<compile_context>
chip_gen: v5e
topology: v5e:2x2
jax: 0.10.0
libtpu: 0.0.40
codegen_flags: <defaults>
</compile_context>

<pallas_src>
import functools
import math

import jax
import jax.numpy as jnp
from jax.experimental import pallas as pl
from jax.experimental.pallas import tpu as pltpu


def _layernorm(x, g, b, eps=1e-5):
    mean = jnp.mean(x, axis=-1, keepdims=True)
    var = jnp.mean((x - mean) ** 2, axis=-1, keepdims=True)
    return (x - mean) * jax.lax.rsqrt(var + eps) * g + b


# ----------------------------------------------------------------------------
# Fused kernel: QKV proj -> raw-view head split -> softmax attention ->
#               output proj -> +residual -> LN -> feed-forward -> +res -> LN
# ----------------------------------------------------------------------------
def fused_block_attention_kernel(
        xq_ref, xk_ref, xv_ref,
        wq_ref, bq_ref, wk_ref, bk_ref, wv_ref, bv_ref,
        wo_ref, bo_ref, g1_ref, b1_ref, wf_ref, bf_ref, g2_ref, b2_ref,
        o_ref,
        q_scr, k_scr, v_scr, vf_scr,
        *, heads, blocksize):
    rows, d_model = xq_ref.shape            # rows = TB * blocksize
    S = blocksize
    TB = rows // S
    scale = 1.0 / math.sqrt(d_model)        # d_k == d_model in this module
    f32 = jnp.float32

    # ---- QKV projections for all TB blocks at once (MXU M = TB*S) ----------
    q_all = jnp.dot(xq_ref[...], wq_ref[...], preferred_element_type=f32) + bq_ref[...]
    k_all = jnp.dot(xk_ref[...], wk_ref[...], preferred_element_type=f32) + bk_ref[...]
    v_all = jnp.dot(xv_ref[...], wv_ref[...], preferred_element_type=f32) + bv_ref[...]

    # ---- per block: raw-view head split + softmax attention (all in VMEM) --
    for b in range(TB):
        r0 = b * S
        # torch: x.view(B, heads, S, d_k) of a contiguous (B, S, heads*d_k)
        # buffer is a scramble:
        #   view[h, s, :] = flat[(h*S+s)//heads, ((h*S+s)%heads)*d_k : +d_k]
        for m in range(heads * S):
            sp, j = divmod(m, heads)        # source (row, d_model-chunk)
            h, s = divmod(m, S)             # destination (head, seq)
            src = (slice(r0 + sp, r0 + sp + 1),
                   slice(j * d_model, (j + 1) * d_model))
            q_scr[h, s:s + 1, :] = q_all[src]
            k_scr[h, s:s + 1, :] = k_all[src]
            v_scr[h, s:s + 1, :] = v_all[src]

        q4 = q_scr[...]
        k4 = k_scr[...]
        v4 = v_scr[...]
        logits = jnp.einsum('hsd,htd->hst', q4, k4,
                            preferred_element_type=f32) * scale
        logits = logits - jnp.max(logits, axis=-1, keepdims=True)
        p = jnp.exp(logits)
        attn = p * pl.reciprocal(jnp.sum(p, axis=-1, keepdims=True), approx=True)
        vals = jnp.einsum('hst,htd->hsd', attn, v4, preferred_element_type=f32)

        # torch: values.reshape(B, S, heads*d_k) -- inverse raw view.
        for m in range(heads * S):
            sp, j = divmod(m, heads)
            h, s = divmod(m, S)
            vf_scr[r0 + sp:r0 + sp + 1,
                   j * d_model:(j + 1) * d_model] = vals[h, s:s + 1, :]

    # ---- output proj + residual + LN + feed-forward + residual + LN --------
    mha = jnp.dot(vf_scr[...], wo_ref[...], preferred_element_type=f32) + bo_ref[...]
    x = mha + xv_ref[...]                   # residual with the value blocks
    x = _layernorm(x, g1_ref[...], b1_ref[...])
    x = jnp.dot(x, wf_ref[...], preferred_element_type=f32) + bf_ref[...] + x
    x = _layernorm(x, g2_ref[...], b2_ref[...])
    o_ref[...] = x


# ----------------------------------------------------------------------------
# Block extraction / recovery (pure slicing + concat, kept in plain JAX)
# ----------------------------------------------------------------------------
def extract_blocks(x, blocksize, blocknum):
    """Overlapping windows (stride blocksize//2), stacked over batch*blocknum."""
    B, L, Dm = x.shape
    if blocknum <= 1:
        return x
    half = blocksize // 2
    idx = (jnp.arange(blocknum) * half)[:, None] + jnp.arange(blocksize)[None, :]
    return x[:, idx, :].reshape(B * blocknum, blocksize, Dm)


def recover_blocks(x, blocksize, blocknum, batch):
    if blocknum <= 1:
        return x
    s = blocksize // 4
    e = blocksize - s
    Dm = x.shape[-1]
    xb = x.reshape(batch, blocknum, blocksize, Dm)
    head = xb[:, 0, :s, :]
    mid = xb[:, :, s:e, :].reshape(batch, blocknum * (e - s), Dm)
    tail = xb[:, -1, e:, :]
    return jnp.concatenate([head, mid, tail], axis=1)


# ----------------------------------------------------------------------------
# Forward pass
# ----------------------------------------------------------------------------
def _pick_block_tile(num_blocks, blocksize, max_rows=1024):
    """Largest TB dividing num_blocks with a legal, VMEM-friendly block."""
    for tb in range(num_blocks, 0, -1):
        if num_blocks % tb:
            continue
        rows = tb * blocksize
        if rows <= max_rows and (rows % 8 == 0 or tb == num_blocks):
            return tb
    return num_blocks      # single grid step is always legal


def attention_block_forward(query, key, value, params, *, blocksize, heads):
    B, L, d_model = query.shape
    blocknum = 2 * L // blocksize - 1          # integer math
    qb = extract_blocks(query, blocksize, blocknum)
    kb = extract_blocks(key, blocksize, blocknum)
    vb = extract_blocks(value, blocksize, blocknum)
    NB, S, _ = qb.shape
    HD = heads * d_model

    # Flatten blocks to lane-dense 2D tiles (free XLA reshapes).
    q2 = qb.reshape(NB * S, d_model)
    k2 = kb.reshape(NB * S, d_model)
    v2 = vb.reshape(NB * S, d_model)

    TB = _pick_block_tile(NB, S)
    rows = TB * S
    grid = (NB // TB,)

    act_spec = pl.BlockSpec((rows, d_model), lambda i: (i, 0))

    def const_spec(shape):
        return pl.BlockSpec(shape, lambda i: (0, 0))

    kernel = functools.partial(fused_block_attention_kernel,
                               heads=heads, blocksize=S)

    out2 = pl.pallas_call(
        kernel,
        out_shape=jax.ShapeDtypeStruct((NB * S, d_model), jnp.float32),
        grid=grid,
        in_specs=[act_spec, act_spec, act_spec,
                  const_spec((d_model, HD)), const_spec((1, HD)),
                  const_spec((d_model, HD)), const_spec((1, HD)),
                  const_spec((d_model, HD)), const_spec((1, HD)),
                  const_spec((HD, d_model)), const_spec((1, d_model)),
                  const_spec((1, d_model)), const_spec((1, d_model)),
                  const_spec((d_model, d_model)), const_spec((1, d_model)),
                  const_spec((1, d_model)), const_spec((1, d_model))],
        out_specs=act_spec,
        scratch_shapes=[pltpu.VMEM((heads, S, d_model), jnp.float32),
                        pltpu.VMEM((heads, S, d_model), jnp.float32),
                        pltpu.VMEM((heads, S, d_model), jnp.float32),
                        pltpu.VMEM((rows, HD), jnp.float32)],
        compiler_params=pltpu.CompilerParams(
            dimension_semantics=("parallel",)),
    )(q2, k2, v2,
      params['wq'], params['bq'], params['wk'], params['bk'],
      params['wv'], params['bv'], params['wo'], params['bo'],
      params['g1'], params['b1'], params['wf'], params['bf'],
      params['g2'], params['b2'])

    out = out2.reshape(NB, S, d_model)
    return recover_blocks(out, blocksize, blocknum, B)


# ----------------------------------------------------------------------------
# Pure-JAX reference (mirrors the PyTorch math exactly) for validation.
# ----------------------------------------------------------------------------
def reference_forward(query, key, value, p, *, blocksize, heads):
    B, L, Dm = query.shape
    blocknum = 2 * L // blocksize - 1
    qb = extract_blocks(query, blocksize, blocknum)
    kb = extract_blocks(key, blocksize, blocknum)
    vb = extract_blocks(value, blocksize, blocknum)
    NB, S, _ = qb.shape
    HD = heads * Dm

    def proj(x, w, b):
        return (x @ w + b).reshape(NB, heads, S, Dm)   # raw view, like torch

    q = proj(qb, p['wq'], p['bq'])
    k = proj(kb, p['wk'], p['bk'])
    v = proj(vb, p['wv'], p['bv'])
    logits = jnp.einsum('bhsd,bhtd->bhst', q, k) / math.sqrt(Dm)
    attn = jax.nn.softmax(logits, axis=-1)
    vals = jnp.einsum('bhst,bhtd->bhsd', attn, v).reshape(NB, S, HD)
    x = vals @ p['wo'] + p['bo']
    x = x + vb
    x = _layernorm(x, p['g1'], p['b1'])
    x = (x @ p['wf'] + p['bf']) + x
    x = _layernorm(x, p['g2'], p['b2'])
    return recover_blocks(x, blocksize, blocknum, B)


# ----------------------------------------------------------------------------
if __name__ == "__main__":
    batch, seq_len = 2, 16
    blocksize, heads, d_model = 8, 2, 128      # blocksize % 4 == 0
    HD = heads * d_model

    root = jax.random.PRNGKey(0)
    ks = jax.random.split(root, 18)

    def w(k, shape, scale=0.05):
        return jax.random.normal(k, shape, dtype=jnp.float32) * scale

    params = {
        'wq': w(ks[0], (d_model, HD)), 'bq': w(ks[1], (1, HD)),
        'wk': w(ks[2], (d_model, HD)), 'bk': w(ks[3], (1, HD)),
        'wv': w(ks[4], (d_model, HD)), 'bv': w(ks[5], (1, HD)),
        'wo': w(ks[6], (HD, d_model)), 'bo': w(ks[7], (1, d_model)),
        'g1': 1.0 + w(ks[8], (1, d_model)), 'b1': w(ks[9], (1, d_model)),
        'wf': w(ks[10], (d_model, d_model)), 'bf': w(ks[11], (1, d_model)),
        'g2': 1.0 + w(ks[12], (1, d_model)), 'b2': w(ks[13], (1, d_model)),
    }

    query = jax.random.normal(ks[14], (batch, seq_len, d_model), jnp.float32)
    key_in = jax.random.normal(ks[15], (batch, seq_len, d_model), jnp.float32)
    value = jax.random.normal(ks[16], (batch, seq_len, d_model), jnp.float32)

    fwd = jax.jit(functools.partial(attention_block_forward,
                                    blocksize=blocksize, heads=heads))
    out = jax.block_until_ready(fwd(query, key_in, value, params))

    ref = jax.block_until_ready(
        reference_forward(query, key_in, value, params,
                          blocksize=blocksize, heads=heads))

    assert out.shape == (batch, seq_len, d_model), out.shape
    max_diff = float(jnp.max(jnp.abs(out - ref)))
    assert jnp.allclose(out, ref, atol=2e-3, rtol=2e-3), f"max diff {max_diff}"

    print("KERNEL_OK")
</pallas_src>

<mosaic_0001>
module attributes {stable_mosaic.version = 11 : i64} {
  func.func @fused_block_attention_kernel(%arg0: i32, %arg1: memref<48x128xf32, #tpu.memory_space<vmem>>, %arg2: memref<48x128xf32, #tpu.memory_space<vmem>>, %arg3: memref<48x128xf32, #tpu.memory_space<vmem>>, %arg4: memref<128x256xf32, #tpu.memory_space<vmem>>, %arg5: memref<1x256xf32, #tpu.memory_space<vmem>>, %arg6: memref<128x256xf32, #tpu.memory_space<vmem>>, %arg7: memref<1x256xf32, #tpu.memory_space<vmem>>, %arg8: memref<128x256xf32, #tpu.memory_space<vmem>>, %arg9: memref<1x256xf32, #tpu.memory_space<vmem>>, %arg10: memref<256x128xf32, #tpu.memory_space<vmem>>, %arg11: memref<1x128xf32, #tpu.memory_space<vmem>>, %arg12: memref<1x128xf32, #tpu.memory_space<vmem>>, %arg13: memref<1x128xf32, #tpu.memory_space<vmem>>, %arg14: memref<128x128xf32, #tpu.memory_space<vmem>>, %arg15: memref<1x128xf32, #tpu.memory_space<vmem>>, %arg16: memref<1x128xf32, #tpu.memory_space<vmem>>, %arg17: memref<1x128xf32, #tpu.memory_space<vmem>>, %arg18: memref<48x128xf32, #tpu.memory_space<vmem>>, %arg19: memref<2x8x128xf32, #tpu.memory_space<vmem>>, %arg20: memref<2x8x128xf32, #tpu.memory_space<vmem>>, %arg21: memref<2x8x128xf32, #tpu.memory_space<vmem>>, %arg22: memref<48x256xf32, #tpu.memory_space<vmem>>) attributes {dimension_semantics = [#tpu.dimension_semantics<parallel>], iteration_bounds = array<i64: 1>, scalar_prefetch = 0 : i64, scratch_operands = 4 : i64, tpu.core_type = #tpu.core_type<tc>, window_params = [{transform_indices = @transform_0, window_bounds = array<i64: 48, 128>}, {transform_indices = @transform_1, window_bounds = array<i64: 48, 128>}, {transform_indices = @transform_2, window_bounds = array<i64: 48, 128>}, {pipeline_mode = #tpu.pipeline_mode<synchronous>, transform_indices = @transform_3, window_bounds = array<i64: 128, 256>}, {pipeline_mode = #tpu.pipeline_mode<synchronous>, transform_indices = @transform_4, window_bounds = array<i64: 1, 256>}, {pipeline_mode = #tpu.pipeline_mode<synchronous>, transform_indices = @transform_5, window_bounds = array<i64: 128, 256>}, {pipeline_mode = #tpu.pipeline_mode<synchronous>, transform_indices = @transform_6, window_bounds = array<i64: 1, 256>}, {pipeline_mode = #tpu.pipeline_mode<synchronous>, transform_indices = @transform_7, window_bounds = array<i64: 128, 256>}, {pipeline_mode = #tpu.pipeline_mode<synchronous>, transform_indices = @transform_8, window_bounds = array<i64: 1, 256>}, {pipeline_mode = #tpu.pipeline_mode<synchronous>, transform_indices = @transform_9, window_bounds = array<i64: 256, 128>}, {pipeline_mode = #tpu.pipeline_mode<synchronous>, transform_indices = @transform_10, window_bounds = array<i64: 1, 128>}, {pipeline_mode = #tpu.pipeline_mode<synchronous>, transform_indices = @transform_11, window_bounds = array<i64: 1, 128>}, {pipeline_mode = #tpu.pipeline_mode<synchronous>, transform_indices = @transform_12, window_bounds = array<i64: 1, 128>}, {pipeline_mode = #tpu.pipeline_mode<synchronous>, transform_indices = @transform_13, window_bounds = array<i64: 128, 128>}, {pipeline_mode = #tpu.pipeline_mode<synchronous>, transform_indices = @transform_14, window_bounds = array<i64: 1, 128>}, {pipeline_mode = #tpu.pipeline_mode<synchronous>, transform_indices = @transform_15, window_bounds = array<i64: 1, 128>}, {pipeline_mode = #tpu.pipeline_mode<synchronous>, transform_indices = @transform_16, window_bounds = array<i64: 1, 128>}, {transform_indices = @transform_17, window_bounds = array<i64: 48, 128>}]} {
    %c0 = arith.constant 0 : index
    %c0_0 = arith.constant 0 : index
    %0 = vector.load %arg1[%c0, %c0_0] : memref<48x128xf32, #tpu.memory_space<vmem>>, vector<48x128xf32>
    %c0_1 = arith.constant 0 : index
    %c0_2 = arith.constant 0 : index
    %1 = vector.load %arg4[%c0_1, %c0_2] : memref<128x256xf32, #tpu.memory_space<vmem>>, vector<128x256xf32>
    %cst = arith.constant dense<0.000000e+00> : vector<48x256xf32>
    %2 = tpu.matmul %0, %1, %cst {dimension_numbers = #tpu.dot_dimension_numbers<[1], [0], [0], [1], [0, 0, 1, 1], [], []>} : vector<48x128xf32>, vector<128x256xf32>, vector<48x256xf32> -> vector<48x256xf32>
    %c0_3 = arith.constant 0 : index
    %c0_4 = arith.constant 0 : index
    %3 = vector.load %arg5[%c0_3, %c0_4] : memref<1x256xf32, #tpu.memory_space<vmem>>, vector<1x256xf32>
    %4 = vector.broadcast %3 : vector<1x256xf32> to vector<48x256xf32>
    %5 = arith.addf %2, %4 : vector<48x256xf32>
    %c0_5 = arith.constant 0 : index
    %c0_6 = arith.constant 0 : index
    %6 = vector.load %arg2[%c0_5, %c0_6] : memref<48x128xf32, #tpu.memory_space<vmem>>, vector<48x128xf32>
    %c0_7 = arith.constant 0 : index
    %c0_8 = arith.constant 0 : index
    %7 = vector.load %arg6[%c0_7, %c0_8] : memref<128x256xf32, #tpu.memory_space<vmem>>, vector<128x256xf32>
    %cst_9 = arith.constant dense<0.000000e+00> : vector<48x256xf32>
    %8 = tpu.matmul %6, %7, %cst_9 {dimension_numbers = #tpu.dot_dimension_numbers<[1], [0], [0], [1], [0, 0, 1, 1], [], []>} : vector<48x128xf32>, vector<128x256xf32>, vector<48x256xf32> -> vector<48x256xf32>
    %c0_10 = arith.constant 0 : index
    %c0_11 = arith.constant 0 : index
    %9 = vector.load %arg7[%c0_10, %c0_11] : memref<1x256xf32, #tpu.memory_space<vmem>>, vector<1x256xf32>
    %10 = vector.broadcast %9 : vector<1x256xf32> to vector<48x256xf32>
    %11 = arith.addf %8, %10 : vector<48x256xf32>
    %c0_12 = arith.constant 0 : index
    %c0_13 = arith.constant 0 : index
    %12 = vector.load %arg3[%c0_12, %c0_13] : memref<48x128xf32, #tpu.memory_space<vmem>>, vector<48x128xf32>
    %c0_14 = arith.constant 0 : index
    %c0_15 = arith.constant 0 : index
    %13 = vector.load %arg8[%c0_14, %c0_15] : memref<128x256xf32, #tpu.memory_space<vmem>>, vector<128x256xf32>
    %cst_16 = arith.constant dense<0.000000e+00> : vector<48x256xf32>
    %14 = tpu.matmul %12, %13, %cst_16 {dimension_numbers = #tpu.dot_dimension_numbers<[1], [0], [0], [1], [0, 0, 1, 1], [], []>} : vector<48x128xf32>, vector<128x256xf32>, vector<48x256xf32> -> vector<48x256xf32>
    %c0_17 = arith.constant 0 : index
    %c0_18 = arith.constant 0 : index
    %15 = vector.load %arg9[%c0_17, %c0_18] : memref<1x256xf32, #tpu.memory_space<vmem>>, vector<1x256xf32>
    %16 = vector.broadcast %15 : vector<1x256xf32> to vector<48x256xf32>
    %17 = arith.addf %14, %16 : vector<48x256xf32>
    %18 = vector.extract_strided_slice %5 {offsets = [0, 0], sizes = [1, 128], strides = [1, 1]} : vector<48x256xf32> to vector<1x128xf32>
    %c0_19 = arith.constant 0 : index
    %c0_20 = arith.constant 0 : index
    %c0_21 = arith.constant 0 : index
    %19 = vector.load %arg19[%c0_19, %c0_20, %c0_21] : memref<2x8x128xf32, #tpu.memory_space<vmem>>, vector<1x1x128xf32>
    %20 = vector.shape_cast %19 : vector<1x1x128xf32> to vector<1x128xf32>
    %21 = vector.shape_cast %18 : vector<1x128xf32> to vector<1x1x128xf32>
    tpu.vector_store %arg19[%c0_19, %c0_20, %c0_21], %21 {strides = array<i32>} : memref<2x8x128xf32, #tpu.memory_space<vmem>>, vector<1x1x128xf32>,
    %22 = vector.extract_strided_slice %11 {offsets = [0, 0], sizes = [1, 128], strides = [1, 1]} : vector<48x256xf32> to vector<1x128xf32>
    %c0_22 = arith.constant 0 : index
    %c0_23 = arith.constant 0 : index
    %c0_24 = arith.constant 0 : index
    %23 = vector.load %arg20[%c0_22, %c0_23, %c0_24] : memref<2x8x128xf32, #tpu.memory_space<vmem>>, vector<1x1x128xf32>
    %24 = vector.shape_cast %23 : vector<1x1x128xf32> to vector<1x128xf32>
    %25 = vector.shape_cast %22 : vector<1x128xf32> to vector<1x1x128xf32>
    tpu.vector_store %arg20[%c0_22, %c0_23, %c0_24], %25 {strides = array<i32>} : memref<2x8x128xf32, #tpu.memory_space<vmem>>, vector<1x1x128xf32>,
    %26 = vector.extract_strided_slice %17 {offsets = [0, 0], sizes = [1, 128], strides = [1, 1]} : vector<48x256xf32> to vector<1x128xf32>
    %c0_25 = arith.constant 0 : index
    %c0_26 = arith.constant 0 : index
    %c0_27 = arith.constant 0 : index
    %27 = vector.load %arg21[%c0_25, %c0_26, %c0_27] : memref<2x8x128xf32, #tpu.memory_space<vmem>>, vector<1x1x128xf32>
    %28 = vector.shape_cast %27 : vector<1x1x128xf32> to vector<1x128xf32>
    %29 = vector.shape_cast %26 : vector<1x128xf32> to vector<1x1x128xf32>
    tpu.vector_store %arg21[%c0_25, %c0_26, %c0_27], %29 {strides = array<i32>} : memref<2x8x128xf32, #tpu.memory_space<vmem>>, vector<1x1x128xf32>,
    %30 = vector.extract_strided_slice %5 {offsets = [0, 128], sizes = [1, 128], strides = [1, 1]} : vector<48x256xf32> to vector<1x128xf32>
    %c0_28 = arith.constant 0 : index
    %c1 = arith.constant 1 : index
    %c0_29 = arith.constant 0 : index
    %31 = vector.load %arg19[%c0_28, %c1, %c0_29] : memref<2x8x128xf32, #tpu.memory_space<vmem>>, vector<1x1x128xf32>
    %32 = vector.shape_cast %31 : vector<1x1x128xf32> to vector<1x128xf32>
    %33 = vector.shape_cast %30 : vector<1x128xf32> to vector<1x1x128xf32>
    tpu.vector_store %arg19[%c0_28, %c1, %c0_29], %33 {strides = array<i32>} : memref<2x8x128xf32, #tpu.memory_space<vmem>>, vector<1x1x128xf32>,
    %34 = vector.extract_strided_slice %11 {offsets = [0, 128], sizes = [1, 128], strides = [1, 1]} : vector<48x256xf32> to vector<1x128xf32>
    %c0_30 = arith.constant 0 : index
    %c1_31 = arith.constant 1 : index
    %c0_32 = arith.constant 0 : index
    %35 = vector.load %arg20[%c0_30, %c1_31, %c0_32] : memref<2x8x128xf32, #tpu.memory_space<vmem>>, vector<1x1x128xf32>
    %36 = vector.shape_cast %35 : vector<1x1x128xf32> to vector<1x128xf32>
    %37 = vector.shape_cast %34 : vector<1x128xf32> to vector<1x1x128xf32>
    tpu.vector_store %arg20[%c0_30, %c1_31, %c0_32], %37 {strides = array<i32>} : memref<2x8x128xf32, #tpu.memory_space<vmem>>, vector<1x1x128xf32>,
    %38 = vector.extract_strided_slice %17 {offsets = [0, 128], sizes = [1, 128], strides = [1, 1]} : vector<48x256xf32> to vector<1x128xf32>
    %c0_33 = arith.constant 0 : index
    %c1_34 = arith.constant 1 : index
    %c0_35 = arith.constant 0 : index
    %39 = vector.load %arg21[%c0_33, %c1_34, %c0_35] : memref<2x8x128xf32, #tpu.memory_space<vmem>>, vector<1x1x128xf32>
    %40 = vector.shape_cast %39 : vector<1x1x128xf32> to vector<1x128xf32>
    %41 = vector.shape_cast %38 : vector<1x128xf32> to vector<1x1x128xf32>
    tpu.vector_store %arg21[%c0_33, %c1_34, %c0_35], %41 {strides = array<i32>} : memref<2x8x128xf32, #tpu.memory_space<vmem>>, vector<1x1x128xf32>,
    %42 = vector.extract_strided_slice %5 {offsets = [1, 0], sizes = [1, 128], strides = [1, 1]} : vector<48x256xf32> to vector<1x128xf32>
    %c0_36 = arith.constant 0 : index
    %c2 = arith.constant 2 : index
    %c0_37 = arith.constant 0 : index
    %43 = vector.load %arg19[%c0_36, %c2, %c0_37] : memref<2x8x128xf32, #tpu.memory_space<vmem>>, vector<1x1x128xf32>
    %44 = vector.shape_cast %43 : vector<1x1x128xf32> to vector<1x128xf32>
    %45 = vector.shape_cast %42 : vector<1x128xf32> to vector<1x1x128xf32>
    tpu.vector_store %arg19[%c0_36, %c2, %c0_37], %45 {strides = array<i32>} : memref<2x8x128xf32, #tpu.memory_space<vmem>>, vector<1x1x128xf32>,
    %46 = vector.extract_strided_slice %11 {offsets = [1, 0], sizes = [1, 128], strides = [1, 1]} : vector<48x256xf32> to vector<1x128xf32>
    %c0_38 = arith.constant 0 : index
    %c2_39 = arith.constant 2 : index
    %c0_40 = arith.constant 0 : index
    %47 = vector.load %arg20[%c0_38, %c2_39, %c0_40] : memref<2x8x128xf32, #tpu.memory_space<vmem>>, vector<1x1x128xf32>
    %48 = vector.shape_cast %47 : vector<1x1x128xf32> to vector<1x128xf32>
    %49 = vector.shape_cast %46 : vector<1x128xf32> to vector<1x1x128xf32>
    tpu.vector_store %arg20[%c0_38, %c2_39, %c0_40], %49 {strides = array<i32>} : memref<2x8x128xf32, #tpu.memory_space<vmem>>, vector<1x1x128xf32>,
    %50 = vector.extract_strided_slice %17 {offsets = [1, 0], sizes = [1, 128], strides = [1, 1]} : vector<48x256xf32> to vector<1x128xf32>
    %c0_41 = arith.constant 0 : index
    %c2_42 = arith.constant 2 : index
    %c0_43 = arith.constant 0 : index
    %51 = vector.load %arg21[%c0_41, %c2_42, %c0_43] : memref<2x8x128xf32, #tpu.memory_space<vmem>>, vector<1x1x128xf32>
    %52 = vector.shape_cast %51 : vector<1x1x128xf32> to vector<1x128xf32>
    %53 = vector.shape_cast %50 : vector<1x128xf32> to vector<1x1x128xf32>
    tpu.vector_store %arg21[%c0_41, %c2_42, %c0_43], %53 {strides = array<i32>} : memref<2x8x128xf32, #tpu.memory_space<vmem>>, vector<1x1x128xf32>,
    %54 = vector.extract_strided_slice %5 {offsets = [1, 128], sizes = [1, 128], strides = [1, 1]} : vector<48x256xf32> to vector<1x128xf32>
    %c0_44 = arith.constant 0 : index
    %c3 = arith.constant 3 : index
    %c0_45 = arith.constant 0 : index
    %55 = vector.load %arg19[%c0_44, %c3, %c0_45] : memref<2x8x128xf32, #tpu.memory_space<vmem>>, vector<1x1x128xf32>
    %56 = vector.shape_cast %55 : vector<1x1x128xf32> to vector<1x128xf32>
    %57 = vector.shape_cast %54 : vector<1x128xf32> to vector<1x1x128xf32>
    tpu.vector_store %arg19[%c0_44, %c3, %c0_45], %57 {strides = array<i32>} : memref<2x8x128xf32, #tpu.memory_space<vmem>>, vector<1x1x128xf32>,
    %58 = vector.extract_strided_slice %11 {offsets = [1, 128], sizes = [1, 128], strides = [1, 1]} : vector<48x256xf32> to vector<1x128xf32>
    %c0_46 = arith.constant 0 : index
    %c3_47 = arith.constant 3 : index
    %c0_48 = arith.constant 0 : index
    %59 = vector.load %arg20[%c0_46, %c3_47, %c0_48] : memref<2x8x128xf32, #tpu.memory_space<vmem>>, vector<1x1x128xf32>
    %60 = vector.shape_cast %59 : vector<1x1x128xf32> to vector<1x128xf32>
    %61 = vector.shape_cast %58 : vector<1x128xf32> to vector<1x1x128xf32>
    tpu.vector_store %arg20[%c0_46, %c3_47, %c0_48], %61 {strides = array<i32>} : memref<2x8x128xf32, #tpu.memory_space<vmem>>, vector<1x1x128xf32>,
    %62 = vector.extract_strided_slice %17 {offsets = [1, 128], sizes = [1, 128], strides = [1, 1]} : vector<48x256xf32> to vector<1x128xf32>
    %c0_49 = arith.constant 0 : index
    %c3_50 = arith.constant 3 : index
    %c0_51 = arith.constant 0 : index
    %63 = vector.load %arg21[%c0_49, %c3_50, %c0_51] : memref<2x8x128xf32, #tpu.memory_space<vmem>>, vector<1x1x128xf32>
    %64 = vector.shape_cast %63 : vector<1x1x128xf32> to vector<1x128xf32>
    %65 = vector.shape_cast %62 : vector<1x128xf32> to vector<1x1x128xf32>
    tpu.vector_store %arg21[%c0_49, %c3_50, %c0_51], %65 {strides = array<i32>} : memref<2x8x128xf32, #tpu.memory_space<vmem>>, vector<1x1x128xf32>,
    %66 = vector.extract_strided_slice %5 {offsets = [2, 0], sizes = [1, 128], strides = [1, 1]} : vector<48x256xf32> to vector<1x128xf32>
    %c0_52 = arith.constant 0 : index
    %c4 = arith.constant 4 : index
    %c0_53 = arith.constant 0 : index
    %67 = vector.load %arg19[%c0_52, %c4, %c0_53] : memref<2x8x128xf32, #tpu.memory_space<vmem>>, vector<1x1x128xf32>
    %68 = vector.shape_cast %67 : vector<1x1x128xf32> to vector<1x128xf32>
    %69 = vector.shape_cast %66 : vector<1x128xf32> to vector<1x1x128xf32>
    tpu.vector_store %arg19[%c0_52, %c4, %c0_53], %69 {strides = array<i32>} : memref<2x8x128xf32, #tpu.memory_space<vmem>>, vector<1x1x128xf32>,
    %70 = vector.extract_strided_slice %11 {offsets = [2, 0], sizes = [1, 128], strides = [1, 1]} : vector<48x256xf32> to vector<1x128xf32>
    %c0_54 = arith.constant 0 : index
    %c4_55 = arith.constant 4 : index
    %c0_56 = arith.constant 0 : index
    %71 = vector.load %arg20[%c0_54, %c4_55, %c0_56] : memref<2x8x128xf32, #tpu.memory_space<vmem>>, vector<1x1x128xf32>
    %72 = vector.shape_cast %71 : vector<1x1x128xf32> to vector<1x128xf32>
    %73 = vector.shape_cast %70 : vector<1x128xf32> to vector<1x1x128xf32>
    tpu.vector_store %arg20[%c0_54, %c4_55, %c0_56], %73 {strides = array<i32>} : memref<2x8x128xf32, #tpu.memory_space<vmem>>, vector<1x1x128xf32>,
    %74 = vector.extract_strided_slice %17 {offsets = [2, 0], sizes = [1, 128], strides = [1, 1]} : vector<48x256xf32> to vector<1x128xf32>
    %c0_57 = arith.constant 0 : index
    %c4_58 = arith.constant 4 : index
    %c0_59 = arith.constant 0 : index
    %75 = vector.load %arg21[%c0_57, %c4_58, %c0_59] : memref<2x8x128xf32, #tpu.memory_space<vmem>>, vector<1x1x128xf32>
    %76 = vector.shape_cast %75 : vector<1x1x128xf32> to vector<1x128xf32>
    %77 = vector.shape_cast %74 : vector<1x128xf32> to vector<1x1x128xf32>
    tpu.vector_store %arg21[%c0_57, %c4_58, %c0_59], %77 {strides = array<i32>} : memref<2x8x128xf32, #tpu.memory_space<vmem>>, vector<1x1x128xf32>,
    %78 = vector.extract_strided_slice %5 {offsets = [2, 128], sizes = [1, 128], strides = [1, 1]} : vector<48x256xf32> to vector<1x128xf32>
    %c0_60 = arith.constant 0 : index
    %c5 = arith.constant 5 : index
    %c0_61 = arith.constant 0 : index
    %79 = vector.load %arg19[%c0_60, %c5, %c0_61] : memref<2x8x128xf32, #tpu.memory_space<vmem>>, vector<1x1x128xf32>
    %80 = vector.shape_cast %79 : vector<1x1x128xf32> to vector<1x128xf32>
    %81 = vector.shape_cast %78 : vector<1x128xf32> to vector<1x1x128xf32>
    tpu.vector_store %arg19[%c0_60, %c5, %c0_61], %81 {strides = array<i32>} : memref<2x8x128xf32, #tpu.memory_space<vmem>>, vector<1x1x128xf32>,
    %82 = vector.extract_strided_slice %11 {offsets = [2, 128], sizes = [1, 128], strides = [1, 1]} : vector<48x256xf32> to vector<1x128xf32>
    %c0_62 = arith.constant 0 : index
    %c5_63 = arith.constant 5 : index
    %c0_64 = arith.constant 0 : index
    %83 = vector.load %arg20[%c0_62, %c5_63, %c0_64] : memref<2x8x128xf32, #tpu.memory_space<vmem>>, vector<1x1x128xf32>
    %84 = vector.shape_cast %83 : vector<1x1x128xf32> to vector<1x128xf32>
    %85 = vector.shape_cast %82 : vector<1x128xf32> to vector<1x1x128xf32>
    tpu.vector_store %arg20[%c0_62, %c5_63, %c0_64], %85 {strides = array<i32>} : memref<2x8x128xf32, #tpu.memory_space<vmem>>, vector<1x1x128xf32>,
    %86 = vector.extract_strided_slice %17 {offsets = [2, 128], sizes = [1, 128], strides = [1, 1]} : vector<48x256xf32> to vector<1x128xf32>
    %c0_65 = arith.constant 0 : index
    %c5_66 = arith.constant 5 : index
    %c0_67 = arith.constant 0 : index
    %87 = vector.load %arg21[%c0_65, %c5_66, %c0_67] : memref<2x8x128xf32, #tpu.memory_space<vmem>>, vector<1x1x128xf32>
    %88 = vector.shape_cast %87 : vector<1x1x128xf32> to vector<1x128xf32>
    %89 = vector.shape_cast %86 : vector<1x128xf32> to vector<1x1x128xf32>
    tpu.vector_store %arg21[%c0_65, %c5_66, %c0_67], %89 {strides = array<i32>} : memref<2x8x128xf32, #tpu.memory_space<vmem>>, vector<1x1x128xf32>,
    %90 = vector.extract_strided_slice %5 {offsets = [3, 0], sizes = [1, 128], strides = [1, 1]} : vector<48x256xf32> to vector<1x128xf32>
    %c0_68 = arith.constant 0 : index
    %c6 = arith.constant 6 : index
    %c0_69 = arith.constant 0 : index
    %91 = vector.load %arg19[%c0_68, %c6, %c0_69] : memref<2x8x128xf32, #tpu.memory_space<vmem>>, vector<1x1x128xf32>
    %92 = vector.shape_cast %91 : vector<1x1x128xf32> to vector<1x128xf32>
    %93 = vector.shape_cast %90 : vector<1x128xf32> to vector<1x1x128xf32>
    tpu.vector_store %arg19[%c0_68, %c6, %c0_69], %93 {strides = array<i32>} : memref<2x8x128xf32, #tpu.memory_space<vmem>>, vector<1x1x128xf32>,
    %94 = vector.extract_strided_slice %11 {offsets = [3, 0], sizes = [1, 128], strides = [1, 1]} : vector<48x256xf32> to vector<1x128xf32>
    %c0_70 = arith.constant 0 : index
    %c6_71 = arith.constant 6 : index
    %c0_72 = arith.constant 0 : index
    %95 = vector.load %arg20[%c0_70, %c6_71, %c0_72] : memref<2x8x128xf32, #tpu.memory_space<vmem>>, vector<1x1x128xf32>
    %96 = vector.shape_cast %95 : vector<1x1x128xf32> to vector<1x128xf32>
    %97 = vector.shape_cast %94 : vector<1x128xf32> to vector<1x1x128xf32>
    tpu.vector_store %arg20[%c0_70, %c6_71, %c0_72], %97 {strides = array<i32>} : memref<2x8x128xf32, #tpu.memory_space<vmem>>, vector<1x1x128xf32>,
    %98 = vector.extract_strided_slice %17 {offsets = [3, 0], sizes = [1, 128], strides = [1, 1]} : vector<48x256xf32> to vector<1x128xf32>
    %c0_73 = arith.constant 0 : index
    %c6_74 = arith.constant 6 : index
    %c0_75 = arith.constant 0 : index
    %99 = vector.load %arg21[%c0_73, %c6_74, %c0_75] : memref<2x8x128xf32, #tpu.memory_space<vmem>>, vector<1x1x128xf32>
    %100 = vector.shape_cast %99 : vector<1x1x128xf32> to vector<1x128xf32>
    %101 = vector.shape_cast %98 : vector<1x128xf32> to vector<1x1x128xf32>
    tpu.vector_store %arg21[%c0_73, %c6_74, %c0_75], %101 {strides = array<i32>} : memref<2x8x128xf32, #tpu.memory_space<vmem>>, vector<1x1x128xf32>,
    %102 = vector.extract_strided_slice %5 {offsets = [3, 128], sizes = [1, 128], strides = [1, 1]} : vector<48x256xf32> to vector<1x128xf32>
    %c0_76 = arith.constant 0 : index
    %c7 = arith.constant 7 : index
    %c0_77 = arith.constant 0 : index
    %103 = vector.load %arg19[%c0_76, %c7, %c0_77] : memref<2x8x128xf32, #tpu.memory_space<vmem>>, vector<1x1x128xf32>
    %104 = vector.shape_cast %103 : vector<1x1x128xf32> to vector<1x128xf32>
    %105 = vector.shape_cast %102 : vector<1x128xf32> to vector<1x1x128xf32>
    tpu.vector_store %arg19[%c0_76, %c7, %c0_77], %105 {strides = array<i32>} : memref<2x8x128xf32, #tpu.memory_space<vmem>>, vector<1x1x128xf32>,
    %106 = vector.extract_strided_slice %11 {offsets = [3, 128], sizes = [1, 128], strides = [1, 1]} : vector<48x256xf32> to vector<1x128xf32>
    %c0_78 = arith.constant 0 : index
    %c7_79 = arith.constant 7 : index
    %c0_80 = arith.constant 0 : index
    %107 = vector.load %arg20[%c0_78, %c7_79, %c0_80] : memref<2x8x128xf32, #tpu.memory_space<vmem>>, vector<1x1x128xf32>
    %108 = vector.shape_cast %107 : vector<1x1x128xf32> to vector<1x128xf32>
    %109 = vector.shape_cast %106 : vector<1x128xf32> to vector<1x1x128xf32>
    tpu.vector_store %arg20[%c0_78, %c7_79, %c0_80], %109 {strides = array<i32>} : memref<2x8x128xf32, #tpu.memory_space<vmem>>, vector<1x1x128xf32>,
    %110 = vector.extract_strided_slice %17 {offsets = [3, 128], sizes = [1, 128], strides = [1, 1]} : vector<48x256xf32> to vector<1x128xf32>
    %c0_81 = arith.constant 0 : index
    %c7_82 = arith.constant 7 : index
    %c0_83 = arith.constant 0 : index
    %111 = vector.load %arg21[%c0_81, %c7_82, %c0_83] : memref<2x8x128xf32, #tpu.memory_space<vmem>>, vector<1x1x128xf32>
    %112 = vector.shape_cast %111 : vector<1x1x128xf32> to vector<1x128xf32>
    %113 = vector.shape_cast %110 : vector<1x128xf32> to vector<1x1x128xf32>
    tpu.vector_store %arg21[%c0_81, %c7_82, %c0_83], %113 {strides = array<i32>} : memref<2x8x128xf32, #tpu.memory_space<vmem>>, vector<1x1x128xf32>,
    %114 = vector.extract_strided_slice %5 {offsets = [4, 0], sizes = [1, 128], strides = [1, 1]} : vector<48x256xf32> to vector<1x128xf32>
    %c1_84 = arith.constant 1 : index
    %c0_85 = arith.constant 0 : index
    %c0_86 = arith.constant 0 : index
    %115 = vector.load %arg19[%c1_84, %c0_85, %c0_86] : memref<2x8x128xf32, #tpu.memory_space<vmem>>, vector<1x1x128xf32>
    %116 = vector.shape_cast %115 : vector<1x1x128xf32> to vector<1x128xf32>
    %117 = vector.shape_cast %114 : vector<1x128xf32> to vector<1x1x128xf32>
    tpu.vector_store %arg19[%c1_84, %c0_85, %c0_86], %117 {strides = array<i32>} : memref<2x8x128xf32, #tpu.memory_space<vmem>>, vector<1x1x128xf32>,
    %118 = vector.extract_strided_slice %11 {offsets = [4, 0], sizes = [1, 128], strides = [1, 1]} : vector<48x256xf32> to vector<1x128xf32>
    %c1_87 = arith.constant 1 : index
    %c0_88 = arith.constant 0 : index
    %c0_89 = arith.constant 0 : index
    %119 = vector.load %arg20[%c1_87, %c0_88, %c0_89] : memref<2x8x128xf32, #tpu.memory_space<vmem>>, vector<1x1x128xf32>
    %120 = vector.shape_cast %119 : vector<1x1x128xf32> to vector<1x128xf32>
    %121 = vector.shape_cast %118 : vector<1x128xf32> to vector<1x1x128xf32>
    tpu.vector_store %arg20[%c1_87, %c0_88, %c0_89], %121 {strides = array<i32>} : memref<2x8x128xf32, #tpu.memory_space<vmem>>, vector<1x1x128xf32>,
    %122 = vector.extract_strided_slice %17 {offsets = [4, 0], sizes = [1, 128], strides = [1, 1]} : vector<48x256xf32> to vector<1x128xf32>
    %c1_90 = arith.constant 1 : index
    %c0_91 = arith.constant 0 : index
    %c0_92 = arith.constant 0 : index
    %123 = vector.load %arg21[%c1_90, %c0_91, %c0_92] : memref<2x8x128xf32, #tpu.memory_space<vmem>>, vector<1x1x128xf32>
    %124 = vector.shape_cast %123 : vector<1x1x128xf32> to vector<1x128xf32>
    %125 = vector.shape_cast %122 : vector<1x128xf32> to vector<1x1x128xf32>
    tpu.vector_store %arg21[%c1_90, %c0_91, %c0_92], %125 {strides = array<i32>} : memref<2x8x128xf32, #tpu.memory_space<vmem>>, vector<1x1x128xf32>,
    %126 = vector.extract_strided_slice %5 {offsets = [4, 128], sizes = [1, 128], strides = [1, 1]} : vector<48x256xf32> to vector<1x128xf32>
    %c1_93 = arith.constant 1 : index
    %c1_94 = arith.constant 1 : index
    %c0_95 = arith.constant 0 : index
    %127 = vector.load %arg19[%c1_93, %c1_94, %c0_95] : memref<2x8x128xf32, #tpu.memory_space<vmem>>, vector<1x1x128xf32>
    %128 = vector.shape_cast %127 : vector<1x1x128xf32> to vector<1x128xf32>
    %129 = vector.shape_cast %126 : vector<1x128xf32> to vector<1x1x128xf32>
    tpu.vector_store %arg19[%c1_93, %c1_94, %c0_95], %129 {strides = array<i32>} : memref<2x8x128xf32, #tpu.memory_space<vmem>>, vector<1x1x128xf32>,
    %130 = vector.extract_strided_slice %11 {offsets = [4, 128], sizes = [1, 128], strides = [1, 1]} : vector<48x256xf32> to vector<1x128xf32>
    %c1_96 = arith.constant 1 : index
    %c1_97 = arith.constant 1 : index
    %c0_98 = arith.constant 0 : index
    %131 = vector.load %arg20[%c1_96, %c1_97, %c0_98] : memref<2x8x128xf32, #tpu.memory_space<vmem>>, vector<1x1x128xf32>
    %132 = vector.shape_cast %131 : vector<1x1x128xf32> to vector<1x128xf32>
    %133 = vector.shape_cast %130 : vector<1x128xf32> to vector<1x1x128xf32>
    tpu.vector_store %arg20[%c1_96, %c1_97, %c0_98], %133 {strides = array<i32>} : memref<2x8x128xf32, #tpu.memory_space<vmem>>, vector<1x1x128xf32>,
    %134 = vector.extract_strided_slice %17 {offsets = [4, 128], sizes = [1, 128], strides = [1, 1]} : vector<48x256xf32> to vector<1x128xf32>
    %c1_99 = arith.constant 1 : index
    %c1_100 = arith.constant 1 : index
    %c0_101 = arith.constant 0 : index
    %135 = vector.load %arg21[%c1_99, %c1_100, %c0_101] : memref<2x8x128xf32, #tpu.memory_space<vmem>>, vector<1x1x128xf32>
    %136 = vector.shape_cast %135 : vector<1x1x128xf32> to vector<1x128xf32>
    %137 = vector.shape_cast %134 : vector<1x128xf32> to vector<1x1x128xf32>
    tpu.vector_store %arg21[%c1_99, %c1_100, %c0_101], %137 {strides = array<i32>} : memref<2x8x128xf32, #tpu.memory_space<vmem>>, vector<1x1x128xf32>,
    %138 = vector.extract_strided_slice %5 {offsets = [5, 0], sizes = [1, 128], strides = [1, 1]} : vector<48x256xf32> to vector<1x128xf32>
    %c1_102 = arith.constant 1 : index
    %c2_103 = arith.constant 2 : index
    %c0_104 = arith.constant 0 : index
    %139 = vector.load %arg19[%c1_102, %c2_103, %c0_104] : memref<2x8x128xf32, #tpu.memory_space<vmem>>, vector<1x1x128xf32>
    %140 = vector.shape_cast %139 : vector<1x1x128xf32> to vector<1x128xf32>
    %141 = vector.shape_cast %138 : vector<1x128xf32> to vector<1x1x128xf32>
    tpu.vector_store %arg19[%c1_102, %c2_103, %c0_104], %141 {strides = array<i32>} : memref<2x8x128xf32, #tpu.memory_space<vmem>>, vector<1x1x128xf32>,
    %142 = vector.extract_strided_slice %11 {offsets = [5, 0], sizes = [1, 128], strides = [1, 1]} : vector<48x256xf32> to vector<1x128xf32>
    %c1_105 = arith.constant 1 : index
    %c2_106 = arith.constant 2 : index
    %c0_107 = arith.constant 0 : index
    %143 = vector.load %arg20[%c1_105, %c2_106, %c0_107] : memref<2x8x128xf32, #tpu.memory_space<vmem>>, vector<1x1x128xf32>
    %144 = vector.shape_cast %143 : vector<1x1x128xf32> to vector<1x128xf32>
    %145 = vector.shape_cast %142 : vector<1x128xf32> to vector<1x1x128xf32>
    tpu.vector_store %arg20[%c1_105, %c2_106, %c0_107], %145 {strides = array<i32>} : memref<2x8x128xf32, #tpu.memory_space<vmem>>, vector<1x1x128xf32>,
    %146 = vector.extract_strided_slice %17 {offsets = [5, 0], sizes = [1, 128], strides = [1, 1]} : vector<48x256xf32> to vector<1x128xf32>
    %c1_108 = arith.constant 1 : index
    %c2_109 = arith.constant 2 : index
    %c0_110 = arith.constant 0 : index
    %147 = vector.load %arg21[%c1_108, %c2_109, %c0_110] : memref<2x8x128xf32, #tpu.memory_space<vmem>>, vector<1x1x128xf32>
    %148 = vector.shape_cast %147 : vector<1x1x128xf32> to vector<1x128xf32>
    %149 = vector.shape_cast %146 : vector<1x128xf32> to vector<1x1x128xf32>
    tpu.vector_store %arg21[%c1_108, %c2_109, %c0_110], %149 {strides = array<i32>} : memref<2x8x128xf32, #tpu.memory_space<vmem>>, vector<1x1x128xf32>,
    %150 = vector.extract_strided_slice %5 {offsets = [5, 128], sizes = [1, 128], strides = [1, 1]} : vector<48x256xf32> to vector<1x128xf32>
    %c1_111 = arith.constant 1 : index
    %c3_112 = arith.constant 3 : index
    %c0_113 = arith.constant 0 : index
    %151 = vector.load %arg19[%c1_111, %c3_112, %c0_113] : memref<2x8x128xf32, #tpu.memory_space<vmem>>, vector<1x1x128xf32>
    %152 = vector.shape_cast %151 : vector<1x1x128xf32> to vector<1x128xf32>
    %153 = vector.shape_cast %150 : vector<1x128xf32> to vector<1x1x128xf32>
    tpu.vector_store %arg19[%c1_111, %c3_112, %c0_113], %153 {strides = array<i32>} : memref<2x8x128xf32, #tpu.memory_space<vmem>>, vector<1x1x128xf32>,
    %154 = vector.extract_strided_slice %11 {offsets = [5, 128], sizes = [1, 128], strides = [1, 1]} : vector<48x256xf32> to vector<1x128xf32>
    %c1_114 = arith.constant 1 : index
    %c3_115 = arith.constant 3 : index
    %c0_116 = arith.constant 0 : index
    %155 = vector.load %arg20[%c1_114, %c3_115, %c0_116] : memref<2x8x128xf32, #tpu.memory_space<vmem>>, vector<1x1x128xf32>
    %156 = vector.shape_cast %155 : vector<1x1x128xf32> to vector<1x128xf32>
    %157 = vector.shape_cast %154 : vector<1x128xf32> to vector<1x1x128xf32>
    tpu.vector_store %arg20[%c1_114, %c3_115, %c0_116], %157 {strides = array<i32>} : memref<2x8x128xf32, #tpu.memory_space<vmem>>, vector<1x1x128xf32>,
    %158 = vector.extract_strided_slice %17 {offsets = [5, 128], sizes = [1, 128], strides = [1, 1]} : vector<48x256xf32> to vector<1x128xf32>
    %c1_117 = arith.constant 1 : index
    %c3_118 = arith.constant 3 : index
    %c0_119 = arith.constant 0 : index
    %159 = vector.load %arg21[%c1_117, %c3_118, %c0_119] : memref<2x8x128xf32, #tpu.memory_space<vmem>>, vector<1x1x128xf32>
    %160 = vector.shape_cast %159 : vector<1x1x128xf32> to vector<1x128xf32>
    %161 = vector.shape_cast %158 : vector<1x128xf32> to vector<1x1x128xf32>
    tpu.vector_store %arg21[%c1_117, %c3_118, %c0_119], %161 {strides = array<i32>} : memref<2x8x128xf32, #tpu.memory_space<vmem>>, vector<1x1x128xf32>,
    %162 = vector.extract_strided_slice %5 {offsets = [6, 0], sizes = [1, 128], strides = [1, 1]} : vector<48x256xf32> to vector<1x128xf32>
    %c1_120 = arith.constant 1 : index
    %c4_121 = arith.constant 4 : index
    %c0_122 = arith.constant 0 : index
    %163 = vector.load %arg19[%c1_120, %c4_121, %c0_122] : memref<2x8x128xf32, #tpu.memory_space<vmem>>, vector<1x1x128xf32>
    %164 = vector.shape_cast %163 : vector<1x1x128xf32> to vector<1x128xf32>
    %165 = vector.shape_cast %162 : vector<1x128xf32> to vector<1x1x128xf32>
    tpu.vector_store %arg19[%c1_120, %c4_121, %c0_122], %165 {strides = array<i32>} : memref<2x8x128xf32, #tpu.memory_space<vmem>>, vector<1x1x128xf32>,
    %166 = vector.extract_strided_slice %11 {offsets = [6, 0], sizes = [1, 128], strides = [1, 1]} : vector<48x256xf32> to vector<1x128xf32>
    %c1_123 = arith.constant 1 : index
    %c4_124 = arith.constant 4 : index
    %c0_125 = arith.constant 0 : index
    %167 = vector.load %arg20[%c1_123, %c4_124, %c0_125] : memref<2x8x128xf32, #tpu.memory_space<vmem>>, vector<1x1x128xf32>
    %168 = vector.shape_cast %167 : vector<1x1x128xf32> to vector<1x128xf32>
    %169 = vector.shape_cast %166 : vector<1x128xf32> to vector<1x1x128xf32>
    tpu.vector_store %arg20[%c1_123, %c4_124, %c0_125], %169 {strides = array<i32>} : memref<2x8x128xf32, #tpu.memory_space<vmem>>, vector<1x1x128xf32>,
    %170 = vector.extract_strided_slice %17 {offsets = [6, 0], sizes = [1, 128], strides = [1, 1]} : vector<48x256xf32> to vector<1x128xf32>
    %c1_126 = arith.constant 1 : index
    %c4_127 = arith.constant 4 : index
    %c0_128 = arith.constant 0 : index
    %171 = vector.load %arg21[%c1_126, %c4_127, %c0_128] : memref<2x8x128xf32, #tpu.memory_space<vmem>>, vector<1x1x128xf32>
    %172 = vector.shape_cast %171 : vector<1x1x128xf32> to vector<1x128xf32>
    %173 = vector.shape_cast %170 : vector<1x128xf32> to vector<1x1x128xf32>
    tpu.vector_store %arg21[%c1_126, %c4_127, %c0_128], %173 {strides = array<i32>} : memref<2x8x128xf32, #tpu.memory_space<vmem>>, vector<1x1x128xf32>,
    %174 = vector.extract_strided_slice %5 {offsets = [6, 128], sizes = [1, 128], strides = [1, 1]} : vector<48x256xf32> to vector<1x128xf32>
    %c1_129 = arith.constant 1 : index
    %c5_130 = arith.constant 5 : index
    %c0_131 = arith.constant 0 : index
    %175 = vector.load %arg19[%c1_129, %c5_130, %c0_131] : memref<2x8x128xf32, #tpu.memory_space<vmem>>, vector<1x1x128xf32>
    %176 = vector.shape_cast %175 : vector<1x1x128xf32> to vector<1x128xf32>
    %177 = vector.shape_cast %174 : vector<1x128xf32> to vector<1x1x128xf32>
    tpu.vector_store %arg19[%c1_129, %c5_130, %c0_131], %177 {strides = array<i32>} : memref<2x8x128xf32, #tpu.memory_space<vmem>>, vector<1x1x128xf32>,
    %178 = vector.extract_strided_slice %11 {offsets = [6, 128], sizes = [1, 128], strides = [1, 1]} : vector<48x256xf32> to vector<1x128xf32>
    %c1_132 = arith.constant 1 : index
    %c5_133 = arith.constant 5 : index
    %c0_134 = arith.constant 0 : index
    %179 = vector.load %arg20[%c1_132, %c5_133, %c0_134] : memref<2x8x128xf32, #tpu.memory_space<vmem>>, vector<1x1x128xf32>
    %180 = vector.shape_cast %179 : vector<1x1x128xf32> to vector<1x128xf32>
    %181 = vector.shape_cast %178 : vector<1x128xf32> to vector<1x1x128xf32>
    tpu.vector_store %arg20[%c1_132, %c5_133, %c0_134], %181 {strides = array<i32>} : memref<2x8x128xf32, #tpu.memory_space<vmem>>, vector<1x1x128xf32>,
    %182 = vector.extract_strided_slice %17 {offsets = [6, 128], sizes = [1, 128], strides = [1, 1]} : vector<48x256xf32> to vector<1x128xf32>
    %c1_135 = arith.constant 1 : index
    %c5_136 = arith.constant 5 : index
    %c0_137 = arith.constant 0 : index
    %183 = vector.load %arg21[%c1_135, %c5_136, %c0_137] : memref<2x8x128xf32, #tpu.memory_space<vmem>>, vector<1x1x128xf32>
    %184 = vector.shape_cast %183 : vector<1x1x128xf32> to vector<1x128xf32>
    %185 = vector.shape_cast %182 : vector<1x128xf32> to vector<1x1x128xf32>
    tpu.vector_store %arg21[%c1_135, %c5_136, %c0_137], %185 {strides = array<i32>} : memref<2x8x128xf32, #tpu.memory_space<vmem>>, vector<1x1x128xf32>,
    %186 = vector.extract_strided_slice %5 {offsets = [7, 0], sizes = [1, 128], strides = [1, 1]} : vector<48x256xf32> to vector<1x128xf32>
    %c1_138 = arith.constant 1 : index
    %c6_139 = arith.constant 6 : index
    %c0_140 = arith.constant 0 : index
    %187 = vector.load %arg19[%c1_138, %c6_139, %c0_140] : memref<2x8x128xf32, #tpu.memory_space<vmem>>, vector<1x1x128xf32>
    %188 = vector.shape_cast %187 : vector<1x1x128xf32> to vector<1x128xf32>
    %189 = vector.shape_cast %186 : vector<1x128xf32> to vector<1x1x128xf32>
    tpu.vector_store %arg19[%c1_138, %c6_139, %c0_140], %189 {strides = array<i32>} : memref<2x8x128xf32, #tpu.memory_space<vmem>>, vector<1x1x128xf32>,
    %190 = vector.extract_strided_slice %11 {offsets = [7, 0], sizes = [1, 128], strides = [1, 1]} : vector<48x256xf32> to vector<1x128xf32>
    %c1_141 = arith.constant 1 : index
    %c6_142 = arith.constant 6 : index
    %c0_143 = arith.constant 0 : index
    %191 = vector.load %arg20[%c1_141, %c6_142, %c0_143] : memref<2x8x128xf32, #tpu.memory_space<vmem>>, vector<1x1x128xf32>
    %192 = vector.shape_cast %191 : vector<1x1x128xf32> to vector<1x128xf32>
    %193 = vector.shape_cast %190 : vector<1x128xf32> to vector<1x1x128xf32>
    tpu.vector_store %arg20[%c1_141, %c6_142, %c0_143], %193 {strides = array<i32>} : memref<2x8x128xf32, #tpu.memory_space<vmem>>, vector<1x1x128xf32>,
    %194 = vector.extract_strided_slice %17 {offsets = [7, 0], sizes = [1, 128], strides = [1, 1]} : vector<48x256xf32> to vector<1x128xf32>
    %c1_144 = arith.constant 1 : index
    %c6_145 = arith.constant 6 : index
    %c0_146 = arith.constant 0 : index
    %195 = vector.load %arg21[%c1_144, %c6_145, %c0_146] : memref<2x8x128xf32, #tpu.memory_space<vmem>>, vector<1x1x128xf32>
    %196 = vector.shape_cast %195 : vector<1x1x128xf32> to vector<1x128xf32>
    %197 = vector.shape_cast %194 : vector<1x128xf32> to vector<1x1x128xf32>
    tpu.vector_store %arg21[%c1_144, %c6_145, %c0_146], %197 {strides = array<i32>} : memref<2x8x128xf32, #tpu.memory_space<vmem>>, vector<1x1x128xf32>,
    %198 = vector.extract_strided_slice %5 {offsets = [7, 128], sizes = [1, 128], strides = [1, 1]} : vector<48x256xf32> to vector<1x128xf32>
    %c1_147 = arith.constant 1 : index
    %c7_148 = arith.constant 7 : index
    %c0_149 = arith.constant 0 : index
    %199 = vector.load %arg19[%c1_147, %c7_148, %c0_149] : memref<2x8x128xf32, #tpu.memory_space<vmem>>, vector<1x1x128xf32>
    %200 = vector.shape_cast %199 : vector<1x1x128xf32> to vector<1x128xf32>
    %201 = vector.shape_cast %198 : vector<1x128xf32> to vector<1x1x128xf32>
    tpu.vector_store %arg19[%c1_147, %c7_148, %c0_149], %201 {strides = array<i32>} : memref<2x8x128xf32, #tpu.memory_space<vmem>>, vector<1x1x128xf32>,
    %202 = vector.extract_strided_slice %11 {offsets = [7, 128], sizes = [1, 128], strides = [1, 1]} : vector<48x256xf32> to vector<1x128xf32>
    %c1_150 = arith.constant 1 : index
    %c7_151 = arith.constant 7 : index
    %c0_152 = arith.constant 0 : index
    %203 = vector.load %arg20[%c1_150, %c7_151, %c0_152] : memref<2x8x128xf32, #tpu.memory_space<vmem>>, vector<1x1x128xf32>
    %204 = vector.shape_cast %203 : vector<1x1x128xf32> to vector<1x128xf32>
    %205 = vector.shape_cast %202 : vector<1x128xf32> to vector<1x1x128xf32>
    tpu.vector_store %arg20[%c1_150, %c7_151, %c0_152], %205 {strides = array<i32>} : memref<2x8x128xf32, #tpu.memory_space<vmem>>, vector<1x1x128xf32>,
    %206 = vector.extract_strided_slice %17 {offsets = [7, 128], sizes = [1, 128], strides = [1, 1]} : vector<48x256xf32> to vector<1x128xf32>
    %c1_153 = arith.constant 1 : index
    %c7_154 = arith.constant 7 : index
    %c0_155 = arith.constant 0 : index
    %207 = vector.load %arg21[%c1_153, %c7_154, %c0_155] : memref<2x8x128xf32, #tpu.memory_space<vmem>>, vector<1x1x128xf32>
    %208 = vector.shape_cast %207 : vector<1x1x128xf32> to vector<1x128xf32>
    %209 = vector.shape_cast %206 : vector<1x128xf32> to vector<1x1x128xf32>
    tpu.vector_store %arg21[%c1_153, %c7_154, %c0_155], %209 {strides = array<i32>} : memref<2x8x128xf32, #tpu.memory_space<vmem>>, vector<1x1x128xf32>,
    %c0_156 = arith.constant 0 : index
    %c0_157 = arith.constant 0 : index
    %c0_158 = arith.constant 0 : index
    %210 = vector.load %arg19[%c0_156, %c0_157, %c0_158] : memref<2x8x128xf32, #tpu.memory_space<vmem>>, vector<2x8x128xf32>
    %c0_159 = arith.constant 0 : index
    %c0_160 = arith.constant 0 : index
    %c0_161 = arith.constant 0 : index
    %211 = vector.load %arg20[%c0_159, %c0_160, %c0_161] : memref<2x8x128xf32, #tpu.memory_space<vmem>>, vector<2x8x128xf32>
    %c0_162 = arith.constant 0 : index
    %c0_163 = arith.constant 0 : index
    %c0_164 = arith.constant 0 : index
    %212 = vector.load %arg21[%c0_162, %c0_163, %c0_164] : memref<2x8x128xf32, #tpu.memory_space<vmem>>, vector<2x8x128xf32>
    "tpu.trace_start"() <{level = 10 : i32, message = "hsd,htd->hst"}> : () -> ()
    %cst_165 = arith.constant dense<0.000000e+00> : vector<2x8x8xf32>
    %213 = tpu.matmul %210, %211, %cst_165 {dimension_numbers = #tpu.dot_dimension_numbers<[2], [2], [1], [1], [0, 0, 0, 1, 1, 1], [0], [0]>} : vector<2x8x128xf32>, vector<2x8x128xf32>, vector<2x8x8xf32> -> vector<2x8x8xf32>
    "tpu.trace_stop"() : () -> ()
    %cst_166 = arith.constant 0.0883883461 : f32
    %214 = vector.broadcast %cst_166 : f32 to vector<2x8x8xf32>
    %215 = arith.mulf %213, %214 : vector<2x8x8xf32>
    %cst_167 = arith.constant dense<0xFF800000> : vector<2x8xf32>
    %216 = vector.multi_reduction <maximumf>, %215, %cst_167 [2] : vector<2x8x8xf32> to vector<2x8xf32>
    %217 = vector.shape_cast %216 : vector<2x8xf32> to vector<2x8x1xf32>
    %218 = vector.broadcast %217 : vector<2x8x1xf32> to vector<2x8x8xf32>
    %219 = arith.subf %215, %218 : vector<2x8x8xf32>
    %220 = math.exp %219 : vector<2x8x8xf32>
    %cst_168 = arith.constant dense<0.000000e+00> : vector<2x8xf32>
    %221 = vector.multi_reduction <add>, %220, %cst_168 [2] : vector<2x8x8xf32> to vector<2x8xf32>
    %222 = vector.shape_cast %221 : vector<2x8xf32> to vector<2x8x1xf32>
    %223 = tpu.reciprocal %222 {approx = true} : vector<2x8x1xf32> -> vector<2x8x1xf32>
    %224 = vector.broadcast %223 : vector<2x8x1xf32> to vector<2x8x8xf32>
    %225 = arith.mulf %220, %224 : vector<2x8x8xf32>
    "tpu.trace_start"() <{level = 10 : i32, message = "hst,htd->hsd"}> : () -> ()
    %cst_169 = arith.constant dense<0.000000e+00> : vector<2x8x128xf32>
    %226 = tpu.matmul %225, %212, %cst_169 {dimension_numbers = #tpu.dot_dimension_numbers<[2], [1], [1], [2], [0, 0, 0, 1, 1, 2], [0], [0]>} : vector<2x8x8xf32>, vector<2x8x128xf32>, vector<2x8x128xf32> -> vector<2x8x128xf32>
    "tpu.trace_stop"() : () -> ()
    %227 = vector.extract_strided_slice %226 {offsets = [0, 0, 0], sizes = [1, 1, 128], strides = [1, 1, 1]} : vector<2x8x128xf32> to vector<1x1x128xf32>
    %228 = vector.shape_cast %227 : vector<1x1x128xf32> to vector<1x128xf32>
    %c0_170 = arith.constant 0 : index
    %c0_171 = arith.constant 0 : index
    %229 = vector.load %arg22[%c0_170, %c0_171] : memref<48x256xf32, #tpu.memory_space<vmem>>, vector<1x128xf32>
    tpu.vector_store %arg22[%c0_170, %c0_171], %228 {strides = array<i32>} : memref<48x256xf32, #tpu.memory_space<vmem>>, vector<1x128xf32>,
    %230 = vector.extract_strided_slice %226 {offsets = [0, 1, 0], sizes = [1, 1, 128], strides = [1, 1, 1]} : vector<2x8x128xf32> to vector<1x1x128xf32>
    %231 = vector.shape_cast %230 : vector<1x1x128xf32> to vector<1x128xf32>
    %c0_172 = arith.constant 0 : index
    %c128 = arith.constant 128 : index
    %232 = vector.load %arg22[%c0_172, %c128] : memref<48x256xf32, #tpu.memory_space<vmem>>, vector<1x128xf32>
    tpu.vector_store %arg22[%c0_172, %c128], %231 {strides = array<i32>} : memref<48x256xf32, #tpu.memory_space<vmem>>, vector<1x128xf32>,
    %233 = vector.extract_strided_slice %226 {offsets = [0, 2, 0], sizes = [1, 1, 128], strides = [1, 1, 1]} : vector<2x8x128xf32> to vector<1x1x128xf32>
    %234 = vector.shape_cast %233 : vector<1x1x128xf32> to vector<1x128xf32>
    %c1_173 = arith.constant 1 : index
    %c0_174 = arith.constant 0 : index
    %235 = vector.load %arg22[%c1_173, %c0_174] : memref<48x256xf32, #tpu.memory_space<vmem>>, vector<1x128xf32>
    tpu.vector_store %arg22[%c1_173, %c0_174], %234 {strides = array<i32>} : memref<48x256xf32, #tpu.memory_space<vmem>>, vector<1x128xf32>,
    %236 = vector.extract_strided_slice %226 {offsets = [0, 3, 0], sizes = [1, 1, 128], strides = [1, 1, 1]} : vector<2x8x128xf32> to vector<1x1x128xf32>
    %237 = vector.shape_cast %236 : vector<1x1x128xf32> to vector<1x128xf32>
    %c1_175 = arith.constant 1 : index
    %c128_176 = arith.constant 128 : index
    %238 = vector.load %arg22[%c1_175, %c128_176] : memref<48x256xf32, #tpu.memory_space<vmem>>, vector<1x128xf32>
    tpu.vector_store %arg22[%c1_175, %c128_176], %237 {strides = array<i32>} : memref<48x256xf32, #tpu.memory_space<vmem>>, vector<1x128xf32>,
    %239 = vector.extract_strided_slice %226 {offsets = [0, 4, 0], sizes = [1, 1, 128], strides = [1, 1, 1]} : vector<2x8x128xf32> to vector<1x1x128xf32>
    %240 = vector.shape_cast %239 : vector<1x1x128xf32> to vector<1x128xf32>
    %c2_177 = arith.constant 2 : index
    %c0_178 = arith.constant 0 : index
    %241 = vector.load %arg22[%c2_177, %c0_178] : memref<48x256xf32, #tpu.memory_space<vmem>>, vector<1x128xf32>
    tpu.vector_store %arg22[%c2_177, %c0_178], %240 {strides = array<i32>} : memref<48x256xf32, #tpu.memory_space<vmem>>, vector<1x128xf32>,
    %242 = vector.extract_strided_slice %226 {offsets = [0, 5, 0], sizes = [1, 1, 128], strides = [1, 1, 1]} : vector<2x8x128xf32> to vector<1x1x128xf32>
    %243 = vector.shape_cast %242 : vector<1x1x128xf32> to vector<1x128xf32>
    %c2_179 = arith.constant 2 : index
    %c128_180 = arith.constant 128 : index
    %244 = vector.load %arg22[%c2_179, %c128_180] : memref<48x256xf32, #tpu.memory_space<vmem>>, vector<1x128xf32>
    tpu.vector_store %arg22[%c2_179, %c128_180], %243 {strides = array<i32>} : memref<48x256xf32, #tpu.memory_space<vmem>>, vector<1x128xf32>,
    %245 = vector.extract_strided_slice %226 {offsets = [0, 6, 0], sizes = [1, 1, 128], strides = [1, 1, 1]} : vector<2x8x128xf32> to vector<1x1x128xf32>
    %246 = vector.shape_cast %245 : vector<1x1x128xf32> to vector<1x128xf32>
    %c3_181 = arith.constant 3 : index
    %c0_182 = arith.constant 0 : index
    %247 = vector.load %arg22[%c3_181, %c0_182] : memref<48x256xf32, #tpu.memory_space<vmem>>, vector<1x128xf32>
    tpu.vector_store %arg22[%c3_181, %c0_182], %246 {strides = array<i32>} : memref<48x256xf32, #tpu.memory_space<vmem>>, vector<1x128xf32>,
    %248 = vector.extract_strided_slice %226 {offsets = [0, 7, 0], sizes = [1, 1, 128], strides = [1, 1, 1]} : vector<2x8x128xf32> to vector<1x1x128xf32>
    %249 = vector.shape_cast %248 : vector<1x1x128xf32> to vector<1x128xf32>
    %c3_183 = arith.constant 3 : index
    %c128_184 = arith.constant 128 : index
    %250 = vector.load %arg22[%c3_183, %c128_184] : memref<48x256xf32, #tpu.memory_space<vmem>>, vector<1x128xf32>
    tpu.vector_store %arg22[%c3_183, %c128_184], %249 {strides = array<i32>} : memref<48x256xf32, #tpu.memory_space<vmem>>, vector<1x128xf32>,
    %251 = vector.extract_strided_slice %226 {offsets = [1, 0, 0], sizes = [1, 1, 128], strides = [1, 1, 1]} : vector<2x8x128xf32> to vector<1x1x128xf32>
    %252 = vector.shape_cast %251 : vector<1x1x128xf32> to vector<1x128xf32>
    %c4_185 = arith.constant 4 : index
    %c0_186 = arith.constant 0 : index
    %253 = vector.load %arg22[%c4_185, %c0_186] : memref<48x256xf32, #tpu.memory_space<vmem>>, vector<1x128xf32>
    tpu.vector_store %arg22[%c4_185, %c0_186], %252 {strides = array<i32>} : memref<48x256xf32, #tpu.memory_space<vmem>>, vector<1x128xf32>,
    %254 = vector.extract_strided_slice %226 {offsets = [1, 1, 0], sizes = [1, 1, 128], strides = [1, 1, 1]} : vector<2x8x128xf32> to vector<1x1x128xf32>
    %255 = vector.shape_cast %254 : vector<1x1x128xf32> to vector<1x128xf32>
    %c4_187 = arith.constant 4 : index
    %c128_188 = arith.constant 128 : index
    %256 = vector.load %arg22[%c4_187, %c128_188] : memref<48x256xf32, #tpu.memory_space<vmem>>, vector<1x128xf32>
    tpu.vector_store %arg22[%c4_187, %c128_188], %255 {strides = array<i32>} : memref<48x256xf32, #tpu.memory_space<vmem>>, vector<1x128xf32>,
    %257 = vector.extract_strided_slice %226 {offsets = [1, 2, 0], sizes = [1, 1, 128], strides = [1, 1, 1]} : vector<2x8x128xf32> to vector<1x1x128xf32>
    %258 = vector.shape_cast %257 : vector<1x1x128xf32> to vector<1x128xf32>
    %c5_189 = arith.constant 5 : index
    %c0_190 = arith.constant 0 : index
    %259 = vector.load %arg22[%c5_189, %c0_190] : memref<48x256xf32, #tpu.memory_space<vmem>>, vector<1x128xf32>
    tpu.vector_store %arg22[%c5_189, %c0_190], %258 {strides = array<i32>} : memref<48x256xf32, #tpu.memory_space<vmem>>, vector<1x128xf32>,
    %260 = vector.extract_strided_slice %226 {offsets = [1, 3, 0], sizes = [1, 1, 128], strides = [1, 1, 1]} : vector<2x8x128xf32> to vector<1x1x128xf32>
    %261 = vector.shape_cast %260 : vector<1x1x128xf32> to vector<1x128xf32>
    %c5_191 = arith.constant 5 : index
    %c128_192 = arith.constant 128 : index
    %262 = vector.load %arg22[%c5_191, %c128_192] : memref<48x256xf32, #tpu.memory_space<vmem>>, vector<1x128xf32>
    tpu.vector_store %arg22[%c5_191, %c128_192], %261 {strides = array<i32>} : memref<48x256xf32, #tpu.memory_space<vmem>>, vector<1x128xf32>,
    %263 = vector.extract_strided_slice %226 {offsets = [1, 4, 0], sizes = [1, 1, 128], strides = [1, 1, 1]} : vector<2x8x128xf32> to vector<1x1x128xf32>
    %264 = vector.shape_cast %263 : vector<1x1x128xf32> to vector<1x128xf32>
    %c6_193 = arith.constant 6 : index
    %c0_194 = arith.constant 0 : index
    %265 = vector.load %arg22[%c6_193, %c0_194] : memref<48x256xf32, #tpu.memory_space<vmem>>, vector<1x128xf32>
    tpu.vector_store %arg22[%c6_193, %c0_194], %264 {strides = array<i32>} : memref<48x256xf32, #tpu.memory_space<vmem>>, vector<1x128xf32>,
    %266 = vector.extract_strided_slice %226 {offsets = [1, 5, 0], sizes = [1, 1, 128], strides = [1, 1, 1]} : vector<2x8x128xf32> to vector<1x1x128xf32>
    %267 = vector.shape_cast %266 : vector<1x1x128xf32> to vector<1x128xf32>
    %c6_195 = arith.constant 6 : index
    %c128_196 = arith.constant 128 : index
    %268 = vector.load %arg22[%c6_195, %c128_196] : memref<48x256xf32, #tpu.memory_space<vmem>>, vector<1x128xf32>
    tpu.vector_store %arg22[%c6_195, %c128_196], %267 {strides = array<i32>} : memref<48x256xf32, #tpu.memory_space<vmem>>, vector<1x128xf32>,
    %269 = vector.extract_strided_slice %226 {offsets = [1, 6, 0], sizes = [1, 1, 128], strides = [1, 1, 1]} : vector<2x8x128xf32> to vector<1x1x128xf32>
    %270 = vector.shape_cast %269 : vector<1x1x128xf32> to vector<1x128xf32>
    %c7_197 = arith.constant 7 : index
    %c0_198 = arith.constant 0 : index
    %271 = vector.load %arg22[%c7_197, %c0_198] : memref<48x256xf32, #tpu.memory_space<vmem>>, vector<1x128xf32>
    tpu.vector_store %arg22[%c7_197, %c0_198], %270 {strides = array<i32>} : memref<48x256xf32, #tpu.memory_space<vmem>>, vector<1x128xf32>,
    %272 = vector.extract_strided_slice %226 {offsets = [1, 7, 0], sizes = [1, 1, 128], strides = [1, 1, 1]} : vector<2x8x128xf32> to vector<1x1x128xf32>
    %273 = vector.shape_cast %272 : vector<1x1x128xf32> to vector<1x128xf32>
    %c7_199 = arith.constant 7 : index
    %c128_200 = arith.constant 128 : index
    %274 = vector.load %arg22[%c7_199, %c128_200] : memref<48x256xf32, #tpu.memory_space<vmem>>, vector<1x128xf32>
    tpu.vector_store %arg22[%c7_199, %c128_200], %273 {strides = array<i32>} : memref<48x256xf32, #tpu.memory_space<vmem>>, vector<1x128xf32>,
    %275 = vector.extract_strided_slice %5 {offsets = [8, 0], sizes = [1, 128], strides = [1, 1]} : vector<48x256xf32> to vector<1x128xf32>
    %c0_201 = arith.constant 0 : index
    %c0_202 = arith.constant 0 : index
    %c0_203 = arith.constant 0 : index
    %276 = vector.load %arg19[%c0_201, %c0_202, %c0_203] : memref<2x8x128xf32, #tpu.memory_space<vmem>>, vector<1x1x128xf32>
    %277 = vector.shape_cast %276 : vector<1x1x128xf32> to vector<1x128xf32>
    %278 = vector.shape_cast %275 : vector<1x128xf32> to vector<1x1x128xf32>
    tpu.vector_store %arg19[%c0_201, %c0_202, %c0_203], %278 {strides = array<i32>} : memref<2x8x128xf32, #tpu.memory_space<vmem>>, vector<1x1x128xf32>,
    %279 = vector.extract_strided_slice %11 {offsets = [8, 0], sizes = [1, 128], strides = [1, 1]} : vector<48x256xf32> to vector<1x128xf32>
    %c0_204 = arith.constant 0 : index
    %c0_205 = arith.constant 0 : index
    %c0_206 = arith.constant 0 : index
    %280 = vector.load %arg20[%c0_204, %c0_205, %c0_206] : memref<2x8x128xf32, #tpu.memory_space<vmem>>, vector<1x1x128xf32>
    %281 = vector.shape_cast %280 : vector<1x1x128xf32> to vector<1x128xf32>
    %282 = vector.shape_cast %279 : vector<1x128xf32> to vector<1x1x128xf32>
    tpu.vector_store %arg20[%c0_204, %c0_205, %c0_206], %282 {strides = array<i32>} : memref<2x8x128xf32, #tpu.memory_space<vmem>>, vector<1x1x128xf32>,
    %283 = vector.extract_strided_slice %17 {offsets = [8, 0], sizes = [1, 128], strides = [1, 1]} : vector<48x256xf32> to vector<1x128xf32>
    %c0_207 = arith.constant 0 : index
    %c0_208 = arith.constant 0 : index
    %c0_209 = arith.constant 0 : index
    %284 = vector.load %arg21[%c0_207, %c0_208, %c0_209] : memref<2x8x128xf32, #tpu.memory_space<vmem>>, vector<1x1x128xf32>
    %285 = vector.shape_cast %284 : vector<1x1x128xf32> to vector<1x128xf32>
    %286 = vector.shape_cast %283 : vector<1x128xf32> to vector<1x1x128xf32>
    tpu.vector_store %arg21[%c0_207, %c0_208, %c0_209], %286 {strides = array<i32>} : memref<2x8x128xf32, #tpu.memory_space<vmem>>, vector<1x1x128xf32>,
    %287 = vector.extract_strided_slice %5 {offsets = [8, 128], sizes = [1, 128], strides = [1, 1]} : vector<48x256xf32> to vector<1x128xf32>
    %c0_210 = arith.constant 0 : index
    %c1_211 = arith.constant 1 : index
    %c0_212 = arith.constant 0 : index
    %288 = vector.load %arg19[%c0_210, %c1_211, %c0_212] : memref<2x8x128xf32, #tpu.memory_space<vmem>>, vector<1x1x128xf32>
    %289 = vector.shape_cast %288 : vector<1x1x128xf32> to vector<1x128xf32>
    %290 = vector.shape_cast %287 : vector<1x128xf32> to vector<1x1x128xf32>
    tpu.vector_store %arg19[%c0_210, %c1_211, %c0_212], %290 {strides = array<i32>} : memref<2x8x128xf32, #tpu.memory_space<vmem>>, vector<1x1x128xf32>,
    %291 = vector.extract_strided_slice %11 {offsets = [8, 128], sizes = [1, 128], strides = [1, 1]} : vector<48x256xf32> to vector<1x128xf32>
    %c0_213 = arith.constant 0 : index
    %c1_214 = arith.constant 1 : index
    %c0_215 = arith.constant 0 : index
    %292 = vector.load %arg20[%c0_213, %c1_214, %c0_215] : memref<2x8x128xf32, #tpu.memory_space<vmem>>, vector<1x1x128xf32>
    %293 = vector.shape_cast %292 : vector<1x1x128xf32> to vector<1x128xf32>
    %294 = vector.shape_cast %291 : vector<1x128xf32> to vector<1x1x128xf32>
    tpu.vector_store %arg20[%c0_213, %c1_214, %c0_215], %294 {strides = array<i32>} : memref<2x8x128xf32, #tpu.memory_space<vmem>>, vector<1x1x128xf32>,
    %295 = vector.extract_strided_slice %17 {offsets = [8, 128], sizes = [1, 128], strides = [1, 1]} : vector<48x256xf32> to vector<1x128xf32>
    %c0_216 = arith.constant 0 : index
    %c1_217 = arith.constant 1 : index
    %c0_218 = arith.constant 0 : index
    %296 = vector.load %arg21[%c0_216, %c1_217, %c0_218] : memref<2x8x128xf32, #tpu.memory_space<vmem>>, vector<1x1x128xf32>
    %297 = vector.shape_cast %296 : vector<1x1x128xf32> to vector<1x128xf32>
    %298 = vector.shape_cast %295 : vector<1x128xf32> to vector<1x1x128xf32>
    tpu.vector_store %arg21[%c0_216, %c1_217, %c0_218], %298 {strides = array<i32>} : memref<2x8x128xf32, #tpu.memory_space<vmem>>, vector<1x1x128xf32>,
    %299 = vector.extract_strided_slice %5 {offsets = [9, 0], sizes = [1, 128], strides = [1, 1]} : vector<48x256xf32> to vector<1x128xf32>
    %c0_219 = arith.constant 0 : index
    %c2_220 = arith.constant 2 : index
    %c0_221 = arith.constant 0 : index
    %300 = vector.load %arg19[%c0_219, %c2_220, %c0_221] : memref<2x8x128xf32, #tpu.memory_space<vmem>>, vector<1x1x128xf32>
    %301 = vector.shape_cast %300 : vector<1x1x128xf32> to vector<1x128xf32>
    %302 = vector.shape_cast %299 : vector<1x128xf32> to vector<1x1x128xf32>
    tpu.vector_store %arg19[%c0_219, %c2_220, %c0_221], %302 {strides = array<i32>} : memref<2x8x128xf32, #tpu.memory_space<vmem>>, vector<1x1x128xf32>,
    %303 = vector.extract_strided_slice %11 {offsets = [9, 0], sizes = [1, 128], strides = [1, 1]} : vector<48x256xf32> to vector<1x128xf32>
    %c0_222 = arith.constant 0 : index
    %c2_223 = arith.constant 2 : index
    %c0_224 = arith.constant 0 : index
    %304 = vector.load %arg20[%c0_222, %c2_223, %c0_224] : memref<2x8x128xf32, #tpu.memory_space<vmem>>, vector<1x1x128xf32>
    %305 = vector.shape_cast %304 : vector<1x1x128xf32> to vector<1x128xf32>
    %306 = vector.shape_cast %303 : vector<1x128xf32> to vector<1x1x128xf32>
    tpu.vector_store %arg20[%c0_222, %c2_223, %c0_224], %306 {strides = array<i32>} : memref<2x8x128xf32, #tpu.memory_space<vmem>>, vector<1x1x128xf32>,
    %307 = vector.extract_strided_slice %17 {offsets = [9, 0], sizes = [1, 128], strides = [1, 1]} : vector<48x256xf32> to vector<1x128xf32>
    %c0_225 = arith.constant 0 : index
    %c2_226 = arith.constant 2 : index
    %c0_227 = arith.constant 0 : index
    %308 = vector.load %arg21[%c0_225, %c2_226, %c0_227] : memref<2x8x128xf32, #tpu.memory_space<vmem>>, vector<1x1x128xf32>
    %309 = vector.shape_cast %308 : vector<1x1x128xf32> to vector<1x128xf32>
    %310 = vector.shape_cast %307 : vector<1x128xf32> to vector<1x1x128xf32>
    tpu.vector_store %arg21[%c0_225, %c2_226, %c0_227], %310 {strides = array<i32>} : memref<2x8x128xf32, #tpu.memory_space<vmem>>, vector<1x1x128xf32>,
    %311 = vector.extract_strided_slice %5 {offsets = [9, 128], sizes = [1, 128], strides = [1, 1]} : vector<48x256xf32> to vector<1x128xf32>
    %c0_228 = arith.constant 0 : index
    %c3_229 = arith.constant 3 : index
    %c0_230 = arith.constant 0 : index
    %312 = vector.load %arg19[%c0_228, %c3_229, %c0_230] : memref<2x8x128xf32, #tpu.memory_space<vmem>>, vector<1x1x128xf32>
    %313 = vector.shape_cast %312 : vector<1x1x128xf32> to vector<1x128xf32>
    %314 = vector.shape_cast %311 : vector<1x128xf32> to vector<1x1x128xf32>
    tpu.vector_store %arg19[%c0_228, %c3_229, %c0_230], %314 {strides = array<i32>} : memref<2x8x128xf32, #tpu.memory_space<vmem>>, vector<1x1x128xf32>,
    %315 = vector.extract_strided_slice %11 {offsets = [9, 128], sizes = [1, 128], strides = [1, 1]} : vector<48x256xf32> to vector<1x128xf32>
    %c0_231 = arith.constant 0 : index
    %c3_232 = arith.constant 3 : index
    %c0_233 = arith.constant 0 : index
    %316 = vector.load %arg20[%c0_231, %c3_232, %c0_233] : memref<2x8x128xf32, #tpu.memory_space<vmem>>, vector<1x1x128xf32>
    %317 = vector.shape_cast %316 : vector<1x1x128xf32> to vector<1x128xf32>
    %318 = vector.shape_cast %315 : vector<1x128xf32> to vector<1x1x128xf32>
    tpu.vector_store %arg20[%c0_231, %c3_232, %c0_233], %318 {strides = array<i32>} : memref<2x8x128xf32, #tpu.memory_space<vmem>>, vector<1x1x128xf32>,
    %319 = vector.extract_strided_slice %17 {offsets = [9, 128], sizes = [1, 128], strides = [1, 1]} : vector<48x256xf32> to vector<1x128xf32>
    %c0_234 = arith.constant 0 : index
    %c3_235 = arith.constant 3 : index
    %c0_236 = arith.constant 0 : index
    %320 = vector.load %arg21[%c0_234, %c3_235, %c0_236] : memref<2x8x128xf32, #tpu.memory_space<vmem>>, vector<1x1x128xf32>
    %321 = vector.shape_cast %320 : vector<1x1x128xf32> to vector<1x128xf32>
    %322 = vector.shape_cast %319 : vector<1x128xf32> to vector<1x1x128xf32>
    tpu.vector_store %arg21[%c0_234, %c3_235, %c0_236], %322 {strides = array<i32>} : memref<2x8x128xf32, #tpu.memory_space<vmem>>, vector<1x1x128xf32>,
    %323 = vector.extract_strided_slice %5 {offsets = [10, 0], sizes = [1, 128], strides = [1, 1]} : vector<48x256xf32> to vector<1x128xf32>
    %c0_237 = arith.constant 0 : index
    %c4_238 = arith.constant 4 : index
    %c0_239 = arith.constant 0 : index
    %324 = vector.load %arg19[%c0_237, %c4_238, %c0_239] : memref<2x8x128xf32, #tpu.memory_space<vmem>>, vector<1x1x128xf32>
    %325 = vector.shape_cast %324 : vector<1x1x128xf32> to vector<1x128xf32>
    %326 = vector.shape_cast %323 : vector<1x128xf32> to vector<1x1x128xf32>
    tpu.vector_store %arg19[%c0_237, %c4_238, %c0_239], %326 {strides = array<i32>} : memref<2x8x128xf32, #tpu.memory_space<vmem>>, vector<1x1x128xf32>,
    %327 = vector.extract_strided_slice %11 {offsets = [10, 0], sizes = [1, 128], strides = [1, 1]} : vector<48x256xf32> to vector<1x128xf32>
    %c0_240 = arith.constant 0 : index
    %c4_241 = arith.constant 4 : index
    %c0_242 = arith.constant 0 : index
    %328 = vector.load %arg20[%c0_240, %c4_241, %c0_242] : memref<2x8x128xf32, #tpu.memory_space<vmem>>, vector<1x1x128xf32>
    %329 = vector.shape_cast %328 : vector<1x1x128xf32> to vector<1x128xf32>
    %330 = vector.shape_cast %327 : vector<1x128xf32> to vector<1x1x128xf32>
    tpu.vector_store %arg20[%c0_240, %c4_241, %c0_242], %330 {strides = array<i32>} : memref<2x8x128xf32, #tpu.memory_space<vmem>>, vector<1x1x128xf32>,
    %331 = vector.extract_strided_slice %17 {offsets = [10, 0], sizes = [1, 128], strides = [1, 1]} : vector<48x256xf32> to vector<1x128xf32>
    %c0_243 = arith.constant 0 : index
    %c4_244 = arith.constant 4 : index
    %c0_245 = arith.constant 0 : index
    %332 = vector.load %arg21[%c0_243, %c4_244, %c0_245] : memref<2x8x128xf32, #tpu.memory_space<vmem>>, vector<1x1x128xf32>
    %333 = vector.shape_cast %332 : vector<1x1x128xf32> to vector<1x128xf32>
    %334 = vector.shape_cast %331 : vector<1x128xf32> to vector<1x1x128xf32>
    tpu.vector_store %arg21[%c0_243, %c4_244, %c0_245], %334 {strides = array<i32>} : memref<2x8x128xf32, #tpu.memory_space<vmem>>, vector<1x1x128xf32>,
    %335 = vector.extract_strided_slice %5 {offsets = [10, 128], sizes = [1, 128], strides = [1, 1]} : vector<48x256xf32> to vector<1x128xf32>
    %c0_246 = arith.constant 0 : index
    %c5_247 = arith.constant 5 : index
    %c0_248 = arith.constant 0 : index
    %336 = vector.load %arg19[%c0_246, %c5_247, %c0_248] : memref<2x8x128xf32, #tpu.memory_space<vmem>>, vector<1x1x128xf32>
    %337 = vector.shape_cast %336 : vector<1x1x128xf32> to vector<1x128xf32>
    %338 = vector.shape_cast %335 : vector<1x128xf32> to vector<1x1x128xf32>
    tpu.vector_store %arg19[%c0_246, %c5_247, %c0_248], %338 {strides = array<i32>} : memref<2x8x128xf32, #tpu.memory_space<vmem>>, vector<1x1x128xf32>,
    %339 = vector.extract_strided_slice %11 {offsets = [10, 128], sizes = [1, 128], strides = [1, 1]} : vector<48x256xf32> to vector<1x128xf32>
    %c0_249 = arith.constant 0 : index
    %c5_250 = arith.constant 5 : index
    %c0_251 = arith.constant 0 : index
    %340 = vector.load %arg20[%c0_249, %c5_250, %c0_251] : memref<2x8x128xf32, #tpu.memory_space<vmem>>, vector<1x1x128xf32>
    %341 = vector.shape_cast %340 : vector<1x1x128xf32> to vector<1x128xf32>
    %342 = vector.shape_cast %339 : vector<1x128xf32> to vector<1x1x128xf32>
    tpu.vector_store %arg20[%c0_249, %c5_250, %c0_251], %342 {strides = array<i32>} : memref<2x8x128xf32, #tpu.memory_space<vmem>>, vector<1x1x128xf32>,
    %343 = vector.extract_strided_slice %17 {offsets = [10, 128], sizes = [1, 128], strides = [1, 1]} : vector<48x256xf32> to vector<1x128xf32>
    %c0_252 = arith.constant 0 : index
    %c5_253 = arith.constant 5 : index
    %c0_254 = arith.constant 0 : index
    %344 = vector.load %arg21[%c0_252, %c5_253, %c0_254] : memref<2x8x128xf32, #tpu.memory_space<vmem>>, vector<1x1x128xf32>
    %345 = vector.shape_cast %344 : vector<1x1x128xf32> to vector<1x128xf32>
    %346 = vector.shape_cast %343 : vector<1x128xf32> to vector<1x1x128xf32>
    tpu.vector_store %arg21[%c0_252, %c5_253, %c0_254], %346 {strides = array<i32>} : memref<2x8x128xf32, #tpu.memory_space<vmem>>, vector<1x1x128xf32>,
    %347 = vector.extract_strided_slice %5 {offsets = [11, 0], sizes = [1, 128], strides = [1, 1]} : vector<48x256xf32> to vector<1x128xf32>
    %c0_255 = arith.constant 0 : index
    %c6_256 = arith.constant 6 : index
    %c0_257 = arith.constant 0 : index
    %348 = vector.load %arg19[%c0_255, %c6_256, %c0_257] : memref<2x8x128xf32, #tpu.memory_space<vmem>>, vector<1x1x128xf32>
    %349 = vector.shape_cast %348 : vector<1x1x128xf32> to vector<1x128xf32>
    %350 = vector.shape_cast %347 : vector<1x128xf32> to vector<1x1x128xf32>
    tpu.vector_store %arg19[%c0_255, %c6_256, %c0_257], %350 {strides = array<i32>} : memref<2x8x128xf32, #tpu.memory_space<vmem>>, vector<1x1x128xf32>,
    %351 = vector.extract_strided_slice %11 {offsets = [11, 0], sizes = [1, 128], strides = [1, 1]} : vector<48x256xf32> to vector<1x128xf32>
    %c0_258 = arith.constant 0 : index
    %c6_259 = arith.constant 6 : index
    %c0_260 = arith.constant 0 : index
    %352 = vector.load %arg20[%c0_258, %c6_259, %c0_260] : memref<2x8x128xf32, #tpu.memory_space<vmem>>, vector<1x1x128xf32>
    %353 = vector.shape_cast %352 : vector<1x1x128xf32> to vector<1x128xf32>
    %354 = vector.shape_cast %351 : vector<1x128xf32> to vector<1x1x128xf32>
    tpu.vector_store %arg20[%c0_258, %c6_259, %c0_260], %354 {strides = array<i32>} : memref<2x8x128xf32, #tpu.memory_space<vmem>>, vector<1x1x128xf32>,
    %355 = vector.extract_strided_slice %17 {offsets = [11, 0], sizes = [1, 128], strides = [1, 1]} : vector<48x256xf32> to vector<1x128xf32>
    %c0_261 = arith.constant 0 : index
    %c6_262 = arith.constant 6 : index
    %c0_263 = arith.constant 0 : index
    %356 = vector.load %arg21[%c0_261, %c6_262, %c0_263] : memref<2x8x128xf32, #tpu.memory_space<vmem>>, vector<1x1x128xf32>
    %357 = vector.shape_cast %356 : vector<1x1x128xf32> to vector<1x128xf32>
    %358 = vector.shape_cast %355 : vector<1x128xf32> to vector<1x1x128xf32>
    tpu.vector_store %arg21[%c0_261, %c6_262, %c0_263], %358 {strides = array<i32>} : memref<2x8x128xf32, #tpu.memory_space<vmem>>, vector<1x1x128xf32>,
    %359 = vector.extract_strided_slice %5 {offsets = [11, 128], sizes = [1, 128], strides = [1, 1]} : vector<48x256xf32> to vector<1x128xf32>
    %c0_264 = arith.constant 0 : index
    %c7_265 = arith.constant 7 : index
    %c0_266 = arith.constant 0 : index
    %360 = vector.load %arg19[%c0_264, %c7_265, %c0_266] : memref<2x8x128xf32, #tpu.memory_space<vmem>>, vector<1x1x128xf32>
    %361 = vector.shape_cast %360 : vector<1x1x128xf32> to vector<1x128xf32>
    %362 = vector.shape_cast %359 : vector<1x128xf32> to vector<1x1x128xf32>
    tpu.vector_store %arg19[%c0_264, %c7_265, %c0_266], %362 {strides = array<i32>} : memref<2x8x128xf32, #tpu.memory_space<vmem>>, vector<1x1x128xf32>,
    %363 = vector.extract_strided_slice %11 {offsets = [11, 128], sizes = [1, 128], strides = [1, 1]} : vector<48x256xf32> to vector<1x128xf32>
    %c0_267 = arith.constant 0 : index
    %c7_268 = arith.constant 7 : index
    %c0_269 = arith.constant 0 : index
    %364 = vector.load %arg20[%c0_267, %c7_268, %c0_269] : memref<2x8x128xf32, #tpu.memory_space<vmem>>, vector<1x1x128xf32>
    %365 = vector.shape_cast %364 : vector<1x1x128xf32> to vector<1x128xf32>
    %366 = vector.shape_cast %363 : vector<1x128xf32> to vector<1x1x128xf32>
    tpu.vector_store %arg20[%c0_267, %c7_268, %c0_269], %366 {strides = array<i32>} : memref<2x8x128xf32, #tpu.memory_space<vmem>>, vector<1x1x128xf32>,
    %367 = vector.extract_strided_slice %17 {offsets = [11, 128], sizes = [1, 128], strides = [1, 1]} : vector<48x256xf32> to vector<1x128xf32>
    %c0_270 = arith.constant 0 : index
    %c7_271 = arith.constant 7 : index
    %c0_272 = arith.constant 0 : index
    %368 = vector.load %arg21[%c0_270, %c7_271, %c0_272] : memref<2x8x128xf32, #tpu.memory_space<vmem>>, vector<1x1x128xf32>
    %369 = vector.shape_cast %368 : vector<1x1x128xf32> to vector<1x128xf32>
    %370 = vector.shape_cast %367 : vector<1x128xf32> to vector<1x1x128xf32>
    tpu.vector_store %arg21[%c0_270, %c7_271, %c0_272], %370 {strides = array<i32>} : memref<2x8x128xf32, #tpu.memory_space<vmem>>, vector<1x1x128xf32>,
    %371 = vector.extract_strided_slice %5 {offsets = [12, 0], sizes = [1, 128], strides = [1, 1]} : vector<48x256xf32> to vector<1x128xf32>
    %c1_273 = arith.constant 1 : index
    %c0_274 = arith.constant 0 : index
    %c0_275 = arith.constant 0 : index
    %372 = vector.load %arg19[%c1_273, %c0_274, %c0_275] : memref<2x8x128xf32, #tpu.memory_space<vmem>>, vector<1x1x128xf32>
    %373 = vector.shape_cast %372 : vector<1x1x128xf32> to vector<1x128xf32>
    %374 = vector.shape_cast %371 : vector<1x128xf32> to vector<1x1x128xf32>
    tpu.vector_store %arg19[%c1_273, %c0_274, %c0_275], %374 {strides = array<i32>} : memref<2x8x128xf32, #tpu.memory_space<vmem>>, vector<1x1x128xf32>,
    %375 = vector.extract_strided_slice %11 {offsets = [12, 0], sizes = [1, 128], strides = [1, 1]} : vector<48x256xf32> to vector<1x128xf32>
    %c1_276 = arith.constant 1 : index
    %c0_277 = arith.constant 0 : index
    %c0_278 = arith.constant 0 : index
    %376 = vector.load %arg20[%c1_276, %c0_277, %c0_278] : memref<2x8x128xf32, #tpu.memory_space<vmem>>, vector<1x1x128xf32>
    %377 = vector.shape_cast %376 : vector<1x1x128xf32> to vector<1x128xf32>
    %378 = vector.shape_cast %375 : vector<1x128xf32> to vector<1x1x128xf32>
    tpu.vector_store %arg20[%c1_276, %c0_277, %c0_278], %378 {strides = array<i32>} : memref<2x8x128xf32, #tpu.memory_space<vmem>>, vector<1x1x128xf32>,
    %379 = vector.extract_strided_slice %17 {offsets = [12, 0], sizes = [1, 128], strides = [1, 1]} : vector<48x256xf32> to vector<1x128xf32>
    %c1_279 = arith.constant 1 : index
    %c0_280 = arith.constant 0 : index
    %c0_281 = arith.constant 0 : index
    %380 = vector.load %arg21[%c1_279, %c0_280, %c0_281] : memref<2x8x128xf32, #tpu.memory_space<vmem>>, vector<1x1x128xf32>
    %381 = vector.shape_cast %380 : vector<1x1x128xf32> to vector<1x128xf32>
    %382 = vector.shape_cast %379 : vector<1x128xf32> to vector<1x1x128xf32>
    tpu.vector_store %arg21[%c1_279, %c0_280, %c0_281], %382 {strides = array<i32>} : memref<2x8x128xf32, #tpu.memory_space<vmem>>, vector<1x1x128xf32>,
    %383 = vector.extract_strided_slice %5 {offsets = [12, 128], sizes = [1, 128], strides = [1, 1]} : vector<48x256xf32> to vector<1x128xf32>
    %c1_282 = arith.constant 1 : index
    %c1_283 = arith.constant 1 : index
    %c0_284 = arith.constant 0 : index
    %384 = vector.load %arg19[%c1_282, %c1_283, %c0_284] : memref<2x8x128xf32, #tpu.memory_space<vmem>>, vector<1x1x128xf32>
    %385 = vector.shape_cast %384 : vector<1x1x128xf32> to vector<1x128xf32>
    %386 = vector.shape_cast %383 : vector<1x128xf32> to vector<1x1x128xf32>
    tpu.vector_store %arg19[%c1_282, %c1_283, %c0_284], %386 {strides = array<i32>} : memref<2x8x128xf32, #tpu.memory_space<vmem>>, vector<1x1x128xf32>,
    %387 = vector.extract_strided_slice %11 {offsets = [12, 128], sizes = [1, 128], strides = [1, 1]} : vector<48x256xf32> to vector<1x128xf32>
    %c1_285 = arith.constant 1 : index
    %c1_286 = arith.constant 1 : index
    %c0_287 = arith.constant 0 : index
    %388 = vector.load %arg20[%c1_285, %c1_286, %c0_287] : memref<2x8x128xf32, #tpu.memory_space<vmem>>, vector<1x1x128xf32>
    %389 = vector.shape_cast %388 : vector<1x1x128xf32> to vector<1x128xf32>
    %390 = vector.shape_cast %387 : vector<1x128xf32> to vector<1x1x128xf32>
    tpu.vector_store %arg20[%c1_285, %c1_286, %c0_287], %390 {strides = array<i32>} : memref<2x8x128xf32, #tpu.memory_space<vmem>>, vector<1x1x128xf32>,
    %391 = vector.extract_strided_slice %17 {offsets = [12, 128], sizes = [1, 128], strides = [1, 1]} : vector<48x256xf32> to vector<1x128xf32>
    %c1_288 = arith.constant 1 : index
    %c1_289 = arith.constant 1 : index
    %c0_290 = arith.constant 0 : index
    %392 = vector.load %arg21[%c1_288, %c1_289, %c0_290] : memref<2x8x128xf32, #tpu.memory_space<vmem>>, vector<1x1x128xf32>
    %393 = vector.shape_cast %392 : vector<1x1x128xf32> to vector<1x128xf32>
    %394 = vector.shape_cast %391 : vector<1x128xf32> to vector<1x1x128xf32>
    tpu.vector_store %arg21[%c1_288, %c1_289, %c0_290], %394 {strides = array<i32>} : memref<2x8x128xf32, #tpu.memory_space<vmem>>, vector<1x1x128xf32>,
    %395 = vector.extract_strided_slice %5 {offsets = [13, 0], sizes = [1, 128], strides = [1, 1]} : vector<48x256xf32> to vector<1x128xf32>
    %c1_291 = arith.constant 1 : index
    %c2_292 = arith.constant 2 : index
    %c0_293 = arith.constant 0 : index
    %396 = vector.load %arg19[%c1_291, %c2_292, %c0_293] : memref<2x8x128xf32, #tpu.memory_space<vmem>>, vector<1x1x128xf32>
    %397 = vector.shape_cast %396 : vector<1x1x128xf32> to vector<1x128xf32>
    %398 = vector.shape_cast %395 : vector<1x128xf32> to vector<1x1x128xf32>
    tpu.vector_store %arg19[%c1_291, %c2_292, %c0_293], %398 {strides = array<i32>} : memref<2x8x128xf32, #tpu.memory_space<vmem>>, vector<1x1x128xf32>,
    %399 = vector.extract_strided_slice %11 {offsets = [13, 0], sizes = [1, 128], strides = [1, 1]} : vector<48x256xf32> to vector<1x128xf32>
    %c1_294 = arith.constant 1 : index
    %c2_295 = arith.constant 2 : index
    %c0_296 = arith.constant 0 : index
    %400 = vector.load %arg20[%c1_294, %c2_295, %c0_296] : memref<2x8x128xf32, #tpu.memory_space<vmem>>, vector<1x1x128xf32>
    %401 = vector.shape_cast %400 : vector<1x1x128xf32> to vector<1x128xf32>
    %402 = vector.shape_cast %399 : vector<1x128xf32> to vector<1x1x128xf32>
    tpu.vector_store %arg20[%c1_294, %c2_295, %c0_296], %402 {strides = array<i32>} : memref<2x8x128xf32, #tpu.memory_space<vmem>>, vector<1x1x128xf32>,
    %403 = vector.extract_strided_slice %17 {offsets = [13, 0], sizes = [1, 128], strides = [1, 1]} : vector<48x256xf32> to vector<1x128xf32>
    %c1_297 = arith.constant 1 : index
    %c2_298 = arith.constant 2 : index
    %c0_299 = arith.constant 0 : index
    %404 = vector.load %arg21[%c1_297, %c2_298, %c0_299] : memref<2x8x128xf32, #tpu.memory_space<vmem>>, vector<1x1x128xf32>
    %405 = vector.shape_cast %404 : vector<1x1x128xf32> to vector<1x128xf32>
    %406 = vector.shape_cast %403 : vector<1x128xf32> to vector<1x1x128xf32>
    tpu.vector_store %arg21[%c1_297, %c2_298, %c0_299], %406 {strides = array<i32>} : memref<2x8x128xf32, #tpu.memory_space<vmem>>, vector<1x1x128xf32>,
    %407 = vector.extract_strided_slice %5 {offsets = [13, 128], sizes = [1, 128], strides = [1, 1]} : vector<48x256xf32> to vector<1x128xf32>
    %c1_300 = arith.constant 1 : index
    %c3_301 = arith.constant 3 : index
    %c0_302 = arith.constant 0 : index
    %408 = vector.load %arg19[%c1_300, %c3_301, %c0_302] : memref<2x8x128xf32, #tpu.memory_space<vmem>>, vector<1x1x128xf32>
    %409 = vector.shape_cast %408 : vector<1x1x128xf32> to vector<1x128xf32>
    %410 = vector.shape_cast %407 : vector<1x128xf32> to vector<1x1x128xf32>
    tpu.vector_store %arg19[%c1_300, %c3_301, %c0_302], %410 {strides = array<i32>} : memref<2x8x128xf32, #tpu.memory_space<vmem>>, vector<1x1x128xf32>,
    %411 = vector.extract_strided_slice %11 {offsets = [13, 128], sizes = [1, 128], strides = [1, 1]} : vector<48x256xf32> to vector<1x128xf32>
    %c1_303 = arith.constant 1 : index
    %c3_304 = arith.constant 3 : index
    %c0_305 = arith.constant 0 : index
    %412 = vector.load %arg20[%c1_303, %c3_304, %c0_305] : memref<2x8x128xf32, #tpu.memory_space<vmem>>, vector<1x1x128xf32>
    %413 = vector.shape_cast %412 : vector<1x1x128xf32> to vector<1x128xf32>
    %414 = vector.shape_cast %411 : vector<1x128xf32> to vector<1x1x128xf32>
    tpu.vector_store %arg20[%c1_303, %c3_304, %c0_305], %414 {strides = array<i32>} : memref<2x8x128xf32, #tpu.memory_space<vmem>>, vector<1x1x128xf32>,
    %415 = vector.extract_strided_slice %17 {offsets = [13, 128], sizes = [1, 128], strides = [1, 1]} : vector<48x256xf32> to vector<1x128xf32>
    %c1_306 = arith.constant 1 : index
    %c3_307 = arith.constant 3 : index
    %c0_308 = arith.constant 0 : index
    %416 = vector.load %arg21[%c1_306, %c3_307, %c0_308] : memref<2x8x128xf32, #tpu.memory_space<vmem>>, vector<1x1x128xf32>
    %417 = vector.shape_cast %416 : vector<1x1x128xf32> to vector<1x128xf32>
    %418 = vector.shape_cast %415 : vector<1x128xf32> to vector<1x1x128xf32>
    tpu.vector_store %arg21[%c1_306, %c3_307, %c0_308], %418 {strides = array<i32>} : memref<2x8x128xf32, #tpu.memory_space<vmem>>, vector<1x1x128xf32>,
    %419 = vector.extract_strided_slice %5 {offsets = [14, 0], sizes = [1, 128], strides = [1, 1]} : vector<48x256xf32> to vector<1x128xf32>
    %c1_309 = arith.constant 1 : index
    %c4_310 = arith.constant 4 : index
    %c0_311 = arith.constant 0 : index
    %420 = vector.load %arg19[%c1_309, %c4_310, %c0_311] : memref<2x8x128xf32, #tpu.memory_space<vmem>>, vector<1x1x128xf32>
    %421 = vector.shape_cast %420 : vector<1x1x128xf32> to vector<1x128xf32>
    %422 = vector.shape_cast %419 : vector<1x128xf32> to vector<1x1x128xf32>
    tpu.vector_store %arg19[%c1_309, %c4_310, %c0_311], %422 {strides = array<i32>} : memref<2x8x128xf32, #tpu.memory_space<vmem>>, vector<1x1x128xf32>,
    %423 = vector.extract_strided_slice %11 {offsets = [14, 0], sizes = [1, 128], strides = [1, 1]} : vector<48x256xf32> to vector<1x128xf32>
    %c1_312 = arith.constant 1 : index
    %c4_313 = arith.constant 4 : index
    %c0_314 = arith.constant 0 : index
    %424 = vector.load %arg20[%c1_312, %c4_313, %c0_314] : memref<2x8x128xf32, #tpu.memory_space<vmem>>, vector<1x1x128xf32>
    %425 = vector.shape_cast %424 : vector<1x1x128xf32> to vector<1x128xf32>
    %426 = vector.shape_cast %423 : vector<1x128xf32> to vector<1x1x128xf32>
    tpu.vector_store %arg20[%c1_312, %c4_313, %c0_314], %426 {strides = array<i32>} : memref<2x8x128xf32, #tpu.memory_space<vmem>>, vector<1x1x128xf32>,
    %427 = vector.extract_strided_slice %17 {offsets = [14, 0], sizes = [1, 128], strides = [1, 1]} : vector<48x256xf32> to vector<1x128xf32>
    %c1_315 = arith.constant 1 : index
    %c4_316 = arith.constant 4 : index
    %c0_317 = arith.constant 0 : index
    %428 = vector.load %arg21[%c1_315, %c4_316, %c0_317] : memref<2x8x128xf32, #tpu.memory_space<vmem>>, vector<1x1x128xf32>
    %429 = vector.shape_cast %428 : vector<1x1x128xf32> to vector<1x128xf32>
    %430 = vector.shape_cast %427 : vector<1x128xf32> to vector<1x1x128xf32>
    tpu.vector_store %arg21[%c1_315, %c4_316, %c0_317], %430 {strides = array<i32>} : memref<2x8x128xf32, #tpu.memory_space<vmem>>, vector<1x1x128xf32>,
    %431 = vector.extract_strided_slice %5 {offsets = [14, 128], sizes = [1, 128], strides = [1, 1]} : vector<48x256xf32> to vector<1x128xf32>
    %c1_318 = arith.constant 1 : index
    %c5_319 = arith.constant 5 : index
    %c0_320 = arith.constant 0 : index
    %432 = vector.load %arg19[%c1_318, %c5_319, %c0_320] : memref<2x8x128xf32, #tpu.memory_space<vmem>>, vector<1x1x128xf32>
    %433 = vector.shape_cast %432 : vector<1x1x128xf32> to vector<1x128xf32>
    %434 = vector.shape_cast %431 : vector<1x128xf32> to vector<1x1x128xf32>
    tpu.vector_store %arg19[%c1_318, %c5_319, %c0_320], %434 {strides = array<i32>} : memref<2x8x128xf32, #tpu.memory_space<vmem>>, vector<1x1x128xf32>,
    %435 = vector.extract_strided_slice %11 {offsets = [14, 128], sizes = [1, 128], strides = [1, 1]} : vector<48x256xf32> to vector<1x128xf32>
    %c1_321 = arith.constant 1 : index
    %c5_322 = arith.constant 5 : index
    %c0_323 = arith.constant 0 : index
    %436 = vector.load %arg20[%c1_321, %c5_322, %c0_323] : memref<2x8x128xf32, #tpu.memory_space<vmem>>, vector<1x1x128xf32>
    %437 = vector.shape_cast %436 : vector<1x1x128xf32> to vector<1x128xf32>
    %438 = vector.shape_cast %435 : vector<1x128xf32> to vector<1x1x128xf32>
    tpu.vector_store %arg20[%c1_321, %c5_322, %c0_323], %438 {strides = array<i32>} : memref<2x8x128xf32, #tpu.memory_space<vmem>>, vector<1x1x128xf32>,
    %439 = vector.extract_strided_slice %17 {offsets = [14, 128], sizes = [1, 128], strides = [1, 1]} : vector<48x256xf32> to vector<1x128xf32>
    %c1_324 = arith.constant 1 : index
    %c5_325 = arith.constant 5 : index
    %c0_326 = arith.constant 0 : index
    %440 = vector.load %arg21[%c1_324, %c5_325, %c0_326] : memref<2x8x128xf32, #tpu.memory_space<vmem>>, vector<1x1x128xf32>
    %441 = vector.shape_cast %440 : vector<1x1x128xf32> to vector<1x128xf32>
    %442 = vector.shape_cast %439 : vector<1x128xf32> to vector<1x1x128xf32>
    tpu.vector_store %arg21[%c1_324, %c5_325, %c0_326], %442 {strides = array<i32>} : memref<2x8x128xf32, #tpu.memory_space<vmem>>, vector<1x1x128xf32>,
    %443 = vector.extract_strided_slice %5 {offsets = [15, 0], sizes = [1, 128], strides = [1, 1]} : vector<48x256xf32> to vector<1x128xf32>
    %c1_327 = arith.constant 1 : index
    %c6_328 = arith.constant 6 : index
    %c0_329 = arith.constant 0 : index
    %444 = vector.load %arg19[%c1_327, %c6_328, %c0_329] : memref<2x8x128xf32, #tpu.memory_space<vmem>>, vector<1x1x128xf32>
    %445 = vector.shape_cast %444 : vector<1x1x128xf32> to vector<1x128xf32>
    %446 = vector.shape_cast %443 : vector<1x128xf32> to vector<1x1x128xf32>
    tpu.vector_store %arg19[%c1_327, %c6_328, %c0_329], %446 {strides = array<i32>} : memref<2x8x128xf32, #tpu.memory_space<vmem>>, vector<1x1x128xf32>,
    %447 = vector.extract_strided_slice %11 {offsets = [15, 0], sizes = [1, 128], strides = [1, 1]} : vector<48x256xf32> to vector<1x128xf32>
    %c1_330 = arith.constant 1 : index
    %c6_331 = arith.constant 6 : index
    %c0_332 = arith.constant 0 : index
    %448 = vector.load %arg20[%c1_330, %c6_331, %c0_332] : memref<2x8x128xf32, #tpu.memory_space<vmem>>, vector<1x1x128xf32>
    %449 = vector.shape_cast %448 : vector<1x1x128xf32> to vector<1x128xf32>
    %450 = vector.shape_cast %447 : vector<1x128xf32> to vector<1x1x128xf32>
    tpu.vector_store %arg20[%c1_330, %c6_331, %c0_332], %450 {strides = array<i32>} : memref<2x8x128xf32, #tpu.memory_space<vmem>>, vector<1x1x128xf32>,
    %451 = vector.extract_strided_slice %17 {offsets = [15, 0], sizes = [1, 128], strides = [1, 1]} : vector<48x256xf32> to vector<1x128xf32>
    %c1_333 = arith.constant 1 : index
    %c6_334 = arith.constant 6 : index
    %c0_335 = arith.constant 0 : index
    %452 = vector.load %arg21[%c1_333, %c6_334, %c0_335] : memref<2x8x128xf32, #tpu.memory_space<vmem>>, vector<1x1x128xf32>
    %453 = vector.shape_cast %452 : vector<1x1x128xf32> to vector<1x128xf32>
    %454 = vector.shape_cast %451 : vector<1x128xf32> to vector<1x1x128xf32>
    tpu.vector_store %arg21[%c1_333, %c6_334, %c0_335], %454 {strides = array<i32>} : memref<2x8x128xf32, #tpu.memory_space<vmem>>, vector<1x1x128xf32>,
    %455 = vector.extract_strided_slice %5 {offsets = [15, 128], sizes = [1, 128], strides = [1, 1]} : vector<48x256xf32> to vector<1x128xf32>
    %c1_336 = arith.constant 1 : index
    %c7_337 = arith.constant 7 : index
    %c0_338 = arith.constant 0 : index
    %456 = vector.load %arg19[%c1_336, %c7_337, %c0_338] : memref<2x8x128xf32, #tpu.memory_space<vmem>>, vector<1x1x128xf32>
    %457 = vector.shape_cast %456 : vector<1x1x128xf32> to vector<1x128xf32>
    %458 = vector.shape_cast %455 : vector<1x128xf32> to vector<1x1x128xf32>
    tpu.vector_store %arg19[%c1_336, %c7_337, %c0_338], %458 {strides = array<i32>} : memref<2x8x128xf32, #tpu.memory_space<vmem>>, vector<1x1x128xf32>,
    %459 = vector.extract_strided_slice %11 {offsets = [15, 128], sizes = [1, 128], strides = [1, 1]} : vector<48x256xf32> to vector<1x128xf32>
    %c1_339 = arith.constant 1 : index
    %c7_340 = arith.constant 7 : index
    %c0_341 = arith.constant 0 : index
    %460 = vector.load %arg20[%c1_339, %c7_340, %c0_341] : memref<2x8x128xf32, #tpu.memory_space<vmem>>, vector<1x1x128xf32>
    %461 = vector.shape_cast %460 : vector<1x1x128xf32> to vector<1x128xf32>
    %462 = vector.shape_cast %459 : vector<1x128xf32> to vector<1x1x128xf32>
    tpu.vector_store %arg20[%c1_339, %c7_340, %c0_341], %462 {strides = array<i32>} : memref<2x8x128xf32, #tpu.memory_space<vmem>>, vector<1x1x128xf32>,
    %463 = vector.extract_strided_slice %17 {offsets = [15, 128], sizes = [1, 128], strides = [1, 1]} : vector<48x256xf32> to vector<1x128xf32>
    %c1_342 = arith.constant 1 : index
    %c7_343 = arith.constant 7 : index
    %c0_344 = arith.constant 0 : index
    %464 = vector.load %arg21[%c1_342, %c7_343, %c0_344] : memref<2x8x128xf32, #tpu.memory_space<vmem>>, vector<1x1x128xf32>
    %465 = vector.shape_cast %464 : vector<1x1x128xf32> to vector<1x128xf32>
    %466 = vector.shape_cast %463 : vector<1x128xf32> to vector<1x1x128xf32>
    tpu.vector_store %arg21[%c1_342, %c7_343, %c0_344], %466 {strides = array<i32>} : memref<2x8x128xf32, #tpu.memory_space<vmem>>, vector<1x1x128xf32>,
    %c0_345 = arith.constant 0 : index
    %c0_346 = arith.constant 0 : index
    %c0_347 = arith.constant 0 : index
    %467 = vector.load %arg19[%c0_345, %c0_346, %c0_347] : memref<2x8x128xf32, #tpu.memory_space<vmem>>, vector<2x8x128xf32>
    %c0_348 = arith.constant 0 : index
    %c0_349 = arith.constant 0 : index
    %c0_350 = arith.constant 0 : index
    %468 = vector.load %arg20[%c0_348, %c0_349, %c0_350] : memref<2x8x128xf32, #tpu.memory_space<vmem>>, vector<2x8x128xf32>
    %c0_351 = arith.constant 0 : index
    %c0_352 = arith.constant 0 : index
    %c0_353 = arith.constant 0 : index
    %469 = vector.load %arg21[%c0_351, %c0_352, %c0_353] : memref<2x8x128xf32, #tpu.memory_space<vmem>>, vector<2x8x128xf32>
    "tpu.trace_start"() <{level = 10 : i32, message = "hsd,htd->hst"}> : () -> ()
    %cst_354 = arith.constant dense<0.000000e+00> : vector<2x8x8xf32>
    %470 = tpu.matmul %467, %468, %cst_354 {dimension_numbers = #tpu.dot_dimension_numbers<[2], [2], [1], [1], [0, 0, 0, 1, 1, 1], [0], [0]>} : vector<2x8x128xf32>, vector<2x8x128xf32>, vector<2x8x8xf32> -> vector<2x8x8xf32>
    "tpu.trace_stop"() : () -> ()
    %cst_355 = arith.constant 0.0883883461 : f32
    %471 = vector.broadcast %cst_355 : f32 to vector<2x8x8xf32>
    %472 = arith.mulf %470, %471 : vector<2x8x8xf32>
    %cst_356 = arith.constant dense<0xFF800000> : vector<2x8xf32>
    %473 = vector.multi_reduction <maximumf>, %472, %cst_356 [2] : vector<2x8x8xf32> to vector<2x8xf32>
    %474 = vector.shape_cast %473 : vector<2x8xf32> to vector<2x8x1xf32>
    %475 = vector.broadcast %474 : vector<2x8x1xf32> to vector<2x8x8xf32>
    %476 = arith.subf %472, %475 : vector<2x8x8xf32>
    %477 = math.exp %476 : vector<2x8x8xf32>
    %cst_357 = arith.constant dense<0.000000e+00> : vector<2x8xf32>
    %478 = vector.multi_reduction <add>, %477, %cst_357 [2] : vector<2x8x8xf32> to vector<2x8xf32>
    %479 = vector.shape_cast %478 : vector<2x8xf32> to vector<2x8x1xf32>
    %480 = tpu.reciprocal %479 {approx = true} : vector<2x8x1xf32> -> vector<2x8x1xf32>
    %481 = vector.broadcast %480 : vector<2x8x1xf32> to vector<2x8x8xf32>
    %482 = arith.mulf %477, %481 : vector<2x8x8xf32>
    "tpu.trace_start"() <{level = 10 : i32, message = "hst,htd->hsd"}> : () -> ()
    %cst_358 = arith.constant dense<0.000000e+00> : vector<2x8x128xf32>
    %483 = tpu.matmul %482, %469, %cst_358 {dimension_numbers = #tpu.dot_dimension_numbers<[2], [1], [1], [2], [0, 0, 0, 1, 1, 2], [0], [0]>} : vector<2x8x8xf32>, vector<2x8x128xf32>, vector<2x8x128xf32> -> vector<2x8x128xf32>
    "tpu.trace_stop"() : () -> ()
    %484 = vector.extract_strided_slice %483 {offsets = [0, 0, 0], sizes = [1, 1, 128], strides = [1, 1, 1]} : vector<2x8x128xf32> to vector<1x1x128xf32>
    %485 = vector.shape_cast %484 : vector<1x1x128xf32> to vector<1x128xf32>
    %c8 = arith.constant 8 : index
    %c0_359 = arith.constant 0 : index
    %486 = vector.load %arg22[%c8, %c0_359] : memref<48x256xf32, #tpu.memory_space<vmem>>, vector<1x128xf32>
    tpu.vector_store %arg22[%c8, %c0_359], %485 {strides = array<i32>} : memref<48x256xf32, #tpu.memory_space<vmem>>, vector<1x128xf32>,
    %487 = vector.extract_strided_slice %483 {offsets = [0, 1, 0], sizes = [1, 1, 128], strides = [1, 1, 1]} : vector<2x8x128xf32> to vector<1x1x128xf32>
    %488 = vector.shape_cast %487 : vector<1x1x128xf32> to vector<1x128xf32>
    %c8_360 = arith.constant 8 : index
    %c128_361 = arith.constant 128 : index
    %489 = vector.load %arg22[%c8_360, %c128_361] : memref<48x256xf32, #tpu.memory_space<vmem>>, vector<1x128xf32>
    tpu.vector_store %arg22[%c8_360, %c128_361], %488 {strides = array<i32>} : memref<48x256xf32, #tpu.memory_space<vmem>>, vector<1x128xf32>,
    %490 = vector.extract_strided_slice %483 {offsets = [0, 2, 0], sizes = [1, 1, 128], strides = [1, 1, 1]} : vector<2x8x128xf32> to vector<1x1x128xf32>
    %491 = vector.shape_cast %490 : vector<1x1x128xf32> to vector<1x128xf32>
    %c9 = arith.constant 9 : index
    %c0_362 = arith.constant 0 : index
    %492 = vector.load %arg22[%c9, %c0_362] : memref<48x256xf32, #tpu.memory_space<vmem>>, vector<1x128xf32>
    tpu.vector_store %arg22[%c9, %c0_362], %491 {strides = array<i32>} : memref<48x256xf32, #tpu.memory_space<vmem>>, vector<1x128xf32>,
    %493 = vector.extract_strided_slice %483 {offsets = [0, 3, 0], sizes = [1, 1, 128], strides = [1, 1, 1]} : vector<2x8x128xf32> to vector<1x1x128xf32>
    %494 = vector.shape_cast %493 : vector<1x1x128xf32> to vector<1x128xf32>
    %c9_363 = arith.constant 9 : index
    %c128_364 = arith.constant 128 : index
    %495 = vector.load %arg22[%c9_363, %c128_364] : memref<48x256xf32, #tpu.memory_space<vmem>>, vector<1x128xf32>
    tpu.vector_store %arg22[%c9_363, %c128_364], %494 {strides = array<i32>} : memref<48x256xf32, #tpu.memory_space<vmem>>, vector<1x128xf32>,
    %496 = vector.extract_strided_slice %483 {offsets = [0, 4, 0], sizes = [1, 1, 128], strides = [1, 1, 1]} : vector<2x8x128xf32> to vector<1x1x128xf32>
    %497 = vector.shape_cast %496 : vector<1x1x128xf32> to vector<1x128xf32>
    %c10 = arith.constant 10 : index
    %c0_365 = arith.constant 0 : index
    %498 = vector.load %arg22[%c10, %c0_365] : memref<48x256xf32, #tpu.memory_space<vmem>>, vector<1x128xf32>
    tpu.vector_store %arg22[%c10, %c0_365], %497 {strides = array<i32>} : memref<48x256xf32, #tpu.memory_space<vmem>>, vector<1x128xf32>,
    %499 = vector.extract_strided_slice %483 {offsets = [0, 5, 0], sizes = [1, 1, 128], strides = [1, 1, 1]} : vector<2x8x128xf32> to vector<1x1x128xf32>
    %500 = vector.shape_cast %499 : vector<1x1x128xf32> to vector<1x128xf32>
    %c10_366 = arith.constant 10 : index
    %c128_367 = arith.constant 128 : index
    %501 = vector.load %arg22[%c10_366, %c128_367] : memref<48x256xf32, #tpu.memory_space<vmem>>, vector<1x128xf32>
    tpu.vector_store %arg22[%c10_366, %c128_367], %500 {strides = array<i32>} : memref<48x256xf32, #tpu.memory_space<vmem>>, vector<1x128xf32>,
    %502 = vector.extract_strided_slice %483 {offsets = [0, 6, 0], sizes = [1, 1, 128], strides = [1, 1, 1]} : vector<2x8x128xf32> to vector<1x1x128xf32>
    %503 = vector.shape_cast %502 : vector<1x1x128xf32> to vector<1x128xf32>
    %c11 = arith.constant 11 : index
    %c0_368 = arith.constant 0 : index
    %504 = vector.load %arg22[%c11, %c0_368] : memref<48x256xf32, #tpu.memory_space<vmem>>, vector<1x128xf32>
    tpu.vector_store %arg22[%c11, %c0_368], %503 {strides = array<i32>} : memref<48x256xf32, #tpu.memory_space<vmem>>, vector<1x128xf32>,
    %505 = vector.extract_strided_slice %483 {offsets = [0, 7, 0], sizes = [1, 1, 128], strides = [1, 1, 1]} : vector<2x8x128xf32> to vector<1x1x128xf32>
    %506 = vector.shape_cast %505 : vector<1x1x128xf32> to vector<1x128xf32>
    %c11_369 = arith.constant 11 : index
    %c128_370 = arith.constant 128 : index
    %507 = vector.load %arg22[%c11_369, %c128_370] : memref<48x256xf32, #tpu.memory_space<vmem>>, vector<1x128xf32>
    tpu.vector_store %arg22[%c11_369, %c128_370], %506 {strides = array<i32>} : memref<48x256xf32, #tpu.memory_space<vmem>>, vector<1x128xf32>,
    %508 = vector.extract_strided_slice %483 {offsets = [1, 0, 0], sizes = [1, 1, 128], strides = [1, 1, 1]} : vector<2x8x128xf32> to vector<1x1x128xf32>
    %509 = vector.shape_cast %508 : vector<1x1x128xf32> to vector<1x128xf32>
    %c12 = arith.constant 12 : index
    %c0_371 = arith.constant 0 : index
    %510 = vector.load %arg22[%c12, %c0_371] : memref<48x256xf32, #tpu.memory_space<vmem>>, vector<1x128xf32>
    tpu.vector_store %arg22[%c12, %c0_371], %509 {strides = array<i32>} : memref<48x256xf32, #tpu.memory_space<vmem>>, vector<1x128xf32>,
    %511 = vector.extract_strided_slice %483 {offsets = [1, 1, 0], sizes = [1, 1, 128], strides = [1, 1, 1]} : vector<2x8x128xf32> to vector<1x1x128xf32>
    %512 = vector.shape_cast %511 : vector<1x1x128xf32> to vector<1x128xf32>
    %c12_372 = arith.constant 12 : index
    %c128_373 = arith.constant 128 : index
    %513 = vector.load %arg22[%c12_372, %c128_373] : memref<48x256xf32, #tpu.memory_space<vmem>>, vector<1x128xf32>
    tpu.vector_store %arg22[%c12_372, %c128_373], %512 {strides = array<i32>} : memref<48x256xf32, #tpu.memory_space<vmem>>, vector<1x128xf32>,
    %514 = vector.extract_strided_slice %483 {offsets = [1, 2, 0], sizes = [1, 1, 128], strides = [1, 1, 1]} : vector<2x8x128xf32> to vector<1x1x128xf32>
    %515 = vector.shape_cast %514 : vector<1x1x128xf32> to vector<1x128xf32>
    %c13 = arith.constant 13 : index
    %c0_374 = arith.constant 0 : index
    %516 = vector.load %arg22[%c13, %c0_374] : memref<48x256xf32, #tpu.memory_space<vmem>>, vector<1x128xf32>
    tpu.vector_store %arg22[%c13, %c0_374], %515 {strides = array<i32>} : memref<48x256xf32, #tpu.memory_space<vmem>>, vector<1x128xf32>,
    %517 = vector.extract_strided_slice %483 {offsets = [1, 3, 0], sizes = [1, 1, 128], strides = [1, 1, 1]} : vector<2x8x128xf32> to vector<1x1x128xf32>
    %518 = vector.shape_cast %517 : vector<1x1x128xf32> to vector<1x128xf32>
    %c13_375 = arith.constant 13 : index
    %c128_376 = arith.constant 128 : index
    %519 = vector.load %arg22[%c13_375, %c128_376] : memref<48x256xf32, #tpu.memory_space<vmem>>, vector<1x128xf32>
    tpu.vector_store %arg22[%c13_375, %c128_376], %518 {strides = array<i32>} : memref<48x256xf32, #tpu.memory_space<vmem>>, vector<1x128xf32>,
    %520 = vector.extract_strided_slice %483 {offsets = [1, 4, 0], sizes = [1, 1, 128], strides = [1, 1, 1]} : vector<2x8x128xf32> to vector<1x1x128xf32>
    %521 = vector.shape_cast %520 : vector<1x1x128xf32> to vector<1x128xf32>
    %c14 = arith.constant 14 : index
    %c0_377 = arith.constant 0 : index
    %522 = vector.load %arg22[%c14, %c0_377] : memref<48x256xf32, #tpu.memory_space<vmem>>, vector<1x128xf32>
    tpu.vector_store %arg22[%c14, %c0_377], %521 {strides = array<i32>} : memref<48x256xf32, #tpu.memory_space<vmem>>, vector<1x128xf32>,
    %523 = vector.extract_strided_slice %483 {offsets = [1, 5, 0], sizes = [1, 1, 128], strides = [1, 1, 1]} : vector<2x8x128xf32> to vector<1x1x128xf32>
    %524 = vector.shape_cast %523 : vector<1x1x128xf32> to vector<1x128xf32>
    %c14_378 = arith.constant 14 : index
    %c128_379 = arith.constant 128 : index
    %525 = vector.load %arg22[%c14_378, %c128_379] : memref<48x256xf32, #tpu.memory_space<vmem>>, vector<1x128xf32>
    tpu.vector_store %arg22[%c14_378, %c128_379], %524 {strides = array<i32>} : memref<48x256xf32, #tpu.memory_space<vmem>>, vector<1x128xf32>,
    %526 = vector.extract_strided_slice %483 {offsets = [1, 6, 0], sizes = [1, 1, 128], strides = [1, 1, 1]} : vector<2x8x128xf32> to vector<1x1x128xf32>
    %527 = vector.shape_cast %526 : vector<1x1x128xf32> to vector<1x128xf32>
    %c15 = arith.constant 15 : index
    %c0_380 = arith.constant 0 : index
    %528 = vector.load %arg22[%c15, %c0_380] : memref<48x256xf32, #tpu.memory_space<vmem>>, vector<1x128xf32>
    tpu.vector_store %arg22[%c15, %c0_380], %527 {strides = array<i32>} : memref<48x256xf32, #tpu.memory_space<vmem>>, vector<1x128xf32>,
    %529 = vector.extract_strided_slice %483 {offsets = [1, 7, 0], sizes = [1, 1, 128], strides = [1, 1, 1]} : vector<2x8x128xf32> to vector<1x1x128xf32>
    %530 = vector.shape_cast %529 : vector<1x1x128xf32> to vector<1x128xf32>
    %c15_381 = arith.constant 15 : index
    %c128_382 = arith.constant 128 : index
    %531 = vector.load %arg22[%c15_381, %c128_382] : memref<48x256xf32, #tpu.memory_space<vmem>>, vector<1x128xf32>
    tpu.vector_store %arg22[%c15_381, %c128_382], %530 {strides = array<i32>} : memref<48x256xf32, #tpu.memory_space<vmem>>, vector<1x128xf32>,
    %532 = vector.extract_strided_slice %5 {offsets = [16, 0], sizes = [1, 128], strides = [1, 1]} : vector<48x256xf32> to vector<1x128xf32>
    %c0_383 = arith.constant 0 : index
    %c0_384 = arith.constant 0 : index
    %c0_385 = arith.constant 0 : index
    %533 = vector.load %arg19[%c0_383, %c0_384, %c0_385] : memref<2x8x128xf32, #tpu.memory_space<vmem>>, vector<1x1x128xf32>
    %534 = vector.shape_cast %533 : vector<1x1x128xf32> to vector<1x128xf32>
    %535 = vector.shape_cast %532 : vector<1x128xf32> to vector<1x1x128xf32>
    tpu.vector_store %arg19[%c0_383, %c0_384, %c0_385], %535 {strides = array<i32>} : memref<2x8x128xf32, #tpu.memory_space<vmem>>, vector<1x1x128xf32>,
    %536 = vector.extract_strided_slice %11 {offsets = [16, 0], sizes = [1, 128], strides = [1, 1]} : vector<48x256xf32> to vector<1x128xf32>
    %c0_386 = arith.constant 0 : index
    %c0_387 = arith.constant 0 : index
    %c0_388 = arith.constant 0 : index
    %537 = vector.load %arg20[%c0_386, %c0_387, %c0_388] : memref<2x8x128xf32, #tpu.memory_space<vmem>>, vector<1x1x128xf32>
    %538 = vector.shape_cast %537 : vector<1x1x128xf32> to vector<1x128xf32>
    %539 = vector.shape_cast %536 : vector<1x128xf32> to vector<1x1x128xf32>
    tpu.vector_store %arg20[%c0_386, %c0_387, %c0_388], %539 {strides = array<i32>} : memref<2x8x128xf32, #tpu.memory_space<vmem>>, vector<1x1x128xf32>,
    %540 = vector.extract_strided_slice %17 {offsets = [16, 0], sizes = [1, 128], strides = [1, 1]} : vector<48x256xf32> to vector<1x128xf32>
    %c0_389 = arith.constant 0 : index
    %c0_390 = arith.constant 0 : index
    %c0_391 = arith.constant 0 : index
    %541 = vector.load %arg21[%c0_389, %c0_390, %c0_391] : memref<2x8x128xf32, #tpu.memory_space<vmem>>, vector<1x1x128xf32>
    %542 = vector.shape_cast %541 : vector<1x1x128xf32> to vector<1x128xf32>
    %543 = vector.shape_cast %540 : vector<1x128xf32> to vector<1x1x128xf32>
    tpu.vector_store %arg21[%c0_389, %c0_390, %c0_391], %543 {strides = array<i32>} : memref<2x8x128xf32, #tpu.memory_space<vmem>>, vector<1x1x128xf32>,
    %544 = vector.extract_strided_slice %5 {offsets = [16, 128], sizes = [1, 128], strides = [1, 1]} : vector<48x256xf32> to vector<1x128xf32>
    %c0_392 = arith.constant 0 : index
    %c1_393 = arith.constant 1 : index
    %c0_394 = arith.constant 0 : index
    %545 = vector.load %arg19[%c0_392, %c1_393, %c0_394] : memref<2x8x128xf32, #tpu.memory_space<vmem>>, vector<1x1x128xf32>
    %546 = vector.shape_cast %545 : vector<1x1x128xf32> to vector<1x128xf32>
    %547 = vector.shape_cast %544 : vector<1x128xf32> to vector<1x1x128xf32>
    tpu.vector_store %arg19[%c0_392, %c1_393, %c0_394], %547 {strides = array<i32>} : memref<2x8x128xf32, #tpu.memory_space<vmem>>, vector<1x1x128xf32>,
    %548 = vector.extract_strided_slice %11 {offsets = [16, 128], sizes = [1, 128], strides = [1, 1]} : vector<48x256xf32> to vector<1x128xf32>
    %c0_395 = arith.constant 0 : index
    %c1_396 = arith.constant 1 : index
    %c0_397 = arith.constant 0 : index
    %549 = vector.load %arg20[%c0_395, %c1_396, %c0_397] : memref<2x8x128xf32, #tpu.memory_space<vmem>>, vector<1x1x128xf32>
    %550 = vector.shape_cast %549 : vector<1x1x128xf32> to vector<1x128xf32>
    %551 = vector.shape_cast %548 : vector<1x128xf32> to vector<1x1x128xf32>
    tpu.vector_store %arg20[%c0_395, %c1_396, %c0_397], %551 {strides = array<i32>} : memref<2x8x128xf32, #tpu.memory_space<vmem>>, vector<1x1x128xf32>,
    %552 = vector.extract_strided_slice %17 {offsets = [16, 128], sizes = [1, 128], strides = [1, 1]} : vector<48x256xf32> to vector<1x128xf32>
    %c0_398 = arith.constant 0 : index
    %c1_399 = arith.constant 1 : index
    %c0_400 = arith.constant 0 : index
    %553 = vector.load %arg21[%c0_398, %c1_399, %c0_400] : memref<2x8x128xf32, #tpu.memory_space<vmem>>, vector<1x1x128xf32>
    %554 = vector.shape_cast %553 : vector<1x1x128xf32> to vector<1x128xf32>
    %555 = vector.shape_cast %552 : vector<1x128xf32> to vector<1x1x128xf32>
    tpu.vector_store %arg21[%c0_398, %c1_399, %c0_400], %555 {strides = array<i32>} : memref<2x8x128xf32, #tpu.memory_space<vmem>>, vector<1x1x128xf32>,
    %556 = vector.extract_strided_slice %5 {offsets = [17, 0], sizes = [1, 128], strides = [1, 1]} : vector<48x256xf32> to vector<1x128xf32>
    %c0_401 = arith.constant 0 : index
    %c2_402 = arith.constant 2 : index
    %c0_403 = arith.constant 0 : index
    %557 = vector.load %arg19[%c0_401, %c2_402, %c0_403] : memref<2x8x128xf32, #tpu.memory_space<vmem>>, vector<1x1x128xf32>
    %558 = vector.shape_cast %557 : vector<1x1x128xf32> to vector<1x128xf32>
    %559 = vector.shape_cast %556 : vector<1x128xf32> to vector<1x1x128xf32>
    tpu.vector_store %arg19[%c0_401, %c2_402, %c0_403], %559 {strides = array<i32>} : memref<2x8x128xf32, #tpu.memory_space<vmem>>, vector<1x1x128xf32>,
    %560 = vector.extract_strided_slice %11 {offsets = [17, 0], sizes = [1, 128], strides = [1, 1]} : vector<48x256xf32> to vector<1x128xf32>
    %c0_404 = arith.constant 0 : index
    %c2_405 = arith.constant 2 : index
    %c0_406 = arith.constant 0 : index
    %561 = vector.load %arg20[%c0_404, %c2_405, %c0_406] : memref<2x8x128xf32, #tpu.memory_space<vmem>>, vector<1x1x128xf32>
    %562 = vector.shape_cast %561 : vector<1x1x128xf32> to vector<1x128xf32>
    %563 = vector.shape_cast %560 : vector<1x128xf32> to vector<1x1x128xf32>
    tpu.vector_store %arg20[%c0_404, %c2_405, %c0_406], %563 {strides = array<i32>} : memref<2x8x128xf32, #tpu.memory_space<vmem>>, vector<1x1x128xf32>,
    %564 = vector.extract_strided_slice %17 {offsets = [17, 0], sizes = [1, 128], strides = [1, 1]} : vector<48x256xf32> to vector<1x128xf32>
    %c0_407 = arith.constant 0 : index
    %c2_408 = arith.constant 2 : index
    %c0_409 = arith.constant 0 : index
    %565 = vector.load %arg21[%c0_407, %c2_408, %c0_409] : memref<2x8x128xf32, #tpu.memory_space<vmem>>, vector<1x1x128xf32>
    %566 = vector.shape_cast %565 : vector<1x1x128xf32> to vector<1x128xf32>
    %567 = vector.shape_cast %564 : vector<1x128xf32> to vector<1x1x128xf32>
    tpu.vector_store %arg21[%c0_407, %c2_408, %c0_409], %567 {strides = array<i32>} : memref<2x8x128xf32, #tpu.memory_space<vmem>>, vector<1x1x128xf32>,
    %568 = vector.extract_strided_slice %5 {offsets = [17, 128], sizes = [1, 128], strides = [1, 1]} : vector<48x256xf32> to vector<1x128xf32>
    %c0_410 = arith.constant 0 : index
    %c3_411 = arith.constant 3 : index
    %c0_412 = arith.constant 0 : index
    %569 = vector.load %arg19[%c0_410, %c3_411, %c0_412] : memref<2x8x128xf32, #tpu.memory_space<vmem>>, vector<1x1x128xf32>
    %570 = vector.shape_cast %569 : vector<1x1x128xf32> to vector<1x128xf32>
    %571 = vector.shape_cast %568 : vector<1x128xf32> to vector<1x1x128xf32>
    tpu.vector_store %arg19[%c0_410, %c3_411, %c0_412], %571 {strides = array<i32>} : memref<2x8x128xf32, #tpu.memory_space<vmem>>, vector<1x1x128xf32>,
    %572 = vector.extract_strided_slice %11 {offsets = [17, 128], sizes = [1, 128], strides = [1, 1]} : vector<48x256xf32> to vector<1x128xf32>
    %c0_413 = arith.constant 0 : index
    %c3_414 = arith.constant 3 : index
    %c0_415 = arith.constant 0 : index
    %573 = vector.load %arg20[%c0_413, %c3_414, %c0_415] : memref<2x8x128xf32, #tpu.memory_space<vmem>>, vector<1x1x128xf32>
    %574 = vector.shape_cast %573 : vector<1x1x128xf32> to vector<1x128xf32>
    %575 = vector.shape_cast %572 : vector<1x128xf32> to vector<1x1x128xf32>
    tpu.vector_store %arg20[%c0_413, %c3_414, %c0_415], %575 {strides = array<i32>} : memref<2x8x128xf32, #tpu.memory_space<vmem>>, vector<1x1x128xf32>,
    %576 = vector.extract_strided_slice %17 {offsets = [17, 128], sizes = [1, 128], strides = [1, 1]} : vector<48x256xf32> to vector<1x128xf32>
    %c0_416 = arith.constant 0 : index
    %c3_417 = arith.constant 3 : index
    %c0_418 = arith.constant 0 : index
    %577 = vector.load %arg21[%c0_416, %c3_417, %c0_418] : memref<2x8x128xf32, #tpu.memory_space<vmem>>, vector<1x1x128xf32>
    %578 = vector.shape_cast %577 : vector<1x1x128xf32> to vector<1x128xf32>
    %579 = vector.shape_cast %576 : vector<1x128xf32> to vector<1x1x128xf32>
    tpu.vector_store %arg21[%c0_416, %c3_417, %c0_418], %579 {strides = array<i32>} : memref<2x8x128xf32, #tpu.memory_space<vmem>>, vector<1x1x128xf32>,
    %580 = vector.extract_strided_slice %5 {offsets = [18, 0], sizes = [1, 128], strides = [1, 1]} : vector<48x256xf32> to vector<1x128xf32>
    %c0_419 = arith.constant 0 : index
    %c4_420 = arith.constant 4 : index
    %c0_421 = arith.constant 0 : index
    %581 = vector.load %arg19[%c0_419, %c4_420, %c0_421] : memref<2x8x128xf32, #tpu.memory_space<vmem>>, vector<1x1x128xf32>
    %582 = vector.shape_cast %581 : vector<1x1x128xf32> to vector<1x128xf32>
    %583 = vector.shape_cast %580 : vector<1x128xf32> to vector<1x1x128xf32>
    tpu.vector_store %arg19[%c0_419, %c4_420, %c0_421], %583 {strides = array<i32>} : memref<2x8x128xf32, #tpu.memory_space<vmem>>, vector<1x1x128xf32>,
    %584 = vector.extract_strided_slice %11 {offsets = [18, 0], sizes = [1, 128], strides = [1, 1]} : vector<48x256xf32> to vector<1x128xf32>
    %c0_422 = arith.constant 0 : index
    %c4_423 = arith.constant 4 : index
    %c0_424 = arith.constant 0 : index
    %585 = vector.load %arg20[%c0_422, %c4_423, %c0_424] : memref<2x8x128xf32, #tpu.memory_space<vmem>>, vector<1x1x128xf32>
    %586 = vector.shape_cast %585 : vector<1x1x128xf32> to vector<1x128xf32>
    %587 = vector.shape_cast %584 : vector<1x128xf32> to vector<1x1x128xf32>
    tpu.vector_store %arg20[%c0_422, %c4_423, %c0_424], %587 {strides = array<i32>} : memref<2x8x128xf32, #tpu.memory_space<vmem>>, vector<1x1x128xf32>,
    %588 = vector.extract_strided_slice %17 {offsets = [18, 0], sizes = [1, 128], strides = [1, 1]} : vector<48x256xf32> to vector<1x128xf32>
    %c0_425 = arith.constant 0 : index
    %c4_426 = arith.constant 4 : index
    %c0_427 = arith.constant 0 : index
    %589 = vector.load %arg21[%c0_425, %c4_426, %c0_427] : memref<2x8x128xf32, #tpu.memory_space<vmem>>, vector<1x1x128xf32>
    %590 = vector.shape_cast %589 : vector<1x1x128xf32> to vector<1x128xf32>
    %591 = vector.shape_cast %588 : vector<1x128xf32> to vector<1x1x128xf32>
    tpu.vector_store %arg21[%c0_425, %c4_426, %c0_427], %591 {strides = array<i32>} : memref<2x8x128xf32, #tpu.memory_space<vmem>>, vector<1x1x128xf32>,
    %592 = vector.extract_strided_slice %5 {offsets = [18, 128], sizes = [1, 128], strides = [1, 1]} : vector<48x256xf32> to vector<1x128xf32>
    %c0_428 = arith.constant 0 : index
    %c5_429 = arith.constant 5 : index
    %c0_430 = arith.constant 0 : index
    %593 = vector.load %arg19[%c0_428, %c5_429, %c0_430] : memref<2x8x128xf32, #tpu.memory_space<vmem>>, vector<1x1x128xf32>
    %594 = vector.shape_cast %593 : vector<1x1x128xf32> to vector<1x128xf32>
    %595 = vector.shape_cast %592 : vector<1x128xf32> to vector<1x1x128xf32>
    tpu.vector_store %arg19[%c0_428, %c5_429, %c0_430], %595 {strides = array<i32>} : memref<2x8x128xf32, #tpu.memory_space<vmem>>, vector<1x1x128xf32>,
    %596 = vector.extract_strided_slice %11 {offsets = [18, 128], sizes = [1, 128], strides = [1, 1]} : vector<48x256xf32> to vector<1x128xf32>
    %c0_431 = arith.constant 0 : index
    %c5_432 = arith.constant 5 : index
    %c0_433 = arith.constant 0 : index
    %597 = vector.load %arg20[%c0_431, %c5_432, %c0_433] : memref<2x8x128xf32, #tpu.memory_space<vmem>>, vector<1x1x128xf32>
    %598 = vector.shape_cast %597 : vector<1x1x128xf32> to vector<1x128xf32>
    %599 = vector.shape_cast %596 : vector<1x128xf32> to vector<1x1x128xf32>
    tpu.vector_store %arg20[%c0_431, %c5_432, %c0_433], %599 {strides = array<i32>} : memref<2x8x128xf32, #tpu.memory_space<vmem>>, vector<1x1x128xf32>,
    %600 = vector.extract_strided_slice %17 {offsets = [18, 128], sizes = [1, 128], strides = [1, 1]} : vector<48x256xf32> to vector<1x128xf32>
    %c0_434 = arith.constant 0 : index
    %c5_435 = arith.constant 5 : index
    %c0_436 = arith.constant 0 : index
    %601 = vector.load %arg21[%c0_434, %c5_435, %c0_436] : memref<2x8x128xf32, #tpu.memory_space<vmem>>, vector<1x1x128xf32>
    %602 = vector.shape_cast %601 : vector<1x1x128xf32> to vector<1x128xf32>
    %603 = vector.shape_cast %600 : vector<1x128xf32> to vector<1x1x128xf32>
    tpu.vector_store %arg21[%c0_434, %c5_435, %c0_436], %603 {strides = array<i32>} : memref<2x8x128xf32, #tpu.memory_space<vmem>>, vector<1x1x128xf32>,
    %604 = vector.extract_strided_slice %5 {offsets = [19, 0], sizes = [1, 128], strides = [1, 1]} : vector<48x256xf32> to vector<1x128xf32>
    %c0_437 = arith.constant 0 : index
    %c6_438 = arith.constant 6 : index
    %c0_439 = arith.constant 0 : index
    %605 = vector.load %arg19[%c0_437, %c6_438, %c0_439] : memref<2x8x128xf32, #tpu.memory_space<vmem>>, vector<1x1x128xf32>
    %606 = vector.shape_cast %605 : vector<1x1x128xf32> to vector<1x128xf32>
    %607 = vector.shape_cast %604 : vector<1x128xf32> to vector<1x1x128xf32>
    tpu.vector_store %arg19[%c0_437, %c6_438, %c0_439], %607 {strides = array<i32>} : memref<2x8x128xf32, #tpu.memory_space<vmem>>, vector<1x1x128xf32>,
    %608 = vector.extract_strided_slice %11 {offsets = [19, 0], sizes = [1, 128], strides = [1, 1]} : vector<48x256xf32> to vector<1x128xf32>
    %c0_440 = arith.constant 0 : index
    %c6_441 = arith.constant 6 : index
    %c0_442 = arith.constant 0 : index
    %609 = vector.load %arg20[%c0_440, %c6_441, %c0_442] : memref<2x8x128xf32, #tpu.memory_space<vmem>>, vector<1x1x128xf32>
    %610 = vector.shape_cast %609 : vector<1x1x128xf32> to vector<1x128xf32>
    %611 = vector.shape_cast %608 : vector<1x128xf32> to vector<1x1x128xf32>
    tpu.vector_store %arg20[%c0_440, %c6_441, %c0_442], %611 {strides = array<i32>} : memref<2x8x128xf32, #tpu.memory_space<vmem>>, vector<1x1x128xf32>,
    %612 = vector.extract_strided_slice %17 {offsets = [19, 0], sizes = [1, 128], strides = [1, 1]} : vector<48x256xf32> to vector<1x128xf32>
    %c0_443 = arith.constant 0 : index
    %c6_444 = arith.constant 6 : index
    %c0_445 = arith.constant 0 : index
    %613 = vector.load %arg21[%c0_443, %c6_444, %c0_445] : memref<2x8x128xf32, #tpu.memory_space<vmem>>, vector<1x1x128xf32>
    %614 = vector.shape_cast %613 : vector<1x1x128xf32> to vector<1x128xf32>
    %615 = vector.shape_cast %612 : vector<1x128xf32> to vector<1x1x128xf32>
    tpu.vector_store %arg21[%c0_443, %c6_444, %c0_445], %615 {strides = array<i32>} : memref<2x8x128xf32, #tpu.memory_space<vmem>>, vector<1x1x128xf32>,
    %616 = vector.extract_strided_slice %5 {offsets = [19, 128], sizes = [1, 128], strides = [1, 1]} : vector<48x256xf32> to vector<1x128xf32>
    %c0_446 = arith.constant 0 : index
    %c7_447 = arith.constant 7 : index
    %c0_448 = arith.constant 0 : index
    %617 = vector.load %arg19[%c0_446, %c7_447, %c0_448] : memref<2x8x128xf32, #tpu.memory_space<vmem>>, vector<1x1x128xf32>
    %618 = vector.shape_cast %617 : vector<1x1x128xf32> to vector<1x128xf32>
    %619 = vector.shape_cast %616 : vector<1x128xf32> to vector<1x1x128xf32>
    tpu.vector_store %arg19[%c0_446, %c7_447, %c0_448], %619 {strides = array<i32>} : memref<2x8x128xf32, #tpu.memory_space<vmem>>, vector<1x1x128xf32>,
    %620 = vector.extract_strided_slice %11 {offsets = [19, 128], sizes = [1, 128], strides = [1, 1]} : vector<48x256xf32> to vector<1x128xf32>
    %c0_449 = arith.constant 0 : index
    %c7_450 = arith.constant 7 : index
    %c0_451 = arith.constant 0 : index
    %621 = vector.load %arg20[%c0_449, %c7_450, %c0_451] : memref<2x8x128xf32, #tpu.memory_space<vmem>>, vector<1x1x128xf32>
    %622 = vector.shape_cast %621 : vector<1x1x128xf32> to vector<1x128xf32>
    %623 = vector.shape_cast %620 : vector<1x128xf32> to vector<1x1x128xf32>
    tpu.vector_store %arg20[%c0_449, %c7_450, %c0_451], %623 {strides = array<i32>} : memref<2x8x128xf32, #tpu.memory_space<vmem>>, vector<1x1x128xf32>,
    %624 = vector.extract_strided_slice %17 {offsets = [19, 128], sizes = [1, 128], strides = [1, 1]} : vector<48x256xf32> to vector<1x128xf32>
    %c0_452 = arith.constant 0 : index
    %c7_453 = arith.constant 7 : index
    %c0_454 = arith.constant 0 : index
    %625 = vector.load %arg21[%c0_452, %c7_453, %c0_454] : memref<2x8x128xf32, #tpu.memory_space<vmem>>, vector<1x1x128xf32>
    %626 = vector.shape_cast %625 : vector<1x1x128xf32> to vector<1x128xf32>
    %627 = vector.shape_cast %624 : vector<1x128xf32> to vector<1x1x128xf32>
    tpu.vector_store %arg21[%c0_452, %c7_453, %c0_454], %627 {strides = array<i32>} : memref<2x8x128xf32, #tpu.memory_space<vmem>>, vector<1x1x128xf32>,
    %628 = vector.extract_strided_slice %5 {offsets = [20, 0], sizes = [1, 128], strides = [1, 1]} : vector<48x256xf32> to vector<1x128xf32>
    %c1_455 = arith.constant 1 : index
    %c0_456 = arith.constant 0 : index
    %c0_457 = arith.constant 0 : index
    %629 = vector.load %arg19[%c1_455, %c0_456, %c0_457] : memref<2x8x128xf32, #tpu.memory_space<vmem>>, vector<1x1x128xf32>
    %630 = vector.shape_cast %629 : vector<1x1x128xf32> to vector<1x128xf32>
    %631 = vector.shape_cast %628 : vector<1x128xf32> to vector<1x1x128xf32>
    tpu.vector_store %arg19[%c1_455, %c0_456, %c0_457], %631 {strides = array<i32>} : memref<2x8x128xf32, #tpu.memory_space<vmem>>, vector<1x1x128xf32>,
    %632 = vector.extract_strided_slice %11 {offsets = [20, 0], sizes = [1, 128], strides = [1, 1]} : vector<48x256xf32> to vector<1x128xf32>
    %c1_458 = arith.constant 1 : index
    %c0_459 = arith.constant 0 : index
    %c0_460 = arith.constant 0 : index
    %633 = vector.load %arg20[%c1_458, %c0_459, %c0_460] : memref<2x8x128xf32, #tpu.memory_space<vmem>>, vector<1x1x128xf32>
    %634 = vector.shape_cast %633 : vector<1x1x128xf32> to vector<1x128xf32>
    %635 = vector.shape_cast %632 : vector<1x128xf32> to vector<1x1x128xf32>
    tpu.vector_store %arg20[%c1_458, %c0_459, %c0_460], %635 {strides = array<i32>} : memref<2x8x128xf32, #tpu.memory_space<vmem>>, vector<1x1x128xf32>,
    %636 = vector.extract_strided_slice %17 {offsets = [20, 0], sizes = [1, 128], strides = [1, 1]} : vector<48x256xf32> to vector<1x128xf32>
    %c1_461 = arith.constant 1 : index
    %c0_462 = arith.constant 0 : index
    %c0_463 = arith.constant 0 : index
    %637 = vector.load %arg21[%c1_461, %c0_462, %c0_463] : memref<2x8x128xf32, #tpu.memory_space<vmem>>, vector<1x1x128xf32>
    %638 = vector.shape_cast %637 : vector<1x1x128xf32> to vector<1x128xf32>
    %639 = vector.shape_cast %636 : vector<1x128xf32> to vector<1x1x128xf32>
    tpu.vector_store %arg21[%c1_461, %c0_462, %c0_463], %639 {strides = array<i32>} : memref<2x8x128xf32, #tpu.memory_space<vmem>>, vector<1x1x128xf32>,
    %640 = vector.extract_strided_slice %5 {offsets = [20, 128], sizes = [1, 128], strides = [1, 1]} : vector<48x256xf32> to vector<1x128xf32>
    %c1_464 = arith.constant 1 : index
    %c1_465 = arith.constant 1 : index
    %c0_466 = arith.constant 0 : index
    %641 = vector.load %arg19[%c1_464, %c1_465, %c0_466] : memref<2x8x128xf32, #tpu.memory_space<vmem>>, vector<1x1x128xf32>
    %642 = vector.shape_cast %641 : vector<1x1x128xf32> to vector<1x128xf32>
    %643 = vector.shape_cast %640 : vector<1x128xf32> to vector<1x1x128xf32>
    tpu.vector_store %arg19[%c1_464, %c1_465, %c0_466], %643 {strides = array<i32>} : memref<2x8x128xf32, #tpu.memory_space<vmem>>, vector<1x1x128xf32>,
    %644 = vector.extract_strided_slice %11 {offsets = [20, 128], sizes = [1, 128], strides = [1, 1]} : vector<48x256xf32> to vector<1x128xf32>
    %c1_467 = arith.constant 1 : index
    %c1_468 = arith.constant 1 : index
    %c0_469 = arith.constant 0 : index
    %645 = vector.load %arg20[%c1_467, %c1_468, %c0_469] : memref<2x8x128xf32, #tpu.memory_space<vmem>>, vector<1x1x128xf32>
    %646 = vector.shape_cast %645 : vector<1x1x128xf32> to vector<1x128xf32>
    %647 = vector.shape_cast %644 : vector<1x128xf32> to vector<1x1x128xf32>
    tpu.vector_store %arg20[%c1_467, %c1_468, %c0_469], %647 {strides = array<i32>} : memref<2x8x128xf32, #tpu.memory_space<vmem>>, vector<1x1x128xf32>,
    %648 = vector.extract_strided_slice %17 {offsets = [20, 128], sizes = [1, 128], strides = [1, 1]} : vector<48x256xf32> to vector<1x128xf32>
    %c1_470 = arith.constant 1 : index
    %c1_471 = arith.constant 1 : index
    %c0_472 = arith.constant 0 : index
    %649 = vector.load %arg21[%c1_470, %c1_471, %c0_472] : memref<2x8x128xf32, #tpu.memory_space<vmem>>, vector<1x1x128xf32>
    %650 = vector.shape_cast %649 : vector<1x1x128xf32> to vector<1x128xf32>
    %651 = vector.shape_cast %648 : vector<1x128xf32> to vector<1x1x128xf32>
    tpu.vector_store %arg21[%c1_470, %c1_471, %c0_472], %651 {strides = array<i32>} : memref<2x8x128xf32, #tpu.memory_space<vmem>>, vector<1x1x128xf32>,
    %652 = vector.extract_strided_slice %5 {offsets = [21, 0], sizes = [1, 128], strides = [1, 1]} : vector<48x256xf32> to vector<1x128xf32>
    %c1_473 = arith.constant 1 : index
    %c2_474 = arith.constant 2 : index
    %c0_475 = arith.constant 0 : index
    %653 = vector.load %arg19[%c1_473, %c2_474, %c0_475] : memref<2x8x128xf32, #tpu.memory_space<vmem>>, vector<1x1x128xf32>
    %654 = vector.shape_cast %653 : vector<1x1x128xf32> to vector<1x128xf32>
    %655 = vector.shape_cast %652 : vector<1x128xf32> to vector<1x1x128xf32>
    tpu.vector_store %arg19[%c1_473, %c2_474, %c0_475], %655 {strides = array<i32>} : memref<2x8x128xf32, #tpu.memory_space<vmem>>, vector<1x1x128xf32>,
    %656 = vector.extract_strided_slice %11 {offsets = [21, 0], sizes = [1, 128], strides = [1, 1]} : vector<48x256xf32> to vector<1x128xf32>
    %c1_476 = arith.constant 1 : index
    %c2_477 = arith.constant 2 : index
    %c0_478 = arith.constant 0 : index
    %657 = vector.load %arg20[%c1_476, %c2_477, %c0_478] : memref<2x8x128xf32, #tpu.memory_space<vmem>>, vector<1x1x128xf32>
    %658 = vector.shape_cast %657 : vector<1x1x128xf32> to vector<1x128xf32>
    %659 = vector.shape_cast %656 : vector<1x128xf32> to vector<1x1x128xf32>
    tpu.vector_store %arg20[%c1_476, %c2_477, %c0_478], %659 {strides = array<i32>} : memref<2x8x128xf32, #tpu.memory_space<vmem>>, vector<1x1x128xf32>,
    %660 = vector.extract_strided_slice %17 {offsets = [21, 0], sizes = [1, 128], strides = [1, 1]} : vector<48x256xf32> to vector<1x128xf32>
    %c1_479 = arith.constant 1 : index
    %c2_480 = arith.constant 2 : index
    %c0_481 = arith.constant 0 : index
    %661 = vector.load %arg21[%c1_479, %c2_480, %c0_481] : memref<2x8x128xf32, #tpu.memory_space<vmem>>, vector<1x1x128xf32>
    %662 = vector.shape_cast %661 : vector<1x1x128xf32> to vector<1x128xf32>
    %663 = vector.shape_cast %660 : vector<1x128xf32> to vector<1x1x128xf32>
    tpu.vector_store %arg21[%c1_479, %c2_480, %c0_481], %663 {strides = array<i32>} : memref<2x8x128xf32, #tpu.memory_space<vmem>>, vector<1x1x128xf32>,
    %664 = vector.extract_strided_slice %5 {offsets = [21, 128], sizes = [1, 128], strides = [1, 1]} : vector<48x256xf32> to vector<1x128xf32>
    %c1_482 = arith.constant 1 : index
    %c3_483 = arith.constant 3 : index
    %c0_484 = arith.constant 0 : index
    %665 = vector.load %arg19[%c1_482, %c3_483, %c0_484] : memref<2x8x128xf32, #tpu.memory_space<vmem>>, vector<1x1x128xf32>
    %666 = vector.shape_cast %665 : vector<1x1x128xf32> to vector<1x128xf32>
    %667 = vector.shape_cast %664 : vector<1x128xf32> to vector<1x1x128xf32>
    tpu.vector_store %arg19[%c1_482, %c3_483, %c0_484], %667 {strides = array<i32>} : memref<2x8x128xf32, #tpu.memory_space<vmem>>, vector<1x1x128xf32>,
    %668 = vector.extract_strided_slice %11 {offsets = [21, 128], sizes = [1, 128], strides = [1, 1]} : vector<48x256xf32> to vector<1x128xf32>
    %c1_485 = arith.constant 1 : index
    %c3_486 = arith.constant 3 : index
    %c0_487 = arith.constant 0 : index
    %669 = vector.load %arg20[%c1_485, %c3_486, %c0_487] : memref<2x8x128xf32, #tpu.memory_space<vmem>>, vector<1x1x128xf32>
    %670 = vector.shape_cast %669 : vector<1x1x128xf32> to vector<1x128xf32>
    %671 = vector.shape_cast %668 : vector<1x128xf32> to vector<1x1x128xf32>
    tpu.vector_store %arg20[%c1_485, %c3_486, %c0_487], %671 {strides = array<i32>} : memref<2x8x128xf32, #tpu.memory_space<vmem>>, vector<1x1x128xf32>,
    %672 = vector.extract_strided_slice %17 {offsets = [21, 128], sizes = [1, 128], strides = [1, 1]} : vector<48x256xf32> to vector<1x128xf32>
    %c1_488 = arith.constant 1 : index
    %c3_489 = arith.constant 3 : index
    %c0_490 = arith.constant 0 : index
    %673 = vector.load %arg21[%c1_488, %c3_489, %c0_490] : memref<2x8x128xf32, #tpu.memory_space<vmem>>, vector<1x1x128xf32>
    %674 = vector.shape_cast %673 : vector<1x1x128xf32> to vector<1x128xf32>
    %675 = vector.shape_cast %672 : vector<1x128xf32> to vector<1x1x128xf32>
    tpu.vector_store %arg21[%c1_488, %c3_489, %c0_490], %675 {strides = array<i32>} : memref<2x8x128xf32, #tpu.memory_space<vmem>>, vector<1x1x128xf32>,
    %676 = vector.extract_strided_slice %5 {offsets = [22, 0], sizes = [1, 128], strides = [1, 1]} : vector<48x256xf32> to vector<1x128xf32>
    %c1_491 = arith.constant 1 : index
    %c4_492 = arith.constant 4 : index
    %c0_493 = arith.constant 0 : index
    %677 = vector.load %arg19[%c1_491, %c4_492, %c0_493] : memref<2x8x128xf32, #tpu.memory_space<vmem>>, vector<1x1x128xf32>
    %678 = vector.shape_cast %677 : vector<1x1x128xf32> to vector<1x128xf32>
    %679 = vector.shape_cast %676 : vector<1x128xf32> to vector<1x1x128xf32>
    tpu.vector_store %arg19[%c1_491, %c4_492, %c0_493], %679 {strides = array<i32>} : memref<2x8x128xf32, #tpu.memory_space<vmem>>, vector<1x1x128xf32>,
    %680 = vector.extract_strided_slice %11 {offsets = [22, 0], sizes = [1, 128], strides = [1, 1]} : vector<48x256xf32> to vector<1x128xf32>
    %c1_494 = arith.constant 1 : index
    %c4_495 = arith.constant 4 : index
    %c0_496 = arith.constant 0 : index
    %681 = vector.load %arg20[%c1_494, %c4_495, %c0_496] : memref<2x8x128xf32, #tpu.memory_space<vmem>>, vector<1x1x128xf32>
    %682 = vector.shape_cast %681 : vector<1x1x128xf32> to vector<1x128xf32>
    %683 = vector.shape_cast %680 : vector<1x128xf32> to vector<1x1x128xf32>
    tpu.vector_store %arg20[%c1_494, %c4_495, %c0_496], %683 {strides = array<i32>} : memref<2x8x128xf32, #tpu.memory_space<vmem>>, vector<1x1x128xf32>,
    %684 = vector.extract_strided_slice %17 {offsets = [22, 0], sizes = [1, 128], strides = [1, 1]} : vector<48x256xf32> to vector<1x128xf32>
    %c1_497 = arith.constant 1 : index
    %c4_498 = arith.constant 4 : index
    %c0_499 = arith.constant 0 : index
    %685 = vector.load %arg21[%c1_497, %c4_498, %c0_499] : memref<2x8x128xf32, #tpu.memory_space<vmem>>, vector<1x1x128xf32>
    %686 = vector.shape_cast %685 : vector<1x1x128xf32> to vector<1x128xf32>
    %687 = vector.shape_cast %684 : vector<1x128xf32> to vector<1x1x128xf32>
    tpu.vector_store %arg21[%c1_497, %c4_498, %c0_499], %687 {strides = array<i32>} : memref<2x8x128xf32, #tpu.memory_space<vmem>>, vector<1x1x128xf32>,
    %688 = vector.extract_strided_slice %5 {offsets = [22, 128], sizes = [1, 128], strides = [1, 1]} : vector<48x256xf32> to vector<1x128xf32>
    %c1_500 = arith.constant 1 : index
    %c5_501 = arith.constant 5 : index
    %c0_502 = arith.constant 0 : index
    %689 = vector.load %arg19[%c1_500, %c5_501, %c0_502] : memref<2x8x128xf32, #tpu.memory_space<vmem>>, vector<1x1x128xf32>
    %690 = vector.shape_cast %689 : vector<1x1x128xf32> to vector<1x128xf32>
    %691 = vector.shape_cast %688 : vector<1x128xf32> to vector<1x1x128xf32>
    tpu.vector_store %arg19[%c1_500, %c5_501, %c0_502], %691 {strides = array<i32>} : memref<2x8x128xf32, #tpu.memory_space<vmem>>, vector<1x1x128xf32>,
    %692 = vector.extract_strided_slice %11 {offsets = [22, 128], sizes = [1, 128], strides = [1, 1]} : vector<48x256xf32> to vector<1x128xf32>
    %c1_503 = arith.constant 1 : index
    %c5_504 = arith.constant 5 : index
    %c0_505 = arith.constant 0 : index
    %693 = vector.load %arg20[%c1_503, %c5_504, %c0_505] : memref<2x8x128xf32, #tpu.memory_space<vmem>>, vector<1x1x128xf32>
    %694 = vector.shape_cast %693 : vector<1x1x128xf32> to vector<1x128xf32>
    %695 = vector.shape_cast %692 : vector<1x128xf32> to vector<1x1x128xf32>
    tpu.vector_store %arg20[%c1_503, %c5_504, %c0_505], %695 {strides = array<i32>} : memref<2x8x128xf32, #tpu.memory_space<vmem>>, vector<1x1x128xf32>,
    %696 = vector.extract_strided_slice %17 {offsets = [22, 128], sizes = [1, 128], strides = [1, 1]} : vector<48x256xf32> to vector<1x128xf32>
    %c1_506 = arith.constant 1 : index
    %c5_507 = arith.constant 5 : index
    %c0_508 = arith.constant 0 : index
    %697 = vector.load %arg21[%c1_506, %c5_507, %c0_508] : memref<2x8x128xf32, #tpu.memory_space<vmem>>, vector<1x1x128xf32>
    %698 = vector.shape_cast %697 : vector<1x1x128xf32> to vector<1x128xf32>
    %699 = vector.shape_cast %696 : vector<1x128xf32> to vector<1x1x128xf32>
    tpu.vector_store %arg21[%c1_506, %c5_507, %c0_508], %699 {strides = array<i32>} : memref<2x8x128xf32, #tpu.memory_space<vmem>>, vector<1x1x128xf32>,
    %700 = vector.extract_strided_slice %5 {offsets = [23, 0], sizes = [1, 128], strides = [1, 1]} : vector<48x256xf32> to vector<1x128xf32>
    %c1_509 = arith.constant 1 : index
    %c6_510 = arith.constant 6 : index
    %c0_511 = arith.constant 0 : index
    %701 = vector.load %arg19[%c1_509, %c6_510, %c0_511] : memref<2x8x128xf32, #tpu.memory_space<vmem>>, vector<1x1x128xf32>
    %702 = vector.shape_cast %701 : vector<1x1x128xf32> to vector<1x128xf32>
    %703 = vector.shape_cast %700 : vector<1x128xf32> to vector<1x1x128xf32>
    tpu.vector_store %arg19[%c1_509, %c6_510, %c0_511], %703 {strides = array<i32>} : memref<2x8x128xf32, #tpu.memory_space<vmem>>, vector<1x1x128xf32>,
    %704 = vector.extract_strided_slice %11 {offsets = [23, 0], sizes = [1, 128], strides = [1, 1]} : vector<48x256xf32> to vector<1x128xf32>
    %c1_512 = arith.constant 1 : index
    %c6_513 = arith.constant 6 : index
    %c0_514 = arith.constant 0 : index
    %705 = vector.load %arg20[%c1_512, %c6_513, %c0_514] : memref<2x8x128xf32, #tpu.memory_space<vmem>>, vector<1x1x128xf32>
    %706 = vector.shape_cast %705 : vector<1x1x128xf32> to vector<1x128xf32>
    %707 = vector.shape_cast %704 : vector<1x128xf32> to vector<1x1x128xf32>
    tpu.vector_store %arg20[%c1_512, %c6_513, %c0_514], %707 {strides = array<i32>} : memref<2x8x128xf32, #tpu.memory_space<vmem>>, vector<1x1x128xf32>,
    %708 = vector.extract_strided_slice %17 {offsets = [23, 0], sizes = [1, 128], strides = [1, 1]} : vector<48x256xf32> to vector<1x128xf32>
    %c1_515 = arith.constant 1 : index
    %c6_516 = arith.constant 6 : index
    %c0_517 = arith.constant 0 : index
    %709 = vector.load %arg21[%c1_515, %c6_516, %c0_517] : memref<2x8x128xf32, #tpu.memory_space<vmem>>, vector<1x1x128xf32>
    %710 = vector.shape_cast %709 : vector<1x1x128xf32> to vector<1x128xf32>
    %711 = vector.shape_cast %708 : vector<1x128xf32> to vector<1x1x128xf32>
    tpu.vector_store %arg21[%c1_515, %c6_516, %c0_517], %711 {strides = array<i32>} : memref<2x8x128xf32, #tpu.memory_space<vmem>>, vector<1x1x128xf32>,
    %712 = vector.extract_strided_slice %5 {offsets = [23, 128], sizes = [1, 128], strides = [1, 1]} : vector<48x256xf32> to vector<1x128xf32>
    %c1_518 = arith.constant 1 : index
    %c7_519 = arith.constant 7 : index
    %c0_520 = arith.constant 0 : index
    %713 = vector.load %arg19[%c1_518, %c7_519, %c0_520] : memref<2x8x128xf32, #tpu.memory_space<vmem>>, vector<1x1x128xf32>
    %714 = vector.shape_cast %713 : vector<1x1x128xf32> to vector<1x128xf32>
    %715 = vector.shape_cast %712 : vector<1x128xf32> to vector<1x1x128xf32>
    tpu.vector_store %arg19[%c1_518, %c7_519, %c0_520], %715 {strides = array<i32>} : memref<2x8x128xf32, #tpu.memory_space<vmem>>, vector<1x1x128xf32>,
    %716 = vector.extract_strided_slice %11 {offsets = [23, 128], sizes = [1, 128], strides = [1, 1]} : vector<48x256xf32> to vector<1x128xf32>
    %c1_521 = arith.constant 1 : index
    %c7_522 = arith.constant 7 : index
    %c0_523 = arith.constant 0 : index
    %717 = vector.load %arg20[%c1_521, %c7_522, %c0_523] : memref<2x8x128xf32, #tpu.memory_space<vmem>>, vector<1x1x128xf32>
    %718 = vector.shape_cast %717 : vector<1x1x128xf32> to vector<1x128xf32>
    %719 = vector.shape_cast %716 : vector<1x128xf32> to vector<1x1x128xf32>
    tpu.vector_store %arg20[%c1_521, %c7_522, %c0_523], %719 {strides = array<i32>} : memref<2x8x128xf32, #tpu.memory_space<vmem>>, vector<1x1x128xf32>,
    %720 = vector.extract_strided_slice %17 {offsets = [23, 128], sizes = [1, 128], strides = [1, 1]} : vector<48x256xf32> to vector<1x128xf32>
    %c1_524 = arith.constant 1 : index
    %c7_525 = arith.constant 7 : index
    %c0_526 = arith.constant 0 : index
    %721 = vector.load %arg21[%c1_524, %c7_525, %c0_526] : memref<2x8x128xf32, #tpu.memory_space<vmem>>, vector<1x1x128xf32>
    %722 = vector.shape_cast %721 : vector<1x1x128xf32> to vector<1x128xf32>
    %723 = vector.shape_cast %720 : vector<1x128xf32> to vector<1x1x128xf32>
    tpu.vector_store %arg21[%c1_524, %c7_525, %c0_526], %723 {strides = array<i32>} : memref<2x8x128xf32, #tpu.memory_space<vmem>>, vector<1x1x128xf32>,
    %c0_527 = arith.constant 0 : index
    %c0_528 = arith.constant 0 : index
    %c0_529 = arith.constant 0 : index
    %724 = vector.load %arg19[%c0_527, %c0_528, %c0_529] : memref<2x8x128xf32, #tpu.memory_space<vmem>>, vector<2x8x128xf32>
    %c0_530 = arith.constant 0 : index
    %c0_531 = arith.constant 0 : index
    %c0_532 = arith.constant 0 : index
    %725 = vector.load %arg20[%c0_530, %c0_531, %c0_532] : memref<2x8x128xf32, #tpu.memory_space<vmem>>, vector<2x8x128xf32>
    %c0_533 = arith.constant 0 : index
    %c0_534 = arith.constant 0 : index
    %c0_535 = arith.constant 0 : index
    %726 = vector.load %arg21[%c0_533, %c0_534, %c0_535] : memref<2x8x128xf32, #tpu.memory_space<vmem>>, vector<2x8x128xf32>
    "tpu.trace_start"() <{level = 10 : i32, message = "hsd,htd->hst"}> : () -> ()
    %cst_536 = arith.constant dense<0.000000e+00> : vector<2x8x8xf32>
    %727 = tpu.matmul %724, %725, %cst_536 {dimension_numbers = #tpu.dot_dimension_numbers<[2], [2], [1], [1], [0, 0, 0, 1, 1, 1], [0], [0]>} : vector<2x8x128xf32>, vector<2x8x128xf32>, vector<2x8x8xf32> -> vector<2x8x8xf32>
    "tpu.trace_stop"() : () -> ()
    %cst_537 = arith.constant 0.0883883461 : f32
    %728 = vector.broadcast %cst_537 : f32 to vector<2x8x8xf32>
    %729 = arith.mulf %727, %728 : vector<2x8x8xf32>
    %cst_538 = arith.constant dense<0xFF800000> : vector<2x8xf32>
    %730 = vector.multi_reduction <maximumf>, %729, %cst_538 [2] : vector<2x8x8xf32> to vector<2x8xf32>
    %731 = vector.shape_cast %730 : vector<2x8xf32> to vector<2x8x1xf32>
    %732 = vector.broadcast %731 : vector<2x8x1xf32> to vector<2x8x8xf32>
    %733 = arith.subf %729, %732 : vector<2x8x8xf32>
    %734 = math.exp %733 : vector<2x8x8xf32>
    %cst_539 = arith.constant dense<0.000000e+00> : vector<2x8xf32>
    %735 = vector.multi_reduction <add>, %734, %cst_539 [2] : vector<2x8x8xf32> to vector<2x8xf32>
    %736 = vector.shape_cast %735 : vector<2x8xf32> to vector<2x8x1xf32>
    %737 = tpu.reciprocal %736 {approx = true} : vector<2x8x1xf32> -> vector<2x8x1xf32>
    %738 = vector.broadcast %737 : vector<2x8x1xf32> to vector<2x8x8xf32>
    %739 = arith.mulf %734, %738 : vector<2x8x8xf32>
    "tpu.trace_start"() <{level = 10 : i32, message = "hst,htd->hsd"}> : () -> ()
    %cst_540 = arith.constant dense<0.000000e+00> : vector<2x8x128xf32>
    %740 = tpu.matmul %739, %726, %cst_540 {dimension_numbers = #tpu.dot_dimension_numbers<[2], [1], [1], [2], [0, 0, 0, 1, 1, 2], [0], [0]>} : vector<2x8x8xf32>, vector<2x8x128xf32>, vector<2x8x128xf32> -> vector<2x8x128xf32>
    "tpu.trace_stop"() : () -> ()
    %741 = vector.extract_strided_slice %740 {offsets = [0, 0, 0], sizes = [1, 1, 128], strides = [1, 1, 1]} : vector<2x8x128xf32> to vector<1x1x128xf32>
    %742 = vector.shape_cast %741 : vector<1x1x128xf32> to vector<1x128xf32>
    %c16 = arith.constant 16 : index
    %c0_541 = arith.constant 0 : index
    %743 = vector.load %arg22[%c16, %c0_541] : memref<48x256xf32, #tpu.memory_space<vmem>>, vector<1x128xf32>
    tpu.vector_store %arg22[%c16, %c0_541], %742 {strides = array<i32>} : memref<48x256xf32, #tpu.memory_space<vmem>>, vector<1x128xf32>,
    %744 = vector.extract_strided_slice %740 {offsets = [0, 1, 0], sizes = [1, 1, 128], strides = [1, 1, 1]} : vector<2x8x128xf32> to vector<1x1x128xf32>
    %745 = vector.shape_cast %744 : vector<1x1x128xf32> to vector<1x128xf32>
    %c16_542 = arith.constant 16 : index
    %c128_543 = arith.constant 128 : index
    %746 = vector.load %arg22[%c16_542, %c128_543] : memref<48x256xf32, #tpu.memory_space<vmem>>, vector<1x128xf32>
    tpu.vector_store %arg22[%c16_542, %c128_543], %745 {strides = array<i32>} : memref<48x256xf32, #tpu.memory_space<vmem>>, vector<1x128xf32>,
    %747 = vector.extract_strided_slice %740 {offsets = [0, 2, 0], sizes = [1, 1, 128], strides = [1, 1, 1]} : vector<2x8x128xf32> to vector<1x1x128xf32>
    %748 = vector.shape_cast %747 : vector<1x1x128xf32> to vector<1x128xf32>
    %c17 = arith.constant 17 : index
    %c0_544 = arith.constant 0 : index
    %749 = vector.load %arg22[%c17, %c0_544] : memref<48x256xf32, #tpu.memory_space<vmem>>, vector<1x128xf32>
    tpu.vector_store %arg22[%c17, %c0_544], %748 {strides = array<i32>} : memref<48x256xf32, #tpu.memory_space<vmem>>, vector<1x128xf32>,
    %750 = vector.extract_strided_slice %740 {offsets = [0, 3, 0], sizes = [1, 1, 128], strides = [1, 1, 1]} : vector<2x8x128xf32> to vector<1x1x128xf32>
    %751 = vector.shape_cast %750 : vector<1x1x128xf32> to vector<1x128xf32>
    %c17_545 = arith.constant 17 : index
    %c128_546 = arith.constant 128 : index
    %752 = vector.load %arg22[%c17_545, %c128_546] : memref<48x256xf32, #tpu.memory_space<vmem>>, vector<1x128xf32>
    tpu.vector_store %arg22[%c17_545, %c128_546], %751 {strides = array<i32>} : memref<48x256xf32, #tpu.memory_space<vmem>>, vector<1x128xf32>,
    %753 = vector.extract_strided_slice %740 {offsets = [0, 4, 0], sizes = [1, 1, 128], strides = [1, 1, 1]} : vector<2x8x128xf32> to vector<1x1x128xf32>
    %754 = vector.shape_cast %753 : vector<1x1x128xf32> to vector<1x128xf32>
    %c18 = arith.constant 18 : index
    %c0_547 = arith.constant 0 : index
    %755 = vector.load %arg22[%c18, %c0_547] : memref<48x256xf32, #tpu.memory_space<vmem>>, vector<1x128xf32>
    tpu.vector_store %arg22[%c18, %c0_547], %754 {strides = array<i32>} : memref<48x256xf32, #tpu.memory_space<vmem>>, vector<1x128xf32>,
    %756 = vector.extract_strided_slice %740 {offsets = [0, 5, 0], sizes = [1, 1, 128], strides = [1, 1, 1]} : vector<2x8x128xf32> to vector<1x1x128xf32>
    %757 = vector.shape_cast %756 : vector<1x1x128xf32> to vector<1x128xf32>
    %c18_548 = arith.constant 18 : index
    %c128_549 = arith.constant 128 : index
    %758 = vector.load %arg22[%c18_548, %c128_549] : memref<48x256xf32, #tpu.memory_space<vmem>>, vector<1x128xf32>
    tpu.vector_store %arg22[%c18_548, %c128_549], %757 {strides = array<i32>} : memref<48x256xf32, #tpu.memory_space<vmem>>, vector<1x128xf32>,
    %759 = vector.extract_strided_slice %740 {offsets = [0, 6, 0], sizes = [1, 1, 128], strides = [1, 1, 1]} : vector<2x8x128xf32> to vector<1x1x128xf32>
    %760 = vector.shape_cast %759 : vector<1x1x128xf32> to vector<1x128xf32>
    %c19 = arith.constant 19 : index
    %c0_550 = arith.constant 0 : index
    %761 = vector.load %arg22[%c19, %c0_550] : memref<48x256xf32, #tpu.memory_space<vmem>>, vector<1x128xf32>
    tpu.vector_store %arg22[%c19, %c0_550], %760 {strides = array<i32>} : memref<48x256xf32, #tpu.memory_space<vmem>>, vector<1x128xf32>,
    %762 = vector.extract_strided_slice %740 {offsets = [0, 7, 0], sizes = [1, 1, 128], strides = [1, 1, 1]} : vector<2x8x128xf32> to vector<1x1x128xf32>
    %763 = vector.shape_cast %762 : vector<1x1x128xf32> to vector<1x128xf32>
    %c19_551 = arith.constant 19 : index
    %c128_552 = arith.constant 128 : index
    %764 = vector.load %arg22[%c19_551, %c128_552] : memref<48x256xf32, #tpu.memory_space<vmem>>, vector<1x128xf32>
    tpu.vector_store %arg22[%c19_551, %c128_552], %763 {strides = array<i32>} : memref<48x256xf32, #tpu.memory_space<vmem>>, vector<1x128xf32>,
    %765 = vector.extract_strided_slice %740 {offsets = [1, 0, 0], sizes = [1, 1, 128], strides = [1, 1, 1]} : vector<2x8x128xf32> to vector<1x1x128xf32>
    %766 = vector.shape_cast %765 : vector<1x1x128xf32> to vector<1x128xf32>
    %c20 = arith.constant 20 : index
    %c0_553 = arith.constant 0 : index
    %767 = vector.load %arg22[%c20, %c0_553] : memref<48x256xf32, #tpu.memory_space<vmem>>, vector<1x128xf32>
    tpu.vector_store %arg22[%c20, %c0_553], %766 {strides = array<i32>} : memref<48x256xf32, #tpu.memory_space<vmem>>, vector<1x128xf32>,
    %768 = vector.extract_strided_slice %740 {offsets = [1, 1, 0], sizes = [1, 1, 128], strides = [1, 1, 1]} : vector<2x8x128xf32> to vector<1x1x128xf32>
    %769 = vector.shape_cast %768 : vector<1x1x128xf32> to vector<1x128xf32>
    %c20_554 = arith.constant 20 : index
    %c128_555 = arith.constant 128 : index
    %770 = vector.load %arg22[%c20_554, %c128_555] : memref<48x256xf32, #tpu.memory_space<vmem>>, vector<1x128xf32>
    tpu.vector_store %arg22[%c20_554, %c128_555], %769 {strides = array<i32>} : memref<48x256xf32, #tpu.memory_space<vmem>>, vector<1x128xf32>,
    %771 = vector.extract_strided_slice %740 {offsets = [1, 2, 0], sizes = [1, 1, 128], strides = [1, 1, 1]} : vector<2x8x128xf32> to vector<1x1x128xf32>
    %772 = vector.shape_cast %771 : vector<1x1x128xf32> to vector<1x128xf32>
    %c21 = arith.constant 21 : index
    %c0_556 = arith.constant 0 : index
    %773 = vector.load %arg22[%c21, %c0_556] : memref<48x256xf32, #tpu.memory_space<vmem>>, vector<1x128xf32>
    tpu.vector_store %arg22[%c21, %c0_556], %772 {strides = array<i32>} : memref<48x256xf32, #tpu.memory_space<vmem>>, vector<1x128xf32>,
    %774 = vector.extract_strided_slice %740 {offsets = [1, 3, 0], sizes = [1, 1, 128], strides = [1, 1, 1]} : vector<2x8x128xf32> to vector<1x1x128xf32>
    %775 = vector.shape_cast %774 : vector<1x1x128xf32> to vector<1x128xf32>
    %c21_557 = arith.constant 21 : index
    %c128_558 = arith.constant 128 : index
    %776 = vector.load %arg22[%c21_557, %c128_558] : memref<48x256xf32, #tpu.memory_space<vmem>>, vector<1x128xf32>
    tpu.vector_store %arg22[%c21_557, %c128_558], %775 {strides = array<i32>} : memref<48x256xf32, #tpu.memory_space<vmem>>, vector<1x128xf32>,
    %777 = vector.extract_strided_slice %740 {offsets = [1, 4, 0], sizes = [1, 1, 128], strides = [1, 1, 1]} : vector<2x8x128xf32> to vector<1x1x128xf32>
    %778 = vector.shape_cast %777 : vector<1x1x128xf32> to vector<1x128xf32>
    %c22 = arith.constant 22 : index
    %c0_559 = arith.constant 0 : index
    %779 = vector.load %arg22[%c22, %c0_559] : memref<48x256xf32, #tpu.memory_space<vmem>>, vector<1x128xf32>
    tpu.vector_store %arg22[%c22, %c0_559], %778 {strides = array<i32>} : memref<48x256xf32, #tpu.memory_space<vmem>>, vector<1x128xf32>,
    %780 = vector.extract_strided_slice %740 {offsets = [1, 5, 0], sizes = [1, 1, 128], strides = [1, 1, 1]} : vector<2x8x128xf32> to vector<1x1x128xf32>
    %781 = vector.shape_cast %780 : vector<1x1x128xf32> to vector<1x128xf32>
    %c22_560 = arith.constant 22 : index
    %c128_561 = arith.constant 128 : index
    %782 = vector.load %arg22[%c22_560, %c128_561] : memref<48x256xf32, #tpu.memory_space<vmem>>, vector<1x128xf32>
    tpu.vector_store %arg22[%c22_560, %c128_561], %781 {strides = array<i32>} : memref<48x256xf32, #tpu.memory_space<vmem>>, vector<1x128xf32>,
    %783 = vector.extract_strided_slice %740 {offsets = [1, 6, 0], sizes = [1, 1, 128], strides = [1, 1, 1]} : vector<2x8x128xf32> to vector<1x1x128xf32>
    %784 = vector.shape_cast %783 : vector<1x1x128xf32> to vector<1x128xf32>
    %c23 = arith.constant 23 : index
    %c0_562 = arith.constant 0 : index
    %785 = vector.load %arg22[%c23, %c0_562] : memref<48x256xf32, #tpu.memory_space<vmem>>, vector<1x128xf32>
    tpu.vector_store %arg22[%c23, %c0_562], %784 {strides = array<i32>} : memref<48x256xf32, #tpu.memory_space<vmem>>, vector<1x128xf32>,
    %786 = vector.extract_strided_slice %740 {offsets = [1, 7, 0], sizes = [1, 1, 128], strides = [1, 1, 1]} : vector<2x8x128xf32> to vector<1x1x128xf32>
    %787 = vector.shape_cast %786 : vector<1x1x128xf32> to vector<1x128xf32>
    %c23_563 = arith.constant 23 : index
    %c128_564 = arith.constant 128 : index
    %788 = vector.load %arg22[%c23_563, %c128_564] : memref<48x256xf32, #tpu.memory_space<vmem>>, vector<1x128xf32>
    tpu.vector_store %arg22[%c23_563, %c128_564], %787 {strides = array<i32>} : memref<48x256xf32, #tpu.memory_space<vmem>>, vector<1x128xf32>,
    %789 = vector.extract_strided_slice %5 {offsets = [24, 0], sizes = [1, 128], strides = [1, 1]} : vector<48x256xf32> to vector<1x128xf32>
    %c0_565 = arith.constant 0 : index
    %c0_566 = arith.constant 0 : index
    %c0_567 = arith.constant 0 : index
    %790 = vector.load %arg19[%c0_565, %c0_566, %c0_567] : memref<2x8x128xf32, #tpu.memory_space<vmem>>, vector<1x1x128xf32>
    %791 = vector.shape_cast %790 : vector<1x1x128xf32> to vector<1x128xf32>
    %792 = vector.shape_cast %789 : vector<1x128xf32> to vector<1x1x128xf32>
    tpu.vector_store %arg19[%c0_565, %c0_566, %c0_567], %792 {strides = array<i32>} : memref<2x8x128xf32, #tpu.memory_space<vmem>>, vector<1x1x128xf32>,
    %793 = vector.extract_strided_slice %11 {offsets = [24, 0], sizes = [1, 128], strides = [1, 1]} : vector<48x256xf32> to vector<1x128xf32>
    %c0_568 = arith.constant 0 : index
    %c0_569 = arith.constant 0 : index
    %c0_570 = arith.constant 0 : index
    %794 = vector.load %arg20[%c0_568, %c0_569, %c0_570] : memref<2x8x128xf32, #tpu.memory_space<vmem>>, vector<1x1x128xf32>
    %795 = vector.shape_cast %794 : vector<1x1x128xf32> to vector<1x128xf32>
    %796 = vector.shape_cast %793 : vector<1x128xf32> to vector<1x1x128xf32>
    tpu.vector_store %arg20[%c0_568, %c0_569, %c0_570], %796 {strides = array<i32>} : memref<2x8x128xf32, #tpu.memory_space<vmem>>, vector<1x1x128xf32>,
    %797 = vector.extract_strided_slice %17 {offsets = [24, 0], sizes = [1, 128], strides = [1, 1]} : vector<48x256xf32> to vector<1x128xf32>
    %c0_571 = arith.constant 0 : index
    %c0_572 = arith.constant 0 : index
    %c0_573 = arith.constant 0 : index
    %798 = vector.load %arg21[%c0_571, %c0_572, %c0_573] : memref<2x8x128xf32, #tpu.memory_space<vmem>>, vector<1x1x128xf32>
    %799 = vector.shape_cast %798 : vector<1x1x128xf32> to vector<1x128xf32>
    %800 = vector.shape_cast %797 : vector<1x128xf32> to vector<1x1x128xf32>
    tpu.vector_store %arg21[%c0_571, %c0_572, %c0_573], %800 {strides = array<i32>} : memref<2x8x128xf32, #tpu.memory_space<vmem>>, vector<1x1x128xf32>,
    %801 = vector.extract_strided_slice %5 {offsets = [24, 128], sizes = [1, 128], strides = [1, 1]} : vector<48x256xf32> to vector<1x128xf32>
    %c0_574 = arith.constant 0 : index
    %c1_575 = arith.constant 1 : index
    %c0_576 = arith.constant 0 : index
    %802 = vector.load %arg19[%c0_574, %c1_575, %c0_576] : memref<2x8x128xf32, #tpu.memory_space<vmem>>, vector<1x1x128xf32>
    %803 = vector.shape_cast %802 : vector<1x1x128xf32> to vector<1x128xf32>
    %804 = vector.shape_cast %801 : vector<1x128xf32> to vector<1x1x128xf32>
    tpu.vector_store %arg19[%c0_574, %c1_575, %c0_576], %804 {strides = array<i32>} : memref<2x8x128xf32, #tpu.memory_space<vmem>>, vector<1x1x128xf32>,
    %805 = vector.extract_strided_slice %11 {offsets = [24, 128], sizes = [1, 128], strides = [1, 1]} : vector<48x256xf32> to vector<1x128xf32>
    %c0_577 = arith.constant 0 : index
    %c1_578 = arith.constant 1 : index
    %c0_579 = arith.constant 0 : index
    %806 = vector.load %arg20[%c0_577, %c1_578, %c0_579] : memref<2x8x128xf32, #tpu.memory_space<vmem>>, vector<1x1x128xf32>
    %807 = vector.shape_cast %806 : vector<1x1x128xf32> to vector<1x128xf32>
    %808 = vector.shape_cast %805 : vector<1x128xf32> to vector<1x1x128xf32>
    tpu.vector_store %arg20[%c0_577, %c1_578, %c0_579], %808 {strides = array<i32>} : memref<2x8x128xf32, #tpu.memory_space<vmem>>, vector<1x1x128xf32>,
    %809 = vector.extract_strided_slice %17 {offsets = [24, 128], sizes = [1, 128], strides = [1, 1]} : vector<48x256xf32> to vector<1x128xf32>
    %c0_580 = arith.constant 0 : index
    %c1_581 = arith.constant 1 : index
    %c0_582 = arith.constant 0 : index
    %810 = vector.load %arg21[%c0_580, %c1_581, %c0_582] : memref<2x8x128xf32, #tpu.memory_space<vmem>>, vector<1x1x128xf32>
    %811 = vector.shape_cast %810 : vector<1x1x128xf32> to vector<1x128xf32>
    %812 = vector.shape_cast %809 : vector<1x128xf32> to vector<1x1x128xf32>
    tpu.vector_store %arg21[%c0_580, %c1_581, %c0_582], %812 {strides = array<i32>} : memref<2x8x128xf32, #tpu.memory_space<vmem>>, vector<1x1x128xf32>,
    %813 = vector.extract_strided_slice %5 {offsets = [25, 0], sizes = [1, 128], strides = [1, 1]} : vector<48x256xf32> to vector<1x128xf32>
    %c0_583 = arith.constant 0 : index
    %c2_584 = arith.constant 2 : index
    %c0_585 = arith.constant 0 : index
    %814 = vector.load %arg19[%c0_583, %c2_584, %c0_585] : memref<2x8x128xf32, #tpu.memory_space<vmem>>, vector<1x1x128xf32>
    %815 = vector.shape_cast %814 : vector<1x1x128xf32> to vector<1x128xf32>
    %816 = vector.shape_cast %813 : vector<1x128xf32> to vector<1x1x128xf32>
    tpu.vector_store %arg19[%c0_583, %c2_584, %c0_585], %816 {strides = array<i32>} : memref<2x8x128xf32, #tpu.memory_space<vmem>>, vector<1x1x128xf32>,
    %817 = vector.extract_strided_slice %11 {offsets = [25, 0], sizes = [1, 128], strides = [1, 1]} : vector<48x256xf32> to vector<1x128xf32>
    %c0_586 = arith.constant 0 : index
    %c2_587 = arith.constant 2 : index
    %c0_588 = arith.constant 0 : index
    %818 = vector.load %arg20[%c0_586, %c2_587, %c0_588] : memref<2x8x128xf32, #tpu.memory_space<vmem>>, vector<1x1x128xf32>
    %819 = vector.shape_cast %818 : vector<1x1x128xf32> to vector<1x128xf32>
    %820 = vector.shape_cast %817 : vector<1x128xf32> to vector<1x1x128xf32>
    tpu.vector_store %arg20[%c0_586, %c2_587, %c0_588], %820 {strides = array<i32>} : memref<2x8x128xf32, #tpu.memory_space<vmem>>, vector<1x1x128xf32>,
    %821 = vector.extract_strided_slice %17 {offsets = [25, 0], sizes = [1, 128], strides = [1, 1]} : vector<48x256xf32> to vector<1x128xf32>
    %c0_589 = arith.constant 0 : index
    %c2_590 = arith.constant 2 : index
    %c0_591 = arith.constant 0 : index
    %822 = vector.load %arg21[%c0_589, %c2_590, %c0_591] : memref<2x8x128xf32, #tpu.memory_space<vmem>>, vector<1x1x128xf32>
    %823 = vector.shape_cast %822 : vector<1x1x128xf32> to vector<1x128xf32>
    %824 = vector.shape_cast %821 : vector<1x128xf32> to vector<1x1x128xf32>
    tpu.vector_store %arg21[%c0_589, %c2_590, %c0_591], %824 {strides = array<i32>} : memref<2x8x128xf32, #tpu.memory_space<vmem>>, vector<1x1x128xf32>,
    %825 = vector.extract_strided_slice %5 {offsets = [25, 128], sizes = [1, 128], strides = [1, 1]} : vector<48x256xf32> to vector<1x128xf32>
    %c0_592 = arith.constant 0 : index
    %c3_593 = arith.constant 3 : index
    %c0_594 = arith.constant 0 : index
    %826 = vector.load %arg19[%c0_592, %c3_593, %c0_594] : memref<2x8x128xf32, #tpu.memory_space<vmem>>, vector<1x1x128xf32>
    %827 = vector.shape_cast %826 : vector<1x1x128xf32> to vector<1x128xf32>
    %828 = vector.shape_cast %825 : vector<1x128xf32> to vector<1x1x128xf32>
    tpu.vector_store %arg19[%c0_592, %c3_593, %c0_594], %828 {strides = array<i32>} : memref<2x8x128xf32, #tpu.memory_space<vmem>>, vector<1x1x128xf32>,
    %829 = vector.extract_strided_slice %11 {offsets = [25, 128], sizes = [1, 128], strides = [1, 1]} : vector<48x256xf32> to vector<1x128xf32>
    %c0_595 = arith.constant 0 : index
    %c3_596 = arith.constant 3 : index
    %c0_597 = arith.constant 0 : index
    %830 = vector.load %arg20[%c0_595, %c3_596, %c0_597] : memref<2x8x128xf32, #tpu.memory_space<vmem>>, vector<1x1x128xf32>
    %831 = vector.shape_cast %830 : vector<1x1x128xf32> to vector<1x128xf32>
    %832 = vector.shape_cast %829 : vector<1x128xf32> to vector<1x1x128xf32>
    tpu.vector_store %arg20[%c0_595, %c3_596, %c0_597], %832 {strides = array<i32>} : memref<2x8x128xf32, #tpu.memory_space<vmem>>, vector<1x1x128xf32>,
    %833 = vector.extract_strided_slice %17 {offsets = [25, 128], sizes = [1, 128], strides = [1, 1]} : vector<48x256xf32> to vector<1x128xf32>
    %c0_598 = arith.constant 0 : index
    %c3_599 = arith.constant 3 : index
    %c0_600 = arith.constant 0 : index
    %834 = vector.load %arg21[%c0_598, %c3_599, %c0_600] : memref<2x8x128xf32, #tpu.memory_space<vmem>>, vector<1x1x128xf32>
    %835 = vector.shape_cast %834 : vector<1x1x128xf32> to vector<1x128xf32>
    %836 = vector.shape_cast %833 : vector<1x128xf32> to vector<1x1x128xf32>
    tpu.vector_store %arg21[%c0_598, %c3_599, %c0_600], %836 {strides = array<i32>} : memref<2x8x128xf32, #tpu.memory_space<vmem>>, vector<1x1x128xf32>,
    %837 = vector.extract_strided_slice %5 {offsets = [26, 0], sizes = [1, 128], strides = [1, 1]} : vector<48x256xf32> to vector<1x128xf32>
    %c0_601 = arith.constant 0 : index
    %c4_602 = arith.constant 4 : index
    %c0_603 = arith.constant 0 : index
    %838 = vector.load %arg19[%c0_601, %c4_602, %c0_603] : memref<2x8x128xf32, #tpu.memory_space<vmem>>, vector<1x1x128xf32>
    %839 = vector.shape_cast %838 : vector<1x1x128xf32> to vector<1x128xf32>
    %840 = vector.shape_cast %837 : vector<1x128xf32> to vector<1x1x128xf32>
    tpu.vector_store %arg19[%c0_601, %c4_602, %c0_603], %840 {strides = array<i32>} : memref<2x8x128xf32, #tpu.memory_space<vmem>>, vector<1x1x128xf32>,
    %841 = vector.extract_strided_slice %11 {offsets = [26, 0], sizes = [1, 128], strides = [1, 1]} : vector<48x256xf32> to vector<1x128xf32>
    %c0_604 = arith.constant 0 : index
    %c4_605 = arith.constant 4 : index
    %c0_606 = arith.constant 0 : index
    %842 = vector.load %arg20[%c0_604, %c4_605, %c0_606] : memref<2x8x128xf32, #tpu.memory_space<vmem>>, vector<1x1x128xf32>
    %843 = vector.shape_cast %842 : vector<1x1x128xf32> to vector<1x128xf32>
    %844 = vector.shape_cast %841 : vector<1x128xf32> to vector<1x1x128xf32>
    tpu.vector_store %arg20[%c0_604, %c4_605, %c0_606], %844 {strides = array<i32>} : memref<2x8x128xf32, #tpu.memory_space<vmem>>, vector<1x1x128xf32>,
    %845 = vector.extract_strided_slice %17 {offsets = [26, 0], sizes = [1, 128], strides = [1, 1]} : vector<48x256xf32> to vector<1x128xf32>
    %c0_607 = arith.constant 0 : index
    %c4_608 = arith.constant 4 : index
    %c0_609 = arith.constant 0 : index
    %846 = vector.load %arg21[%c0_607, %c4_608, %c0_609] : memref<2x8x128xf32, #tpu.memory_space<vmem>>, vector<1x1x128xf32>
    %847 = vector.shape_cast %846 : vector<1x1x128xf32> to vector<1x128xf32>
    %848 = vector.shape_cast %845 : vector<1x128xf32> to vector<1x1x128xf32>
    tpu.vector_store %arg21[%c0_607, %c4_608, %c0_609], %848 {strides = array<i32>} : memref<2x8x128xf32, #tpu.memory_space<vmem>>, vector<1x1x128xf32>,
    %849 = vector.extract_strided_slice %5 {offsets = [26, 128], sizes = [1, 128], strides = [1, 1]} : vector<48x256xf32> to vector<1x128xf32>
    %c0_610 = arith.constant 0 : index
    %c5_611 = arith.constant 5 : index
    %c0_612 = arith.constant 0 : index
    %850 = vector.load %arg19[%c0_610, %c5_611, %c0_612] : memref<2x8x128xf32, #tpu.memory_space<vmem>>, vector<1x1x128xf32>
    %851 = vector.shape_cast %850 : vector<1x1x128xf32> to vector<1x128xf32>
    %852 = vector.shape_cast %849 : vector<1x128xf32> to vector<1x1x128xf32>
    tpu.vector_store %arg19[%c0_610, %c5_611, %c0_612], %852 {strides = array<i32>} : memref<2x8x128xf32, #tpu.memory_space<vmem>>, vector<1x1x128xf32>,
    %853 = vector.extract_strided_slice %11 {offsets = [26, 128], sizes = [1, 128], strides = [1, 1]} : vector<48x256xf32> to vector<1x128xf32>
    %c0_613 = arith.constant 0 : index
    %c5_614 = arith.constant 5 : index
    %c0_615 = arith.constant 0 : index
    %854 = vector.load %arg20[%c0_613, %c5_614, %c0_615] : memref<2x8x128xf32, #tpu.memory_space<vmem>>, vector<1x1x128xf32>
    %855 = vector.shape_cast %854 : vector<1x1x128xf32> to vector<1x128xf32>
    %856 = vector.shape_cast %853 : vector<1x128xf32> to vector<1x1x128xf32>
    tpu.vector_store %arg20[%c0_613, %c5_614, %c0_615], %856 {strides = array<i32>} : memref<2x8x128xf32, #tpu.memory_space<vmem>>, vector<1x1x128xf32>,
    %857 = vector.extract_strided_slice %17 {offsets = [26, 128], sizes = [1, 128], strides = [1, 1]} : vector<48x256xf32> to vector<1x128xf32>
    %c0_616 = arith.constant 0 : index
    %c5_617 = arith.constant 5 : index
    %c0_618 = arith.constant 0 : index
    %858 = vector.load %arg21[%c0_616, %c5_617, %c0_618] : memref<2x8x128xf32, #tpu.memory_space<vmem>>, vector<1x1x128xf32>
    %859 = vector.shape_cast %858 : vector<1x1x128xf32> to vector<1x128xf32>
    %860 = vector.shape_cast %857 : vector<1x128xf32> to vector<1x1x128xf32>
    tpu.vector_store %arg21[%c0_616, %c5_617, %c0_618], %860 {strides = array<i32>} : memref<2x8x128xf32, #tpu.memory_space<vmem>>, vector<1x1x128xf32>,
    %861 = vector.extract_strided_slice %5 {offsets = [27, 0], sizes = [1, 128], strides = [1, 1]} : vector<48x256xf32> to vector<1x128xf32>
    %c0_619 = arith.constant 0 : index
    %c6_620 = arith.constant 6 : index
    %c0_621 = arith.constant 0 : index
    %862 = vector.load %arg19[%c0_619, %c6_620, %c0_621] : memref<2x8x128xf32, #tpu.memory_space<vmem>>, vector<1x1x128xf32>
    %863 = vector.shape_cast %862 : vector<1x1x128xf32> to vector<1x128xf32>
    %864 = vector.shape_cast %861 : vector<1x128xf32> to vector<1x1x128xf32>
    tpu.vector_store %arg19[%c0_619, %c6_620, %c0_621], %864 {strides = array<i32>} : memref<2x8x128xf32, #tpu.memory_space<vmem>>, vector<1x1x128xf32>,
    %865 = vector.extract_strided_slice %11 {offsets = [27, 0], sizes = [1, 128], strides = [1, 1]} : vector<48x256xf32> to vector<1x128xf32>
    %c0_622 = arith.constant 0 : index
    %c6_623 = arith.constant 6 : index
    %c0_624 = arith.constant 0 : index
    %866 = vector.load %arg20[%c0_622, %c6_623, %c0_624] : memref<2x8x128xf32, #tpu.memory_space<vmem>>, vector<1x1x128xf32>
    %867 = vector.shape_cast %866 : vector<1x1x128xf32> to vector<1x128xf32>
    %868 = vector.shape_cast %865 : vector<1x128xf32> to vector<1x1x128xf32>
    tpu.vector_store %arg20[%c0_622, %c6_623, %c0_624], %868 {strides = array<i32>} : memref<2x8x128xf32, #tpu.memory_space<vmem>>, vector<1x1x128xf32>,
    %869 = vector.extract_strided_slice %17 {offsets = [27, 0], sizes = [1, 128], strides = [1, 1]} : vector<48x256xf32> to vector<1x128xf32>
    %c0_625 = arith.constant 0 : index
    %c6_626 = arith.constant 6 : index
    %c0_627 = arith.constant 0 : index
    %870 = vector.load %arg21[%c0_625, %c6_626, %c0_627] : memref<2x8x128xf32, #tpu.memory_space<vmem>>, vector<1x1x128xf32>
    %871 = vector.shape_cast %870 : vector<1x1x128xf32> to vector<1x128xf32>
    %872 = vector.shape_cast %869 : vector<1x128xf32> to vector<1x1x128xf32>
    tpu.vector_store %arg21[%c0_625, %c6_626, %c0_627], %872 {strides = array<i32>} : memref<2x8x128xf32, #tpu.memory_space<vmem>>, vector<1x1x128xf32>,
    %873 = vector.extract_strided_slice %5 {offsets = [27, 128], sizes = [1, 128], strides = [1, 1]} : vector<48x256xf32> to vector<1x128xf32>
    %c0_628 = arith.constant 0 : index
    %c7_629 = arith.constant 7 : index
    %c0_630 = arith.constant 0 : index
    %874 = vector.load %arg19[%c0_628, %c7_629, %c0_630] : memref<2x8x128xf32, #tpu.memory_space<vmem>>, vector<1x1x128xf32>
    %875 = vector.shape_cast %874 : vector<1x1x128xf32> to vector<1x128xf32>
    %876 = vector.shape_cast %873 : vector<1x128xf32> to vector<1x1x128xf32>
    tpu.vector_store %arg19[%c0_628, %c7_629, %c0_630], %876 {strides = array<i32>} : memref<2x8x128xf32, #tpu.memory_space<vmem>>, vector<1x1x128xf32>,
    %877 = vector.extract_strided_slice %11 {offsets = [27, 128], sizes = [1, 128], strides = [1, 1]} : vector<48x256xf32> to vector<1x128xf32>
    %c0_631 = arith.constant 0 : index
    %c7_632 = arith.constant 7 : index
    %c0_633 = arith.constant 0 : index
    %878 = vector.load %arg20[%c0_631, %c7_632, %c0_633] : memref<2x8x128xf32, #tpu.memory_space<vmem>>, vector<1x1x128xf32>
    %879 = vector.shape_cast %878 : vector<1x1x128xf32> to vector<1x128xf32>
    %880 = vector.shape_cast %877 : vector<1x128xf32> to vector<1x1x128xf32>
    tpu.vector_store %arg20[%c0_631, %c7_632, %c0_633], %880 {strides = array<i32>} : memref<2x8x128xf32, #tpu.memory_space<vmem>>, vector<1x1x128xf32>,
    %881 = vector.extract_strided_slice %17 {offsets = [27, 128], sizes = [1, 128], strides = [1, 1]} : vector<48x256xf32> to vector<1x128xf32>
    %c0_634 = arith.constant 0 : index
    %c7_635 = arith.constant 7 : index
    %c0_636 = arith.constant 0 : index
    %882 = vector.load %arg21[%c0_634, %c7_635, %c0_636] : memref<2x8x128xf32, #tpu.memory_space<vmem>>, vector<1x1x128xf32>
    %883 = vector.shape_cast %882 : vector<1x1x128xf32> to vector<1x128xf32>
    %884 = vector.shape_cast %881 : vector<1x128xf32> to vector<1x1x128xf32>
    tpu.vector_store %arg21[%c0_634, %c7_635, %c0_636], %884 {strides = array<i32>} : memref<2x8x128xf32, #tpu.memory_space<vmem>>, vector<1x1x128xf32>,
    %885 = vector.extract_strided_slice %5 {offsets = [28, 0], sizes = [1, 128], strides = [1, 1]} : vector<48x256xf32> to vector<1x128xf32>
    %c1_637 = arith.constant 1 : index
    %c0_638 = arith.constant 0 : index
    %c0_639 = arith.constant 0 : index
    %886 = vector.load %arg19[%c1_637, %c0_638, %c0_639] : memref<2x8x128xf32, #tpu.memory_space<vmem>>, vector<1x1x128xf32>
    %887 = vector.shape_cast %886 : vector<1x1x128xf32> to vector<1x128xf32>
    %888 = vector.shape_cast %885 : vector<1x128xf32> to vector<1x1x128xf32>
    tpu.vector_store %arg19[%c1_637, %c0_638, %c0_639], %888 {strides = array<i32>} : memref<2x8x128xf32, #tpu.memory_space<vmem>>, vector<1x1x128xf32>,
    %889 = vector.extract_strided_slice %11 {offsets = [28, 0], sizes = [1, 128], strides = [1, 1]} : vector<48x256xf32> to vector<1x128xf32>
    %c1_640 = arith.constant 1 : index
    %c0_641 = arith.constant 0 : index
    %c0_642 = arith.constant 0 : index
    %890 = vector.load %arg20[%c1_640, %c0_641, %c0_642] : memref<2x8x128xf32, #tpu.memory_space<vmem>>, vector<1x1x128xf32>
    %891 = vector.shape_cast %890 : vector<1x1x128xf32> to vector<1x128xf32>
    %892 = vector.shape_cast %889 : vector<1x128xf32> to vector<1x1x128xf32>
    tpu.vector_store %arg20[%c1_640, %c0_641, %c0_642], %892 {strides = array<i32>} : memref<2x8x128xf32, #tpu.memory_space<vmem>>, vector<1x1x128xf32>,
    %893 = vector.extract_strided_slice %17 {offsets = [28, 0], sizes = [1, 128], strides = [1, 1]} : vector<48x256xf32> to vector<1x128xf32>
    %c1_643 = arith.constant 1 : index
    %c0_644 = arith.constant 0 : index
    %c0_645 = arith.constant 0 : index
    %894 = vector.load %arg21[%c1_643, %c0_644, %c0_645] : memref<2x8x128xf32, #tpu.memory_space<vmem>>, vector<1x1x128xf32>
    %895 = vector.shape_cast %894 : vector<1x1x128xf32> to vector<1x128xf32>
    %896 = vector.shape_cast %893 : vector<1x128xf32> to vector<1x1x128xf32>
    tpu.vector_store %arg21[%c1_643, %c0_644, %c0_645], %896 {strides = array<i32>} : memref<2x8x128xf32, #tpu.memory_space<vmem>>, vector<1x1x128xf32>,
    %897 = vector.extract_strided_slice %5 {offsets = [28, 128], sizes = [1, 128], strides = [1, 1]} : vector<48x256xf32> to vector<1x128xf32>
    %c1_646 = arith.constant 1 : index
    %c1_647 = arith.constant 1 : index
    %c0_648 = arith.constant 0 : index
    %898 = vector.load %arg19[%c1_646, %c1_647, %c0_648] : memref<2x8x128xf32, #tpu.memory_space<vmem>>, vector<1x1x128xf32>
    %899 = vector.shape_cast %898 : vector<1x1x128xf32> to vector<1x128xf32>
    %900 = vector.shape_cast %897 : vector<1x128xf32> to vector<1x1x128xf32>
    tpu.vector_store %arg19[%c1_646, %c1_647, %c0_648], %900 {strides = array<i32>} : memref<2x8x128xf32, #tpu.memory_space<vmem>>, vector<1x1x128xf32>,
    %901 = vector.extract_strided_slice %11 {offsets = [28, 128], sizes = [1, 128], strides = [1, 1]} : vector<48x256xf32> to vector<1x128xf32>
    %c1_649 = arith.constant 1 : index
    %c1_650 = arith.constant 1 : index
    %c0_651 = arith.constant 0 : index
    %902 = vector.load %arg20[%c1_649, %c1_650, %c0_651] : memref<2x8x128xf32, #tpu.memory_space<vmem>>, vector<1x1x128xf32>
    %903 = vector.shape_cast %902 : vector<1x1x128xf32> to vector<1x128xf32>
    %904 = vector.shape_cast %901 : vector<1x128xf32> to vector<1x1x128xf32>
    tpu.vector_store %arg20[%c1_649, %c1_650, %c0_651], %904 {strides = array<i32>} : memref<2x8x128xf32, #tpu.memory_space<vmem>>, vector<1x1x128xf32>,
    %905 = vector.extract_strided_slice %17 {offsets = [28, 128], sizes = [1, 128], strides = [1, 1]} : vector<48x256xf32> to vector<1x128xf32>
    %c1_652 = arith.constant 1 : index
    %c1_653 = arith.constant 1 : index
    %c0_654 = arith.constant 0 : index
    %906 = vector.load %arg21[%c1_652, %c1_653, %c0_654] : memref<2x8x128xf32, #tpu.memory_space<vmem>>, vector<1x1x128xf32>
    %907 = vector.shape_cast %906 : vector<1x1x128xf32> to vector<1x128xf32>
    %908 = vector.shape_cast %905 : vector<1x128xf32> to vector<1x1x128xf32>
    tpu.vector_store %arg21[%c1_652, %c1_653, %c0_654], %908 {strides = array<i32>} : memref<2x8x128xf32, #tpu.memory_space<vmem>>, vector<1x1x128xf32>,
    %909 = vector.extract_strided_slice %5 {offsets = [29, 0], sizes = [1, 128], strides = [1, 1]} : vector<48x256xf32> to vector<1x128xf32>
    %c1_655 = arith.constant 1 : index
    %c2_656 = arith.constant 2 : index
    %c0_657 = arith.constant 0 : index
    %910 = vector.load %arg19[%c1_655, %c2_656, %c0_657] : memref<2x8x128xf32, #tpu.memory_space<vmem>>, vector<1x1x128xf32>
    %911 = vector.shape_cast %910 : vector<1x1x128xf32> to vector<1x128xf32>
    %912 = vector.shape_cast %909 : vector<1x128xf32> to vector<1x1x128xf32>
    tpu.vector_store %arg19[%c1_655, %c2_656, %c0_657], %912 {strides = array<i32>} : memref<2x8x128xf32, #tpu.memory_space<vmem>>, vector<1x1x128xf32>,
    %913 = vector.extract_strided_slice %11 {offsets = [29, 0], sizes = [1, 128], strides = [1, 1]} : vector<48x256xf32> to vector<1x128xf32>
    %c1_658 = arith.constant 1 : index
    %c2_659 = arith.constant 2 : index
    %c0_660 = arith.constant 0 : index
    %914 = vector.load %arg20[%c1_658, %c2_659, %c0_660] : memref<2x8x128xf32, #tpu.memory_space<vmem>>, vector<1x1x128xf32>
    %915 = vector.shape_cast %914 : vector<1x1x128xf32> to vector<1x128xf32>
    %916 = vector.shape_cast %913 : vector<1x128xf32> to vector<1x1x128xf32>
    tpu.vector_store %arg20[%c1_658, %c2_659, %c0_660], %916 {strides = array<i32>} : memref<2x8x128xf32, #tpu.memory_space<vmem>>, vector<1x1x128xf32>,
    %917 = vector.extract_strided_slice %17 {offsets = [29, 0], sizes = [1, 128], strides = [1, 1]} : vector<48x256xf32> to vector<1x128xf32>
    %c1_661 = arith.constant 1 : index
    %c2_662 = arith.constant 2 : index
    %c0_663 = arith.constant 0 : index
    %918 = vector.load %arg21[%c1_661, %c2_662, %c0_663] : memref<2x8x128xf32, #tpu.memory_space<vmem>>, vector<1x1x128xf32>
    %919 = vector.shape_cast %918 : vector<1x1x128xf32> to vector<1x128xf32>
    %920 = vector.shape_cast %917 : vector<1x128xf32> to vector<1x1x128xf32>
    tpu.vector_store %arg21[%c1_661, %c2_662, %c0_663], %920 {strides = array<i32>} : memref<2x8x128xf32, #tpu.memory_space<vmem>>, vector<1x1x128xf32>,
    %921 = vector.extract_strided_slice %5 {offsets = [29, 128], sizes = [1, 128], strides = [1, 1]} : vector<48x256xf32> to vector<1x128xf32>
    %c1_664 = arith.constant 1 : index
    %c3_665 = arith.constant 3 : index
    %c0_666 = arith.constant 0 : index
    %922 = vector.load %arg19[%c1_664, %c3_665, %c0_666] : memref<2x8x128xf32, #tpu.memory_space<vmem>>, vector<1x1x128xf32>
    %923 = vector.shape_cast %922 : vector<1x1x128xf32> to vector<1x128xf32>
    %924 = vector.shape_cast %921 : vector<1x128xf32> to vector<1x1x128xf32>
    tpu.vector_store %arg19[%c1_664, %c3_665, %c0_666], %924 {strides = array<i32>} : memref<2x8x128xf32, #tpu.memory_space<vmem>>, vector<1x1x128xf32>,
    %925 = vector.extract_strided_slice %11 {offsets = [29, 128], sizes = [1, 128], strides = [1, 1]} : vector<48x256xf32> to vector<1x128xf32>
    %c1_667 = arith.constant 1 : index
    %c3_668 = arith.constant 3 : index
    %c0_669 = arith.constant 0 : index
    %926 = vector.load %arg20[%c1_667, %c3_668, %c0_669] : memref<2x8x128xf32, #tpu.memory_space<vmem>>, vector<1x1x128xf32>
    %927 = vector.shape_cast %926 : vector<1x1x128xf32> to vector<1x128xf32>
    %928 = vector.shape_cast %925 : vector<1x128xf32> to vector<1x1x128xf32>
    tpu.vector_store %arg20[%c1_667, %c3_668, %c0_669], %928 {strides = array<i32>} : memref<2x8x128xf32, #tpu.memory_space<vmem>>, vector<1x1x128xf32>,
    %929 = vector.extract_strided_slice %17 {offsets = [29, 128], sizes = [1, 128], strides = [1, 1]} : vector<48x256xf32> to vector<1x128xf32>
    %c1_670 = arith.constant 1 : index
    %c3_671 = arith.constant 3 : index
    %c0_672 = arith.constant 0 : index
    %930 = vector.load %arg21[%c1_670, %c3_671, %c0_672] : memref<2x8x128xf32, #tpu.memory_space<vmem>>, vector<1x1x128xf32>
    %931 = vector.shape_cast %930 : vector<1x1x128xf32> to vector<1x128xf32>
    %932 = vector.shape_cast %929 : vector<1x128xf32> to vector<1x1x128xf32>
    tpu.vector_store %arg21[%c1_670, %c3_671, %c0_672], %932 {strides = array<i32>} : memref<2x8x128xf32, #tpu.memory_space<vmem>>, vector<1x1x128xf32>,
    %933 = vector.extract_strided_slice %5 {offsets = [30, 0], sizes = [1, 128], strides = [1, 1]} : vector<48x256xf32> to vector<1x128xf32>
    %c1_673 = arith.constant 1 : index
    %c4_674 = arith.constant 4 : index
    %c0_675 = arith.constant 0 : index
    %934 = vector.load %arg19[%c1_673, %c4_674, %c0_675] : memref<2x8x128xf32, #tpu.memory_space<vmem>>, vector<1x1x128xf32>
    %935 = vector.shape_cast %934 : vector<1x1x128xf32> to vector<1x128xf32>
    %936 = vector.shape_cast %933 : vector<1x128xf32> to vector<1x1x128xf32>
    tpu.vector_store %arg19[%c1_673, %c4_674, %c0_675], %936 {strides = array<i32>} : memref<2x8x128xf32, #tpu.memory_space<vmem>>, vector<1x1x128xf32>,
    %937 = vector.extract_strided_slice %11 {offsets = [30, 0], sizes = [1, 128], strides = [1, 1]} : vector<48x256xf32> to vector<1x128xf32>
    %c1_676 = arith.constant 1 : index
    %c4_677 = arith.constant 4 : index
    %c0_678 = arith.constant 0 : index
    %938 = vector.load %arg20[%c1_676, %c4_677, %c0_678] : memref<2x8x128xf32, #tpu.memory_space<vmem>>, vector<1x1x128xf32>
    %939 = vector.shape_cast %938 : vector<1x1x128xf32> to vector<1x128xf32>
    %940 = vector.shape_cast %937 : vector<1x128xf32> to vector<1x1x128xf32>
    tpu.vector_store %arg20[%c1_676, %c4_677, %c0_678], %940 {strides = array<i32>} : memref<2x8x128xf32, #tpu.memory_space<vmem>>, vector<1x1x128xf32>,
    %941 = vector.extract_strided_slice %17 {offsets = [30, 0], sizes = [1, 128], strides = [1, 1]} : vector<48x256xf32> to vector<1x128xf32>
    %c1_679 = arith.constant 1 : index
    %c4_680 = arith.constant 4 : index
    %c0_681 = arith.constant 0 : index
    %942 = vector.load %arg21[%c1_679, %c4_680, %c0_681] : memref<2x8x128xf32, #tpu.memory_space<vmem>>, vector<1x1x128xf32>
    %943 = vector.shape_cast %942 : vector<1x1x128xf32> to vector<1x128xf32>
    %944 = vector.shape_cast %941 : vector<1x128xf32> to vector<1x1x128xf32>
    tpu.vector_store %arg21[%c1_679, %c4_680, %c0_681], %944 {strides = array<i32>} : memref<2x8x128xf32, #tpu.memory_space<vmem>>, vector<1x1x128xf32>,
    %945 = vector.extract_strided_slice %5 {offsets = [30, 128], sizes = [1, 128], strides = [1, 1]} : vector<48x256xf32> to vector<1x128xf32>
    %c1_682 = arith.constant 1 : index
    %c5_683 = arith.constant 5 : index
    %c0_684 = arith.constant 0 : index
    %946 = vector.load %arg19[%c1_682, %c5_683, %c0_684] : memref<2x8x128xf32, #tpu.memory_space<vmem>>, vector<1x1x128xf32>
    %947 = vector.shape_cast %946 : vector<1x1x128xf32> to vector<1x128xf32>
    %948 = vector.shape_cast %945 : vector<1x128xf32> to vector<1x1x128xf32>
    tpu.vector_store %arg19[%c1_682, %c5_683, %c0_684], %948 {strides = array<i32>} : memref<2x8x128xf32, #tpu.memory_space<vmem>>, vector<1x1x128xf32>,
    %949 = vector.extract_strided_slice %11 {offsets = [30, 128], sizes = [1, 128], strides = [1, 1]} : vector<48x256xf32> to vector<1x128xf32>
    %c1_685 = arith.constant 1 : index
    %c5_686 = arith.constant 5 : index
    %c0_687 = arith.constant 0 : index
    %950 = vector.load %arg20[%c1_685, %c5_686, %c0_687] : memref<2x8x128xf32, #tpu.memory_space<vmem>>, vector<1x1x128xf32>
    %951 = vector.shape_cast %950 : vector<1x1x128xf32> to vector<1x128xf32>
    %952 = vector.shape_cast %949 : vector<1x128xf32> to vector<1x1x128xf32>
    tpu.vector_store %arg20[%c1_685, %c5_686, %c0_687], %952 {strides = array<i32>} : memref<2x8x128xf32, #tpu.memory_space<vmem>>, vector<1x1x128xf32>,
    %953 = vector.extract_strided_slice %17 {offsets = [30, 128], sizes = [1, 128], strides = [1, 1]} : vector<48x256xf32> to vector<1x128xf32>
    %c1_688 = arith.constant 1 : index
    %c5_689 = arith.constant 5 : index
    %c0_690 = arith.constant 0 : index
    %954 = vector.load %arg21[%c1_688, %c5_689, %c0_690] : memref<2x8x128xf32, #tpu.memory_space<vmem>>, vector<1x1x128xf32>
    %955 = vector.shape_cast %954 : vector<1x1x128xf32> to vector<1x128xf32>
    %956 = vector.shape_cast %953 : vector<1x128xf32> to vector<1x1x128xf32>
    tpu.vector_store %arg21[%c1_688, %c5_689, %c0_690], %956 {strides = array<i32>} : memref<2x8x128xf32, #tpu.memory_space<vmem>>, vector<1x1x128xf32>,
    %957 = vector.extract_strided_slice %5 {offsets = [31, 0], sizes = [1, 128], strides = [1, 1]} : vector<48x256xf32> to vector<1x128xf32>
    %c1_691 = arith.constant 1 : index
    %c6_692 = arith.constant 6 : index
    %c0_693 = arith.constant 0 : index
    %958 = vector.load %arg19[%c1_691, %c6_692, %c0_693] : memref<2x8x128xf32, #tpu.memory_space<vmem>>, vector<1x1x128xf32>
    %959 = vector.shape_cast %958 : vector<1x1x128xf32> to vector<1x128xf32>
    %960 = vector.shape_cast %957 : vector<1x128xf32> to vector<1x1x128xf32>
    tpu.vector_store %arg19[%c1_691, %c6_692, %c0_693], %960 {strides = array<i32>} : memref<2x8x128xf32, #tpu.memory_space<vmem>>, vector<1x1x128xf32>,
    %961 = vector.extract_strided_slice %11 {offsets = [31, 0], sizes = [1, 128], strides = [1, 1]} : vector<48x256xf32> to vector<1x128xf32>
    %c1_694 = arith.constant 1 : index
    %c6_695 = arith.constant 6 : index
    %c0_696 = arith.constant 0 : index
    %962 = vector.load %arg20[%c1_694, %c6_695, %c0_696] : memref<2x8x128xf32, #tpu.memory_space<vmem>>, vector<1x1x128xf32>
    %963 = vector.shape_cast %962 : vector<1x1x128xf32> to vector<1x128xf32>
    %964 = vector.shape_cast %961 : vector<1x128xf32> to vector<1x1x128xf32>
    tpu.vector_store %arg20[%c1_694, %c6_695, %c0_696], %964 {strides = array<i32>} : memref<2x8x128xf32, #tpu.memory_space<vmem>>, vector<1x1x128xf32>,
    %965 = vector.extract_strided_slice %17 {offsets = [31, 0], sizes = [1, 128], strides = [1, 1]} : vector<48x256xf32> to vector<1x128xf32>
    %c1_697 = arith.constant 1 : index
    %c6_698 = arith.constant 6 : index
    %c0_699 = arith.constant 0 : index
    %966 = vector.load %arg21[%c1_697, %c6_698, %c0_699] : memref<2x8x128xf32, #tpu.memory_space<vmem>>, vector<1x1x128xf32>
    %967 = vector.shape_cast %966 : vector<1x1x128xf32> to vector<1x128xf32>
    %968 = vector.shape_cast %965 : vector<1x128xf32> to vector<1x1x128xf32>
    tpu.vector_store %arg21[%c1_697, %c6_698, %c0_699], %968 {strides = array<i32>} : memref<2x8x128xf32, #tpu.memory_space<vmem>>, vector<1x1x128xf32>,
    %969 = vector.extract_strided_slice %5 {offsets = [31, 128], sizes = [1, 128], strides = [1, 1]} : vector<48x256xf32> to vector<1x128xf32>
    %c1_700 = arith.constant 1 : index
    %c7_701 = arith.constant 7 : index
    %c0_702 = arith.constant 0 : index
    %970 = vector.load %arg19[%c1_700, %c7_701, %c0_702] : memref<2x8x128xf32, #tpu.memory_space<vmem>>, vector<1x1x128xf32>
    %971 = vector.shape_cast %970 : vector<1x1x128xf32> to vector<1x128xf32>
    %972 = vector.shape_cast %969 : vector<1x128xf32> to vector<1x1x128xf32>
    tpu.vector_store %arg19[%c1_700, %c7_701, %c0_702], %972 {strides = array<i32>} : memref<2x8x128xf32, #tpu.memory_space<vmem>>, vector<1x1x128xf32>,
    %973 = vector.extract_strided_slice %11 {offsets = [31, 128], sizes = [1, 128], strides = [1, 1]} : vector<48x256xf32> to vector<1x128xf32>
    %c1_703 = arith.constant 1 : index
    %c7_704 = arith.constant 7 : index
    %c0_705 = arith.constant 0 : index
    %974 = vector.load %arg20[%c1_703, %c7_704, %c0_705] : memref<2x8x128xf32, #tpu.memory_space<vmem>>, vector<1x1x128xf32>
    %975 = vector.shape_cast %974 : vector<1x1x128xf32> to vector<1x128xf32>
    %976 = vector.shape_cast %973 : vector<1x128xf32> to vector<1x1x128xf32>
    tpu.vector_store %arg20[%c1_703, %c7_704, %c0_705], %976 {strides = array<i32>} : memref<2x8x128xf32, #tpu.memory_space<vmem>>, vector<1x1x128xf32>,
    %977 = vector.extract_strided_slice %17 {offsets = [31, 128], sizes = [1, 128], strides = [1, 1]} : vector<48x256xf32> to vector<1x128xf32>
    %c1_706 = arith.constant 1 : index
    %c7_707 = arith.constant 7 : index
    %c0_708 = arith.constant 0 : index
    %978 = vector.load %arg21[%c1_706, %c7_707, %c0_708] : memref<2x8x128xf32, #tpu.memory_space<vmem>>, vector<1x1x128xf32>
    %979 = vector.shape_cast %978 : vector<1x1x128xf32> to vector<1x128xf32>
    %980 = vector.shape_cast %977 : vector<1x128xf32> to vector<1x1x128xf32>
    tpu.vector_store %arg21[%c1_706, %c7_707, %c0_708], %980 {strides = array<i32>} : memref<2x8x128xf32, #tpu.memory_space<vmem>>, vector<1x1x128xf32>,
    %c0_709 = arith.constant 0 : index
    %c0_710 = arith.constant 0 : index
    %c0_711 = arith.constant 0 : index
    %981 = vector.load %arg19[%c0_709, %c0_710, %c0_711] : memref<2x8x128xf32, #tpu.memory_space<vmem>>, vector<2x8x128xf32>
    %c0_712 = arith.constant 0 : index
    %c0_713 = arith.constant 0 : index
    %c0_714 = arith.constant 0 : index
    %982 = vector.load %arg20[%c0_712, %c0_713, %c0_714] : memref<2x8x128xf32, #tpu.memory_space<vmem>>, vector<2x8x128xf32>
    %c0_715 = arith.constant 0 : index
    %c0_716 = arith.constant 0 : index
    %c0_717 = arith.constant 0 : index
    %983 = vector.load %arg21[%c0_715, %c0_716, %c0_717] : memref<2x8x128xf32, #tpu.memory_space<vmem>>, vector<2x8x128xf32>
    "tpu.trace_start"() <{level = 10 : i32, message = "hsd,htd->hst"}> : () -> ()
    %cst_718 = arith.constant dense<0.000000e+00> : vector<2x8x8xf32>
    %984 = tpu.matmul %981, %982, %cst_718 {dimension_numbers = #tpu.dot_dimension_numbers<[2], [2], [1], [1], [0, 0, 0, 1, 1, 1], [0], [0]>} : vector<2x8x128xf32>, vector<2x8x128xf32>, vector<2x8x8xf32> -> vector<2x8x8xf32>
    "tpu.trace_stop"() : () -> ()
    %cst_719 = arith.constant 0.0883883461 : f32
    %985 = vector.broadcast %cst_719 : f32 to vector<2x8x8xf32>
    %986 = arith.mulf %984, %985 : vector<2x8x8xf32>
    %cst_720 = arith.constant dense<0xFF800000> : vector<2x8xf32>
    %987 = vector.multi_reduction <maximumf>, %986, %cst_720 [2] : vector<2x8x8xf32> to vector<2x8xf32>
    %988 = vector.shape_cast %987 : vector<2x8xf32> to vector<2x8x1xf32>
    %989 = vector.broadcast %988 : vector<2x8x1xf32> to vector<2x8x8xf32>
    %990 = arith.subf %986, %989 : vector<2x8x8xf32>
    %991 = math.exp %990 : vector<2x8x8xf32>
    %cst_721 = arith.constant dense<0.000000e+00> : vector<2x8xf32>
    %992 = vector.multi_reduction <add>, %991, %cst_721 [2] : vector<2x8x8xf32> to vector<2x8xf32>
    %993 = vector.shape_cast %992 : vector<2x8xf32> to vector<2x8x1xf32>
    %994 = tpu.reciprocal %993 {approx = true} : vector<2x8x1xf32> -> vector<2x8x1xf32>
    %995 = vector.broadcast %994 : vector<2x8x1xf32> to vector<2x8x8xf32>
    %996 = arith.mulf %991, %995 : vector<2x8x8xf32>
    "tpu.trace_start"() <{level = 10 : i32, message = "hst,htd->hsd"}> : () -> ()
    %cst_722 = arith.constant dense<0.000000e+00> : vector<2x8x128xf32>
    %997 = tpu.matmul %996, %983, %cst_722 {dimension_numbers = #tpu.dot_dimension_numbers<[2], [1], [1], [2], [0, 0, 0, 1, 1, 2], [0], [0]>} : vector<2x8x8xf32>, vector<2x8x128xf32>, vector<2x8x128xf32> -> vector<2x8x128xf32>
    "tpu.trace_stop"() : () -> ()
    %998 = vector.extract_strided_slice %997 {offsets = [0, 0, 0], sizes = [1, 1, 128], strides = [1, 1, 1]} : vector<2x8x128xf32> to vector<1x1x128xf32>
    %999 = vector.shape_cast %998 : vector<1x1x128xf32> to vector<1x128xf32>
    %c24 = arith.constant 24 : index
    %c0_723 = arith.constant 0 : index
    %1000 = vector.load %arg22[%c24, %c0_723] : memref<48x256xf32, #tpu.memory_space<vmem>>, vector<1x128xf32>
    tpu.vector_store %arg22[%c24, %c0_723], %999 {strides = array<i32>} : memref<48x256xf32, #tpu.memory_space<vmem>>, vector<1x128xf32>,
    %1001 = vector.extract_strided_slice %997 {offsets = [0, 1, 0], sizes = [1, 1, 128], strides = [1, 1, 1]} : vector<2x8x128xf32> to vector<1x1x128xf32>
    %1002 = vector.shape_cast %1001 : vector<1x1x128xf32> to vector<1x128xf32>
    %c24_724 = arith.constant 24 : index
    %c128_725 = arith.constant 128 : index
    %1003 = vector.load %arg22[%c24_724, %c128_725] : memref<48x256xf32, #tpu.memory_space<vmem>>, vector<1x128xf32>
    tpu.vector_store %arg22[%c24_724, %c128_725], %1002 {strides = array<i32>} : memref<48x256xf32, #tpu.memory_space<vmem>>, vector<1x128xf32>,
    %1004 = vector.extract_strided_slice %997 {offsets = [0, 2, 0], sizes = [1, 1, 128], strides = [1, 1, 1]} : vector<2x8x128xf32> to vector<1x1x128xf32>
    %1005 = vector.shape_cast %1004 : vector<1x1x128xf32> to vector<1x128xf32>
    %c25 = arith.constant 25 : index
    %c0_726 = arith.constant 0 : index
    %1006 = vector.load %arg22[%c25, %c0_726] : memref<48x256xf32, #tpu.memory_space<vmem>>, vector<1x128xf32>
    tpu.vector_store %arg22[%c25, %c0_726], %1005 {strides = array<i32>} : memref<48x256xf32, #tpu.memory_space<vmem>>, vector<1x128xf32>,
    %1007 = vector.extract_strided_slice %997 {offsets = [0, 3, 0], sizes = [1, 1, 128], strides = [1, 1, 1]} : vector<2x8x128xf32> to vector<1x1x128xf32>
    %1008 = vector.shape_cast %1007 : vector<1x1x128xf32> to vector<1x128xf32>
    %c25_727 = arith.constant 25 : index
    %c128_728 = arith.constant 128 : index
    %1009 = vector.load %arg22[%c25_727, %c128_728] : memref<48x256xf32, #tpu.memory_space<vmem>>, vector<1x128xf32>
    tpu.vector_store %arg22[%c25_727, %c128_728], %1008 {strides = array<i32>} : memref<48x256xf32, #tpu.memory_space<vmem>>, vector<1x128xf32>,
    %1010 = vector.extract_strided_slice %997 {offsets = [0, 4, 0], sizes = [1, 1, 128], strides = [1, 1, 1]} : vector<2x8x128xf32> to vector<1x1x128xf32>
    %1011 = vector.shape_cast %1010 : vector<1x1x128xf32> to vector<1x128xf32>
    %c26 = arith.constant 26 : index
    %c0_729 = arith.constant 0 : index
    %1012 = vector.load %arg22[%c26, %c0_729] : memref<48x256xf32, #tpu.memory_space<vmem>>, vector<1x128xf32>
    tpu.vector_store %arg22[%c26, %c0_729], %1011 {strides = array<i32>} : memref<48x256xf32, #tpu.memory_space<vmem>>, vector<1x128xf32>,
    %1013 = vector.extract_strided_slice %997 {offsets = [0, 5, 0], sizes = [1, 1, 128], strides = [1, 1, 1]} : vector<2x8x128xf32> to vector<1x1x128xf32>
    %1014 = vector.shape_cast %1013 : vector<1x1x128xf32> to vector<1x128xf32>
    %c26_730 = arith.constant 26 : index
    %c128_731 = arith.constant 128 : index
    %1015 = vector.load %arg22[%c26_730, %c128_731] : memref<48x256xf32, #tpu.memory_space<vmem>>, vector<1x128xf32>
    tpu.vector_store %arg22[%c26_730, %c128_731], %1014 {strides = array<i32>} : memref<48x256xf32, #tpu.memory_space<vmem>>, vector<1x128xf32>,
    %1016 = vector.extract_strided_slice %997 {offsets = [0, 6, 0], sizes = [1, 1, 128], strides = [1, 1, 1]} : vector<2x8x128xf32> to vector<1x1x128xf32>
    %1017 = vector.shape_cast %1016 : vector<1x1x128xf32> to vector<1x128xf32>
    %c27 = arith.constant 27 : index
    %c0_732 = arith.constant 0 : index
    %1018 = vector.load %arg22[%c27, %c0_732] : memref<48x256xf32, #tpu.memory_space<vmem>>, vector<1x128xf32>
    tpu.vector_store %arg22[%c27, %c0_732], %1017 {strides = array<i32>} : memref<48x256xf32, #tpu.memory_space<vmem>>, vector<1x128xf32>,
    %1019 = vector.extract_strided_slice %997 {offsets = [0, 7, 0], sizes = [1, 1, 128], strides = [1, 1, 1]} : vector<2x8x128xf32> to vector<1x1x128xf32>
    %1020 = vector.shape_cast %1019 : vector<1x1x128xf32> to vector<1x128xf32>
    %c27_733 = arith.constant 27 : index
    %c128_734 = arith.constant 128 : index
    %1021 = vector.load %arg22[%c27_733, %c128_734] : memref<48x256xf32, #tpu.memory_space<vmem>>, vector<1x128xf32>
    tpu.vector_store %arg22[%c27_733, %c128_734], %1020 {strides = array<i32>} : memref<48x256xf32, #tpu.memory_space<vmem>>, vector<1x128xf32>,
    %1022 = vector.extract_strided_slice %997 {offsets = [1, 0, 0], sizes = [1, 1, 128], strides = [1, 1, 1]} : vector<2x8x128xf32> to vector<1x1x128xf32>
    %1023 = vector.shape_cast %1022 : vector<1x1x128xf32> to vector<1x128xf32>
    %c28 = arith.constant 28 : index
    %c0_735 = arith.constant 0 : index
    %1024 = vector.load %arg22[%c28, %c0_735] : memref<48x256xf32, #tpu.memory_space<vmem>>, vector<1x128xf32>
    tpu.vector_store %arg22[%c28, %c0_735], %1023 {strides = array<i32>} : memref<48x256xf32, #tpu.memory_space<vmem>>, vector<1x128xf32>,
    %1025 = vector.extract_strided_slice %997 {offsets = [1, 1, 0], sizes = [1, 1, 128], strides = [1, 1, 1]} : vector<2x8x128xf32> to vector<1x1x128xf32>
    %1026 = vector.shape_cast %1025 : vector<1x1x128xf32> to vector<1x128xf32>
    %c28_736 = arith.constant 28 : index
    %c128_737 = arith.constant 128 : index
    %1027 = vector.load %arg22[%c28_736, %c128_737] : memref<48x256xf32, #tpu.memory_space<vmem>>, vector<1x128xf32>
    tpu.vector_store %arg22[%c28_736, %c128_737], %1026 {strides = array<i32>} : memref<48x256xf32, #tpu.memory_space<vmem>>, vector<1x128xf32>,
    %1028 = vector.extract_strided_slice %997 {offsets = [1, 2, 0], sizes = [1, 1, 128], strides = [1, 1, 1]} : vector<2x8x128xf32> to vector<1x1x128xf32>
    %1029 = vector.shape_cast %1028 : vector<1x1x128xf32> to vector<1x128xf32>
    %c29 = arith.constant 29 : index
    %c0_738 = arith.constant 0 : index
    %1030 = vector.load %arg22[%c29, %c0_738] : memref<48x256xf32, #tpu.memory_space<vmem>>, vector<1x128xf32>
    tpu.vector_store %arg22[%c29, %c0_738], %1029 {strides = array<i32>} : memref<48x256xf32, #tpu.memory_space<vmem>>, vector<1x128xf32>,
    %1031 = vector.extract_strided_slice %997 {offsets = [1, 3, 0], sizes = [1, 1, 128], strides = [1, 1, 1]} : vector<2x8x128xf32> to vector<1x1x128xf32>
    %1032 = vector.shape_cast %1031 : vector<1x1x128xf32> to vector<1x128xf32>
    %c29_739 = arith.constant 29 : index
    %c128_740 = arith.constant 128 : index
    %1033 = vector.load %arg22[%c29_739, %c128_740] : memref<48x256xf32, #tpu.memory_space<vmem>>, vector<1x128xf32>
    tpu.vector_store %arg22[%c29_739, %c128_740], %1032 {strides = array<i32>} : memref<48x256xf32, #tpu.memory_space<vmem>>, vector<1x128xf32>,
    %1034 = vector.extract_strided_slice %997 {offsets = [1, 4, 0], sizes = [1, 1, 128], strides = [1, 1, 1]} : vector<2x8x128xf32> to vector<1x1x128xf32>
    %1035 = vector.shape_cast %1034 : vector<1x1x128xf32> to vector<1x128xf32>
    %c30 = arith.constant 30 : index
    %c0_741 = arith.constant 0 : index
    %1036 = vector.load %arg22[%c30, %c0_741] : memref<48x256xf32, #tpu.memory_space<vmem>>, vector<1x128xf32>
    tpu.vector_store %arg22[%c30, %c0_741], %1035 {strides = array<i32>} : memref<48x256xf32, #tpu.memory_space<vmem>>, vector<1x128xf32>,
    %1037 = vector.extract_strided_slice %997 {offsets = [1, 5, 0], sizes = [1, 1, 128], strides = [1, 1, 1]} : vector<2x8x128xf32> to vector<1x1x128xf32>
    %1038 = vector.shape_cast %1037 : vector<1x1x128xf32> to vector<1x128xf32>
    %c30_742 = arith.constant 30 : index
    %c128_743 = arith.constant 128 : index
    %1039 = vector.load %arg22[%c30_742, %c128_743] : memref<48x256xf32, #tpu.memory_space<vmem>>, vector<1x128xf32>
    tpu.vector_store %arg22[%c30_742, %c128_743], %1038 {strides = array<i32>} : memref<48x256xf32, #tpu.memory_space<vmem>>, vector<1x128xf32>,
    %1040 = vector.extract_strided_slice %997 {offsets = [1, 6, 0], sizes = [1, 1, 128], strides = [1, 1, 1]} : vector<2x8x128xf32> to vector<1x1x128xf32>
    %1041 = vector.shape_cast %1040 : vector<1x1x128xf32> to vector<1x128xf32>
    %c31 = arith.constant 31 : index
    %c0_744 = arith.constant 0 : index
    %1042 = vector.load %arg22[%c31, %c0_744] : memref<48x256xf32, #tpu.memory_space<vmem>>, vector<1x128xf32>
    tpu.vector_store %arg22[%c31, %c0_744], %1041 {strides = array<i32>} : memref<48x256xf32, #tpu.memory_space<vmem>>, vector<1x128xf32>,
    %1043 = vector.extract_strided_slice %997 {offsets = [1, 7, 0], sizes = [1, 1, 128], strides = [1, 1, 1]} : vector<2x8x128xf32> to vector<1x1x128xf32>
    %1044 = vector.shape_cast %1043 : vector<1x1x128xf32> to vector<1x128xf32>
    %c31_745 = arith.constant 31 : index
    %c128_746 = arith.constant 128 : index
    %1045 = vector.load %arg22[%c31_745, %c128_746] : memref<48x256xf32, #tpu.memory_space<vmem>>, vector<1x128xf32>
    tpu.vector_store %arg22[%c31_745, %c128_746], %1044 {strides = array<i32>} : memref<48x256xf32, #tpu.memory_space<vmem>>, vector<1x128xf32>,
    %1046 = vector.extract_strided_slice %5 {offsets = [32, 0], sizes = [1, 128], strides = [1, 1]} : vector<48x256xf32> to vector<1x128xf32>
    %c0_747 = arith.constant 0 : index
    %c0_748 = arith.constant 0 : index
    %c0_749 = arith.constant 0 : index
    %1047 = vector.load %arg19[%c0_747, %c0_748, %c0_749] : memref<2x8x128xf32, #tpu.memory_space<vmem>>, vector<1x1x128xf32>
    %1048 = vector.shape_cast %1047 : vector<1x1x128xf32> to vector<1x128xf32>
    %1049 = vector.shape_cast %1046 : vector<1x128xf32> to vector<1x1x128xf32>
    tpu.vector_store %arg19[%c0_747, %c0_748, %c0_749], %1049 {strides = array<i32>} : memref<2x8x128xf32, #tpu.memory_space<vmem>>, vector<1x1x128xf32>,
    %1050 = vector.extract_strided_slice %11 {offsets = [32, 0], sizes = [1, 128], strides = [1, 1]} : vector<48x256xf32> to vector<1x128xf32>
    %c0_750 = arith.constant 0 : index
    %c0_751 = arith.constant 0 : index
    %c0_752 = arith.constant 0 : index
    %1051 = vector.load %arg20[%c0_750, %c0_751, %c0_752] : memref<2x8x128xf32, #tpu.memory_space<vmem>>, vector<1x1x128xf32>
    %1052 = vector.shape_cast %1051 : vector<1x1x128xf32> to vector<1x128xf32>
    %1053 = vector.shape_cast %1050 : vector<1x128xf32> to vector<1x1x128xf32>
    tpu.vector_store %arg20[%c0_750, %c0_751, %c0_752], %1053 {strides = array<i32>} : memref<2x8x128xf32, #tpu.memory_space<vmem>>, vector<1x1x128xf32>,
    %1054 = vector.extract_strided_slice %17 {offsets = [32, 0], sizes = [1, 128], strides = [1, 1]} : vector<48x256xf32> to vector<1x128xf32>
    %c0_753 = arith.constant 0 : index
    %c0_754 = arith.constant 0 : index
    %c0_755 = arith.constant 0 : index
    %1055 = vector.load %arg21[%c0_753, %c0_754, %c0_755] : memref<2x8x128xf32, #tpu.memory_space<vmem>>, vector<1x1x128xf32>
    %1056 = vector.shape_cast %1055 : vector<1x1x128xf32> to vector<1x128xf32>
    %1057 = vector.shape_cast %1054 : vector<1x128xf32> to vector<1x1x128xf32>
    tpu.vector_store %arg21[%c0_753, %c0_754, %c0_755], %1057 {strides = array<i32>} : memref<2x8x128xf32, #tpu.memory_space<vmem>>, vector<1x1x128xf32>,
    %1058 = vector.extract_strided_slice %5 {offsets = [32, 128], sizes = [1, 128], strides = [1, 1]} : vector<48x256xf32> to vector<1x128xf32>
    %c0_756 = arith.constant 0 : index
    %c1_757 = arith.constant 1 : index
    %c0_758 = arith.constant 0 : index
    %1059 = vector.load %arg19[%c0_756, %c1_757, %c0_758] : memref<2x8x128xf32, #tpu.memory_space<vmem>>, vector<1x1x128xf32>
    %1060 = vector.shape_cast %1059 : vector<1x1x128xf32> to vector<1x128xf32>
    %1061 = vector.shape_cast %1058 : vector<1x128xf32> to vector<1x1x128xf32>
    tpu.vector_store %arg19[%c0_756, %c1_757, %c0_758], %1061 {strides = array<i32>} : memref<2x8x128xf32, #tpu.memory_space<vmem>>, vector<1x1x128xf32>,
    %1062 = vector.extract_strided_slice %11 {offsets = [32, 128], sizes = [1, 128], strides = [1, 1]} : vector<48x256xf32> to vector<1x128xf32>
    %c0_759 = arith.constant 0 : index
    %c1_760 = arith.constant 1 : index
    %c0_761 = arith.constant 0 : index
    %1063 = vector.load %arg20[%c0_759, %c1_760, %c0_761] : memref<2x8x128xf32, #tpu.memory_space<vmem>>, vector<1x1x128xf32>
    %1064 = vector.shape_cast %1063 : vector<1x1x128xf32> to vector<1x128xf32>
    %1065 = vector.shape_cast %1062 : vector<1x128xf32> to vector<1x1x128xf32>
    tpu.vector_store %arg20[%c0_759, %c1_760, %c0_761], %1065 {strides = array<i32>} : memref<2x8x128xf32, #tpu.memory_space<vmem>>, vector<1x1x128xf32>,
    %1066 = vector.extract_strided_slice %17 {offsets = [32, 128], sizes = [1, 128], strides = [1, 1]} : vector<48x256xf32> to vector<1x128xf32>
    %c0_762 = arith.constant 0 : index
    %c1_763 = arith.constant 1 : index
    %c0_764 = arith.constant 0 : index
    %1067 = vector.load %arg21[%c0_762, %c1_763, %c0_764] : memref<2x8x128xf32, #tpu.memory_space<vmem>>, vector<1x1x128xf32>
    %1068 = vector.shape_cast %1067 : vector<1x1x128xf32> to vector<1x128xf32>
    %1069 = vector.shape_cast %1066 : vector<1x128xf32> to vector<1x1x128xf32>
    tpu.vector_store %arg21[%c0_762, %c1_763, %c0_764], %1069 {strides = array<i32>} : memref<2x8x128xf32, #tpu.memory_space<vmem>>, vector<1x1x128xf32>,
    %1070 = vector.extract_strided_slice %5 {offsets = [33, 0], sizes = [1, 128], strides = [1, 1]} : vector<48x256xf32> to vector<1x128xf32>
    %c0_765 = arith.constant 0 : index
    %c2_766 = arith.constant 2 : index
    %c0_767 = arith.constant 0 : index
    %1071 = vector.load %arg19[%c0_765, %c2_766, %c0_767] : memref<2x8x128xf32, #tpu.memory_space<vmem>>, vector<1x1x128xf32>
    %1072 = vector.shape_cast %1071 : vector<1x1x128xf32> to vector<1x128xf32>
    %1073 = vector.shape_cast %1070 : vector<1x128xf32> to vector<1x1x128xf32>
    tpu.vector_store %arg19[%c0_765, %c2_766, %c0_767], %1073 {strides = array<i32>} : memref<2x8x128xf32, #tpu.memory_space<vmem>>, vector<1x1x128xf32>,
    %1074 = vector.extract_strided_slice %11 {offsets = [33, 0], sizes = [1, 128], strides = [1, 1]} : vector<48x256xf32> to vector<1x128xf32>
    %c0_768 = arith.constant 0 : index
    %c2_769 = arith.constant 2 : index
    %c0_770 = arith.constant 0 : index
    %1075 = vector.load %arg20[%c0_768, %c2_769, %c0_770] : memref<2x8x128xf32, #tpu.memory_space<vmem>>, vector<1x1x128xf32>
    %1076 = vector.shape_cast %1075 : vector<1x1x128xf32> to vector<1x128xf32>
    %1077 = vector.shape_cast %1074 : vector<1x128xf32> to vector<1x1x128xf32>
    tpu.vector_store %arg20[%c0_768, %c2_769, %c0_770], %1077 {strides = array<i32>} : memref<2x8x128xf32, #tpu.memory_space<vmem>>, vector<1x1x128xf32>,
    %1078 = vector.extract_strided_slice %17 {offsets = [33, 0], sizes = [1, 128], strides = [1, 1]} : vector<48x256xf32> to vector<1x128xf32>
    %c0_771 = arith.constant 0 : index
    %c2_772 = arith.constant 2 : index
    %c0_773 = arith.constant 0 : index
    %1079 = vector.load %arg21[%c0_771, %c2_772, %c0_773] : memref<2x8x128xf32, #tpu.memory_space<vmem>>, vector<1x1x128xf32>
    %1080 = vector.shape_cast %1079 : vector<1x1x128xf32> to vector<1x128xf32>
    %1081 = vector.shape_cast %1078 : vector<1x128xf32> to vector<1x1x128xf32>
    tpu.vector_store %arg21[%c0_771, %c2_772, %c0_773], %1081 {strides = array<i32>} : memref<2x8x128xf32, #tpu.memory_space<vmem>>, vector<1x1x128xf32>,
    %1082 = vector.extract_strided_slice %5 {offsets = [33, 128], sizes = [1, 128], strides = [1, 1]} : vector<48x256xf32> to vector<1x128xf32>
    %c0_774 = arith.constant 0 : index
    %c3_775 = arith.constant 3 : index
    %c0_776 = arith.constant 0 : index
    %1083 = vector.load %arg19[%c0_774, %c3_775, %c0_776] : memref<2x8x128xf32, #tpu.memory_space<vmem>>, vector<1x1x128xf32>
    %1084 = vector.shape_cast %1083 : vector<1x1x128xf32> to vector<1x128xf32>
    %1085 = vector.shape_cast %1082 : vector<1x128xf32> to vector<1x1x128xf32>
    tpu.vector_store %arg19[%c0_774, %c3_775, %c0_776], %1085 {strides = array<i32>} : memref<2x8x128xf32, #tpu.memory_space<vmem>>, vector<1x1x128xf32>,
    %1086 = vector.extract_strided_slice %11 {offsets = [33, 128], sizes = [1, 128], strides = [1, 1]} : vector<48x256xf32> to vector<1x128xf32>
    %c0_777 = arith.constant 0 : index
    %c3_778 = arith.constant 3 : index
    %c0_779 = arith.constant 0 : index
    %1087 = vector.load %arg20[%c0_777, %c3_778, %c0_779] : memref<2x8x128xf32, #tpu.memory_space<vmem>>, vector<1x1x128xf32>
    %1088 = vector.shape_cast %1087 : vector<1x1x128xf32> to vector<1x128xf32>
    %1089 = vector.shape_cast %1086 : vector<1x128xf32> to vector<1x1x128xf32>
    tpu.vector_store %arg20[%c0_777, %c3_778, %c0_779], %1089 {strides = array<i32>} : memref<2x8x128xf32, #tpu.memory_space<vmem>>, vector<1x1x128xf32>,
    %1090 = vector.extract_strided_slice %17 {offsets = [33, 128], sizes = [1, 128], strides = [1, 1]} : vector<48x256xf32> to vector<1x128xf32>
    %c0_780 = arith.constant 0 : index
    %c3_781 = arith.constant 3 : index
    %c0_782 = arith.constant 0 : index
    %1091 = vector.load %arg21[%c0_780, %c3_781, %c0_782] : memref<2x8x128xf32, #tpu.memory_space<vmem>>, vector<1x1x128xf32>
    %1092 = vector.shape_cast %1091 : vector<1x1x128xf32> to vector<1x128xf32>
    %1093 = vector.shape_cast %1090 : vector<1x128xf32> to vector<1x1x128xf32>
    tpu.vector_store %arg21[%c0_780, %c3_781, %c0_782], %1093 {strides = array<i32>} : memref<2x8x128xf32, #tpu.memory_space<vmem>>, vector<1x1x128xf32>,
    %1094 = vector.extract_strided_slice %5 {offsets = [34, 0], sizes = [1, 128], strides = [1, 1]} : vector<48x256xf32> to vector<1x128xf32>
    %c0_783 = arith.constant 0 : index
    %c4_784 = arith.constant 4 : index
    %c0_785 = arith.constant 0 : index
    %1095 = vector.load %arg19[%c0_783, %c4_784, %c0_785] : memref<2x8x128xf32, #tpu.memory_space<vmem>>, vector<1x1x128xf32>
    %1096 = vector.shape_cast %1095 : vector<1x1x128xf32> to vector<1x128xf32>
    %1097 = vector.shape_cast %1094 : vector<1x128xf32> to vector<1x1x128xf32>
    tpu.vector_store %arg19[%c0_783, %c4_784, %c0_785], %1097 {strides = array<i32>} : memref<2x8x128xf32, #tpu.memory_space<vmem>>, vector<1x1x128xf32>,
    %1098 = vector.extract_strided_slice %11 {offsets = [34, 0], sizes = [1, 128], strides = [1, 1]} : vector<48x256xf32> to vector<1x128xf32>
    %c0_786 = arith.constant 0 : index
    %c4_787 = arith.constant 4 : index
    %c0_788 = arith.constant 0 : index
    %1099 = vector.load %arg20[%c0_786, %c4_787, %c0_788] : memref<2x8x128xf32, #tpu.memory_space<vmem>>, vector<1x1x128xf32>
    %1100 = vector.shape_cast %1099 : vector<1x1x128xf32> to vector<1x128xf32>
    %1101 = vector.shape_cast %1098 : vector<1x128xf32> to vector<1x1x128xf32>
    tpu.vector_store %arg20[%c0_786, %c4_787, %c0_788], %1101 {strides = array<i32>} : memref<2x8x128xf32, #tpu.memory_space<vmem>>, vector<1x1x128xf32>,
    %1102 = vector.extract_strided_slice %17 {offsets = [34, 0], sizes = [1, 128], strides = [1, 1]} : vector<48x256xf32> to vector<1x128xf32>
    %c0_789 = arith.constant 0 : index
    %c4_790 = arith.constant 4 : index
    %c0_791 = arith.constant 0 : index
    %1103 = vector.load %arg21[%c0_789, %c4_790, %c0_791] : memref<2x8x128xf32, #tpu.memory_space<vmem>>, vector<1x1x128xf32>
    %1104 = vector.shape_cast %1103 : vector<1x1x128xf32> to vector<1x128xf32>
    %1105 = vector.shape_cast %1102 : vector<1x128xf32> to vector<1x1x128xf32>
    tpu.vector_store %arg21[%c0_789, %c4_790, %c0_791], %1105 {strides = array<i32>} : memref<2x8x128xf32, #tpu.memory_space<vmem>>, vector<1x1x128xf32>,
    %1106 = vector.extract_strided_slice %5 {offsets = [34, 128], sizes = [1, 128], strides = [1, 1]} : vector<48x256xf32> to vector<1x128xf32>
    %c0_792 = arith.constant 0 : index
    %c5_793 = arith.constant 5 : index
    %c0_794 = arith.constant 0 : index
    %1107 = vector.load %arg19[%c0_792, %c5_793, %c0_794] : memref<2x8x128xf32, #tpu.memory_space<vmem>>, vector<1x1x128xf32>
    %1108 = vector.shape_cast %1107 : vector<1x1x128xf32> to vector<1x128xf32>
    %1109 = vector.shape_cast %1106 : vector<1x128xf32> to vector<1x1x128xf32>
    tpu.vector_store %arg19[%c0_792, %c5_793, %c0_794], %1109 {strides = array<i32>} : memref<2x8x128xf32, #tpu.memory_space<vmem>>, vector<1x1x128xf32>,
    %1110 = vector.extract_strided_slice %11 {offsets = [34, 128], sizes = [1, 128], strides = [1, 1]} : vector<48x256xf32> to vector<1x128xf32>
    %c0_795 = arith.constant 0 : index
    %c5_796 = arith.constant 5 : index
    %c0_797 = arith.constant 0 : index
    %1111 = vector.load %arg20[%c0_795, %c5_796, %c0_797] : memref<2x8x128xf32, #tpu.memory_space<vmem>>, vector<1x1x128xf32>
    %1112 = vector.shape_cast %1111 : vector<1x1x128xf32> to vector<1x128xf32>
    %1113 = vector.shape_cast %1110 : vector<1x128xf32> to vector<1x1x128xf32>
    tpu.vector_store %arg20[%c0_795, %c5_796, %c0_797], %1113 {strides = array<i32>} : memref<2x8x128xf32, #tpu.memory_space<vmem>>, vector<1x1x128xf32>,
    %1114 = vector.extract_strided_slice %17 {offsets = [34, 128], sizes = [1, 128], strides = [1, 1]} : vector<48x256xf32> to vector<1x128xf32>
    %c0_798 = arith.constant 0 : index
    %c5_799 = arith.constant 5 : index
    %c0_800 = arith.constant 0 : index
    %1115 = vector.load %arg21[%c0_798, %c5_799, %c0_800] : memref<2x8x128xf32, #tpu.memory_space<vmem>>, vector<1x1x128xf32>
    %1116 = vector.shape_cast %1115 : vector<1x1x128xf32> to vector<1x128xf32>
    %1117 = vector.shape_cast %1114 : vector<1x128xf32> to vector<1x1x128xf32>
    tpu.vector_store %arg21[%c0_798, %c5_799, %c0_800], %1117 {strides = array<i32>} : memref<2x8x128xf32, #tpu.memory_space<vmem>>, vector<1x1x128xf32>,
    %1118 = vector.extract_strided_slice %5 {offsets = [35, 0], sizes = [1, 128], strides = [1, 1]} : vector<48x256xf32> to vector<1x128xf32>
    %c0_801 = arith.constant 0 : index
    %c6_802 = arith.constant 6 : index
    %c0_803 = arith.constant 0 : index
    %1119 = vector.load %arg19[%c0_801, %c6_802, %c0_803] : memref<2x8x128xf32, #tpu.memory_space<vmem>>, vector<1x1x128xf32>
    %1120 = vector.shape_cast %1119 : vector<1x1x128xf32> to vector<1x128xf32>
    %1121 = vector.shape_cast %1118 : vector<1x128xf32> to vector<1x1x128xf32>
    tpu.vector_store %arg19[%c0_801, %c6_802, %c0_803], %1121 {strides = array<i32>} : memref<2x8x128xf32, #tpu.memory_space<vmem>>, vector<1x1x128xf32>,
    %1122 = vector.extract_strided_slice %11 {offsets = [35, 0], sizes = [1, 128], strides = [1, 1]} : vector<48x256xf32> to vector<1x128xf32>
    %c0_804 = arith.constant 0 : index
    %c6_805 = arith.constant 6 : index
    %c0_806 = arith.constant 0 : index
    %1123 = vector.load %arg20[%c0_804, %c6_805, %c0_806] : memref<2x8x128xf32, #tpu.memory_space<vmem>>, vector<1x1x128xf32>
    %1124 = vector.shape_cast %1123 : vector<1x1x128xf32> to vector<1x128xf32>
    %1125 = vector.shape_cast %1122 : vector<1x128xf32> to vector<1x1x128xf32>
    tpu.vector_store %arg20[%c0_804, %c6_805, %c0_806], %1125 {strides = array<i32>} : memref<2x8x128xf32, #tpu.memory_space<vmem>>, vector<1x1x128xf32>,
    %1126 = vector.extract_strided_slice %17 {offsets = [35, 0], sizes = [1, 128], strides = [1, 1]} : vector<48x256xf32> to vector<1x128xf32>
    %c0_807 = arith.constant 0 : index
    %c6_808 = arith.constant 6 : index
    %c0_809 = arith.constant 0 : index
    %1127 = vector.load %arg21[%c0_807, %c6_808, %c0_809] : memref<2x8x128xf32, #tpu.memory_space<vmem>>, vector<1x1x128xf32>
    %1128 = vector.shape_cast %1127 : vector<1x1x128xf32> to vector<1x128xf32>
    %1129 = vector.shape_cast %1126 : vector<1x128xf32> to vector<1x1x128xf32>
    tpu.vector_store %arg21[%c0_807, %c6_808, %c0_809], %1129 {strides = array<i32>} : memref<2x8x128xf32, #tpu.memory_space<vmem>>, vector<1x1x128xf32>,
    %1130 = vector.extract_strided_slice %5 {offsets = [35, 128], sizes = [1, 128], strides = [1, 1]} : vector<48x256xf32> to vector<1x128xf32>
    %c0_810 = arith.constant 0 : index
    %c7_811 = arith.constant 7 : index
    %c0_812 = arith.constant 0 : index
    %1131 = vector.load %arg19[%c0_810, %c7_811, %c0_812] : memref<2x8x128xf32, #tpu.memory_space<vmem>>, vector<1x1x128xf32>
    %1132 = vector.shape_cast %1131 : vector<1x1x128xf32> to vector<1x128xf32>
    %1133 = vector.shape_cast %1130 : vector<1x128xf32> to vector<1x1x128xf32>
    tpu.vector_store %arg19[%c0_810, %c7_811, %c0_812], %1133 {strides = array<i32>} : memref<2x8x128xf32, #tpu.memory_space<vmem>>, vector<1x1x128xf32>,
    %1134 = vector.extract_strided_slice %11 {offsets = [35, 128], sizes = [1, 128], strides = [1, 1]} : vector<48x256xf32> to vector<1x128xf32>
    %c0_813 = arith.constant 0 : index
    %c7_814 = arith.constant 7 : index
    %c0_815 = arith.constant 0 : index
    %1135 = vector.load %arg20[%c0_813, %c7_814, %c0_815] : memref<2x8x128xf32, #tpu.memory_space<vmem>>, vector<1x1x128xf32>
    %1136 = vector.shape_cast %1135 : vector<1x1x128xf32> to vector<1x128xf32>
    %1137 = vector.shape_cast %1134 : vector<1x128xf32> to vector<1x1x128xf32>
    tpu.vector_store %arg20[%c0_813, %c7_814, %c0_815], %1137 {strides = array<i32>} : memref<2x8x128xf32, #tpu.memory_space<vmem>>, vector<1x1x128xf32>,
    %1138 = vector.extract_strided_slice %17 {offsets = [35, 128], sizes = [1, 128], strides = [1, 1]} : vector<48x256xf32> to vector<1x128xf32>
    %c0_816 = arith.constant 0 : index
    %c7_817 = arith.constant 7 : index
    %c0_818 = arith.constant 0 : index
    %1139 = vector.load %arg21[%c0_816, %c7_817, %c0_818] : memref<2x8x128xf32, #tpu.memory_space<vmem>>, vector<1x1x128xf32>
    %1140 = vector.shape_cast %1139 : vector<1x1x128xf32> to vector<1x128xf32>
    %1141 = vector.shape_cast %1138 : vector<1x128xf32> to vector<1x1x128xf32>
    tpu.vector_store %arg21[%c0_816, %c7_817, %c0_818], %1141 {strides = array<i32>} : memref<2x8x128xf32, #tpu.memory_space<vmem>>, vector<1x1x128xf32>,
    %1142 = vector.extract_strided_slice %5 {offsets = [36, 0], sizes = [1, 128], strides = [1, 1]} : vector<48x256xf32> to vector<1x128xf32>
    %c1_819 = arith.constant 1 : index
    %c0_820 = arith.constant 0 : index
    %c0_821 = arith.constant 0 : index
    %1143 = vector.load %arg19[%c1_819, %c0_820, %c0_821] : memref<2x8x128xf32, #tpu.memory_space<vmem>>, vector<1x1x128xf32>
    %1144 = vector.shape_cast %1143 : vector<1x1x128xf32> to vector<1x128xf32>
    %1145 = vector.shape_cast %1142 : vector<1x128xf32> to vector<1x1x128xf32>
    tpu.vector_store %arg19[%c1_819, %c0_820, %c0_821], %1145 {strides = array<i32>} : memref<2x8x128xf32, #tpu.memory_space<vmem>>, vector<1x1x128xf32>,
    %1146 = vector.extract_strided_slice %11 {offsets = [36, 0], sizes = [1, 128], strides = [1, 1]} : vector<48x256xf32> to vector<1x128xf32>
    %c1_822 = arith.constant 1 : index
    %c0_823 = arith.constant 0 : index
    %c0_824 = arith.constant 0 : index
    %1147 = vector.load %arg20[%c1_822, %c0_823, %c0_824] : memref<2x8x128xf32, #tpu.memory_space<vmem>>, vector<1x1x128xf32>
    %1148 = vector.shape_cast %1147 : vector<1x1x128xf32> to vector<1x128xf32>
    %1149 = vector.shape_cast %1146 : vector<1x128xf32> to vector<1x1x128xf32>
    tpu.vector_store %arg20[%c1_822, %c0_823, %c0_824], %1149 {strides = array<i32>} : memref<2x8x128xf32, #tpu.memory_space<vmem>>, vector<1x1x128xf32>,
    %1150 = vector.extract_strided_slice %17 {offsets = [36, 0], sizes = [1, 128], strides = [1, 1]} : vector<48x256xf32> to vector<1x128xf32>
    %c1_825 = arith.constant 1 : index
    %c0_826 = arith.constant 0 : index
    %c0_827 = arith.constant 0 : index
    %1151 = vector.load %arg21[%c1_825, %c0_826, %c0_827] : memref<2x8x128xf32, #tpu.memory_space<vmem>>, vector<1x1x128xf32>
    %1152 = vector.shape_cast %1151 : vector<1x1x128xf32> to vector<1x128xf32>
    %1153 = vector.shape_cast %1150 : vector<1x128xf32> to vector<1x1x128xf32>
    tpu.vector_store %arg21[%c1_825, %c0_826, %c0_827], %1153 {strides = array<i32>} : memref<2x8x128xf32, #tpu.memory_space<vmem>>, vector<1x1x128xf32>,
    %1154 = vector.extract_strided_slice %5 {offsets = [36, 128], sizes = [1, 128], strides = [1, 1]} : vector<48x256xf32> to vector<1x128xf32>
    %c1_828 = arith.constant 1 : index
    %c1_829 = arith.constant 1 : index
    %c0_830 = arith.constant 0 : index
    %1155 = vector.load %arg19[%c1_828, %c1_829, %c0_830] : memref<2x8x128xf32, #tpu.memory_space<vmem>>, vector<1x1x128xf32>
    %1156 = vector.shape_cast %1155 : vector<1x1x128xf32> to vector<1x128xf32>
    %1157 = vector.shape_cast %1154 : vector<1x128xf32> to vector<1x1x128xf32>
    tpu.vector_store %arg19[%c1_828, %c1_829, %c0_830], %1157 {strides = array<i32>} : memref<2x8x128xf32, #tpu.memory_space<vmem>>, vector<1x1x128xf32>,
    %1158 = vector.extract_strided_slice %11 {offsets = [36, 128], sizes = [1, 128], strides = [1, 1]} : vector<48x256xf32> to vector<1x128xf32>
    %c1_831 = arith.constant 1 : index
    %c1_832 = arith.constant 1 : index
    %c0_833 = arith.constant 0 : index
    %1159 = vector.load %arg20[%c1_831, %c1_832, %c0_833] : memref<2x8x128xf32, #tpu.memory_space<vmem>>, vector<1x1x128xf32>
    %1160 = vector.shape_cast %1159 : vector<1x1x128xf32> to vector<1x128xf32>
    %1161 = vector.shape_cast %1158 : vector<1x128xf32> to vector<1x1x128xf32>
    tpu.vector_store %arg20[%c1_831, %c1_832, %c0_833], %1161 {strides = array<i32>} : memref<2x8x128xf32, #tpu.memory_space<vmem>>, vector<1x1x128xf32>,
    %1162 = vector.extract_strided_slice %17 {offsets = [36, 128], sizes = [1, 128], strides = [1, 1]} : vector<48x256xf32> to vector<1x128xf32>
    %c1_834 = arith.constant 1 : index
    %c1_835 = arith.constant 1 : index
    %c0_836 = arith.constant 0 : index
    %1163 = vector.load %arg21[%c1_834, %c1_835, %c0_836] : memref<2x8x128xf32, #tpu.memory_space<vmem>>, vector<1x1x128xf32>
    %1164 = vector.shape_cast %1163 : vector<1x1x128xf32> to vector<1x128xf32>
    %1165 = vector.shape_cast %1162 : vector<1x128xf32> to vector<1x1x128xf32>
    tpu.vector_store %arg21[%c1_834, %c1_835, %c0_836], %1165 {strides = array<i32>} : memref<2x8x128xf32, #tpu.memory_space<vmem>>, vector<1x1x128xf32>,
    %1166 = vector.extract_strided_slice %5 {offsets = [37, 0], sizes = [1, 128], strides = [1, 1]} : vector<48x256xf32> to vector<1x128xf32>
    %c1_837 = arith.constant 1 : index
    %c2_838 = arith.constant 2 : index
    %c0_839 = arith.constant 0 : index
    %1167 = vector.load %arg19[%c1_837, %c2_838, %c0_839] : memref<2x8x128xf32, #tpu.memory_space<vmem>>, vector<1x1x128xf32>
    %1168 = vector.shape_cast %1167 : vector<1x1x128xf32> to vector<1x128xf32>
    %1169 = vector.shape_cast %1166 : vector<1x128xf32> to vector<1x1x128xf32>
    tpu.vector_store %arg19[%c1_837, %c2_838, %c0_839], %1169 {strides = array<i32>} : memref<2x8x128xf32, #tpu.memory_space<vmem>>, vector<1x1x128xf32>,
    %1170 = vector.extract_strided_slice %11 {offsets = [37, 0], sizes = [1, 128], strides = [1, 1]} : vector<48x256xf32> to vector<1x128xf32>
    %c1_840 = arith.constant 1 : index
    %c2_841 = arith.constant 2 : index
    %c0_842 = arith.constant 0 : index
    %1171 = vector.load %arg20[%c1_840, %c2_841, %c0_842] : memref<2x8x128xf32, #tpu.memory_space<vmem>>, vector<1x1x128xf32>
    %1172 = vector.shape_cast %1171 : vector<1x1x128xf32> to vector<1x128xf32>
    %1173 = vector.shape_cast %1170 : vector<1x128xf32> to vector<1x1x128xf32>
    tpu.vector_store %arg20[%c1_840, %c2_841, %c0_842], %1173 {strides = array<i32>} : memref<2x8x128xf32, #tpu.memory_space<vmem>>, vector<1x1x128xf32>,
    %1174 = vector.extract_strided_slice %17 {offsets = [37, 0], sizes = [1, 128], strides = [1, 1]} : vector<48x256xf32> to vector<1x128xf32>
    %c1_843 = arith.constant 1 : index
    %c2_844 = arith.constant 2 : index
    %c0_845 = arith.constant 0 : index
    %1175 = vector.load %arg21[%c1_843, %c2_844, %c0_845] : memref<2x8x128xf32, #tpu.memory_space<vmem>>, vector<1x1x128xf32>
    %1176 = vector.shape_cast %1175 : vector<1x1x128xf32> to vector<1x128xf32>
    %1177 = vector.shape_cast %1174 : vector<1x128xf32> to vector<1x1x128xf32>
    tpu.vector_store %arg21[%c1_843, %c2_844, %c0_845], %1177 {strides = array<i32>} : memref<2x8x128xf32, #tpu.memory_space<vmem>>, vector<1x1x128xf32>,
    %1178 = vector.extract_strided_slice %5 {offsets = [37, 128], sizes = [1, 128], strides = [1, 1]} : vector<48x256xf32> to vector<1x128xf32>
    %c1_846 = arith.constant 1 : index
    %c3_847 = arith.constant 3 : index
    %c0_848 = arith.constant 0 : index
    %1179 = vector.load %arg19[%c1_846, %c3_847, %c0_848] : memref<2x8x128xf32, #tpu.memory_space<vmem>>, vector<1x1x128xf32>
    %1180 = vector.shape_cast %1179 : vector<1x1x128xf32> to vector<1x128xf32>
    %1181 = vector.shape_cast %1178 : vector<1x128xf32> to vector<1x1x128xf32>
    tpu.vector_store %arg19[%c1_846, %c3_847, %c0_848], %1181 {strides = array<i32>} : memref<2x8x128xf32, #tpu.memory_space<vmem>>, vector<1x1x128xf32>,
    %1182 = vector.extract_strided_slice %11 {offsets = [37, 128], sizes = [1, 128], strides = [1, 1]} : vector<48x256xf32> to vector<1x128xf32>
    %c1_849 = arith.constant 1 : index
    %c3_850 = arith.constant 3 : index
    %c0_851 = arith.constant 0 : index
    %1183 = vector.load %arg20[%c1_849, %c3_850, %c0_851] : memref<2x8x128xf32, #tpu.memory_space<vmem>>, vector<1x1x128xf32>
    %1184 = vector.shape_cast %1183 : vector<1x1x128xf32> to vector<1x128xf32>
    %1185 = vector.shape_cast %1182 : vector<1x128xf32> to vector<1x1x128xf32>
    tpu.vector_store %arg20[%c1_849, %c3_850, %c0_851], %1185 {strides = array<i32>} : memref<2x8x128xf32, #tpu.memory_space<vmem>>, vector<1x1x128xf32>,
    %1186 = vector.extract_strided_slice %17 {offsets = [37, 128], sizes = [1, 128], strides = [1, 1]} : vector<48x256xf32> to vector<1x128xf32>
    %c1_852 = arith.constant 1 : index
    %c3_853 = arith.constant 3 : index
    %c0_854 = arith.constant 0 : index
    %1187 = vector.load %arg21[%c1_852, %c3_853, %c0_854] : memref<2x8x128xf32, #tpu.memory_space<vmem>>, vector<1x1x128xf32>
    %1188 = vector.shape_cast %1187 : vector<1x1x128xf32> to vector<1x128xf32>
    %1189 = vector.shape_cast %1186 : vector<1x128xf32> to vector<1x1x128xf32>
    tpu.vector_store %arg21[%c1_852, %c3_853, %c0_854], %1189 {strides = array<i32>} : memref<2x8x128xf32, #tpu.memory_space<vmem>>, vector<1x1x128xf32>,
    %1190 = vector.extract_strided_slice %5 {offsets = [38, 0], sizes = [1, 128], strides = [1, 1]} : vector<48x256xf32> to vector<1x128xf32>
    %c1_855 = arith.constant 1 : index
    %c4_856 = arith.constant 4 : index
    %c0_857 = arith.constant 0 : index
    %1191 = vector.load %arg19[%c1_855, %c4_856, %c0_857] : memref<2x8x128xf32, #tpu.memory_space<vmem>>, vector<1x1x128xf32>
    %1192 = vector.shape_cast %1191 : vector<1x1x128xf32> to vector<1x128xf32>
    %1193 = vector.shape_cast %1190 : vector<1x128xf32> to vector<1x1x128xf32>
    tpu.vector_store %arg19[%c1_855, %c4_856, %c0_857], %1193 {strides = array<i32>} : memref<2x8x128xf32, #tpu.memory_space<vmem>>, vector<1x1x128xf32>,
    %1194 = vector.extract_strided_slice %11 {offsets = [38, 0], sizes = [1, 128], strides = [1, 1]} : vector<48x256xf32> to vector<1x128xf32>
    %c1_858 = arith.constant 1 : index
    %c4_859 = arith.constant 4 : index
    %c0_860 = arith.constant 0 : index
    %1195 = vector.load %arg20[%c1_858, %c4_859, %c0_860] : memref<2x8x128xf32, #tpu.memory_space<vmem>>, vector<1x1x128xf32>
    %1196 = vector.shape_cast %1195 : vector<1x1x128xf32> to vector<1x128xf32>
    %1197 = vector.shape_cast %1194 : vector<1x128xf32> to vector<1x1x128xf32>
    tpu.vector_store %arg20[%c1_858, %c4_859, %c0_860], %1197 {strides = array<i32>} : memref<2x8x128xf32, #tpu.memory_space<vmem>>, vector<1x1x128xf32>,
    %1198 = vector.extract_strided_slice %17 {offsets = [38, 0], sizes = [1, 128], strides = [1, 1]} : vector<48x256xf32> to vector<1x128xf32>
    %c1_861 = arith.constant 1 : index
    %c4_862 = arith.constant 4 : index
    %c0_863 = arith.constant 0 : index
    %1199 = vector.load %arg21[%c1_861, %c4_862, %c0_863] : memref<2x8x128xf32, #tpu.memory_space<vmem>>, vector<1x1x128xf32>
    %1200 = vector.shape_cast %1199 : vector<1x1x128xf32> to vector<1x128xf32>
    %1201 = vector.shape_cast %1198 : vector<1x128xf32> to vector<1x1x128xf32>
    tpu.vector_store %arg21[%c1_861, %c4_862, %c0_863], %1201 {strides = array<i32>} : memref<2x8x128xf32, #tpu.memory_space<vmem>>, vector<1x1x128xf32>,
    %1202 = vector.extract_strided_slice %5 {offsets = [38, 128], sizes = [1, 128], strides = [1, 1]} : vector<48x256xf32> to vector<1x128xf32>
    %c1_864 = arith.constant 1 : index
    %c5_865 = arith.constant 5 : index
    %c0_866 = arith.constant 0 : index
    %1203 = vector.load %arg19[%c1_864, %c5_865, %c0_866] : memref<2x8x128xf32, #tpu.memory_space<vmem>>, vector<1x1x128xf32>
    %1204 = vector.shape_cast %1203 : vector<1x1x128xf32> to vector<1x128xf32>
    %1205 = vector.shape_cast %1202 : vector<1x128xf32> to vector<1x1x128xf32>
    tpu.vector_store %arg19[%c1_864, %c5_865, %c0_866], %1205 {strides = array<i32>} : memref<2x8x128xf32, #tpu.memory_space<vmem>>, vector<1x1x128xf32>,
    %1206 = vector.extract_strided_slice %11 {offsets = [38, 128], sizes = [1, 128], strides = [1, 1]} : vector<48x256xf32> to vector<1x128xf32>
    %c1_867 = arith.constant 1 : index
    %c5_868 = arith.constant 5 : index
    %c0_869 = arith.constant 0 : index
    %1207 = vector.load %arg20[%c1_867, %c5_868, %c0_869] : memref<2x8x128xf32, #tpu.memory_space<vmem>>, vector<1x1x128xf32>
    %1208 = vector.shape_cast %1207 : vector<1x1x128xf32> to vector<1x128xf32>
    %1209 = vector.shape_cast %1206 : vector<1x128xf32> to vector<1x1x128xf32>
    tpu.vector_store %arg20[%c1_867, %c5_868, %c0_869], %1209 {strides = array<i32>} : memref<2x8x128xf32, #tpu.memory_space<vmem>>, vector<1x1x128xf32>,
    %1210 = vector.extract_strided_slice %17 {offsets = [38, 128], sizes = [1, 128], strides = [1, 1]} : vector<48x256xf32> to vector<1x128xf32>
    %c1_870 = arith.constant 1 : index
    %c5_871 = arith.constant 5 : index
    %c0_872 = arith.constant 0 : index
    %1211 = vector.load %arg21[%c1_870, %c5_871, %c0_872] : memref<2x8x128xf32, #tpu.memory_space<vmem>>, vector<1x1x128xf32>
    %1212 = vector.shape_cast %1211 : vector<1x1x128xf32> to vector<1x128xf32>
    %1213 = vector.shape_cast %1210 : vector<1x128xf32> to vector<1x1x128xf32>
    tpu.vector_store %arg21[%c1_870, %c5_871, %c0_872], %1213 {strides = array<i32>} : memref<2x8x128xf32, #tpu.memory_space<vmem>>, vector<1x1x128xf32>,
    %1214 = vector.extract_strided_slice %5 {offsets = [39, 0], sizes = [1, 128], strides = [1, 1]} : vector<48x256xf32> to vector<1x128xf32>
    %c1_873 = arith.constant 1 : index
    %c6_874 = arith.constant 6 : index
    %c0_875 = arith.constant 0 : index
    %1215 = vector.load %arg19[%c1_873, %c6_874, %c0_875] : memref<2x8x128xf32, #tpu.memory_space<vmem>>, vector<1x1x128xf32>
    %1216 = vector.shape_cast %1215 : vector<1x1x128xf32> to vector<1x128xf32>
    %1217 = vector.shape_cast %1214 : vector<1x128xf32> to vector<1x1x128xf32>
    tpu.vector_store %arg19[%c1_873, %c6_874, %c0_875], %1217 {strides = array<i32>} : memref<2x8x128xf32, #tpu.memory_space<vmem>>, vector<1x1x128xf32>,
    %1218 = vector.extract_strided_slice %11 {offsets = [39, 0], sizes = [1, 128], strides = [1, 1]} : vector<48x256xf32> to vector<1x128xf32>
    %c1_876 = arith.constant 1 : index
    %c6_877 = arith.constant 6 : index
    %c0_878 = arith.constant 0 : index
    %1219 = vector.load %arg20[%c1_876, %c6_877, %c0_878] : memref<2x8x128xf32, #tpu.memory_space<vmem>>, vector<1x1x128xf32>
    %1220 = vector.shape_cast %1219 : vector<1x1x128xf32> to vector<1x128xf32>
    %1221 = vector.shape_cast %1218 : vector<1x128xf32> to vector<1x1x128xf32>
    tpu.vector_store %arg20[%c1_876, %c6_877, %c0_878], %1221 {strides = array<i32>} : memref<2x8x128xf32, #tpu.memory_space<vmem>>, vector<1x1x128xf32>,
    %1222 = vector.extract_strided_slice %17 {offsets = [39, 0], sizes = [1, 128], strides = [1, 1]} : vector<48x256xf32> to vector<1x128xf32>
    %c1_879 = arith.constant 1 : index
    %c6_880 = arith.constant 6 : index
    %c0_881 = arith.constant 0 : index
    %1223 = vector.load %arg21[%c1_879, %c6_880, %c0_881] : memref<2x8x128xf32, #tpu.memory_space<vmem>>, vector<1x1x128xf32>
    %1224 = vector.shape_cast %1223 : vector<1x1x128xf32> to vector<1x128xf32>
    %1225 = vector.shape_cast %1222 : vector<1x128xf32> to vector<1x1x128xf32>
    tpu.vector_store %arg21[%c1_879, %c6_880, %c0_881], %1225 {strides = array<i32>} : memref<2x8x128xf32, #tpu.memory_space<vmem>>, vector<1x1x128xf32>,
    %1226 = vector.extract_strided_slice %5 {offsets = [39, 128], sizes = [1, 128], strides = [1, 1]} : vector<48x256xf32> to vector<1x128xf32>
    %c1_882 = arith.constant 1 : index
    %c7_883 = arith.constant 7 : index
    %c0_884 = arith.constant 0 : index
    %1227 = vector.load %arg19[%c1_882, %c7_883, %c0_884] : memref<2x8x128xf32, #tpu.memory_space<vmem>>, vector<1x1x128xf32>
    %1228 = vector.shape_cast %1227 : vector<1x1x128xf32> to vector<1x128xf32>
    %1229 = vector.shape_cast %1226 : vector<1x128xf32> to vector<1x1x128xf32>
    tpu.vector_store %arg19[%c1_882, %c7_883, %c0_884], %1229 {strides = array<i32>} : memref<2x8x128xf32, #tpu.memory_space<vmem>>, vector<1x1x128xf32>,
    %1230 = vector.extract_strided_slice %11 {offsets = [39, 128], sizes = [1, 128], strides = [1, 1]} : vector<48x256xf32> to vector<1x128xf32>
    %c1_885 = arith.constant 1 : index
    %c7_886 = arith.constant 7 : index
    %c0_887 = arith.constant 0 : index
    %1231 = vector.load %arg20[%c1_885, %c7_886, %c0_887] : memref<2x8x128xf32, #tpu.memory_space<vmem>>, vector<1x1x128xf32>
    %1232 = vector.shape_cast %1231 : vector<1x1x128xf32> to vector<1x128xf32>
    %1233 = vector.shape_cast %1230 : vector<1x128xf32> to vector<1x1x128xf32>
    tpu.vector_store %arg20[%c1_885, %c7_886, %c0_887], %1233 {strides = array<i32>} : memref<2x8x128xf32, #tpu.memory_space<vmem>>, vector<1x1x128xf32>,
    %1234 = vector.extract_strided_slice %17 {offsets = [39, 128], sizes = [1, 128], strides = [1, 1]} : vector<48x256xf32> to vector<1x128xf32>
    %c1_888 = arith.constant 1 : index
    %c7_889 = arith.constant 7 : index
    %c0_890 = arith.constant 0 : index
    %1235 = vector.load %arg21[%c1_888, %c7_889, %c0_890] : memref<2x8x128xf32, #tpu.memory_space<vmem>>, vector<1x1x128xf32>
    %1236 = vector.shape_cast %1235 : vector<1x1x128xf32> to vector<1x128xf32>
    %1237 = vector.shape_cast %1234 : vector<1x128xf32> to vector<1x1x128xf32>
    tpu.vector_store %arg21[%c1_888, %c7_889, %c0_890], %1237 {strides = array<i32>} : memref<2x8x128xf32, #tpu.memory_space<vmem>>, vector<1x1x128xf32>,
    %c0_891 = arith.constant 0 : index
    %c0_892 = arith.constant 0 : index
    %c0_893 = arith.constant 0 : index
    %1238 = vector.load %arg19[%c0_891, %c0_892, %c0_893] : memref<2x8x128xf32, #tpu.memory_space<vmem>>, vector<2x8x128xf32>
    %c0_894 = arith.constant 0 : index
    %c0_895 = arith.constant 0 : index
    %c0_896 = arith.constant 0 : index
    %1239 = vector.load %arg20[%c0_894, %c0_895, %c0_896] : memref<2x8x128xf32, #tpu.memory_space<vmem>>, vector<2x8x128xf32>
    %c0_897 = arith.constant 0 : index
    %c0_898 = arith.constant 0 : index
    %c0_899 = arith.constant 0 : index
    %1240 = vector.load %arg21[%c0_897, %c0_898, %c0_899] : memref<2x8x128xf32, #tpu.memory_space<vmem>>, vector<2x8x128xf32>
    "tpu.trace_start"() <{level = 10 : i32, message = "hsd,htd->hst"}> : () -> ()
    %cst_900 = arith.constant dense<0.000000e+00> : vector<2x8x8xf32>
    %1241 = tpu.matmul %1238, %1239, %cst_900 {dimension_numbers = #tpu.dot_dimension_numbers<[2], [2], [1], [1], [0, 0, 0, 1, 1, 1], [0], [0]>} : vector<2x8x128xf32>, vector<2x8x128xf32>, vector<2x8x8xf32> -> vector<2x8x8xf32>
    "tpu.trace_stop"() : () -> ()
    %cst_901 = arith.constant 0.0883883461 : f32
    %1242 = vector.broadcast %cst_901 : f32 to vector<2x8x8xf32>
    %1243 = arith.mulf %1241, %1242 : vector<2x8x8xf32>
    %cst_902 = arith.constant dense<0xFF800000> : vector<2x8xf32>
    %1244 = vector.multi_reduction <maximumf>, %1243, %cst_902 [2] : vector<2x8x8xf32> to vector<2x8xf32>
    %1245 = vector.shape_cast %1244 : vector<2x8xf32> to vector<2x8x1xf32>
    %1246 = vector.broadcast %1245 : vector<2x8x1xf32> to vector<2x8x8xf32>
    %1247 = arith.subf %1243, %1246 : vector<2x8x8xf32>
    %1248 = math.exp %1247 : vector<2x8x8xf32>
    %cst_903 = arith.constant dense<0.000000e+00> : vector<2x8xf32>
    %1249 = vector.multi_reduction <add>, %1248, %cst_903 [2] : vector<2x8x8xf32> to vector<2x8xf32>
    %1250 = vector.shape_cast %1249 : vector<2x8xf32> to vector<2x8x1xf32>
    %1251 = tpu.reciprocal %1250 {approx = true} : vector<2x8x1xf32> -> vector<2x8x1xf32>
    %1252 = vector.broadcast %1251 : vector<2x8x1xf32> to vector<2x8x8xf32>
    %1253 = arith.mulf %1248, %1252 : vector<2x8x8xf32>
    "tpu.trace_start"() <{level = 10 : i32, message = "hst,htd->hsd"}> : () -> ()
    %cst_904 = arith.constant dense<0.000000e+00> : vector<2x8x128xf32>
    %1254 = tpu.matmul %1253, %1240, %cst_904 {dimension_numbers = #tpu.dot_dimension_numbers<[2], [1], [1], [2], [0, 0, 0, 1, 1, 2], [0], [0]>} : vector<2x8x8xf32>, vector<2x8x128xf32>, vector<2x8x128xf32> -> vector<2x8x128xf32>
    "tpu.trace_stop"() : () -> ()
    %1255 = vector.extract_strided_slice %1254 {offsets = [0, 0, 0], sizes = [1, 1, 128], strides = [1, 1, 1]} : vector<2x8x128xf32> to vector<1x1x128xf32>
    %1256 = vector.shape_cast %1255 : vector<1x1x128xf32> to vector<1x128xf32>
    %c32 = arith.constant 32 : index
    %c0_905 = arith.constant 0 : index
    %1257 = vector.load %arg22[%c32, %c0_905] : memref<48x256xf32, #tpu.memory_space<vmem>>, vector<1x128xf32>
    tpu.vector_store %arg22[%c32, %c0_905], %1256 {strides = array<i32>} : memref<48x256xf32, #tpu.memory_space<vmem>>, vector<1x128xf32>,
    %1258 = vector.extract_strided_slice %1254 {offsets = [0, 1, 0], sizes = [1, 1, 128], strides = [1, 1, 1]} : vector<2x8x128xf32> to vector<1x1x128xf32>
    %1259 = vector.shape_cast %1258 : vector<1x1x128xf32> to vector<1x128xf32>
    %c32_906 = arith.constant 32 : index
    %c128_907 = arith.constant 128 : index
    %1260 = vector.load %arg22[%c32_906, %c128_907] : memref<48x256xf32, #tpu.memory_space<vmem>>, vector<1x128xf32>
    tpu.vector_store %arg22[%c32_906, %c128_907], %1259 {strides = array<i32>} : memref<48x256xf32, #tpu.memory_space<vmem>>, vector<1x128xf32>,
    %1261 = vector.extract_strided_slice %1254 {offsets = [0, 2, 0], sizes = [1, 1, 128], strides = [1, 1, 1]} : vector<2x8x128xf32> to vector<1x1x128xf32>
    %1262 = vector.shape_cast %1261 : vector<1x1x128xf32> to vector<1x128xf32>
    %c33 = arith.constant 33 : index
    %c0_908 = arith.constant 0 : index
    %1263 = vector.load %arg22[%c33, %c0_908] : memref<48x256xf32, #tpu.memory_space<vmem>>, vector<1x128xf32>
    tpu.vector_store %arg22[%c33, %c0_908], %1262 {strides = array<i32>} : memref<48x256xf32, #tpu.memory_space<vmem>>, vector<1x128xf32>,
    %1264 = vector.extract_strided_slice %1254 {offsets = [0, 3, 0], sizes = [1, 1, 128], strides = [1, 1, 1]} : vector<2x8x128xf32> to vector<1x1x128xf32>
    %1265 = vector.shape_cast %1264 : vector<1x1x128xf32> to vector<1x128xf32>
    %c33_909 = arith.constant 33 : index
    %c128_910 = arith.constant 128 : index
    %1266 = vector.load %arg22[%c33_909, %c128_910] : memref<48x256xf32, #tpu.memory_space<vmem>>, vector<1x128xf32>
    tpu.vector_store %arg22[%c33_909, %c128_910], %1265 {strides = array<i32>} : memref<48x256xf32, #tpu.memory_space<vmem>>, vector<1x128xf32>,
    %1267 = vector.extract_strided_slice %1254 {offsets = [0, 4, 0], sizes = [1, 1, 128], strides = [1, 1, 1]} : vector<2x8x128xf32> to vector<1x1x128xf32>
    %1268 = vector.shape_cast %1267 : vector<1x1x128xf32> to vector<1x128xf32>
    %c34 = arith.constant 34 : index
    %c0_911 = arith.constant 0 : index
    %1269 = vector.load %arg22[%c34, %c0_911] : memref<48x256xf32, #tpu.memory_space<vmem>>, vector<1x128xf32>
    tpu.vector_store %arg22[%c34, %c0_911], %1268 {strides = array<i32>} : memref<48x256xf32, #tpu.memory_space<vmem>>, vector<1x128xf32>,
    %1270 = vector.extract_strided_slice %1254 {offsets = [0, 5, 0], sizes = [1, 1, 128], strides = [1, 1, 1]} : vector<2x8x128xf32> to vector<1x1x128xf32>
    %1271 = vector.shape_cast %1270 : vector<1x1x128xf32> to vector<1x128xf32>
    %c34_912 = arith.constant 34 : index
    %c128_913 = arith.constant 128 : index
    %1272 = vector.load %arg22[%c34_912, %c128_913] : memref<48x256xf32, #tpu.memory_space<vmem>>, vector<1x128xf32>
    tpu.vector_store %arg22[%c34_912, %c128_913], %1271 {strides = array<i32>} : memref<48x256xf32, #tpu.memory_space<vmem>>, vector<1x128xf32>,
    %1273 = vector.extract_strided_slice %1254 {offsets = [0, 6, 0], sizes = [1, 1, 128], strides = [1, 1, 1]} : vector<2x8x128xf32> to vector<1x1x128xf32>
    %1274 = vector.shape_cast %1273 : vector<1x1x128xf32> to vector<1x128xf32>
    %c35 = arith.constant 35 : index
    %c0_914 = arith.constant 0 : index
    %1275 = vector.load %arg22[%c35, %c0_914] : memref<48x256xf32, #tpu.memory_space<vmem>>, vector<1x128xf32>
    tpu.vector_store %arg22[%c35, %c0_914], %1274 {strides = array<i32>} : memref<48x256xf32, #tpu.memory_space<vmem>>, vector<1x128xf32>,
    %1276 = vector.extract_strided_slice %1254 {offsets = [0, 7, 0], sizes = [1, 1, 128], strides = [1, 1, 1]} : vector<2x8x128xf32> to vector<1x1x128xf32>
    %1277 = vector.shape_cast %1276 : vector<1x1x128xf32> to vector<1x128xf32>
    %c35_915 = arith.constant 35 : index
    %c128_916 = arith.constant 128 : index
    %1278 = vector.load %arg22[%c35_915, %c128_916] : memref<48x256xf32, #tpu.memory_space<vmem>>, vector<1x128xf32>
    tpu.vector_store %arg22[%c35_915, %c128_916], %1277 {strides = array<i32>} : memref<48x256xf32, #tpu.memory_space<vmem>>, vector<1x128xf32>,
    %1279 = vector.extract_strided_slice %1254 {offsets = [1, 0, 0], sizes = [1, 1, 128], strides = [1, 1, 1]} : vector<2x8x128xf32> to vector<1x1x128xf32>
    %1280 = vector.shape_cast %1279 : vector<1x1x128xf32> to vector<1x128xf32>
    %c36 = arith.constant 36 : index
    %c0_917 = arith.constant 0 : index
    %1281 = vector.load %arg22[%c36, %c0_917] : memref<48x256xf32, #tpu.memory_space<vmem>>, vector<1x128xf32>
    tpu.vector_store %arg22[%c36, %c0_917], %1280 {strides = array<i32>} : memref<48x256xf32, #tpu.memory_space<vmem>>, vector<1x128xf32>,
    %1282 = vector.extract_strided_slice %1254 {offsets = [1, 1, 0], sizes = [1, 1, 128], strides = [1, 1, 1]} : vector<2x8x128xf32> to vector<1x1x128xf32>
    %1283 = vector.shape_cast %1282 : vector<1x1x128xf32> to vector<1x128xf32>
    %c36_918 = arith.constant 36 : index
    %c128_919 = arith.constant 128 : index
    %1284 = vector.load %arg22[%c36_918, %c128_919] : memref<48x256xf32, #tpu.memory_space<vmem>>, vector<1x128xf32>
    tpu.vector_store %arg22[%c36_918, %c128_919], %1283 {strides = array<i32>} : memref<48x256xf32, #tpu.memory_space<vmem>>, vector<1x128xf32>,
    %1285 = vector.extract_strided_slice %1254 {offsets = [1, 2, 0], sizes = [1, 1, 128], strides = [1, 1, 1]} : vector<2x8x128xf32> to vector<1x1x128xf32>
    %1286 = vector.shape_cast %1285 : vector<1x1x128xf32> to vector<1x128xf32>
    %c37 = arith.constant 37 : index
    %c0_920 = arith.constant 0 : index
    %1287 = vector.load %arg22[%c37, %c0_920] : memref<48x256xf32, #tpu.memory_space<vmem>>, vector<1x128xf32>
    tpu.vector_store %arg22[%c37, %c0_920], %1286 {strides = array<i32>} : memref<48x256xf32, #tpu.memory_space<vmem>>, vector<1x128xf32>,
    %1288 = vector.extract_strided_slice %1254 {offsets = [1, 3, 0], sizes = [1, 1, 128], strides = [1, 1, 1]} : vector<2x8x128xf32> to vector<1x1x128xf32>
    %1289 = vector.shape_cast %1288 : vector<1x1x128xf32> to vector<1x128xf32>
    %c37_921 = arith.constant 37 : index
    %c128_922 = arith.constant 128 : index
    %1290 = vector.load %arg22[%c37_921, %c128_922] : memref<48x256xf32, #tpu.memory_space<vmem>>, vector<1x128xf32>
    tpu.vector_store %arg22[%c37_921, %c128_922], %1289 {strides = array<i32>} : memref<48x256xf32, #tpu.memory_space<vmem>>, vector<1x128xf32>,
    %1291 = vector.extract_strided_slice %1254 {offsets = [1, 4, 0], sizes = [1, 1, 128], strides = [1, 1, 1]} : vector<2x8x128xf32> to vector<1x1x128xf32>
    %1292 = vector.shape_cast %1291 : vector<1x1x128xf32> to vector<1x128xf32>
    %c38 = arith.constant 38 : index
    %c0_923 = arith.constant 0 : index
    %1293 = vector.load %arg22[%c38, %c0_923] : memref<48x256xf32, #tpu.memory_space<vmem>>, vector<1x128xf32>
    tpu.vector_store %arg22[%c38, %c0_923], %1292 {strides = array<i32>} : memref<48x256xf32, #tpu.memory_space<vmem>>, vector<1x128xf32>,
    %1294 = vector.extract_strided_slice %1254 {offsets = [1, 5, 0], sizes = [1, 1, 128], strides = [1, 1, 1]} : vector<2x8x128xf32> to vector<1x1x128xf32>
    %1295 = vector.shape_cast %1294 : vector<1x1x128xf32> to vector<1x128xf32>
    %c38_924 = arith.constant 38 : index
    %c128_925 = arith.constant 128 : index
    %1296 = vector.load %arg22[%c38_924, %c128_925] : memref<48x256xf32, #tpu.memory_space<vmem>>, vector<1x128xf32>
    tpu.vector_store %arg22[%c38_924, %c128_925], %1295 {strides = array<i32>} : memref<48x256xf32, #tpu.memory_space<vmem>>, vector<1x128xf32>,
    %1297 = vector.extract_strided_slice %1254 {offsets = [1, 6, 0], sizes = [1, 1, 128], strides = [1, 1, 1]} : vector<2x8x128xf32> to vector<1x1x128xf32>
    %1298 = vector.shape_cast %1297 : vector<1x1x128xf32> to vector<1x128xf32>
    %c39 = arith.constant 39 : index
    %c0_926 = arith.constant 0 : index
    %1299 = vector.load %arg22[%c39, %c0_926] : memref<48x256xf32, #tpu.memory_space<vmem>>, vector<1x128xf32>
    tpu.vector_store %arg22[%c39, %c0_926], %1298 {strides = array<i32>} : memref<48x256xf32, #tpu.memory_space<vmem>>, vector<1x128xf32>,
    %1300 = vector.extract_strided_slice %1254 {offsets = [1, 7, 0], sizes = [1, 1, 128], strides = [1, 1, 1]} : vector<2x8x128xf32> to vector<1x1x128xf32>
    %1301 = vector.shape_cast %1300 : vector<1x1x128xf32> to vector<1x128xf32>
    %c39_927 = arith.constant 39 : index
    %c128_928 = arith.constant 128 : index
    %1302 = vector.load %arg22[%c39_927, %c128_928] : memref<48x256xf32, #tpu.memory_space<vmem>>, vector<1x128xf32>
    tpu.vector_store %arg22[%c39_927, %c128_928], %1301 {strides = array<i32>} : memref<48x256xf32, #tpu.memory_space<vmem>>, vector<1x128xf32>,
    %1303 = vector.extract_strided_slice %5 {offsets = [40, 0], sizes = [1, 128], strides = [1, 1]} : vector<48x256xf32> to vector<1x128xf32>
    %c0_929 = arith.constant 0 : index
    %c0_930 = arith.constant 0 : index
    %c0_931 = arith.constant 0 : index
    %1304 = vector.load %arg19[%c0_929, %c0_930, %c0_931] : memref<2x8x128xf32, #tpu.memory_space<vmem>>, vector<1x1x128xf32>
    %1305 = vector.shape_cast %1304 : vector<1x1x128xf32> to vector<1x128xf32>
    %1306 = vector.shape_cast %1303 : vector<1x128xf32> to vector<1x1x128xf32>
    tpu.vector_store %arg19[%c0_929, %c0_930, %c0_931], %1306 {strides = array<i32>} : memref<2x8x128xf32, #tpu.memory_space<vmem>>, vector<1x1x128xf32>,
    %1307 = vector.extract_strided_slice %11 {offsets = [40, 0], sizes = [1, 128], strides = [1, 1]} : vector<48x256xf32> to vector<1x128xf32>
    %c0_932 = arith.constant 0 : index
    %c0_933 = arith.constant 0 : index
    %c0_934 = arith.constant 0 : index
    %1308 = vector.load %arg20[%c0_932, %c0_933, %c0_934] : memref<2x8x128xf32, #tpu.memory_space<vmem>>, vector<1x1x128xf32>
    %1309 = vector.shape_cast %1308 : vector<1x1x128xf32> to vector<1x128xf32>
    %1310 = vector.shape_cast %1307 : vector<1x128xf32> to vector<1x1x128xf32>
    tpu.vector_store %arg20[%c0_932, %c0_933, %c0_934], %1310 {strides = array<i32>} : memref<2x8x128xf32, #tpu.memory_space<vmem>>, vector<1x1x128xf32>,
    %1311 = vector.extract_strided_slice %17 {offsets = [40, 0], sizes = [1, 128], strides = [1, 1]} : vector<48x256xf32> to vector<1x128xf32>
    %c0_935 = arith.constant 0 : index
    %c0_936 = arith.constant 0 : index
    %c0_937 = arith.constant 0 : index
    %1312 = vector.load %arg21[%c0_935, %c0_936, %c0_937] : memref<2x8x128xf32, #tpu.memory_space<vmem>>, vector<1x1x128xf32>
    %1313 = vector.shape_cast %1312 : vector<1x1x128xf32> to vector<1x128xf32>
    %1314 = vector.shape_cast %1311 : vector<1x128xf32> to vector<1x1x128xf32>
    tpu.vector_store %arg21[%c0_935, %c0_936, %c0_937], %1314 {strides = array<i32>} : memref<2x8x128xf32, #tpu.memory_space<vmem>>, vector<1x1x128xf32>,
    %1315 = vector.extract_strided_slice %5 {offsets = [40, 128], sizes = [1, 128], strides = [1, 1]} : vector<48x256xf32> to vector<1x128xf32>
    %c0_938 = arith.constant 0 : index
    %c1_939 = arith.constant 1 : index
    %c0_940 = arith.constant 0 : index
    %1316 = vector.load %arg19[%c0_938, %c1_939, %c0_940] : memref<2x8x128xf32, #tpu.memory_space<vmem>>, vector<1x1x128xf32>
    %1317 = vector.shape_cast %1316 : vector<1x1x128xf32> to vector<1x128xf32>
    %1318 = vector.shape_cast %1315 : vector<1x128xf32> to vector<1x1x128xf32>
    tpu.vector_store %arg19[%c0_938, %c1_939, %c0_940], %1318 {strides = array<i32>} : memref<2x8x128xf32, #tpu.memory_space<vmem>>, vector<1x1x128xf32>,
    %1319 = vector.extract_strided_slice %11 {offsets = [40, 128], sizes = [1, 128], strides = [1, 1]} : vector<48x256xf32> to vector<1x128xf32>
    %c0_941 = arith.constant 0 : index
    %c1_942 = arith.constant 1 : index
    %c0_943 = arith.constant 0 : index
    %1320 = vector.load %arg20[%c0_941, %c1_942, %c0_943] : memref<2x8x128xf32, #tpu.memory_space<vmem>>, vector<1x1x128xf32>
    %1321 = vector.shape_cast %1320 : vector<1x1x128xf32> to vector<1x128xf32>
    %1322 = vector.shape_cast %1319 : vector<1x128xf32> to vector<1x1x128xf32>
    tpu.vector_store %arg20[%c0_941, %c1_942, %c0_943], %1322 {strides = array<i32>} : memref<2x8x128xf32, #tpu.memory_space<vmem>>, vector<1x1x128xf32>,
    %1323 = vector.extract_strided_slice %17 {offsets = [40, 128], sizes = [1, 128], strides = [1, 1]} : vector<48x256xf32> to vector<1x128xf32>
    %c0_944 = arith.constant 0 : index
    %c1_945 = arith.constant 1 : index
    %c0_946 = arith.constant 0 : index
    %1324 = vector.load %arg21[%c0_944, %c1_945, %c0_946] : memref<2x8x128xf32, #tpu.memory_space<vmem>>, vector<1x1x128xf32>
    %1325 = vector.shape_cast %1324 : vector<1x1x128xf32> to vector<1x128xf32>
    %1326 = vector.shape_cast %1323 : vector<1x128xf32> to vector<1x1x128xf32>
    tpu.vector_store %arg21[%c0_944, %c1_945, %c0_946], %1326 {strides = array<i32>} : memref<2x8x128xf32, #tpu.memory_space<vmem>>, vector<1x1x128xf32>,
    %1327 = vector.extract_strided_slice %5 {offsets = [41, 0], sizes = [1, 128], strides = [1, 1]} : vector<48x256xf32> to vector<1x128xf32>
    %c0_947 = arith.constant 0 : index
    %c2_948 = arith.constant 2 : index
    %c0_949 = arith.constant 0 : index
    %1328 = vector.load %arg19[%c0_947, %c2_948, %c0_949] : memref<2x8x128xf32, #tpu.memory_space<vmem>>, vector<1x1x128xf32>
    %1329 = vector.shape_cast %1328 : vector<1x1x128xf32> to vector<1x128xf32>
    %1330 = vector.shape_cast %1327 : vector<1x128xf32> to vector<1x1x128xf32>
    tpu.vector_store %arg19[%c0_947, %c2_948, %c0_949], %1330 {strides = array<i32>} : memref<2x8x128xf32, #tpu.memory_space<vmem>>, vector<1x1x128xf32>,
    %1331 = vector.extract_strided_slice %11 {offsets = [41, 0], sizes = [1, 128], strides = [1, 1]} : vector<48x256xf32> to vector<1x128xf32>
    %c0_950 = arith.constant 0 : index
    %c2_951 = arith.constant 2 : index
    %c0_952 = arith.constant 0 : index
    %1332 = vector.load %arg20[%c0_950, %c2_951, %c0_952] : memref<2x8x128xf32, #tpu.memory_space<vmem>>, vector<1x1x128xf32>
    %1333 = vector.shape_cast %1332 : vector<1x1x128xf32> to vector<1x128xf32>
    %1334 = vector.shape_cast %1331 : vector<1x128xf32> to vector<1x1x128xf32>
    tpu.vector_store %arg20[%c0_950, %c2_951, %c0_952], %1334 {strides = array<i32>} : memref<2x8x128xf32, #tpu.memory_space<vmem>>, vector<1x1x128xf32>,
    %1335 = vector.extract_strided_slice %17 {offsets = [41, 0], sizes = [1, 128], strides = [1, 1]} : vector<48x256xf32> to vector<1x128xf32>
    %c0_953 = arith.constant 0 : index
    %c2_954 = arith.constant 2 : index
    %c0_955 = arith.constant 0 : index
    %1336 = vector.load %arg21[%c0_953, %c2_954, %c0_955] : memref<2x8x128xf32, #tpu.memory_space<vmem>>, vector<1x1x128xf32>
    %1337 = vector.shape_cast %1336 : vector<1x1x128xf32> to vector<1x128xf32>
    %1338 = vector.shape_cast %1335 : vector<1x128xf32> to vector<1x1x128xf32>
    tpu.vector_store %arg21[%c0_953, %c2_954, %c0_955], %1338 {strides = array<i32>} : memref<2x8x128xf32, #tpu.memory_space<vmem>>, vector<1x1x128xf32>,
    %1339 = vector.extract_strided_slice %5 {offsets = [41, 128], sizes = [1, 128], strides = [1, 1]} : vector<48x256xf32> to vector<1x128xf32>
    %c0_956 = arith.constant 0 : index
    %c3_957 = arith.constant 3 : index
    %c0_958 = arith.constant 0 : index
    %1340 = vector.load %arg19[%c0_956, %c3_957, %c0_958] : memref<2x8x128xf32, #tpu.memory_space<vmem>>, vector<1x1x128xf32>
    %1341 = vector.shape_cast %1340 : vector<1x1x128xf32> to vector<1x128xf32>
    %1342 = vector.shape_cast %1339 : vector<1x128xf32> to vector<1x1x128xf32>
    tpu.vector_store %arg19[%c0_956, %c3_957, %c0_958], %1342 {strides = array<i32>} : memref<2x8x128xf32, #tpu.memory_space<vmem>>, vector<1x1x128xf32>,
    %1343 = vector.extract_strided_slice %11 {offsets = [41, 128], sizes = [1, 128], strides = [1, 1]} : vector<48x256xf32> to vector<1x128xf32>
    %c0_959 = arith.constant 0 : index
    %c3_960 = arith.constant 3 : index
    %c0_961 = arith.constant 0 : index
    %1344 = vector.load %arg20[%c0_959, %c3_960, %c0_961] : memref<2x8x128xf32, #tpu.memory_space<vmem>>, vector<1x1x128xf32>
    %1345 = vector.shape_cast %1344 : vector<1x1x128xf32> to vector<1x128xf32>
    %1346 = vector.shape_cast %1343 : vector<1x128xf32> to vector<1x1x128xf32>
    tpu.vector_store %arg20[%c0_959, %c3_960, %c0_961], %1346 {strides = array<i32>} : memref<2x8x128xf32, #tpu.memory_space<vmem>>, vector<1x1x128xf32>,
    %1347 = vector.extract_strided_slice %17 {offsets = [41, 128], sizes = [1, 128], strides = [1, 1]} : vector<48x256xf32> to vector<1x128xf32>
    %c0_962 = arith.constant 0 : index
    %c3_963 = arith.constant 3 : index
    %c0_964 = arith.constant 0 : index
    %1348 = vector.load %arg21[%c0_962, %c3_963, %c0_964] : memref<2x8x128xf32, #tpu.memory_space<vmem>>, vector<1x1x128xf32>
    %1349 = vector.shape_cast %1348 : vector<1x1x128xf32> to vector<1x128xf32>
    %1350 = vector.shape_cast %1347 : vector<1x128xf32> to vector<1x1x128xf32>
    tpu.vector_store %arg21[%c0_962, %c3_963, %c0_964], %1350 {strides = array<i32>} : memref<2x8x128xf32, #tpu.memory_space<vmem>>, vector<1x1x128xf32>,
    %1351 = vector.extract_strided_slice %5 {offsets = [42, 0], sizes = [1, 128], strides = [1, 1]} : vector<48x256xf32> to vector<1x128xf32>
    %c0_965 = arith.constant 0 : index
    %c4_966 = arith.constant 4 : index
    %c0_967 = arith.constant 0 : index
    %1352 = vector.load %arg19[%c0_965, %c4_966, %c0_967] : memref<2x8x128xf32, #tpu.memory_space<vmem>>, vector<1x1x128xf32>
    %1353 = vector.shape_cast %1352 : vector<1x1x128xf32> to vector<1x128xf32>
    %1354 = vector.shape_cast %1351 : vector<1x128xf32> to vector<1x1x128xf32>
    tpu.vector_store %arg19[%c0_965, %c4_966, %c0_967], %1354 {strides = array<i32>} : memref<2x8x128xf32, #tpu.memory_space<vmem>>, vector<1x1x128xf32>,
    %1355 = vector.extract_strided_slice %11 {offsets = [42, 0], sizes = [1, 128], strides = [1, 1]} : vector<48x256xf32> to vector<1x128xf32>
    %c0_968 = arith.constant 0 : index
    %c4_969 = arith.constant 4 : index
    %c0_970 = arith.constant 0 : index
    %1356 = vector.load %arg20[%c0_968, %c4_969, %c0_970] : memref<2x8x128xf32, #tpu.memory_space<vmem>>, vector<1x1x128xf32>
    %1357 = vector.shape_cast %1356 : vector<1x1x128xf32> to vector<1x128xf32>
    %1358 = vector.shape_cast %1355 : vector<1x128xf32> to vector<1x1x128xf32>
    tpu.vector_store %arg20[%c0_968, %c4_969, %c0_970], %1358 {strides = array<i32>} : memref<2x8x128xf32, #tpu.memory_space<vmem>>, vector<1x1x128xf32>,
    %1359 = vector.extract_strided_slice %17 {offsets = [42, 0], sizes = [1, 128], strides = [1, 1]} : vector<48x256xf32> to vector<1x128xf32>
    %c0_971 = arith.constant 0 : index
    %c4_972 = arith.constant 4 : index
    %c0_973 = arith.constant 0 : index
    %1360 = vector.load %arg21[%c0_971, %c4_972, %c0_973] : memref<2x8x128xf32, #tpu.memory_space<vmem>>, vector<1x1x128xf32>
    %1361 = vector.shape_cast %1360 : vector<1x1x128xf32> to vector<1x128xf32>
    %1362 = vector.shape_cast %1359 : vector<1x128xf32> to vector<1x1x128xf32>
    tpu.vector_store %arg21[%c0_971, %c4_972, %c0_973], %1362 {strides = array<i32>} : memref<2x8x128xf32, #tpu.memory_space<vmem>>, vector<1x1x128xf32>,
    %1363 = vector.extract_strided_slice %5 {offsets = [42, 128], sizes = [1, 128], strides = [1, 1]} : vector<48x256xf32> to vector<1x128xf32>
    %c0_974 = arith.constant 0 : index
    %c5_975 = arith.constant 5 : index
    %c0_976 = arith.constant 0 : index
    %1364 = vector.load %arg19[%c0_974, %c5_975, %c0_976] : memref<2x8x128xf32, #tpu.memory_space<vmem>>, vector<1x1x128xf32>
    %1365 = vector.shape_cast %1364 : vector<1x1x128xf32> to vector<1x128xf32>
    %1366 = vector.shape_cast %1363 : vector<1x128xf32> to vector<1x1x128xf32>
    tpu.vector_store %arg19[%c0_974, %c5_975, %c0_976], %1366 {strides = array<i32>} : memref<2x8x128xf32, #tpu.memory_space<vmem>>, vector<1x1x128xf32>,
    %1367 = vector.extract_strided_slice %11 {offsets = [42, 128], sizes = [1, 128], strides = [1, 1]} : vector<48x256xf32> to vector<1x128xf32>
    %c0_977 = arith.constant 0 : index
    %c5_978 = arith.constant 5 : index
    %c0_979 = arith.constant 0 : index
    %1368 = vector.load %arg20[%c0_977, %c5_978, %c0_979] : memref<2x8x128xf32, #tpu.memory_space<vmem>>, vector<1x1x128xf32>
    %1369 = vector.shape_cast %1368 : vector<1x1x128xf32> to vector<1x128xf32>
    %1370 = vector.shape_cast %1367 : vector<1x128xf32> to vector<1x1x128xf32>
    tpu.vector_store %arg20[%c0_977, %c5_978, %c0_979], %1370 {strides = array<i32>} : memref<2x8x128xf32, #tpu.memory_space<vmem>>, vector<1x1x128xf32>,
    %1371 = vector.extract_strided_slice %17 {offsets = [42, 128], sizes = [1, 128], strides = [1, 1]} : vector<48x256xf32> to vector<1x128xf32>
    %c0_980 = arith.constant 0 : index
    %c5_981 = arith.constant 5 : index
    %c0_982 = arith.constant 0 : index
    %1372 = vector.load %arg21[%c0_980, %c5_981, %c0_982] : memref<2x8x128xf32, #tpu.memory_space<vmem>>, vector<1x1x128xf32>
    %1373 = vector.shape_cast %1372 : vector<1x1x128xf32> to vector<1x128xf32>
    %1374 = vector.shape_cast %1371 : vector<1x128xf32> to vector<1x1x128xf32>
    tpu.vector_store %arg21[%c0_980, %c5_981, %c0_982], %1374 {strides = array<i32>} : memref<2x8x128xf32, #tpu.memory_space<vmem>>, vector<1x1x128xf32>,
    %1375 = vector.extract_strided_slice %5 {offsets = [43, 0], sizes = [1, 128], strides = [1, 1]} : vector<48x256xf32> to vector<1x128xf32>
    %c0_983 = arith.constant 0 : index
    %c6_984 = arith.constant 6 : index
    %c0_985 = arith.constant 0 : index
    %1376 = vector.load %arg19[%c0_983, %c6_984, %c0_985] : memref<2x8x128xf32, #tpu.memory_space<vmem>>, vector<1x1x128xf32>
    %1377 = vector.shape_cast %1376 : vector<1x1x128xf32> to vector<1x128xf32>
    %1378 = vector.shape_cast %1375 : vector<1x128xf32> to vector<1x1x128xf32>
    tpu.vector_store %arg19[%c0_983, %c6_984, %c0_985], %1378 {strides = array<i32>} : memref<2x8x128xf32, #tpu.memory_space<vmem>>, vector<1x1x128xf32>,
    %1379 = vector.extract_strided_slice %11 {offsets = [43, 0], sizes = [1, 128], strides = [1, 1]} : vector<48x256xf32> to vector<1x128xf32>
    %c0_986 = arith.constant 0 : index
    %c6_987 = arith.constant 6 : index
    %c0_988 = arith.constant 0 : index
    %1380 = vector.load %arg20[%c0_986, %c6_987, %c0_988] : memref<2x8x128xf32, #tpu.memory_space<vmem>>, vector<1x1x128xf32>
    %1381 = vector.shape_cast %1380 : vector<1x1x128xf32> to vector<1x128xf32>
    %1382 = vector.shape_cast %1379 : vector<1x128xf32> to vector<1x1x128xf32>
    tpu.vector_store %arg20[%c0_986, %c6_987, %c0_988], %1382 {strides = array<i32>} : memref<2x8x128xf32, #tpu.memory_space<vmem>>, vector<1x1x128xf32>,
    %1383 = vector.extract_strided_slice %17 {offsets = [43, 0], sizes = [1, 128], strides = [1, 1]} : vector<48x256xf32> to vector<1x128xf32>
    %c0_989 = arith.constant 0 : index
    %c6_990 = arith.constant 6 : index
    %c0_991 = arith.constant 0 : index
    %1384 = vector.load %arg21[%c0_989, %c6_990, %c0_991] : memref<2x8x128xf32, #tpu.memory_space<vmem>>, vector<1x1x128xf32>
    %1385 = vector.shape_cast %1384 : vector<1x1x128xf32> to vector<1x128xf32>
    %1386 = vector.shape_cast %1383 : vector<1x128xf32> to vector<1x1x128xf32>
    tpu.vector_store %arg21[%c0_989, %c6_990, %c0_991], %1386 {strides = array<i32>} : memref<2x8x128xf32, #tpu.memory_space<vmem>>, vector<1x1x128xf32>,
    %1387 = vector.extract_strided_slice %5 {offsets = [43, 128], sizes = [1, 128], strides = [1, 1]} : vector<48x256xf32> to vector<1x128xf32>
    %c0_992 = arith.constant 0 : index
    %c7_993 = arith.constant 7 : index
    %c0_994 = arith.constant 0 : index
    %1388 = vector.load %arg19[%c0_992, %c7_993, %c0_994] : memref<2x8x128xf32, #tpu.memory_space<vmem>>, vector<1x1x128xf32>
    %1389 = vector.shape_cast %1388 : vector<1x1x128xf32> to vector<1x128xf32>
    %1390 = vector.shape_cast %1387 : vector<1x128xf32> to vector<1x1x128xf32>
    tpu.vector_store %arg19[%c0_992, %c7_993, %c0_994], %1390 {strides = array<i32>} : memref<2x8x128xf32, #tpu.memory_space<vmem>>, vector<1x1x128xf32>,
    %1391 = vector.extract_strided_slice %11 {offsets = [43, 128], sizes = [1, 128], strides = [1, 1]} : vector<48x256xf32> to vector<1x128xf32>
    %c0_995 = arith.constant 0 : index
    %c7_996 = arith.constant 7 : index
    %c0_997 = arith.constant 0 : index
    %1392 = vector.load %arg20[%c0_995, %c7_996, %c0_997] : memref<2x8x128xf32, #tpu.memory_space<vmem>>, vector<1x1x128xf32>
    %1393 = vector.shape_cast %1392 : vector<1x1x128xf32> to vector<1x128xf32>
    %1394 = vector.shape_cast %1391 : vector<1x128xf32> to vector<1x1x128xf32>
    tpu.vector_store %arg20[%c0_995, %c7_996, %c0_997], %1394 {strides = array<i32>} : memref<2x8x128xf32, #tpu.memory_space<vmem>>, vector<1x1x128xf32>,
    %1395 = vector.extract_strided_slice %17 {offsets = [43, 128], sizes = [1, 128], strides = [1, 1]} : vector<48x256xf32> to vector<1x128xf32>
    %c0_998 = arith.constant 0 : index
    %c7_999 = arith.constant 7 : index
    %c0_1000 = arith.constant 0 : index
    %1396 = vector.load %arg21[%c0_998, %c7_999, %c0_1000] : memref<2x8x128xf32, #tpu.memory_space<vmem>>, vector<1x1x128xf32>
    %1397 = vector.shape_cast %1396 : vector<1x1x128xf32> to vector<1x128xf32>
    %1398 = vector.shape_cast %1395 : vector<1x128xf32> to vector<1x1x128xf32>
    tpu.vector_store %arg21[%c0_998, %c7_999, %c0_1000], %1398 {strides = array<i32>} : memref<2x8x128xf32, #tpu.memory_space<vmem>>, vector<1x1x128xf32>,
    %1399 = vector.extract_strided_slice %5 {offsets = [44, 0], sizes = [1, 128], strides = [1, 1]} : vector<48x256xf32> to vector<1x128xf32>
    %c1_1001 = arith.constant 1 : index
    %c0_1002 = arith.constant 0 : index
    %c0_1003 = arith.constant 0 : index
    %1400 = vector.load %arg19[%c1_1001, %c0_1002, %c0_1003] : memref<2x8x128xf32, #tpu.memory_space<vmem>>, vector<1x1x128xf32>
    %1401 = vector.shape_cast %1400 : vector<1x1x128xf32> to vector<1x128xf32>
    %1402 = vector.shape_cast %1399 : vector<1x128xf32> to vector<1x1x128xf32>
    tpu.vector_store %arg19[%c1_1001, %c0_1002, %c0_1003], %1402 {strides = array<i32>} : memref<2x8x128xf32, #tpu.memory_space<vmem>>, vector<1x1x128xf32>,
    %1403 = vector.extract_strided_slice %11 {offsets = [44, 0], sizes = [1, 128], strides = [1, 1]} : vector<48x256xf32> to vector<1x128xf32>
    %c1_1004 = arith.constant 1 : index
    %c0_1005 = arith.constant 0 : index
    %c0_1006 = arith.constant 0 : index
    %1404 = vector.load %arg20[%c1_1004, %c0_1005, %c0_1006] : memref<2x8x128xf32, #tpu.memory_space<vmem>>, vector<1x1x128xf32>
    %1405 = vector.shape_cast %1404 : vector<1x1x128xf32> to vector<1x128xf32>
    %1406 = vector.shape_cast %1403 : vector<1x128xf32> to vector<1x1x128xf32>
    tpu.vector_store %arg20[%c1_1004, %c0_1005, %c0_1006], %1406 {strides = array<i32>} : memref<2x8x128xf32, #tpu.memory_space<vmem>>, vector<1x1x128xf32>,
    %1407 = vector.extract_strided_slice %17 {offsets = [44, 0], sizes = [1, 128], strides = [1, 1]} : vector<48x256xf32> to vector<1x128xf32>
    %c1_1007 = arith.constant 1 : index
    %c0_1008 = arith.constant 0 : index
    %c0_1009 = arith.constant 0 : index
    %1408 = vector.load %arg21[%c1_1007, %c0_1008, %c0_1009] : memref<2x8x128xf32, #tpu.memory_space<vmem>>, vector<1x1x128xf32>
    %1409 = vector.shape_cast %1408 : vector<1x1x128xf32> to vector<1x128xf32>
    %1410 = vector.shape_cast %1407 : vector<1x128xf32> to vector<1x1x128xf32>
    tpu.vector_store %arg21[%c1_1007, %c0_1008, %c0_1009], %1410 {strides = array<i32>} : memref<2x8x128xf32, #tpu.memory_space<vmem>>, vector<1x1x128xf32>,
    %1411 = vector.extract_strided_slice %5 {offsets = [44, 128], sizes = [1, 128], strides = [1, 1]} : vector<48x256xf32> to vector<1x128xf32>
    %c1_1010 = arith.constant 1 : index
    %c1_1011 = arith.constant 1 : index
    %c0_1012 = arith.constant 0 : index
    %1412 = vector.load %arg19[%c1_1010, %c1_1011, %c0_1012] : memref<2x8x128xf32, #tpu.memory_space<vmem>>, vector<1x1x128xf32>
    %1413 = vector.shape_cast %1412 : vector<1x1x128xf32> to vector<1x128xf32>
    %1414 = vector.shape_cast %1411 : vector<1x128xf32> to vector<1x1x128xf32>
    tpu.vector_store %arg19[%c1_1010, %c1_1011, %c0_1012], %1414 {strides = array<i32>} : memref<2x8x128xf32, #tpu.memory_space<vmem>>, vector<1x1x128xf32>,
    %1415 = vector.extract_strided_slice %11 {offsets = [44, 128], sizes = [1, 128], strides = [1, 1]} : vector<48x256xf32> to vector<1x128xf32>
    %c1_1013 = arith.constant 1 : index
    %c1_1014 = arith.constant 1 : index
    %c0_1015 = arith.constant 0 : index
    %1416 = vector.load %arg20[%c1_1013, %c1_1014, %c0_1015] : memref<2x8x128xf32, #tpu.memory_space<vmem>>, vector<1x1x128xf32>
    %1417 = vector.shape_cast %1416 : vector<1x1x128xf32> to vector<1x128xf32>
    %1418 = vector.shape_cast %1415 : vector<1x128xf32> to vector<1x1x128xf32>
    tpu.vector_store %arg20[%c1_1013, %c1_1014, %c0_1015], %1418 {strides = array<i32>} : memref<2x8x128xf32, #tpu.memory_space<vmem>>, vector<1x1x128xf32>,
    %1419 = vector.extract_strided_slice %17 {offsets = [44, 128], sizes = [1, 128], strides = [1, 1]} : vector<48x256xf32> to vector<1x128xf32>
    %c1_1016 = arith.constant 1 : index
    %c1_1017 = arith.constant 1 : index
    %c0_1018 = arith.constant 0 : index
    %1420 = vector.load %arg21[%c1_1016, %c1_1017, %c0_1018] : memref<2x8x128xf32, #tpu.memory_space<vmem>>, vector<1x1x128xf32>
    %1421 = vector.shape_cast %1420 : vector<1x1x128xf32> to vector<1x128xf32>
    %1422 = vector.shape_cast %1419 : vector<1x128xf32> to vector<1x1x128xf32>
    tpu.vector_store %arg21[%c1_1016, %c1_1017, %c0_1018], %1422 {strides = array<i32>} : memref<2x8x128xf32, #tpu.memory_space<vmem>>, vector<1x1x128xf32>,
    %1423 = vector.extract_strided_slice %5 {offsets = [45, 0], sizes = [1, 128], strides = [1, 1]} : vector<48x256xf32> to vector<1x128xf32>
    %c1_1019 = arith.constant 1 : index
    %c2_1020 = arith.constant 2 : index
    %c0_1021 = arith.constant 0 : index
    %1424 = vector.load %arg19[%c1_1019, %c2_1020, %c0_1021] : memref<2x8x128xf32, #tpu.memory_space<vmem>>, vector<1x1x128xf32>
    %1425 = vector.shape_cast %1424 : vector<1x1x128xf32> to vector<1x128xf32>
    %1426 = vector.shape_cast %1423 : vector<1x128xf32> to vector<1x1x128xf32>
    tpu.vector_store %arg19[%c1_1019, %c2_1020, %c0_1021], %1426 {strides = array<i32>} : memref<2x8x128xf32, #tpu.memory_space<vmem>>, vector<1x1x128xf32>,
    %1427 = vector.extract_strided_slice %11 {offsets = [45, 0], sizes = [1, 128], strides = [1, 1]} : vector<48x256xf32> to vector<1x128xf32>
    %c1_1022 = arith.constant 1 : index
    %c2_1023 = arith.constant 2 : index
    %c0_1024 = arith.constant 0 : index
    %1428 = vector.load %arg20[%c1_1022, %c2_1023, %c0_1024] : memref<2x8x128xf32, #tpu.memory_space<vmem>>, vector<1x1x128xf32>
    %1429 = vector.shape_cast %1428 : vector<1x1x128xf32> to vector<1x128xf32>
    %1430 = vector.shape_cast %1427 : vector<1x128xf32> to vector<1x1x128xf32>
    tpu.vector_store %arg20[%c1_1022, %c2_1023, %c0_1024], %1430 {strides = array<i32>} : memref<2x8x128xf32, #tpu.memory_space<vmem>>, vector<1x1x128xf32>,
    %1431 = vector.extract_strided_slice %17 {offsets = [45, 0], sizes = [1, 128], strides = [1, 1]} : vector<48x256xf32> to vector<1x128xf32>
    %c1_1025 = arith.constant 1 : index
    %c2_1026 = arith.constant 2 : index
    %c0_1027 = arith.constant 0 : index
    %1432 = vector.load %arg21[%c1_1025, %c2_1026, %c0_1027] : memref<2x8x128xf32, #tpu.memory_space<vmem>>, vector<1x1x128xf32>
    %1433 = vector.shape_cast %1432 : vector<1x1x128xf32> to vector<1x128xf32>
    %1434 = vector.shape_cast %1431 : vector<1x128xf32> to vector<1x1x128xf32>
    tpu.vector_store %arg21[%c1_1025, %c2_1026, %c0_1027], %1434 {strides = array<i32>} : memref<2x8x128xf32, #tpu.memory_space<vmem>>, vector<1x1x128xf32>,
    %1435 = vector.extract_strided_slice %5 {offsets = [45, 128], sizes = [1, 128], strides = [1, 1]} : vector<48x256xf32> to vector<1x128xf32>
    %c1_1028 = arith.constant 1 : index
    %c3_1029 = arith.constant 3 : index
    %c0_1030 = arith.constant 0 : index
    %1436 = vector.load %arg19[%c1_1028, %c3_1029, %c0_1030] : memref<2x8x128xf32, #tpu.memory_space<vmem>>, vector<1x1x128xf32>
    %1437 = vector.shape_cast %1436 : vector<1x1x128xf32> to vector<1x128xf32>
    %1438 = vector.shape_cast %1435 : vector<1x128xf32> to vector<1x1x128xf32>
    tpu.vector_store %arg19[%c1_1028, %c3_1029, %c0_1030], %1438 {strides = array<i32>} : memref<2x8x128xf32, #tpu.memory_space<vmem>>, vector<1x1x128xf32>,
    %1439 = vector.extract_strided_slice %11 {offsets = [45, 128], sizes = [1, 128], strides = [1, 1]} : vector<48x256xf32> to vector<1x128xf32>
    %c1_1031 = arith.constant 1 : index
    %c3_1032 = arith.constant 3 : index
    %c0_1033 = arith.constant 0 : index
    %1440 = vector.load %arg20[%c1_1031, %c3_1032, %c0_1033] : memref<2x8x128xf32, #tpu.memory_space<vmem>>, vector<1x1x128xf32>
    %1441 = vector.shape_cast %1440 : vector<1x1x128xf32> to vector<1x128xf32>
    %1442 = vector.shape_cast %1439 : vector<1x128xf32> to vector<1x1x128xf32>
    tpu.vector_store %arg20[%c1_1031, %c3_1032, %c0_1033], %1442 {strides = array<i32>} : memref<2x8x128xf32, #tpu.memory_space<vmem>>, vector<1x1x128xf32>,
    %1443 = vector.extract_strided_slice %17 {offsets = [45, 128], sizes = [1, 128], strides = [1, 1]} : vector<48x256xf32> to vector<1x128xf32>
    %c1_1034 = arith.constant 1 : index
    %c3_1035 = arith.constant 3 : index
    %c0_1036 = arith.constant 0 : index
    %1444 = vector.load %arg21[%c1_1034, %c3_1035, %c0_1036] : memref<2x8x128xf32, #tpu.memory_space<vmem>>, vector<1x1x128xf32>
    %1445 = vector.shape_cast %1444 : vector<1x1x128xf32> to vector<1x128xf32>
    %1446 = vector.shape_cast %1443 : vector<1x128xf32> to vector<1x1x128xf32>
    tpu.vector_store %arg21[%c1_1034, %c3_1035, %c0_1036], %1446 {strides = array<i32>} : memref<2x8x128xf32, #tpu.memory_space<vmem>>, vector<1x1x128xf32>,
    %1447 = vector.extract_strided_slice %5 {offsets = [46, 0], sizes = [1, 128], strides = [1, 1]} : vector<48x256xf32> to vector<1x128xf32>
    %c1_1037 = arith.constant 1 : index
    %c4_1038 = arith.constant 4 : index
    %c0_1039 = arith.constant 0 : index
    %1448 = vector.load %arg19[%c1_1037, %c4_1038, %c0_1039] : memref<2x8x128xf32, #tpu.memory_space<vmem>>, vector<1x1x128xf32>
    %1449 = vector.shape_cast %1448 : vector<1x1x128xf32> to vector<1x128xf32>
    %1450 = vector.shape_cast %1447 : vector<1x128xf32> to vector<1x1x128xf32>
    tpu.vector_store %arg19[%c1_1037, %c4_1038, %c0_1039], %1450 {strides = array<i32>} : memref<2x8x128xf32, #tpu.memory_space<vmem>>, vector<1x1x128xf32>,
    %1451 = vector.extract_strided_slice %11 {offsets = [46, 0], sizes = [1, 128], strides = [1, 1]} : vector<48x256xf32> to vector<1x128xf32>
    %c1_1040 = arith.constant 1 : index
    %c4_1041 = arith.constant 4 : index
    %c0_1042 = arith.constant 0 : index
    %1452 = vector.load %arg20[%c1_1040, %c4_1041, %c0_1042] : memref<2x8x128xf32, #tpu.memory_space<vmem>>, vector<1x1x128xf32>
    %1453 = vector.shape_cast %1452 : vector<1x1x128xf32> to vector<1x128xf32>
    %1454 = vector.shape_cast %1451 : vector<1x128xf32> to vector<1x1x128xf32>
    tpu.vector_store %arg20[%c1_1040, %c4_1041, %c0_1042], %1454 {strides = array<i32>} : memref<2x8x128xf32, #tpu.memory_space<vmem>>, vector<1x1x128xf32>,
    %1455 = vector.extract_strided_slice %17 {offsets = [46, 0], sizes = [1, 128], strides = [1, 1]} : vector<48x256xf32> to vector<1x128xf32>
    %c1_1043 = arith.constant 1 : index
    %c4_1044 = arith.constant 4 : index
    %c0_1045 = arith.constant 0 : index
    %1456 = vector.load %arg21[%c1_1043, %c4_1044, %c0_1045] : memref<2x8x128xf32, #tpu.memory_space<vmem>>, vector<1x1x128xf32>
    %1457 = vector.shape_cast %1456 : vector<1x1x128xf32> to vector<1x128xf32>
    %1458 = vector.shape_cast %1455 : vector<1x128xf32> to vector<1x1x128xf32>
    tpu.vector_store %arg21[%c1_1043, %c4_1044, %c0_1045], %1458 {strides = array<i32>} : memref<2x8x128xf32, #tpu.memory_space<vmem>>, vector<1x1x128xf32>,
    %1459 = vector.extract_strided_slice %5 {offsets = [46, 128], sizes = [1, 128], strides = [1, 1]} : vector<48x256xf32> to vector<1x128xf32>
    %c1_1046 = arith.constant 1 : index
    %c5_1047 = arith.constant 5 : index
    %c0_1048 = arith.constant 0 : index
    %1460 = vector.load %arg19[%c1_1046, %c5_1047, %c0_1048] : memref<2x8x128xf32, #tpu.memory_space<vmem>>, vector<1x1x128xf32>
    %1461 = vector.shape_cast %1460 : vector<1x1x128xf32> to vector<1x128xf32>
    %1462 = vector.shape_cast %1459 : vector<1x128xf32> to vector<1x1x128xf32>
    tpu.vector_store %arg19[%c1_1046, %c5_1047, %c0_1048], %1462 {strides = array<i32>} : memref<2x8x128xf32, #tpu.memory_space<vmem>>, vector<1x1x128xf32>,
    %1463 = vector.extract_strided_slice %11 {offsets = [46, 128], sizes = [1, 128], strides = [1, 1]} : vector<48x256xf32> to vector<1x128xf32>
    %c1_1049 = arith.constant 1 : index
    %c5_1050 = arith.constant 5 : index
    %c0_1051 = arith.constant 0 : index
    %1464 = vector.load %arg20[%c1_1049, %c5_1050, %c0_1051] : memref<2x8x128xf32, #tpu.memory_space<vmem>>, vector<1x1x128xf32>
    %1465 = vector.shape_cast %1464 : vector<1x1x128xf32> to vector<1x128xf32>
    %1466 = vector.shape_cast %1463 : vector<1x128xf32> to vector<1x1x128xf32>
    tpu.vector_store %arg20[%c1_1049, %c5_1050, %c0_1051], %1466 {strides = array<i32>} : memref<2x8x128xf32, #tpu.memory_space<vmem>>, vector<1x1x128xf32>,
    %1467 = vector.extract_strided_slice %17 {offsets = [46, 128], sizes = [1, 128], strides = [1, 1]} : vector<48x256xf32> to vector<1x128xf32>
    %c1_1052 = arith.constant 1 : index
    %c5_1053 = arith.constant 5 : index
    %c0_1054 = arith.constant 0 : index
    %1468 = vector.load %arg21[%c1_1052, %c5_1053, %c0_1054] : memref<2x8x128xf32, #tpu.memory_space<vmem>>, vector<1x1x128xf32>
    %1469 = vector.shape_cast %1468 : vector<1x1x128xf32> to vector<1x128xf32>
    %1470 = vector.shape_cast %1467 : vector<1x128xf32> to vector<1x1x128xf32>
    tpu.vector_store %arg21[%c1_1052, %c5_1053, %c0_1054], %1470 {strides = array<i32>} : memref<2x8x128xf32, #tpu.memory_space<vmem>>, vector<1x1x128xf32>,
    %1471 = vector.extract_strided_slice %5 {offsets = [47, 0], sizes = [1, 128], strides = [1, 1]} : vector<48x256xf32> to vector<1x128xf32>
    %c1_1055 = arith.constant 1 : index
    %c6_1056 = arith.constant 6 : index
    %c0_1057 = arith.constant 0 : index
    %1472 = vector.load %arg19[%c1_1055, %c6_1056, %c0_1057] : memref<2x8x128xf32, #tpu.memory_space<vmem>>, vector<1x1x128xf32>
    %1473 = vector.shape_cast %1472 : vector<1x1x128xf32> to vector<1x128xf32>
    %1474 = vector.shape_cast %1471 : vector<1x128xf32> to vector<1x1x128xf32>
    tpu.vector_store %arg19[%c1_1055, %c6_1056, %c0_1057], %1474 {strides = array<i32>} : memref<2x8x128xf32, #tpu.memory_space<vmem>>, vector<1x1x128xf32>,
    %1475 = vector.extract_strided_slice %11 {offsets = [47, 0], sizes = [1, 128], strides = [1, 1]} : vector<48x256xf32> to vector<1x128xf32>
    %c1_1058 = arith.constant 1 : index
    %c6_1059 = arith.constant 6 : index
    %c0_1060 = arith.constant 0 : index
    %1476 = vector.load %arg20[%c1_1058, %c6_1059, %c0_1060] : memref<2x8x128xf32, #tpu.memory_space<vmem>>, vector<1x1x128xf32>
    %1477 = vector.shape_cast %1476 : vector<1x1x128xf32> to vector<1x128xf32>
    %1478 = vector.shape_cast %1475 : vector<1x128xf32> to vector<1x1x128xf32>
    tpu.vector_store %arg20[%c1_1058, %c6_1059, %c0_1060], %1478 {strides = array<i32>} : memref<2x8x128xf32, #tpu.memory_space<vmem>>, vector<1x1x128xf32>,
    %1479 = vector.extract_strided_slice %17 {offsets = [47, 0], sizes = [1, 128], strides = [1, 1]} : vector<48x256xf32> to vector<1x128xf32>
    %c1_1061 = arith.constant 1 : index
    %c6_1062 = arith.constant 6 : index
    %c0_1063 = arith.constant 0 : index
    %1480 = vector.load %arg21[%c1_1061, %c6_1062, %c0_1063] : memref<2x8x128xf32, #tpu.memory_space<vmem>>, vector<1x1x128xf32>
    %1481 = vector.shape_cast %1480 : vector<1x1x128xf32> to vector<1x128xf32>
    %1482 = vector.shape_cast %1479 : vector<1x128xf32> to vector<1x1x128xf32>
    tpu.vector_store %arg21[%c1_1061, %c6_1062, %c0_1063], %1482 {strides = array<i32>} : memref<2x8x128xf32, #tpu.memory_space<vmem>>, vector<1x1x128xf32>,
    %1483 = vector.extract_strided_slice %5 {offsets = [47, 128], sizes = [1, 128], strides = [1, 1]} : vector<48x256xf32> to vector<1x128xf32>
    %c1_1064 = arith.constant 1 : index
    %c7_1065 = arith.constant 7 : index
    %c0_1066 = arith.constant 0 : index
    %1484 = vector.load %arg19[%c1_1064, %c7_1065, %c0_1066] : memref<2x8x128xf32, #tpu.memory_space<vmem>>, vector<1x1x128xf32>
    %1485 = vector.shape_cast %1484 : vector<1x1x128xf32> to vector<1x128xf32>
    %1486 = vector.shape_cast %1483 : vector<1x128xf32> to vector<1x1x128xf32>
    tpu.vector_store %arg19[%c1_1064, %c7_1065, %c0_1066], %1486 {strides = array<i32>} : memref<2x8x128xf32, #tpu.memory_space<vmem>>, vector<1x1x128xf32>,
    %1487 = vector.extract_strided_slice %11 {offsets = [47, 128], sizes = [1, 128], strides = [1, 1]} : vector<48x256xf32> to vector<1x128xf32>
    %c1_1067 = arith.constant 1 : index
    %c7_1068 = arith.constant 7 : index
    %c0_1069 = arith.constant 0 : index
    %1488 = vector.load %arg20[%c1_1067, %c7_1068, %c0_1069] : memref<2x8x128xf32, #tpu.memory_space<vmem>>, vector<1x1x128xf32>
    %1489 = vector.shape_cast %1488 : vector<1x1x128xf32> to vector<1x128xf32>
    %1490 = vector.shape_cast %1487 : vector<1x128xf32> to vector<1x1x128xf32>
    tpu.vector_store %arg20[%c1_1067, %c7_1068, %c0_1069], %1490 {strides = array<i32>} : memref<2x8x128xf32, #tpu.memory_space<vmem>>, vector<1x1x128xf32>,
    %1491 = vector.extract_strided_slice %17 {offsets = [47, 128], sizes = [1, 128], strides = [1, 1]} : vector<48x256xf32> to vector<1x128xf32>
    %c1_1070 = arith.constant 1 : index
    %c7_1071 = arith.constant 7 : index
    %c0_1072 = arith.constant 0 : index
    %1492 = vector.load %arg21[%c1_1070, %c7_1071, %c0_1072] : memref<2x8x128xf32, #tpu.memory_space<vmem>>, vector<1x1x128xf32>
    %1493 = vector.shape_cast %1492 : vector<1x1x128xf32> to vector<1x128xf32>
    %1494 = vector.shape_cast %1491 : vector<1x128xf32> to vector<1x1x128xf32>
    tpu.vector_store %arg21[%c1_1070, %c7_1071, %c0_1072], %1494 {strides = array<i32>} : memref<2x8x128xf32, #tpu.memory_space<vmem>>, vector<1x1x128xf32>,
    %c0_1073 = arith.constant 0 : index
    %c0_1074 = arith.constant 0 : index
    %c0_1075 = arith.constant 0 : index
    %1495 = vector.load %arg19[%c0_1073, %c0_1074, %c0_1075] : memref<2x8x128xf32, #tpu.memory_space<vmem>>, vector<2x8x128xf32>
    %c0_1076 = arith.constant 0 : index
    %c0_1077 = arith.constant 0 : index
    %c0_1078 = arith.constant 0 : index
    %1496 = vector.load %arg20[%c0_1076, %c0_1077, %c0_1078] : memref<2x8x128xf32, #tpu.memory_space<vmem>>, vector<2x8x128xf32>
    %c0_1079 = arith.constant 0 : index
    %c0_1080 = arith.constant 0 : index
    %c0_1081 = arith.constant 0 : index
    %1497 = vector.load %arg21[%c0_1079, %c0_1080, %c0_1081] : memref<2x8x128xf32, #tpu.memory_space<vmem>>, vector<2x8x128xf32>
    "tpu.trace_start"() <{level = 10 : i32, message = "hsd,htd->hst"}> : () -> ()
    %cst_1082 = arith.constant dense<0.000000e+00> : vector<2x8x8xf32>
    %1498 = tpu.matmul %1495, %1496, %cst_1082 {dimension_numbers = #tpu.dot_dimension_numbers<[2], [2], [1], [1], [0, 0, 0, 1, 1, 1], [0], [0]>} : vector<2x8x128xf32>, vector<2x8x128xf32>, vector<2x8x8xf32> -> vector<2x8x8xf32>
    "tpu.trace_stop"() : () -> ()
    %cst_1083 = arith.constant 0.0883883461 : f32
    %1499 = vector.broadcast %cst_1083 : f32 to vector<2x8x8xf32>
    %1500 = arith.mulf %1498, %1499 : vector<2x8x8xf32>
    %cst_1084 = arith.constant dense<0xFF800000> : vector<2x8xf32>
    %1501 = vector.multi_reduction <maximumf>, %1500, %cst_1084 [2] : vector<2x8x8xf32> to vector<2x8xf32>
    %1502 = vector.shape_cast %1501 : vector<2x8xf32> to vector<2x8x1xf32>
    %1503 = vector.broadcast %1502 : vector<2x8x1xf32> to vector<2x8x8xf32>
    %1504 = arith.subf %1500, %1503 : vector<2x8x8xf32>
    %1505 = math.exp %1504 : vector<2x8x8xf32>
    %cst_1085 = arith.constant dense<0.000000e+00> : vector<2x8xf32>
    %1506 = vector.multi_reduction <add>, %1505, %cst_1085 [2] : vector<2x8x8xf32> to vector<2x8xf32>
    %1507 = vector.shape_cast %1506 : vector<2x8xf32> to vector<2x8x1xf32>
    %1508 = tpu.reciprocal %1507 {approx = true} : vector<2x8x1xf32> -> vector<2x8x1xf32>
    %1509 = vector.broadcast %1508 : vector<2x8x1xf32> to vector<2x8x8xf32>
    %1510 = arith.mulf %1505, %1509 : vector<2x8x8xf32>
    "tpu.trace_start"() <{level = 10 : i32, message = "hst,htd->hsd"}> : () -> ()
    %cst_1086 = arith.constant dense<0.000000e+00> : vector<2x8x128xf32>
    %1511 = tpu.matmul %1510, %1497, %cst_1086 {dimension_numbers = #tpu.dot_dimension_numbers<[2], [1], [1], [2], [0, 0, 0, 1, 1, 2], [0], [0]>} : vector<2x8x8xf32>, vector<2x8x128xf32>, vector<2x8x128xf32> -> vector<2x8x128xf32>
    "tpu.trace_stop"() : () -> ()
    %1512 = vector.extract_strided_slice %1511 {offsets = [0, 0, 0], sizes = [1, 1, 128], strides = [1, 1, 1]} : vector<2x8x128xf32> to vector<1x1x128xf32>
    %1513 = vector.shape_cast %1512 : vector<1x1x128xf32> to vector<1x128xf32>
    %c40 = arith.constant 40 : index
    %c0_1087 = arith.constant 0 : index
    %1514 = vector.load %arg22[%c40, %c0_1087] : memref<48x256xf32, #tpu.memory_space<vmem>>, vector<1x128xf32>
    tpu.vector_store %arg22[%c40, %c0_1087], %1513 {strides = array<i32>} : memref<48x256xf32, #tpu.memory_space<vmem>>, vector<1x128xf32>,
    %1515 = vector.extract_strided_slice %1511 {offsets = [0, 1, 0], sizes = [1, 1, 128], strides = [1, 1, 1]} : vector<2x8x128xf32> to vector<1x1x128xf32>
    %1516 = vector.shape_cast %1515 : vector<1x1x128xf32> to vector<1x128xf32>
    %c40_1088 = arith.constant 40 : index
    %c128_1089 = arith.constant 128 : index
    %1517 = vector.load %arg22[%c40_1088, %c128_1089] : memref<48x256xf32, #tpu.memory_space<vmem>>, vector<1x128xf32>
    tpu.vector_store %arg22[%c40_1088, %c128_1089], %1516 {strides = array<i32>} : memref<48x256xf32, #tpu.memory_space<vmem>>, vector<1x128xf32>,
    %1518 = vector.extract_strided_slice %1511 {offsets = [0, 2, 0], sizes = [1, 1, 128], strides = [1, 1, 1]} : vector<2x8x128xf32> to vector<1x1x128xf32>
    %1519 = vector.shape_cast %1518 : vector<1x1x128xf32> to vector<1x128xf32>
    %c41 = arith.constant 41 : index
    %c0_1090 = arith.constant 0 : index
    %1520 = vector.load %arg22[%c41, %c0_1090] : memref<48x256xf32, #tpu.memory_space<vmem>>, vector<1x128xf32>
    tpu.vector_store %arg22[%c41, %c0_1090], %1519 {strides = array<i32>} : memref<48x256xf32, #tpu.memory_space<vmem>>, vector<1x128xf32>,
    %1521 = vector.extract_strided_slice %1511 {offsets = [0, 3, 0], sizes = [1, 1, 128], strides = [1, 1, 1]} : vector<2x8x128xf32> to vector<1x1x128xf32>
    %1522 = vector.shape_cast %1521 : vector<1x1x128xf32> to vector<1x128xf32>
    %c41_1091 = arith.constant 41 : index
    %c128_1092 = arith.constant 128 : index
    %1523 = vector.load %arg22[%c41_1091, %c128_1092] : memref<48x256xf32, #tpu.memory_space<vmem>>, vector<1x128xf32>
    tpu.vector_store %arg22[%c41_1091, %c128_1092], %1522 {strides = array<i32>} : memref<48x256xf32, #tpu.memory_space<vmem>>, vector<1x128xf32>,
    %1524 = vector.extract_strided_slice %1511 {offsets = [0, 4, 0], sizes = [1, 1, 128], strides = [1, 1, 1]} : vector<2x8x128xf32> to vector<1x1x128xf32>
    %1525 = vector.shape_cast %1524 : vector<1x1x128xf32> to vector<1x128xf32>
    %c42 = arith.constant 42 : index
    %c0_1093 = arith.constant 0 : index
    %1526 = vector.load %arg22[%c42, %c0_1093] : memref<48x256xf32, #tpu.memory_space<vmem>>, vector<1x128xf32>
    tpu.vector_store %arg22[%c42, %c0_1093], %1525 {strides = array<i32>} : memref<48x256xf32, #tpu.memory_space<vmem>>, vector<1x128xf32>,
    %1527 = vector.extract_strided_slice %1511 {offsets = [0, 5, 0], sizes = [1, 1, 128], strides = [1, 1, 1]} : vector<2x8x128xf32> to vector<1x1x128xf32>
    %1528 = vector.shape_cast %1527 : vector<1x1x128xf32> to vector<1x128xf32>
    %c42_1094 = arith.constant 42 : index
    %c128_1095 = arith.constant 128 : index
    %1529 = vector.load %arg22[%c42_1094, %c128_1095] : memref<48x256xf32, #tpu.memory_space<vmem>>, vector<1x128xf32>
    tpu.vector_store %arg22[%c42_1094, %c128_1095], %1528 {strides = array<i32>} : memref<48x256xf32, #tpu.memory_space<vmem>>, vector<1x128xf32>,
    %1530 = vector.extract_strided_slice %1511 {offsets = [0, 6, 0], sizes = [1, 1, 128], strides = [1, 1, 1]} : vector<2x8x128xf32> to vector<1x1x128xf32>
    %1531 = vector.shape_cast %1530 : vector<1x1x128xf32> to vector<1x128xf32>
    %c43 = arith.constant 43 : index
    %c0_1096 = arith.constant 0 : index
    %1532 = vector.load %arg22[%c43, %c0_1096] : memref<48x256xf32, #tpu.memory_space<vmem>>, vector<1x128xf32>
    tpu.vector_store %arg22[%c43, %c0_1096], %1531 {strides = array<i32>} : memref<48x256xf32, #tpu.memory_space<vmem>>, vector<1x128xf32>,
    %1533 = vector.extract_strided_slice %1511 {offsets = [0, 7, 0], sizes = [1, 1, 128], strides = [1, 1, 1]} : vector<2x8x128xf32> to vector<1x1x128xf32>
    %1534 = vector.shape_cast %1533 : vector<1x1x128xf32> to vector<1x128xf32>
    %c43_1097 = arith.constant 43 : index
    %c128_1098 = arith.constant 128 : index
    %1535 = vector.load %arg22[%c43_1097, %c128_1098] : memref<48x256xf32, #tpu.memory_space<vmem>>, vector<1x128xf32>
    tpu.vector_store %arg22[%c43_1097, %c128_1098], %1534 {strides = array<i32>} : memref<48x256xf32, #tpu.memory_space<vmem>>, vector<1x128xf32>,
    %1536 = vector.extract_strided_slice %1511 {offsets = [1, 0, 0], sizes = [1, 1, 128], strides = [1, 1, 1]} : vector<2x8x128xf32> to vector<1x1x128xf32>
    %1537 = vector.shape_cast %1536 : vector<1x1x128xf32> to vector<1x128xf32>
    %c44 = arith.constant 44 : index
    %c0_1099 = arith.constant 0 : index
    %1538 = vector.load %arg22[%c44, %c0_1099] : memref<48x256xf32, #tpu.memory_space<vmem>>, vector<1x128xf32>
    tpu.vector_store %arg22[%c44, %c0_1099], %1537 {strides = array<i32>} : memref<48x256xf32, #tpu.memory_space<vmem>>, vector<1x128xf32>,
    %1539 = vector.extract_strided_slice %1511 {offsets = [1, 1, 0], sizes = [1, 1, 128], strides = [1, 1, 1]} : vector<2x8x128xf32> to vector<1x1x128xf32>
    %1540 = vector.shape_cast %1539 : vector<1x1x128xf32> to vector<1x128xf32>
    %c44_1100 = arith.constant 44 : index
    %c128_1101 = arith.constant 128 : index
    %1541 = vector.load %arg22[%c44_1100, %c128_1101] : memref<48x256xf32, #tpu.memory_space<vmem>>, vector<1x128xf32>
    tpu.vector_store %arg22[%c44_1100, %c128_1101], %1540 {strides = array<i32>} : memref<48x256xf32, #tpu.memory_space<vmem>>, vector<1x128xf32>,
    %1542 = vector.extract_strided_slice %1511 {offsets = [1, 2, 0], sizes = [1, 1, 128], strides = [1, 1, 1]} : vector<2x8x128xf32> to vector<1x1x128xf32>
    %1543 = vector.shape_cast %1542 : vector<1x1x128xf32> to vector<1x128xf32>
    %c45 = arith.constant 45 : index
    %c0_1102 = arith.constant 0 : index
    %1544 = vector.load %arg22[%c45, %c0_1102] : memref<48x256xf32, #tpu.memory_space<vmem>>, vector<1x128xf32>
    tpu.vector_store %arg22[%c45, %c0_1102], %1543 {strides = array<i32>} : memref<48x256xf32, #tpu.memory_space<vmem>>, vector<1x128xf32>,
    %1545 = vector.extract_strided_slice %1511 {offsets = [1, 3, 0], sizes = [1, 1, 128], strides = [1, 1, 1]} : vector<2x8x128xf32> to vector<1x1x128xf32>
    %1546 = vector.shape_cast %1545 : vector<1x1x128xf32> to vector<1x128xf32>
    %c45_1103 = arith.constant 45 : index
    %c128_1104 = arith.constant 128 : index
    %1547 = vector.load %arg22[%c45_1103, %c128_1104] : memref<48x256xf32, #tpu.memory_space<vmem>>, vector<1x128xf32>
    tpu.vector_store %arg22[%c45_1103, %c128_1104], %1546 {strides = array<i32>} : memref<48x256xf32, #tpu.memory_space<vmem>>, vector<1x128xf32>,
    %1548 = vector.extract_strided_slice %1511 {offsets = [1, 4, 0], sizes = [1, 1, 128], strides = [1, 1, 1]} : vector<2x8x128xf32> to vector<1x1x128xf32>
    %1549 = vector.shape_cast %1548 : vector<1x1x128xf32> to vector<1x128xf32>
    %c46 = arith.constant 46 : index
    %c0_1105 = arith.constant 0 : index
    %1550 = vector.load %arg22[%c46, %c0_1105] : memref<48x256xf32, #tpu.memory_space<vmem>>, vector<1x128xf32>
    tpu.vector_store %arg22[%c46, %c0_1105], %1549 {strides = array<i32>} : memref<48x256xf32, #tpu.memory_space<vmem>>, vector<1x128xf32>,
    %1551 = vector.extract_strided_slice %1511 {offsets = [1, 5, 0], sizes = [1, 1, 128], strides = [1, 1, 1]} : vector<2x8x128xf32> to vector<1x1x128xf32>
    %1552 = vector.shape_cast %1551 : vector<1x1x128xf32> to vector<1x128xf32>
    %c46_1106 = arith.constant 46 : index
    %c128_1107 = arith.constant 128 : index
    %1553 = vector.load %arg22[%c46_1106, %c128_1107] : memref<48x256xf32, #tpu.memory_space<vmem>>, vector<1x128xf32>
    tpu.vector_store %arg22[%c46_1106, %c128_1107], %1552 {strides = array<i32>} : memref<48x256xf32, #tpu.memory_space<vmem>>, vector<1x128xf32>,
    %1554 = vector.extract_strided_slice %1511 {offsets = [1, 6, 0], sizes = [1, 1, 128], strides = [1, 1, 1]} : vector<2x8x128xf32> to vector<1x1x128xf32>
    %1555 = vector.shape_cast %1554 : vector<1x1x128xf32> to vector<1x128xf32>
    %c47 = arith.constant 47 : index
    %c0_1108 = arith.constant 0 : index
    %1556 = vector.load %arg22[%c47, %c0_1108] : memref<48x256xf32, #tpu.memory_space<vmem>>, vector<1x128xf32>
    tpu.vector_store %arg22[%c47, %c0_1108], %1555 {strides = array<i32>} : memref<48x256xf32, #tpu.memory_space<vmem>>, vector<1x128xf32>,
    %1557 = vector.extract_strided_slice %1511 {offsets = [1, 7, 0], sizes = [1, 1, 128], strides = [1, 1, 1]} : vector<2x8x128xf32> to vector<1x1x128xf32>
    %1558 = vector.shape_cast %1557 : vector<1x1x128xf32> to vector<1x128xf32>
    %c47_1109 = arith.constant 47 : index
    %c128_1110 = arith.constant 128 : index
    %1559 = vector.load %arg22[%c47_1109, %c128_1110] : memref<48x256xf32, #tpu.memory_space<vmem>>, vector<1x128xf32>
    tpu.vector_store %arg22[%c47_1109, %c128_1110], %1558 {strides = array<i32>} : memref<48x256xf32, #tpu.memory_space<vmem>>, vector<1x128xf32>,
    %c0_1111 = arith.constant 0 : index
    %c0_1112 = arith.constant 0 : index
    %1560 = vector.load %arg22[%c0_1111, %c0_1112] : memref<48x256xf32, #tpu.memory_space<vmem>>, vector<48x256xf32>
    %c0_1113 = arith.constant 0 : index
    %c0_1114 = arith.constant 0 : index
    %1561 = vector.load %arg10[%c0_1113, %c0_1114] : memref<256x128xf32, #tpu.memory_space<vmem>>, vector<256x128xf32>
    %cst_1115 = arith.constant dense<0.000000e+00> : vector<48x128xf32>
    %1562 = tpu.matmul %1560, %1561, %cst_1115 {dimension_numbers = #tpu.dot_dimension_numbers<[1], [0], [0], [1], [0, 0, 1, 1], [], []>} : vector<48x256xf32>, vector<256x128xf32>, vector<48x128xf32> -> vector<48x128xf32>
    %c0_1116 = arith.constant 0 : index
    %c0_1117 = arith.constant 0 : index
    %1563 = vector.load %arg11[%c0_1116, %c0_1117] : memref<1x128xf32, #tpu.memory_space<vmem>>, vector<1x128xf32>
    %1564 = vector.broadcast %1563 : vector<1x128xf32> to vector<48x128xf32>
    %1565 = arith.addf %1562, %1564 : vector<48x128xf32>
    %c0_1118 = arith.constant 0 : index
    %c0_1119 = arith.constant 0 : index
    %1566 = vector.load %arg3[%c0_1118, %c0_1119] : memref<48x128xf32, #tpu.memory_space<vmem>>, vector<48x128xf32>
    %1567 = arith.addf %1565, %1566 : vector<48x128xf32>
    %c0_1120 = arith.constant 0 : index
    %c0_1121 = arith.constant 0 : index
    %1568 = vector.load %arg12[%c0_1120, %c0_1121] : memref<1x128xf32, #tpu.memory_space<vmem>>, vector<1x128xf32>
    %c0_1122 = arith.constant 0 : index
    %c0_1123 = arith.constant 0 : index
    %1569 = vector.load %arg13[%c0_1122, %c0_1123] : memref<1x128xf32, #tpu.memory_space<vmem>>, vector<1x128xf32>
    %cst_1124 = arith.constant dense<0.000000e+00> : vector<48xf32>
    %1570 = vector.multi_reduction <add>, %1567, %cst_1124 [1] : vector<48x128xf32> to vector<48xf32>
    %1571 = vector.shape_cast %1570 : vector<48xf32> to vector<48x1xf32>
    %cst_1125 = arith.constant 1.280000e+02 : f32
    %1572 = vector.broadcast %cst_1125 : f32 to vector<48x1xf32>
    %1573 = arith.divf %1571, %1572 : vector<48x1xf32>
    %1574 = vector.broadcast %1573 : vector<48x1xf32> to vector<48x128xf32>
    %1575 = arith.subf %1567, %1574 : vector<48x128xf32>
    %1576 = arith.mulf %1575, %1575 : vector<48x128xf32>
    %cst_1126 = arith.constant dense<0.000000e+00> : vector<48xf32>
    %1577 = vector.multi_reduction <add>, %1576, %cst_1126 [1] : vector<48x128xf32> to vector<48xf32>
    %1578 = vector.shape_cast %1577 : vector<48xf32> to vector<48x1xf32>
    %cst_1127 = arith.constant 1.280000e+02 : f32
    %1579 = vector.broadcast %cst_1127 : f32 to vector<48x1xf32>
    %1580 = arith.divf %1578, %1579 : vector<48x1xf32>
    %1581 = vector.broadcast %1573 : vector<48x1xf32> to vector<48x128xf32>
    %1582 = arith.subf %1567, %1581 : vector<48x128xf32>
    %cst_1128 = arith.constant 9.99999974E-6 : f32
    %1583 = vector.broadcast %cst_1128 : f32 to vector<48x1xf32>
    %1584 = arith.addf %1580, %1583 : vector<48x1xf32>
    %1585 = math.rsqrt %1584 : vector<48x1xf32>
    %1586 = vector.broadcast %1585 : vector<48x1xf32> to vector<48x128xf32>
    %1587 = arith.mulf %1582, %1586 : vector<48x128xf32>
    %1588 = vector.broadcast %1568 : vector<1x128xf32> to vector<48x128xf32>
    %1589 = arith.mulf %1587, %1588 : vector<48x128xf32>
    %1590 = vector.broadcast %1569 : vector<1x128xf32> to vector<48x128xf32>
    %1591 = arith.addf %1589, %1590 : vector<48x128xf32>
    %c0_1129 = arith.constant 0 : index
    %c0_1130 = arith.constant 0 : index
    %1592 = vector.load %arg14[%c0_1129, %c0_1130] : memref<128x128xf32, #tpu.memory_space<vmem>>, vector<128x128xf32>
    %cst_1131 = arith.constant dense<0.000000e+00> : vector<48x128xf32>
    %1593 = tpu.matmul %1591, %1592, %cst_1131 {dimension_numbers = #tpu.dot_dimension_numbers<[1], [0], [0], [1], [0, 0, 1, 1], [], []>} : vector<48x128xf32>, vector<128x128xf32>, vector<48x128xf32> -> vector<48x128xf32>
    %c0_1132 = arith.constant 0 : index
    %c0_1133 = arith.constant 0 : index
    %1594 = vector.load %arg15[%c0_1132, %c0_1133] : memref<1x128xf32, #tpu.memory_space<vmem>>, vector<1x128xf32>
    %1595 = vector.broadcast %1594 : vector<1x128xf32> to vector<48x128xf32>
    %1596 = arith.addf %1593, %1595 : vector<48x128xf32>
    %1597 = arith.addf %1596, %1591 : vector<48x128xf32>
    %c0_1134 = arith.constant 0 : index
    %c0_1135 = arith.constant 0 : index
    %1598 = vector.load %arg16[%c0_1134, %c0_1135] : memref<1x128xf32, #tpu.memory_space<vmem>>, vector<1x128xf32>
    %c0_1136 = arith.constant 0 : index
    %c0_1137 = arith.constant 0 : index
    %1599 = vector.load %arg17[%c0_1136, %c0_1137] : memref<1x128xf32, #tpu.memory_space<vmem>>, vector<1x128xf32>
    %cst_1138 = arith.constant dense<0.000000e+00> : vector<48xf32>
    %1600 = vector.multi_reduction <add>, %1597, %cst_1138 [1] : vector<48x128xf32> to vector<48xf32>
    %1601 = vector.shape_cast %1600 : vector<48xf32> to vector<48x1xf32>
    %cst_1139 = arith.constant 1.280000e+02 : f32
    %1602 = vector.broadcast %cst_1139 : f32 to vector<48x1xf32>
    %1603 = arith.divf %1601, %1602 : vector<48x1xf32>
    %1604 = vector.broadcast %1603 : vector<48x1xf32> to vector<48x128xf32>
    %1605 = arith.subf %1597, %1604 : vector<48x128xf32>
    %1606 = arith.mulf %1605, %1605 : vector<48x128xf32>
    %cst_1140 = arith.constant dense<0.000000e+00> : vector<48xf32>
    %1607 = vector.multi_reduction <add>, %1606, %cst_1140 [1] : vector<48x128xf32> to vector<48xf32>
    %1608 = vector.shape_cast %1607 : vector<48xf32> to vector<48x1xf32>
    %cst_1141 = arith.constant 1.280000e+02 : f32
    %1609 = vector.broadcast %cst_1141 : f32 to vector<48x1xf32>
    %1610 = arith.divf %1608, %1609 : vector<48x1xf32>
    %1611 = vector.broadcast %1603 : vector<48x1xf32> to vector<48x128xf32>
    %1612 = arith.subf %1597, %1611 : vector<48x128xf32>
    %cst_1142 = arith.constant 9.99999974E-6 : f32
    %1613 = vector.broadcast %cst_1142 : f32 to vector<48x1xf32>
    %1614 = arith.addf %1610, %1613 : vector<48x1xf32>
    %1615 = math.rsqrt %1614 : vector<48x1xf32>
    %1616 = vector.broadcast %1615 : vector<48x1xf32> to vector<48x128xf32>
    %1617 = arith.mulf %1612, %1616 : vector<48x128xf32>
    %1618 = vector.broadcast %1598 : vector<1x128xf32> to vector<48x128xf32>
    %1619 = arith.mulf %1617, %1618 : vector<48x128xf32>
    %1620 = vector.broadcast %1599 : vector<1x128xf32> to vector<48x128xf32>
    %1621 = arith.addf %1619, %1620 : vector<48x128xf32>
    %c0_1143 = arith.constant 0 : index
    %c0_1144 = arith.constant 0 : index
    %1622 = vector.load %arg18[%c0_1143, %c0_1144] : memref<48x128xf32, #tpu.memory_space<vmem>>, vector<48x128xf32>
    tpu.vector_store %arg18[%c0_1143, %c0_1144], %1621 {strides = array<i32>} : memref<48x128xf32, #tpu.memory_space<vmem>>, vector<48x128xf32>,
    return
  }
  func.func @transform_0(%arg0: i32) -> (i32, i32) {
    %c0_i32 = arith.constant 0 : i32
    %c0_i32_0 = arith.constant 0 : i32
    return %arg0, %c0_i32 : i32, i32
  }
  func.func @transform_1(%arg0: i32) -> (i32, i32) {
    %c0_i32 = arith.constant 0 : i32
    %c0_i32_0 = arith.constant 0 : i32
    return %arg0, %c0_i32 : i32, i32
  }
  func.func @transform_2(%arg0: i32) -> (i32, i32) {
    %c0_i32 = arith.constant 0 : i32
    %c0_i32_0 = arith.constant 0 : i32
    return %arg0, %c0_i32 : i32, i32
  }
  func.func @transform_3(%arg0: i32) -> (i32, i32) {
    %c0_i32 = arith.constant 0 : i32
    %c0_i32_0 = arith.constant 0 : i32
    %c0_i32_1 = arith.constant 0 : i32
    return %c0_i32, %c0_i32_0 : i32, i32
  }
  func.func @transform_4(%arg0: i32) -> (i32, i32) {
    %c0_i32 = arith.constant 0 : i32
    %c0_i32_0 = arith.constant 0 : i32
    %c0_i32_1 = arith.constant 0 : i32
    return %c0_i32, %c0_i32_0 : i32, i32
  }
  func.func @transform_5(%arg0: i32) -> (i32, i32) {
    %c0_i32 = arith.constant 0 : i32
    %c0_i32_0 = arith.constant 0 : i32
    %c0_i32_1 = arith.constant 0 : i32
    return %c0_i32, %c0_i32_0 : i32, i32
  }
  func.func @transform_6(%arg0: i32) -> (i32, i32) {
    %c0_i32 = arith.constant 0 : i32
    %c0_i32_0 = arith.constant 0 : i32
    %c0_i32_1 = arith.constant 0 : i32
    return %c0_i32, %c0_i32_0 : i32, i32
  }
  func.func @transform_7(%arg0: i32) -> (i32, i32) {
    %c0_i32 = arith.constant 0 : i32
    %c0_i32_0 = arith.constant 0 : i32
    %c0_i32_1 = arith.constant 0 : i32
    return %c0_i32, %c0_i32_0 : i32, i32
  }
  func.func @transform_8(%arg0: i32) -> (i32, i32) {
    %c0_i32 = arith.constant 0 : i32
    %c0_i32_0 = arith.constant 0 : i32
    %c0_i32_1 = arith.constant 0 : i32
    return %c0_i32, %c0_i32_0 : i32, i32
  }
  func.func @transform_9(%arg0: i32) -> (i32, i32) {
    %c0_i32 = arith.constant 0 : i32
    %c0_i32_0 = arith.constant 0 : i32
    %c0_i32_1 = arith.constant 0 : i32
    return %c0_i32, %c0_i32_0 : i32, i32
  }
  func.func @transform_10(%arg0: i32) -> (i32, i32) {
    %c0_i32 = arith.constant 0 : i32
    %c0_i32_0 = arith.constant 0 : i32
    %c0_i32_1 = arith.constant 0 : i32
    return %c0_i32, %c0_i32_0 : i32, i32
  }
  func.func @transform_11(%arg0: i32) -> (i32, i32) {
    %c0_i32 = arith.constant 0 : i32
    %c0_i32_0 = arith.constant 0 : i32
    %c0_i32_1 = arith.constant 0 : i32
    return %c0_i32, %c0_i32_0 : i32, i32
  }
  func.func @transform_12(%arg0: i32) -> (i32, i32) {
    %c0_i32 = arith.constant 0 : i32
    %c0_i32_0 = arith.constant 0 : i32
    %c0_i32_1 = arith.constant 0 : i32
    return %c0_i32, %c0_i32_0 : i32, i32
  }
  func.func @transform_13(%arg0: i32) -> (i32, i32) {
    %c0_i32 = arith.constant 0 : i32
    %c0_i32_0 = arith.constant 0 : i32
    %c0_i32_1 = arith.constant 0 : i32
    return %c0_i32, %c0_i32_0 : i32, i32
  }
  func.func @transform_14(%arg0: i32) -> (i32, i32) {
    %c0_i32 = arith.constant 0 : i32
    %c0_i32_0 = arith.constant 0 : i32
    %c0_i32_1 = arith.constant 0 : i32
    return %c0_i32, %c0_i32_0 : i32, i32
  }
  func.func @transform_15(%arg0: i32) -> (i32, i32) {
    %c0_i32 = arith.constant 0 : i32
    %c0_i32_0 = arith.constant 0 : i32
    %c0_i32_1 = arith.constant 0 : i32
    return %c0_i32, %c0_i32_0 : i32, i32
  }
  func.func @transform_16(%arg0: i32) -> (i32, i32) {
    %c0_i32 = arith.constant 0 : i32
    %c0_i32_0 = arith.constant 0 : i32
    %c0_i32_1 = arith.constant 0 : i32
    return %c0_i32, %c0_i32_0 : i32, i32
  }
  func.func @transform_17(%arg0: i32) -> (i32, i32) {
    %c0_i32 = arith.constant 0 : i32
    %c0_i32_0 = arith.constant 0 : i32
    return %arg0, %c0_i32 : i32, i32
  }
}

</mosaic_0001>

<bundles_post_ra>
// kernel: attention_block_forward.1
= control target key start
LH: loop header
LB: loop body
LE: loop exit
PB: predicated region body
PF: predicated region fallthrough
CT: control target
= control target key end

     0   :  { %s3165_s0 = inlined_call_operand.vmem [shape: f32[48,128], index: 0, kind: input, shape index: {}]   ;;  %s3166_s1 = inlined_call_operand.vmem [shape: f32[48,128], index: 1, kind: input, shape index: {}]   ;;  %s3167_s2 = inlined_call_operand.vmem [shape: f32[48,128], index: 2, kind: input, shape index: {}]   ;;  %s3168_s3 = inlined_call_operand.vmem [shape: f32[128,256], index: 3, kind: input, shape index: {}]   ;;  %s3169_s4 = inlined_call_operand.vmem [shape: f32[1,256], index: 4, kind: input, shape index: {}]   ;;  %s3170_s5 = inlined_call_operand.vmem [shape: f32[128,256], index: 5, kind: input, shape index: {}]   ;;  %s3171_s6 = inlined_call_operand.vmem [shape: f32[1,256], index: 6, kind: input, shape index: {}]   ;;  %s3172_s7 = inlined_call_operand.hbm [shape: f32[128,256], index: 7, kind: input, shape index: {}]   ;;  %s3173_s8 = inlined_call_operand.vmem [shape: f32[1,256], index: 8, kind: input, shape index: {}]   ;;  %s3174_s9 = inlined_call_operand.hbm [shape: f32[256,128], index: 9, kind: input, shape index: {}]   ;;  %s3175_s10 = inlined_call_operand.vmem [shape: f32[1,128], index: 10, kind: input, shape index: {}]   ;;  %s3176_s11 = inlined_call_operand.vmem [shape: f32[1,128], index: 11, kind: input, shape index: {}]   ;;  %s3177_s12 = inlined_call_operand.vmem [shape: f32[1,128], index: 12, kind: input, shape index: {}]   ;;  %s3178_s13 = inlined_call_operand.vmem [shape: f32[128,128], index: 13, kind: input, shape index: {}]   ;;  %s3179_s14 = inlined_call_operand.vmem [shape: f32[1,128], index: 14, kind: input, shape index: {}]   ;;  %s3180_s15 = inlined_call_operand.vmem [shape: f32[1,128], index: 15, kind: input, shape index: {}]   ;;  %s3181_s16 = inlined_call_operand.vmem [shape: f32[1,128], index: 16, kind: input, shape index: {}]   ;;  %s3182_s17 = inlined_call_operand.vmem [shape: f32[48,128], index: 17, kind: output, shape index: {}]  }
   0x1   :  { %3185 = sst [smem:[#allocation12_spill]] %s3165_s0 }
   0x2   :  { %3186 = sst [smem:[#allocation13_spill]] %s3166_s1 }
   0x3   :  { %22 = vsyncpa [#allocation7], 0  ;;  %s42_s26 = sshll.u32 %s3172_s7, 4  ;;  %s43_s26 = int_to_ptr.hbm [resolvable:$true] %s42_s26 }
   0x4   :  { %23 = vsyncpa [#allocation9], 0  ;;  %s2367_s27 = smov [#allocation6]   ;;  %s57_s30 = sshll.u32 %s3174_s9, 4  ;;  %s58_s30 = int_to_ptr.hbm [resolvable:$true] %s57_s30 }
   0x5   :  { %s44_s28 = sshll.u32 %s2367_s27, 4  ;;  %s2368_s18 = smov 256   ;;  %s45_s28 = int_to_ptr.vmem [resolvable:$true] %s44_s28 }
   0x6   :  { %s2369_s19 = smov 16   ;;  %s2370_s1 = smov [#allocation8]  }
   0x7   :  { %50 = dma.hbm_to_vmem [thread:$0]  %s43_s26, 4096, %s45_s28, [#allocation7], %s2368_s18, %s2368_s18, %s2369_s19  }
   0x8   :  { %s59_s20 = sshll.u32 %s2370_s1, 4  ;;  %s2371_s21 = smov 128   ;;  %s60_s20 = int_to_ptr.vmem [resolvable:$true] %s59_s20 }
   0x9   :  { %s2372_s22 = smov 8  }
   0xa   :  { %65 = dma.hbm_to_vmem [thread:$0]  %s58_s30, 4096, %s60_s20, [#allocation9], %s2371_s21, %s2371_s21, %s2372_s22  }
   0xb   :  { %2363 = dma.done.wait [#allocation7], 4096  }
   0xc   :  { %2364 = vsyncadd [#allocation7], 4294963200 }
   0xd   :  { %2365 = dma.done.wait [#allocation9], 4096  }
   0xe   :  { %2366 = vsyncadd [#allocation9], 4294963200  ;;  %v238_v0 = vld [vmem:[%s3170_s5 + $0xf0] sm:$0xff]  ;;  %v239_v1 = vld [vmem:[%s3170_s5 + $0xf8] sm:$0xff]  ;;  %s3187_s9 = sld [smem:[#allocation13_spill]]  ;;  %vm529_vm0 = vcmask 64512  }
   0xf   :  { %v236_v2 = vld [vmem:[%s3170_s5 + $0xe0] sm:$0xff]  ;;  %246 = vmatpush.msra.mxu2 %v238_v0  ;;  %281 = vmatpush.msra.mxu3 %v239_v1  ;;  %v237_v3 = vld [vmem:[%s3170_s5 + $0xe8] sm:$0xff]  ;;  %v234_v4 = vld [vmem:[%s3170_s5 + $0xd0] sm:$0xff]  ;;  %s3188_s1 = sld [smem:[#allocation12_spill]] }
  0x10   :  { %v235_v5 = vld [vmem:[%s3170_s5 + $0xd8] sm:$0xff]  ;;  %v124_v6 = vld [vmem:[%s3168_s3 + $0xf0] sm:$0xff]  ;;  %v232_v8 = vld [vmem:[%s3170_s5 + $0xc0] sm:$0xff] }
  0x11   :  { %247 = vmatpush.msra.mxu2 %v236_v2  ;;  %282 = vmatpush.msra.mxu3 %v237_v3  ;;  %v125_v7 = vld [vmem:[%s3168_s3 + $0xf8] sm:$0xff]  ;;  %v233_v9 = vld [vmem:[%s3170_s5 + $0xc8] sm:$0xff]  ;;  %v122_v10 = vld [vmem:[%s3168_s3 + $0xe0] sm:$0xff] }
  0x12   :  { %132 = vmatpush.msra.mxu0 %v124_v6  ;;  %167 = vmatpush.msra.mxu1 %v125_v7  ;;  %v230_v11 = vld [vmem:[%s3170_s5 + $0xb0] sm:$0xff]  ;;  %v123_v12 = vld [vmem:[%s3168_s3 + $0xe8] sm:$0xff]  ;;  %v231_v13 = vld [vmem:[%s3170_s5 + $0xb8] sm:$0xff] }
  0x13   :  { %248 = vmatpush.msra.mxu2 %v234_v4  ;;  %283 = vmatpush.msra.mxu3 %v235_v5  ;;  %v120_v14 = vld [vmem:[%s3168_s3 + $0xd0] sm:$0xff]  ;;  %v121_v15 = vld [vmem:[%s3168_s3 + $0xd8] sm:$0xff]  ;;  %v118_v16 = vld [vmem:[%s3168_s3 + $0xc0] sm:$0xff] }
  0x14   :  { %133 = vmatpush.msra.mxu0 %v122_v10  ;;  %168 = vmatpush.msra.mxu1 %v123_v12  ;;  %v119_v17 = vld [vmem:[%s3168_s3 + $0xc8] sm:$0xff]  ;;  %v228_v18 = vld [vmem:[%s3170_s5 + $0xa0] sm:$0xff]  ;;  %v116_v20 = vld [vmem:[%s3168_s3 + $0xb0] sm:$0xff] }
  0x15   :  { %249 = vmatpush.msra.mxu2 %v232_v8  ;;  %284 = vmatpush.msra.mxu3 %v233_v9  ;;  %v229_v19 = vld [vmem:[%s3170_s5 + $0xa8] sm:$0xff]  ;;  %v117_v21 = vld [vmem:[%s3168_s3 + $0xb8] sm:$0xff]  ;;  %v226_v22 = vld [vmem:[%s3170_s5 + $0x90] sm:$0xff] }
  0x16   :  { %134 = vmatpush.msra.mxu0 %v120_v14  ;;  %169 = vmatpush.msra.mxu1 %v121_v15  ;;  %v227_v23 = vld [vmem:[%s3170_s5 + $0x98] sm:$0xff]  ;;  %v114_v24 = vld [vmem:[%s3168_s3 + $0xa0] sm:$0xff]  ;;  %v115_v25 = vld [vmem:[%s3168_s3 + $0xa8] sm:$0xff] }
  0x17   :  { %250 = vmatpush.msra.mxu2 %v230_v11  ;;  %285 = vmatpush.msra.mxu3 %v231_v13  ;;  %v224_v26 = vld [vmem:[%s3170_s5 + $0x80] sm:$0xff]  ;;  %v225_v27 = vld [vmem:[%s3170_s5 + $0x88] sm:$0xff]  ;;  %v112_v28 = vld [vmem:[%s3168_s3 + $0x90] sm:$0xff] }
  0x18   :  { %135 = vmatpush.msra.mxu0 %v118_v16  ;;  %170 = vmatpush.msra.mxu1 %v119_v17  ;;  %v113_v29 = vld [vmem:[%s3168_s3 + $0x98] sm:$0xff]  ;;  %v222_v30 = vld [vmem:[%s3170_s5 + $0x70] sm:$0xff]  ;;  %v110_v32 = vld [vmem:[%s3168_s3 + $0x80] sm:$0xff] }
  0x19   :  { %251 = vmatpush.msra.mxu2 %v228_v18  ;;  %286 = vmatpush.msra.mxu3 %v229_v19  ;;  %v223_v31 = vld [vmem:[%s3170_s5 + $0x78] sm:$0xff]  ;;  %v111_v33 = vld [vmem:[%s3168_s3 + $0x88] sm:$0xff]  ;;  %v220_v34 = vld [vmem:[%s3170_s5 + $0x60] sm:$0xff] }
  0x1a   :  { %136 = vmatpush.msra.mxu0 %v116_v20  ;;  %171 = vmatpush.msra.mxu1 %v117_v21  ;;  %v221_v35 = vld [vmem:[%s3170_s5 + $0x68] sm:$0xff]  ;;  %v108_v36 = vld [vmem:[%s3168_s3 + $0x70] sm:$0xff]  ;;  %v109_v37 = vld [vmem:[%s3168_s3 + $0x78] sm:$0xff] }
  0x1b   :  { %252 = vmatpush.msra.mxu2 %v226_v22  ;;  %287 = vmatpush.msra.mxu3 %v227_v23  ;;  %v218_v38 = vld [vmem:[%s3170_s5 + $0x50] sm:$0xff]  ;;  %v219_v39 = vld [vmem:[%s3170_s5 + $0x58] sm:$0xff]  ;;  %v106_v40 = vld [vmem:[%s3168_s3 + $0x60] sm:$0xff] }
  0x1c   :  { %137 = vmatpush.msra.mxu0 %v114_v24  ;;  %172 = vmatpush.msra.mxu1 %v115_v25  ;;  %v107_v41 = vld [vmem:[%s3168_s3 + $0x68] sm:$0xff]  ;;  %v216_v42 = vld [vmem:[%s3170_s5 + $0x40] sm:$0xff]  ;;  %v104_v44 = vld [vmem:[%s3168_s3 + $0x50] sm:$0xff] }
  0x1d   :  { %253 = vmatpush.msra.mxu2 %v224_v26  ;;  %288 = vmatpush.msra.mxu3 %v225_v27  ;;  %v217_v43 = vld [vmem:[%s3170_s5 + $0x48] sm:$0xff]  ;;  %v105_v45 = vld [vmem:[%s3168_s3 + $0x58] sm:$0xff]  ;;  %v214_v46 = vld [vmem:[%s3170_s5 + $0x30] sm:$0xff] }
  0x1e   :  { %138 = vmatpush.msra.mxu0 %v112_v28  ;;  %173 = vmatpush.msra.mxu1 %v113_v29  ;;  %v215_v47 = vld [vmem:[%s3170_s5 + $0x38] sm:$0xff]  ;;  %v102_v48 = vld [vmem:[%s3168_s3 + $0x40] sm:$0xff]  ;;  %v103_v49 = vld [vmem:[%s3168_s3 + $0x48] sm:$0xff] }
  0x1f   :  { %254 = vmatpush.msra.mxu2 %v222_v30  ;;  %289 = vmatpush.msra.mxu3 %v223_v31  ;;  %v212_v50 = vld [vmem:[%s3170_s5 + $0x20] sm:$0xff]  ;;  %v213_v51 = vld [vmem:[%s3170_s5 + $0x28] sm:$0xff]  ;;  %v210_v52 = vld [vmem:[%s3170_s5 + $0x10] sm:$0xff] }
  0x20   :  { %139 = vmatpush.msra.mxu0 %v110_v32  ;;  %174 = vmatpush.msra.mxu1 %v111_v33  ;;  %v100_v53 = vld [vmem:[%s3168_s3 + $0x30] sm:$0xff]  ;;  %v101_v54 = vld [vmem:[%s3168_s3 + $0x38] sm:$0xff]  ;;  %v98_v56 = vld [vmem:[%s3168_s3 + $0x20] sm:$0xff] }
  0x21   :  { %255 = vmatpush.msra.mxu2 %v220_v34  ;;  %290 = vmatpush.msra.mxu3 %v221_v35  ;;  %v211_v55 = vld [vmem:[%s3170_s5 + $0x18] sm:$0xff]  ;;  %v99_v57 = vld [vmem:[%s3168_s3 + $0x28] sm:$0xff]  ;;  %v208_v58 = vld [vmem:[%s3170_s5] sm:$0xff] }
  0x22   :  { %140 = vmatpush.msra.mxu0 %v108_v36  ;;  %175 = vmatpush.msra.mxu1 %v109_v37  ;;  %v209_v59 = vld [vmem:[%s3170_s5 + $0x8] sm:$0xff]  ;;  %v202_v60 = vld [vmem:[%s3187_s9] sm:$0xff]  ;;  %v96_v61 = vld [vmem:[%s3168_s3 + $0x10] sm:$0xff] }
  0x23   :  { %256 = vmatpush.msra.mxu2 %v218_v38  ;;  %291 = vmatpush.msra.mxu3 %v219_v39  ;;  %v97_v62 = vld [vmem:[%s3168_s3 + $0x18] sm:$0xff]  ;;  %v94_v63 = vld [vmem:[%s3168_s3] sm:$0xff]  ;;  %v95_v0 = vld [vmem:[%s3168_s3 + $0x8] sm:$0xff] }
  0x24   :  { %141 = vmatpush.msra.mxu0 %v106_v40  ;;  %176 = vmatpush.msra.mxu1 %v107_v41  ;;  %v88_v1 = vld [vmem:[%s3188_s1] sm:$0xff]  ;;  %v353_v3 = vld [vmem:[#allocation6 + $0xf8] sm:$0xff]  ;;  %v350_v4 = vld [vmem:[#allocation6 + $0xe0] sm:$0xff] }
  0x25   :  { %257 = vmatpush.msra.mxu2 %v216_v42  ;;  %292 = vmatpush.msra.mxu3 %v217_v43  ;;  %v352_v2 = vld [vmem:[#allocation6 + $0xf0] sm:$0xff]  ;;  %v203_v5 = vld [vmem:[%s3187_s9 + $0x8] sm:$0xff]  ;;  %v351_v7 = vld [vmem:[#allocation6 + $0xe8] sm:$0xff] }
  0x26   :  { %142 = vmatpush.msra.mxu0 %v104_v44  ;;  %177 = vmatpush.msra.mxu1 %v105_v45  ;;  %v348_v6 = vld [vmem:[#allocation6 + $0xd0] sm:$0xff]  ;;  %v346_v8 = vld [vmem:[#allocation6 + $0xc0] sm:$0xff]  ;;  %v349_v9 = vld [vmem:[#allocation6 + $0xd8] sm:$0xff] }
  0x27   :  { %258 = vmatpush.msra.mxu2 %v214_v46  ;;  %293 = vmatpush.msra.mxu3 %v215_v47  ;;  %v89_v10 = vld [vmem:[%s3188_s1 + $0x8] sm:$0xff]  ;;  %v347_v11 = vld [vmem:[#allocation6 + $0xc8] sm:$0xff]  ;;  %v344_v12 = vld [vmem:[#allocation6 + $0xb0] sm:$0xff] }
  0x28   :  { %143 = vmatpush.msra.mxu0 %v102_v48  ;;  %178 = vmatpush.msra.mxu1 %v103_v49  ;;  %v345_v13 = vld [vmem:[#allocation6 + $0xb8] sm:$0xff]  ;;  %v204_v14 = vld [vmem:[%s3187_s9 + $0x10] sm:$0xff]  ;;  %v343_v16 = vld [vmem:[#allocation6 + $0xa8] sm:$0xff] }
  0x29   :  { %259 = vmatpush.msra.mxu2 %v212_v50  ;;  %294 = vmatpush.msra.mxu3 %v213_v51  ;;  %v342_v15 = vld [vmem:[#allocation6 + $0xa0] sm:$0xff]  ;;  %v340_v17 = vld [vmem:[#allocation6 + $0x90] sm:$0xff]  ;;  %v341_v18 = vld [vmem:[#allocation6 + $0x98] sm:$0xff] }
  0x2a   :  { %144 = vmatpush.msra.mxu0 %v100_v53  ;;  %179 = vmatpush.msra.mxu1 %v101_v54  ;;  %v90_v19 = vld [vmem:[%s3188_s1 + $0x10] sm:$0xff]  ;;  %v339_v21 = vld [vmem:[#allocation6 + $0x88] sm:$0xff]  ;;  %v336_v22 = vld [vmem:[#allocation6 + $0x70] sm:$0xff] }
  0x2b   :  { %260 = vmatpush.msra.mxu2 %v210_v52  ;;  %295 = vmatpush.msra.mxu3 %v211_v55  ;;  %v338_v20 = vld [vmem:[#allocation6 + $0x80] sm:$0xff]  ;;  %v205_v23 = vld [vmem:[%s3187_s9 + $0x18] sm:$0xff]  ;;  %v337_v24 = vld [vmem:[#allocation6 + $0x78] sm:$0xff] }
  0x2c   :  { %145 = vmatpush.msra.mxu0 %v98_v56  ;;  %180 = vmatpush.msra.mxu1 %v99_v57  ;;  %v334_v25 = vld [vmem:[#allocation6 + $0x60] sm:$0xff]  ;;  %v335_v26 = vld [vmem:[#allocation6 + $0x68] sm:$0xff]  ;;  %v332_v27 = vld [vmem:[#allocation6 + $0x50] sm:$0xff] }
  0x2d   :  { %261 = vmatpush.msra.mxu2 %v208_v58  ;;  %296 = vmatpush.msra.mxu3 %v209_v59  ;;  %v91_v28 = vld [vmem:[%s3188_s1 + $0x18] sm:$0xff]  ;;  %v330_v29 = vld [vmem:[#allocation6 + $0x40] sm:$0xff]  ;;  %v333_v30 = vld [vmem:[#allocation6 + $0x58] sm:$0xff] }
  0x2e   :  { %262 = vmatmul.f32.vlgmr.msra.gmra.mxu2 %v202_v60  ;;  %297 = vmatmul.f32.vlgmr.msra.gmra.mxu3 %v202_v60  ;;  %v328_v31 = vld [vmem:[#allocation6 + $0x30] sm:$0xff]  ;;  %v331_v32 = vld [vmem:[#allocation6 + $0x48] sm:$0xff]  ;;  %v329_v34 = vld [vmem:[#allocation6 + $0x38] sm:$0xff] }
  0x2f   :  { %146 = vmatpush.msra.mxu0 %v96_v61  ;;  %181 = vmatpush.msra.mxu1 %v97_v62  ;;  %v206_v33 = vld [vmem:[%s3187_s9 + $0x20] sm:$0xff]  ;;  %v326_v35 = vld [vmem:[#allocation6 + $0x20] sm:$0xff]  ;;  %v327_v36 = vld [vmem:[#allocation6 + $0x28] sm:$0xff] }
  0x30   :  { %2196 = vmatpush.msrb.mxu3 %v352_v2  ;;  %v92_v37 = vld [vmem:[%s3188_s1 + $0x20] sm:$0xff]  ;;  %v325_v39 = vld [vmem:[#allocation6 + $0x18] sm:$0xff]  ;;  %v322_v40 = vld [vmem:[#allocation6] sm:$0xff] }
  0x31   :  { %147 = vmatpush.msra.mxu0 %v94_v63  ;;  %182 = vmatpush.msra.mxu1 %v95_v0  ;;  %v324_v38 = vld [vmem:[#allocation6 + $0x10] sm:$0xff]  ;;  %v207_v41 = vld [vmem:[%s3187_s9 + $0x28] sm:$0xff]  ;;  %v323_v42 = vld [vmem:[#allocation6 + $0x8] sm:$0xff] }
  0x32   :  { %148 = vmatmul.f32.vlgmr.msra.gmra.mxu0 %v88_v1  ;;  %183 = vmatmul.f32.vlgmr.msra.gmra.mxu1 %v88_v1  ;;  %v93_v43 = vld [vmem:[%s3188_s1 + $0x28] sm:$0xff]  ;;  %v316_v45 = vld [vmem:[%s3167_s2] sm:$0xff]  ;;  %v318_v46 = vld [vmem:[%s3167_s2 + $0x10] sm:$0xff] }
  0x33   :  { %360 = vmatpush.msrb.mxu0 %v352_v2  ;;  %2197 = vmatpush.msrb.mxu3 %v350_v4  ;;  %v317_v44 = vld [vmem:[%s3167_s2 + $0x8] sm:$0xff]  ;;  %v319_v47 = vld [vmem:[%s3167_s2 + $0x18] sm:$0xff]  ;;  %v320_v48 = vld [vmem:[%s3167_s2 + $0x20] sm:$0xff] }
  0x34   :  { %395 = vmatpush.msrb.mxu1 %v353_v3  ;;  %v126_v49 = vld [vmem:[%s3169_s4] sm:$0x3]  ;;  %v321_v55 = vld [vmem:[%s3167_s2 + $0x28] sm:$0xff] }
  0x35   :  { %361 = vmatpush.msrb.mxu0 %v350_v4  ;;  %2198 = vmatpush.msrb.mxu3 %v348_v6  ;;  %v240_v50 = vld [vmem:[%s3171_s6] sm:$0x3]  ;;  %v2719_v51 = vperm.slane %v126_v49, 0  ;;  %v2731_v61 = vperm.slane %v126_v49, 1 }
  0x36   :  { %265 = vmatmul.f32.gmra.mxu2 %v203_v5  ;;  %300 = vmatmul.f32.gmra.mxu3 %v203_v5  ;;  %v2721_v52 = vperm.slane %v240_v50, 0  ;;  %v2728_v58 = vperm.slane %v240_v50, 1 }
  0x37   :  { %396 = vmatpush.msrb.mxu1 %v351_v7  ;;  %362 = vmatpush.msrb.mxu0 %v348_v6 }
  0x38   :  { %2199 = vmatpush.msrb.mxu3 %v346_v8 }
  0x39   :  { %397 = vmatpush.msrb.mxu1 %v349_v9  ;;  %363 = vmatpush.msrb.mxu0 %v346_v8 }
  0x3a   :  { %151 = vmatmul.f32.gmra.mxu0 %v89_v10  ;;  %186 = vmatmul.f32.gmra.mxu1 %v89_v10 }
  0x3b   :  { %2200 = vmatpush.msrb.mxu3 %v344_v12  ;;  %398 = vmatpush.msrb.mxu1 %v347_v11 }
  0x3c   :  { %364 = vmatpush.msrb.mxu0 %v344_v12 }
  0x3d   :  { %2201 = vmatpush.msrb.mxu3 %v342_v15  ;;  %399 = vmatpush.msrb.mxu1 %v345_v13 }
  0x3e   :  { %303 = vmatmul.f32.gmra.mxu3 %v204_v14  ;;  %365 = vmatpush.msrb.mxu0 %v342_v15 }
  0x3f   :  { %2202 = vmatpush.msrb.mxu3 %v340_v17  ;;  %400 = vmatpush.msrb.mxu1 %v343_v16 }
  0x40   :  { %366 = vmatpush.msrb.mxu0 %v340_v17  ;;  %268 = vmatmul.f32.gmra.mxu2 %v204_v14 }
  0x41   :  { %2203 = vmatpush.msrb.mxu3 %v338_v20  ;;  %401 = vmatpush.msrb.mxu1 %v341_v18 }
  0x42   :  { %154 = vmatmul.f32.gmra.mxu0 %v90_v19  ;;  %189 = vmatmul.f32.gmra.mxu1 %v90_v19 }
  0x43   :  { %367 = vmatpush.msrb.mxu0 %v338_v20  ;;  %2204 = vmatpush.msrb.mxu3 %v336_v22 }
  0x44   :  { %402 = vmatpush.msrb.mxu1 %v339_v21 }
  0x45   :  { %368 = vmatpush.msrb.mxu0 %v336_v22  ;;  %2205 = vmatpush.msrb.mxu3 %v334_v25 }
  0x46   :  { %306 = vmatmul.f32.gmra.mxu3 %v205_v23  ;;  %403 = vmatpush.msrb.mxu1 %v337_v24 }
  0x47   :  { %369 = vmatpush.msrb.mxu0 %v334_v25  ;;  %2206 = vmatpush.msrb.mxu3 %v332_v27 }
  0x48   :  { %404 = vmatpush.msrb.mxu1 %v335_v26  ;;  %271 = vmatmul.f32.gmra.mxu2 %v205_v23 }
  0x49   :  { %370 = vmatpush.msrb.mxu0 %v332_v27  ;;  %2207 = vmatpush.msrb.mxu3 %v330_v29 }
  0x4a   :  { %157 = vmatmul.f32.gmra.mxu0 %v91_v28  ;;  %192 = vmatmul.f32.gmra.mxu1 %v91_v28 }
  0x4b   :  { %405 = vmatpush.msrb.mxu1 %v333_v30  ;;  %371 = vmatpush.msrb.mxu0 %v330_v29  ;;  %v354_v29 = vld [vmem:[%s3173_s8] sm:$0x3] }
  0x4c   :  { %2208 = vmatpush.msrb.mxu3 %v328_v31 }
  0x4d   :  { %406 = vmatpush.msrb.mxu1 %v331_v32  ;;  %372 = vmatpush.msrb.mxu0 %v328_v31  ;;  %v2756_v31 = vperm.slane %v354_v29, 0 }
  0x4e   :  { %309 = vmatmul.f32.gmra.mxu3 %v206_v33 }
  0x4f   :  { %2209 = vmatpush.msrb.mxu3 %v326_v35  ;;  %407 = vmatpush.msrb.mxu1 %v329_v34 }
  0x50   :  { %373 = vmatpush.msrb.mxu0 %v326_v35  ;;  %274 = vmatmul.f32.gmra.mxu2 %v206_v33 }
  0x51   :  { %2210 = vmatpush.msrb.mxu3 %v324_v38  ;;  %408 = vmatpush.msrb.mxu1 %v327_v36 }
  0x52   :  { %160 = vmatmul.f32.gmra.mxu0 %v92_v37  ;;  %195 = vmatmul.f32.gmra.mxu1 %v92_v37 }
  0x53   :  { %374 = vmatpush.msrb.mxu0 %v324_v38  ;;  %2211 = vmatpush.msrb.mxu3 %v322_v40 }
  0x54   :  { %409 = vmatpush.msrb.mxu1 %v325_v39 }
  0x55   :  { %375 = vmatpush.msrb.mxu0 %v322_v40 }
  0x56   :  { %312 = vmatmul.f32.gmra.mxu3 %v207_v41  ;;  %410 = vmatpush.msrb.mxu1 %v323_v42  ;;  %v2771_v42 = vperm.slane %v354_v29, 1 }
  0x58   :  { %277 = vmatmul.f32.gmra.mxu2 %v207_v41 }
  0x5a   :  { %163 = vmatmul.f32.gmra.mxu0 %v93_v43  ;;  %198 = vmatmul.f32.gmra.mxu1 %v93_v43 }
  0x5e   :  { %379 = vmatmul.f32.vlgmr.msrb.gmra.mxu3 %v317_v44 }
  0x62   :  { %376 = vmatmul.f32.vlgmr.msrb.gmra.mxu0 %v316_v45  ;;  %411 = vmatmul.f32.vlgmr.msrb.gmra.mxu1 %v316_v45 }
  0x66   :  { %382 = vmatmul.f32.gmra.mxu3 %v318_v46 }
  0x6a   :  { %414 = vmatmul.f32.gmra.mxu1 %v317_v44 }
  0x6e   :  { %385 = vmatmul.f32.gmra.mxu3 %v319_v47 }
  0x72   :  { %417 = vmatmul.f32.gmra.mxu1 %v318_v46 }
  0x76   :  { %388 = vmatmul.f32.gmra.mxu3 %v320_v48 }
  0x7a   :  { %420 = vmatmul.f32.gmra.mxu1 %v319_v47 }
  0x7e   :  { %391 = vmatmul.f32.gmra.mxu3 %v321_v55 }
  0x82   :  { %423 = vmatmul.f32.gmra.mxu1 %v320_v48 }
  0x8a   :  { %426 = vmatmul.f32.gmra.mxu1 %v321_v55 }
  0xaf   :  { %v149_v53 = vpop.f32.mrf.mxu0  ;;  %v184_v62 = vpop.f32.mrf.mxu1 }
  0xb0   :  { %v150_v54 = vadd.f32 %v149_v53, %v2719_v51  ;;  %v185_v0 = vadd.f32 %v184_v62, %v2731_v61 }
  0xb1   :  { %v263_v56 = vpop.f32.mrf.mxu2  ;;  %v298_v59 = vpop.f32.mrf.mxu3 }
  0xb2   :  { %v264_v57 = vadd.f32 %v263_v56, %v2721_v52  ;;  %430 = vst [vmem:[#allocation2] sm:$0x1] %v150_v54  ;;  %v299_v60 = vadd.f32 %v298_v59, %v2728_v58 }
  0xb3   :  { %436 = vst [vmem:[#allocation2 + $0x1] sm:$0x2] %v150_v54 }
  0xb4   :  { %431 = vst [vmem:[#allocation3] sm:$0x1] %v264_v57 }
  0xb5   :  { %437 = vst [vmem:[#allocation3 + $0x1] sm:$0x2] %v264_v57 }
  0xb6   :  { %443 = vst [vmem:[#allocation3 + $0x2] sm:$0x4] %v264_v57 }
  0xb7   :  { %449 = vst [vmem:[#allocation3 + $0x3] sm:$0x8] %v264_v57  ;;  %v152_v7 = vpop.f32.mrf.mxu0  ;;  %v187_v10 = vpop.f32.mrf.mxu1 }
  0xb8   :  { %457 = vst [vmem:[#allocation3 + $0x4] sm:$0x10] %v264_v57  ;;  %v153_v9 = vadd.f32 %v152_v7, %v2719_v51  ;;  %v188_v12 = vadd.f32 %v187_v10, %v2731_v61 }
  0xb9   :  { %464 = vst [vmem:[#allocation3 + $0x5] sm:$0x20] %v264_v57  ;;  %v266_v2 = vpop.f32.mrf.mxu2  ;;  %v301_v4 = vpop.f32.mrf.mxu3 }
  0xba   :  { %470 = vst [vmem:[#allocation3 + $0x6] sm:$0x40] %v264_v57  ;;  %v267_v3 = vadd.f32 %v266_v2, %v2721_v52  ;;  %v302_v6 = vadd.f32 %v301_v4, %v2728_v58 }
  0xbb   :  { %476 = vst [vmem:[#allocation3 + $0x7] sm:$0x80] %v264_v57 }
  0xbc   :  { %434 = vst [vmem:[#allocation3 + $0x1] sm:$0x1] %v299_v60 }
  0xbd   :  { %440 = vst [vmem:[#allocation3 + $0x2] sm:$0x2] %v299_v60 }
  0xbe   :  { %446 = vst [vmem:[#allocation3 + $0x3] sm:$0x4] %v299_v60 }
  0xbf   :  { %452 = vst [vmem:[#allocation3 + $0x4] sm:$0x8] %v299_v60  ;;  %v155_v13 = vpop.f32.mrf.mxu0  ;;  %v190_v20 = vpop.f32.mrf.mxu1 }
  0xc0   :  { %461 = vst [vmem:[#allocation3 + $0x5] sm:$0x10] %v299_v60  ;;  %v156_v16 = vadd.f32 %v155_v13, %v2719_v51  ;;  %v191_v21 = vadd.f32 %v190_v20, %v2731_v61 }
  0xc1   :  { %467 = vst [vmem:[#allocation3 + $0x6] sm:$0x20] %v299_v60  ;;  %v304_v14 = vpop.f32.mrf.mxu3 }
  0xc2   :  { %473 = vst [vmem:[#allocation3 + $0x7] sm:$0x40] %v299_v60  ;;  %v305_v15 = vadd.f32 %v304_v14, %v2728_v58 }
  0xc3   :  { %479 = vst [vmem:[#allocation3 + $0x8] sm:$0x80] %v299_v60  ;;  %v269_v46 = vpop.f32.mrf.mxu2 }
  0xc4   :  { %442 = vst [vmem:[#allocation2 + $0x2] sm:$0x4] %v150_v54  ;;  %v270_v48 = vadd.f32 %v269_v46, %v2721_v52 }
  0xc5   :  { %448 = vst [vmem:[#allocation2 + $0x3] sm:$0x8] %v150_v54 }
  0xc6   :  { %v483_v63 = vld [vmem:[#allocation3] sm:$0xff]  ;;  %455 = vst [vmem:[#allocation2 + $0x4] sm:$0x10] %v150_v54 }
  0xc7   :  { %463 = vst [vmem:[#allocation2 + $0x5] sm:$0x20] %v150_v54  ;;  %502 = vmatpush.xpose.msra.mxu3 %v483_v63  ;;  %v158_v18 = vpop.f32.mrf.mxu0  ;;  %v193_v28 = vpop.f32.mrf.mxu1 }
  0xc8   :  { %469 = vst [vmem:[#allocation2 + $0x6] sm:$0x40] %v150_v54  ;;  %v159_v25 = vadd.f32 %v158_v18, %v2719_v51  ;;  %v194_v30 = vadd.f32 %v193_v28, %v2731_v61 }
  0xc9   :  { %475 = vst [vmem:[#allocation2 + $0x7] sm:$0x80] %v150_v54  ;;  %v2759_v35 = vpop.f32.mrf.mxu3 }
  0xca   :  { %v484_v1 = vld [vmem:[#allocation3 + $0x8] sm:$0xff]  ;;  %433 = vst [vmem:[#allocation2 + $0x1] sm:$0x1] %v185_v0  ;;  %v308_v60 = vadd.f32 %v2759_v35, %v2728_v58 }
  0xcb   :  { %439 = vst [vmem:[#allocation2 + $0x2] sm:$0x2] %v185_v0  ;;  %522 = vmatpush.xpose.msrb.mxu3 %v484_v1  ;;  %v272_v2 = vpop.f32.mrf.mxu2 }
  0xcc   :  { %445 = vst [vmem:[#allocation2 + $0x3] sm:$0x4] %v185_v0  ;;  %v273_v4 = vadd.f32 %v272_v2, %v2721_v52 }
  0xcd   :  { %451 = vst [vmem:[#allocation2 + $0x4] sm:$0x8] %v185_v0 }
  0xce   :  { %460 = vst [vmem:[#allocation2 + $0x5] sm:$0x10] %v185_v0 }
  0xcf   :  { %466 = vst [vmem:[#allocation2 + $0x6] sm:$0x20] %v185_v0  ;;  %v161_v22 = vpop.f32.mrf.mxu0  ;;  %v196_v34 = vpop.f32.mrf.mxu1 }
  0xd0   :  { %472 = vst [vmem:[#allocation2 + $0x7] sm:$0x40] %v185_v0  ;;  %v162_v36 = vadd.f32 %v161_v22, %v2719_v51  ;;  %v197_v39 = vadd.f32 %v196_v34, %v2731_v61 }
  0xd1   :  { %478 = vst [vmem:[#allocation2 + $0x8] sm:$0x80] %v185_v0  ;;  %v2769_v41 = vpop.f32.mrf.mxu3 }
  0xd2   :  { %645 = vst [vmem:[#allocation3] sm:$0x1] %v267_v3  ;;  %v311_v7 = vadd.f32 %v2769_v41, %v2728_v58 }
  0xd3   :  { %651 = vst [vmem:[#allocation3 + $0x1] sm:$0x2] %v267_v3 }
  0xd4   :  { %v481_v5 = vld [vmem:[#allocation2] sm:$0xff]  ;;  %657 = vst [vmem:[#allocation3 + $0x2] sm:$0x4] %v267_v3 }
  0xd5   :  { %663 = vst [vmem:[#allocation3 + $0x3] sm:$0x8] %v267_v3  ;;  %503 = vmatmul.f32.vlgmr.msra.gmra.mxu3 %v481_v5 }
  0xd6   :  { %669 = vst [vmem:[#allocation3 + $0x4] sm:$0x10] %v267_v3 }
  0xd7   :  { %675 = vst [vmem:[#allocation3 + $0x5] sm:$0x20] %v267_v3  ;;  %v2748_v26 = vpop.f32.mrf.mxu0  ;;  %v2767_v40 = vpop.f32.mrf.mxu1 }
  0xd8   :  { %681 = vst [vmem:[#allocation3 + $0x6] sm:$0x40] %v267_v3  ;;  %v482_v8 = vld [vmem:[#allocation2 + $0x8] sm:$0xff] }
  0xd9   :  { %687 = vst [vmem:[#allocation3 + $0x7] sm:$0x80] %v267_v3  ;;  %v2773_v44 = vpop.f32.mrf.mxu3 }
  0xda   :  { %648 = vst [vmem:[#allocation3 + $0x1] sm:$0x1] %v302_v6  ;;  %v2816_v28 = vadd.f32 %v2773_v44, %v2728_v58 }
  0xdb   :  { %654 = vst [vmem:[#allocation3 + $0x2] sm:$0x2] %v302_v6 }
  0xdc   :  { %660 = vst [vmem:[#allocation3 + $0x3] sm:$0x4] %v302_v6 }
  0xdd   :  { %666 = vst [vmem:[#allocation3 + $0x4] sm:$0x8] %v302_v6  ;;  %523 = vmatmul.f32.vlgmr.msrb.gmra.mxu3 %v482_v8 }
  0xde   :  { %672 = vst [vmem:[#allocation3 + $0x5] sm:$0x10] %v302_v6 }
  0xdf   :  { %678 = vst [vmem:[#allocation3 + $0x6] sm:$0x20] %v302_v6  ;;  %v377_v32 = vpop.f32.mrf.mxu0  ;;  %v412_v43 = vpop.f32.mrf.mxu1 }
  0xe0   :  { %684 = vst [vmem:[#allocation3 + $0x7] sm:$0x40] %v302_v6  ;;  %v378_v33 = vadd.f32 %v377_v32, %v2756_v31  ;;  %v413_v45 = vadd.f32 %v412_v43, %v2771_v42 }
  0xe1   :  { %690 = vst [vmem:[#allocation3 + $0x8] sm:$0x80] %v302_v6  ;;  %v380_v47 = vpop.f32.mrf.mxu3  ;;  %v275_v6 = vpop.f32.mrf.mxu2 }
  0xe2   :  { %644 = vst [vmem:[#allocation2] sm:$0x1] %v153_v9  ;;  %v381_v49 = vadd.f32 %v380_v47, %v2756_v31  ;;  %v276_v13 = vadd.f32 %v275_v6, %v2721_v52 }
  0xe3   :  { %650 = vst [vmem:[#allocation2 + $0x1] sm:$0x2] %v153_v9 }
  0xe4   :  { %v694_v11 = vld [vmem:[#allocation3] sm:$0xff]  ;;  %656 = vst [vmem:[#allocation2 + $0x2] sm:$0x4] %v153_v9 }
  0xe5   :  { %662 = vst [vmem:[#allocation2 + $0x3] sm:$0x8] %v153_v9  ;;  %713 = vmatpush.xpose.msrb.mxu2 %v694_v11 }
  0xe6   :  { %668 = vst [vmem:[#allocation2 + $0x4] sm:$0x10] %v153_v9 }
  0xe7   :  { %674 = vst [vmem:[#allocation2 + $0x5] sm:$0x20] %v153_v9  ;;  %v415_v53 = vpop.f32.mrf.mxu1 }
  0xe8   :  { %680 = vst [vmem:[#allocation2 + $0x6] sm:$0x40] %v153_v9  ;;  %v2743_v23 = vld [vmem:[#allocation3 + $0x8] sm:$0xff]  ;;  %v416_v55 = vadd.f32 %v415_v53, %v2771_v42 }
  0xe9   :  { %686 = vst [vmem:[#allocation2 + $0x7] sm:$0x80] %v153_v9  ;;  %v383_v56 = vpop.f32.mrf.mxu3  ;;  %v278_v11 = vpop.f32.mrf.mxu2 }
  0xea   :  { %647 = vst [vmem:[#allocation2 + $0x1] sm:$0x1] %v188_v12  ;;  %v384_v57 = vadd.f32 %v383_v56, %v2756_v31 }
  0xeb   :  { %653 = vst [vmem:[#allocation2 + $0x2] sm:$0x2] %v188_v12 }
  0xec   :  { %659 = vst [vmem:[#allocation2 + $0x3] sm:$0x4] %v188_v12 }
  0xed   :  { %665 = vst [vmem:[#allocation2 + $0x4] sm:$0x8] %v188_v12 }
  0xee   :  { %671 = vst [vmem:[#allocation2 + $0x5] sm:$0x10] %v188_v12 }
  0xef   :  { %677 = vst [vmem:[#allocation2 + $0x6] sm:$0x20] %v188_v12 }
  0xf0   :  { %683 = vst [vmem:[#allocation2 + $0x7] sm:$0x40] %v188_v12 }
  0xf1   :  { %689 = vst [vmem:[#allocation2 + $0x8] sm:$0x80] %v188_v12  ;;  %v2783_v63 = vpop.f32.mrf.mxu3 }
  0xf2   :  { %858 = vst [vmem:[#allocation3 + $0x1] sm:$0x1] %v305_v15 }
  0xf3   :  { %864 = vst [vmem:[#allocation3 + $0x2] sm:$0x2] %v305_v15 }
  0xf4   :  { %v692_v17 = vld [vmem:[#allocation2] sm:$0xff]  ;;  %870 = vst [vmem:[#allocation3 + $0x3] sm:$0x4] %v305_v15 }
  0xf5   :  { %714 = vmatmul.f32.vlgmr.msrb.gmra.mxu2 %v692_v17  ;;  %854 = vst [vmem:[#allocation2] sm:$0x1] %v156_v16 }
  0xf6   :  { %860 = vst [vmem:[#allocation2 + $0x1] sm:$0x2] %v156_v16 }
  0xf7   :  { %866 = vst [vmem:[#allocation2 + $0x2] sm:$0x4] %v156_v16 }
  0xf8   :  { %v2740_v19 = vld [vmem:[#allocation2 + $0x8] sm:$0xff]  ;;  %872 = vst [vmem:[#allocation2 + $0x3] sm:$0x8] %v156_v16 }
  0xf9   :  { %878 = vst [vmem:[#allocation2 + $0x4] sm:$0x10] %v156_v16  ;;  %v2789_v3 = vpop.f32.mrf.mxu3 }
  0xfa   :  { %884 = vst [vmem:[#allocation2 + $0x5] sm:$0x20] %v156_v16 }
  0xfb   :  { %890 = vst [vmem:[#allocation2 + $0x6] sm:$0x40] %v156_v16 }
  0xfc   :  { %896 = vst [vmem:[#allocation2 + $0x7] sm:$0x80] %v156_v16 }
  0xfd   :  { %857 = vst [vmem:[#allocation2 + $0x1] sm:$0x1] %v191_v21 }
  0xfe   :  { %863 = vst [vmem:[#allocation2 + $0x2] sm:$0x2] %v191_v21 }
  0xff   :  { %869 = vst [vmem:[#allocation2 + $0x3] sm:$0x4] %v191_v21 }
 0x100   :  { %875 = vst [vmem:[#allocation2 + $0x4] sm:$0x8] %v191_v21 }
 0x101   :  { %881 = vst [vmem:[#allocation2 + $0x5] sm:$0x10] %v191_v21  ;;  %v2792_v5 = vpop.f32.mrf.mxu3 }
 0x102   :  { %887 = vst [vmem:[#allocation2 + $0x6] sm:$0x20] %v191_v21 }
 0x103   :  { %893 = vst [vmem:[#allocation2 + $0x7] sm:$0x40] %v191_v21 }
 0x104   :  { %899 = vst [vmem:[#allocation2 + $0x8] sm:$0x80] %v191_v21 }
 0x105   :  { %876 = vst [vmem:[#allocation3 + $0x4] sm:$0x8] %v305_v15 }
 0x106   :  { %882 = vst [vmem:[#allocation3 + $0x5] sm:$0x10] %v305_v15 }
 0x107   :  { %v2745_v24 = vld [vmem:[#allocation2] sm:$0xff]  ;;  %888 = vst [vmem:[#allocation3 + $0x6] sm:$0x20] %v305_v15 }
 0x108   :  { %894 = vst [vmem:[#allocation3 + $0x7] sm:$0x40] %v305_v15 }
 0x109   :  { %900 = vst [vmem:[#allocation3 + $0x8] sm:$0x80] %v305_v15  ;;  %v418_v15 = vpop.f32.mrf.mxu1 }
 0x10a   :  { %1064 = vst [vmem:[#allocation2] sm:$0x1] %v159_v25  ;;  %v419_v20 = vadd.f32 %v418_v15, %v2771_v42 }
 0x10b   :  { %v2750_v27 = vld [vmem:[#allocation2 + $0x8] sm:$0xff]  ;;  %1070 = vst [vmem:[#allocation2 + $0x1] sm:$0x2] %v159_v25 }
 0x10c   :  { %1076 = vst [vmem:[#allocation2 + $0x2] sm:$0x4] %v159_v25 }
 0x10d   :  { %1082 = vst [vmem:[#allocation2 + $0x3] sm:$0x8] %v159_v25 }
 0x10e   :  { %1088 = vst [vmem:[#allocation2 + $0x4] sm:$0x10] %v159_v25 }
 0x10f   :  { %1094 = vst [vmem:[#allocation2 + $0x5] sm:$0x20] %v159_v25 }
 0x110   :  { %1100 = vst [vmem:[#allocation2 + $0x6] sm:$0x40] %v159_v25 }
 0x111   :  { %1106 = vst [vmem:[#allocation2 + $0x7] sm:$0x80] %v159_v25  ;;  %v2812_v25 = vadd.f32 %v278_v11, %v2721_v52  ;;  %v387_v52 = vadd.f32 %v2783_v63, %v2756_v31 }
 0x112   :  { %1067 = vst [vmem:[#allocation2 + $0x1] sm:$0x1] %v194_v30 }
 0x113   :  { %1073 = vst [vmem:[#allocation2 + $0x2] sm:$0x2] %v194_v30 }
 0x114   :  { %1079 = vst [vmem:[#allocation2 + $0x3] sm:$0x4] %v194_v30 }
 0x115   :  { %1085 = vst [vmem:[#allocation2 + $0x4] sm:$0x8] %v194_v30 }
 0x116   :  { %1091 = vst [vmem:[#allocation2 + $0x5] sm:$0x10] %v194_v30 }
 0x117   :  { %1097 = vst [vmem:[#allocation2 + $0x6] sm:$0x20] %v194_v30 }
 0x118   :  { %1103 = vst [vmem:[#allocation2 + $0x7] sm:$0x40] %v194_v30 }
 0x119   :  { %1109 = vst [vmem:[#allocation2 + $0x8] sm:$0x80] %v194_v30  ;;  %v421_v30 = vpop.f32.mrf.mxu1 }
 0x11a   :  { %432 = vst [vmem:[#allocation4] sm:$0x1] %v378_v33  ;;  %v422_v32 = vadd.f32 %v421_v30, %v2771_v42 }
 0x11b   :  { %438 = vst [vmem:[#allocation4 + $0x1] sm:$0x2] %v378_v33 }
 0x11c   :  { %v2762_v37 = vld [vmem:[#allocation2] sm:$0xff]  ;;  %444 = vst [vmem:[#allocation4 + $0x2] sm:$0x4] %v378_v33 }
 0x11d   :  { %1274 = vst [vmem:[#allocation2] sm:$0x1] %v162_v36 }
 0x11e   :  { %1280 = vst [vmem:[#allocation2 + $0x1] sm:$0x2] %v162_v36 }
 0x11f   :  { %1286 = vst [vmem:[#allocation2 + $0x2] sm:$0x4] %v162_v36 }
 0x120   :  { %v2764_v38 = vld [vmem:[#allocation2 + $0x8] sm:$0xff]  ;;  %1292 = vst [vmem:[#allocation2 + $0x3] sm:$0x8] %v162_v36 }
 0x121   :  { %1298 = vst [vmem:[#allocation2 + $0x4] sm:$0x10] %v162_v36 }
 0x122   :  { %1304 = vst [vmem:[#allocation2 + $0x5] sm:$0x20] %v162_v36 }
 0x123   :  { %1310 = vst [vmem:[#allocation2 + $0x6] sm:$0x40] %v162_v36 }
 0x124   :  { %1316 = vst [vmem:[#allocation2 + $0x7] sm:$0x80] %v162_v36  ;;  %v390_v36 = vadd.f32 %v2789_v3, %v2756_v31 }
 0x125   :  { %1277 = vst [vmem:[#allocation2 + $0x1] sm:$0x1] %v197_v39 }
 0x126   :  { %1283 = vst [vmem:[#allocation2 + $0x2] sm:$0x2] %v197_v39 }
 0x127   :  { %1289 = vst [vmem:[#allocation2 + $0x3] sm:$0x4] %v197_v39 }
 0x128   :  { %1295 = vst [vmem:[#allocation2 + $0x4] sm:$0x8] %v197_v39 }
 0x129   :  { %1301 = vst [vmem:[#allocation2 + $0x5] sm:$0x10] %v197_v39 }
 0x12a   :  { %1307 = vst [vmem:[#allocation2 + $0x6] sm:$0x20] %v197_v39 }
 0x12b   :  { %1313 = vst [vmem:[#allocation2 + $0x7] sm:$0x40] %v197_v39 }
 0x12c   :  { %1319 = vst [vmem:[#allocation2 + $0x8] sm:$0x80] %v197_v39  ;;  %v424_v39 = vpop.f32.mrf.mxu1 }
 0x12d   :  { %450 = vst [vmem:[#allocation4 + $0x3] sm:$0x8] %v378_v33  ;;  %v425_v43 = vadd.f32 %v424_v39, %v2771_v42 }
 0x12e   :  { %459 = vst [vmem:[#allocation4 + $0x4] sm:$0x10] %v378_v33 }
 0x12f   :  { %465 = vst [vmem:[#allocation4 + $0x5] sm:$0x20] %v378_v33  ;;  %v2873_v6 = vld [vmem:[#allocation2] sm:$0xff] }
 0x130   :  { %471 = vst [vmem:[#allocation4 + $0x6] sm:$0x40] %v378_v33 }
 0x131   :  { %477 = vst [vmem:[#allocation4 + $0x7] sm:$0x80] %v378_v33 }
 0x132   :  { %435 = vst [vmem:[#allocation4 + $0x1] sm:$0x1] %v413_v45 }
 0x133   :  { %441 = vst [vmem:[#allocation4 + $0x2] sm:$0x2] %v413_v45  ;;  %v1323_v63 = vld [vmem:[#allocation2 + $0x8] sm:$0xff] }
 0x134   :  { %447 = vst [vmem:[#allocation4 + $0x3] sm:$0x4] %v413_v45  ;;  %v427_v44 = vpop.f32.mrf.mxu1 }
 0x135   :  { %453 = vst [vmem:[#allocation4 + $0x4] sm:$0x8] %v413_v45  ;;  %v428_v46 = vadd.f32 %v427_v44, %v2771_v42 }
 0x136   :  { %462 = vst [vmem:[#allocation4 + $0x5] sm:$0x10] %v413_v45 }
 0x137   :  { %468 = vst [vmem:[#allocation4 + $0x6] sm:$0x20] %v413_v45 }
 0x138   :  { %474 = vst [vmem:[#allocation4 + $0x7] sm:$0x40] %v413_v45 }
 0x139   :  { %480 = vst [vmem:[#allocation4 + $0x8] sm:$0x80] %v413_v45  ;;  %v393_v45 = vadd.f32 %v2792_v5, %v2756_v31 }
 0x13a   :  { %855 = vst [vmem:[#allocation3] sm:$0x1] %v270_v48 }
 0x13b   :  { %861 = vst [vmem:[#allocation3 + $0x1] sm:$0x2] %v270_v48 }
 0x13c   :  { %v485_v50 = vld [vmem:[#allocation4] sm:$0xff]  ;;  %867 = vst [vmem:[#allocation3 + $0x2] sm:$0x4] %v270_v48 }
 0x13d   :  { %646 = vst [vmem:[#allocation4] sm:$0x1] %v381_v49  ;;  %570 = vmatpush.msra.mxu0 %v485_v50 }
 0x13e   :  { %652 = vst [vmem:[#allocation4 + $0x1] sm:$0x2] %v381_v49 }
 0x13f   :  { %658 = vst [vmem:[#allocation4 + $0x2] sm:$0x4] %v381_v49 }
 0x140   :  { %v486_v54 = vld [vmem:[#allocation4 + $0x8] sm:$0xff]  ;;  %664 = vst [vmem:[#allocation4 + $0x3] sm:$0x8] %v381_v49 }
 0x141   :  { %670 = vst [vmem:[#allocation4 + $0x4] sm:$0x10] %v381_v49  ;;  %593 = vmatpush.msra.mxu3 %v486_v54 }
 0x142   :  { %676 = vst [vmem:[#allocation4 + $0x5] sm:$0x20] %v381_v49 }
 0x143   :  { %733 = vmatpush.xpose.msrb.mxu3 %v2743_v23  ;;  %682 = vst [vmem:[#allocation4 + $0x6] sm:$0x40] %v381_v49 }
 0x144   :  { %688 = vst [vmem:[#allocation4 + $0x7] sm:$0x80] %v381_v49 }
 0x145   :  { %649 = vst [vmem:[#allocation4 + $0x1] sm:$0x1] %v416_v55 }
 0x146   :  { %655 = vst [vmem:[#allocation4 + $0x2] sm:$0x2] %v416_v55 }
 0x147   :  { %661 = vst [vmem:[#allocation4 + $0x3] sm:$0x4] %v416_v55 }
 0x148   :  { %667 = vst [vmem:[#allocation4 + $0x4] sm:$0x8] %v416_v55 }
 0x149   :  { %673 = vst [vmem:[#allocation4 + $0x5] sm:$0x10] %v416_v55 }
 0x14a   :  { %679 = vst [vmem:[#allocation4 + $0x6] sm:$0x20] %v416_v55 }
 0x14b   :  { %685 = vst [vmem:[#allocation4 + $0x7] sm:$0x40] %v416_v55 }
 0x14c   :  { %691 = vst [vmem:[#allocation4 + $0x8] sm:$0x80] %v416_v55 }
 0x14d   :  { %873 = vst [vmem:[#allocation3 + $0x3] sm:$0x8] %v270_v48 }
 0x14e   :  { %879 = vst [vmem:[#allocation3 + $0x4] sm:$0x10] %v270_v48 }
 0x14f   :  { %v696_v59 = vld [vmem:[#allocation4] sm:$0xff]  ;;  %885 = vst [vmem:[#allocation3 + $0x5] sm:$0x20] %v270_v48 }
 0x150   :  { %891 = vst [vmem:[#allocation3 + $0x6] sm:$0x40] %v270_v48  ;;  %780 = vmatpush.msra.mxu2 %v696_v59 }
 0x151   :  { %897 = vst [vmem:[#allocation3 + $0x7] sm:$0x80] %v270_v48 }
 0x152   :  { %856 = vst [vmem:[#allocation4] sm:$0x1] %v384_v57 }
 0x153   :  { %862 = vst [vmem:[#allocation4 + $0x1] sm:$0x2] %v384_v57  ;;  %v2787_v1 = vld [vmem:[#allocation4 + $0x8] sm:$0xff] }
 0x154   :  { %v904_v62 = vld [vmem:[#allocation3] sm:$0xff]  ;;  %868 = vst [vmem:[#allocation4 + $0x2] sm:$0x4] %v384_v57 }
 0x155   :  { %1068 = vst [vmem:[#allocation3 + $0x1] sm:$0x1] %v308_v60  ;;  %923 = vmatpush.xpose.msrb.mxu2 %v904_v62  ;;  %v200_v62 = vadd.f32 %v2767_v40, %v2731_v61 }
 0x156   :  { %1074 = vst [vmem:[#allocation3 + $0x2] sm:$0x2] %v308_v60 }
 0x157   :  { %1080 = vst [vmem:[#allocation3 + $0x3] sm:$0x4] %v308_v60 }
 0x158   :  { %v2785_v0 = vld [vmem:[#allocation3 + $0x8] sm:$0xff]  ;;  %1086 = vst [vmem:[#allocation3 + $0x4] sm:$0x8] %v308_v60  ;;  %v504_v9 = vpop.f32.mrf.mxu3 }
 0x159   :  { %1092 = vst [vmem:[#allocation3 + $0x5] sm:$0x10] %v308_v60  ;;  %v2796_v12 = vmul.f32 0.088388346, %v504_v9 }
 0x15a   :  { %1098 = vst [vmem:[#allocation3 + $0x6] sm:$0x20] %v308_v60 }
 0x15b   :  { %1104 = vst [vmem:[#allocation3 + $0x7] sm:$0x40] %v308_v60  ;;  %v530_v14 = vsel %vm529_vm0, %v2796_v12, -inf }
 0x15c   :  { %1110 = vst [vmem:[#allocation3 + $0x8] sm:$0x80] %v308_v60  ;;  %531 = vmax.xlane.f32.xlu2 %v530_v14  ;;  %v165_v60 = vadd.f32 %v2748_v26, %v2719_v51 }
 0x15d   :  { %874 = vst [vmem:[#allocation4 + $0x3] sm:$0x8] %v384_v57 }
 0x15e   :  { %880 = vst [vmem:[#allocation4 + $0x4] sm:$0x10] %v384_v57 }
 0x15f   :  { %886 = vst [vmem:[#allocation4 + $0x5] sm:$0x20] %v384_v57 }
 0x160   :  { %892 = vst [vmem:[#allocation4 + $0x6] sm:$0x40] %v384_v57  ;;  %v524_v16 = vpop.f32.mrf.mxu3 }
 0x161   :  { %898 = vst [vmem:[#allocation4 + $0x7] sm:$0x80] %v384_v57  ;;  %v2802_v17 = vmul.f32 0.088388346, %v524_v16 }
 0x162   :  { %1065 = vst [vmem:[#allocation3] sm:$0x1] %v273_v4 }
 0x163   :  { %1071 = vst [vmem:[#allocation3 + $0x1] sm:$0x2] %v273_v4  ;;  %v533_v22 = vsel %vm529_vm0, %v2802_v17, -inf }
 0x164   :  { %1077 = vst [vmem:[#allocation3 + $0x2] sm:$0x4] %v273_v4  ;;  %534 = vmax.xlane.f32.xlu0 %v533_v22 }
 0x165   :  { %1083 = vst [vmem:[#allocation3 + $0x3] sm:$0x8] %v273_v4 }
 0x166   :  { %1089 = vst [vmem:[#allocation3 + $0x4] sm:$0x10] %v273_v4 }
 0x167   :  { %1095 = vst [vmem:[#allocation3 + $0x5] sm:$0x20] %v273_v4 }
 0x168   :  { %1101 = vst [vmem:[#allocation3 + $0x6] sm:$0x40] %v273_v4 }
 0x169   :  { %1107 = vst [vmem:[#allocation3 + $0x7] sm:$0x80] %v273_v4 }
 0x16a   :  { %859 = vst [vmem:[#allocation4 + $0x1] sm:$0x1] %v419_v20 }
 0x16b   :  { %865 = vst [vmem:[#allocation4 + $0x2] sm:$0x2] %v419_v20 }
 0x16c   :  { %v1114_v8 = vld [vmem:[#allocation3] sm:$0xff]  ;;  %871 = vst [vmem:[#allocation4 + $0x3] sm:$0x4] %v419_v20 }
 0x16d   :  { %1278 = vst [vmem:[#allocation3 + $0x1] sm:$0x1] %v311_v7  ;;  %1133 = vmatpush.xpose.msrb.mxu0 %v1114_v8 }
 0x16e   :  { %1284 = vst [vmem:[#allocation3 + $0x2] sm:$0x2] %v311_v7 }
 0x16f   :  { %1290 = vst [vmem:[#allocation3 + $0x3] sm:$0x4] %v311_v7 }
 0x170   :  { %v1115_v10 = vld [vmem:[#allocation3 + $0x8] sm:$0xff]  ;;  %1296 = vst [vmem:[#allocation3 + $0x4] sm:$0x8] %v311_v7 }
 0x171   :  { %1302 = vst [vmem:[#allocation3 + $0x5] sm:$0x10] %v311_v7  ;;  %1153 = vmatpush.xpose.msra.mxu1 %v1115_v10 }
 0x172   :  { %1308 = vst [vmem:[#allocation3 + $0x6] sm:$0x20] %v311_v7 }
 0x173   :  { %1314 = vst [vmem:[#allocation3 + $0x7] sm:$0x40] %v311_v7 }
 0x174   :  { %1320 = vst [vmem:[#allocation3 + $0x8] sm:$0x80] %v311_v7  ;;  %1154 = vmatmul.f32.vlgmr.msra.gmra.mxu1 %v2764_v38 }
 0x175   :  { %1275 = vst [vmem:[#allocation3] sm:$0x1] %v276_v13 }
 0x176   :  { %1281 = vst [vmem:[#allocation3 + $0x1] sm:$0x2] %v276_v13 }
 0x177   :  { %1287 = vst [vmem:[#allocation3 + $0x2] sm:$0x4] %v276_v13 }
 0x178   :  { %1293 = vst [vmem:[#allocation3 + $0x3] sm:$0x8] %v276_v13  ;;  %v715_v18 = vpop.f32.mrf.mxu2 }
 0x179   :  { %1299 = vst [vmem:[#allocation3 + $0x4] sm:$0x10] %v276_v13  ;;  %v2805_v21 = vmul.f32 0.088388346, %v715_v18 }
 0x17a   :  { %1305 = vst [vmem:[#allocation3 + $0x5] sm:$0x20] %v276_v13 }
 0x17b   :  { %1311 = vst [vmem:[#allocation3 + $0x6] sm:$0x40] %v276_v13  ;;  %v740_v23 = vsel %vm529_vm0, %v2805_v21, -inf }
 0x17c   :  { %1317 = vst [vmem:[#allocation3 + $0x7] sm:$0x80] %v276_v13  ;;  %741 = vmax.xlane.f32.xlu1 %v740_v23 }
 0x17d   :  { %877 = vst [vmem:[#allocation4 + $0x4] sm:$0x8] %v419_v20 }
 0x17e   :  { %883 = vst [vmem:[#allocation4 + $0x5] sm:$0x10] %v419_v20 }
 0x17f   :  { %889 = vst [vmem:[#allocation4 + $0x6] sm:$0x20] %v419_v20  ;;  %v2833_v35 = vld [vmem:[#allocation3] sm:$0xff] }
 0x180   :  { %895 = vst [vmem:[#allocation4 + $0x7] sm:$0x40] %v419_v20 }
 0x181   :  { %901 = vst [vmem:[#allocation4 + $0x8] sm:$0x80] %v419_v20 }
 0x182   :  { %1485 = vst [vmem:[#allocation3] sm:$0x1] %v2812_v25 }
 0x183   :  { %v1325_v29 = vld [vmem:[#allocation3 + $0x8] sm:$0xff]  ;;  %1488 = vst [vmem:[#allocation3 + $0x1] sm:$0x1] %v2816_v28 }
 0x184   :  { %1363 = vmatpush.xpose.msrb.mxu1 %v1325_v29  ;;  %1509 = vst [vmem:[#allocation3 + $0x4] sm:$0x10] %v2812_v25  ;;  %v2827_v58 = vld [vmem:[#allocation4] sm:$0xff] }
 0x185   :  { %1512 = vst [vmem:[#allocation3 + $0x5] sm:$0x10] %v2816_v28 }
 0x186   :  { %1515 = vst [vmem:[#allocation3 + $0x5] sm:$0x20] %v2812_v25 }
 0x187   :  { %1518 = vst [vmem:[#allocation3 + $0x6] sm:$0x20] %v2816_v28  ;;  %1364 = vmatmul.f32.vlgmr.msrb.gmra.mxu1 %v1323_v63  ;;  %v1711_v63 = vld [vmem:[#allocation8 + $0x28] sm:$0xff] }
 0x188   :  { %1521 = vst [vmem:[#allocation3 + $0x6] sm:$0x40] %v2812_v25  ;;  %v2831_v34 = vld [vmem:[#allocation4 + $0x8] sm:$0xff] }
 0x189   :  { %1524 = vst [vmem:[#allocation3 + $0x7] sm:$0x40] %v2816_v28 }
 0x18a   :  { %1527 = vst [vmem:[#allocation3 + $0x7] sm:$0x80] %v2812_v25 }
 0x18b   :  { %1530 = vst [vmem:[#allocation3 + $0x8] sm:$0x80] %v2816_v28 }
 0x18c   :  { %1066 = vst [vmem:[#allocation4] sm:$0x1] %v387_v52 }
 0x18d   :  { %1072 = vst [vmem:[#allocation4 + $0x1] sm:$0x2] %v387_v52 }
 0x18e   :  { %1078 = vst [vmem:[#allocation4 + $0x2] sm:$0x4] %v387_v52 }
 0x18f   :  { %1084 = vst [vmem:[#allocation4 + $0x3] sm:$0x8] %v387_v52 }
 0x190   :  { %1069 = vst [vmem:[#allocation4 + $0x1] sm:$0x1] %v422_v32 }
 0x191   :  { %1075 = vst [vmem:[#allocation4 + $0x2] sm:$0x2] %v422_v32 }
 0x192   :  { %v1535_v33 = vld [vmem:[#allocation3 + $0x8] sm:$0xff]  ;;  %1081 = vst [vmem:[#allocation4 + $0x3] sm:$0x4] %v422_v32 }
 0x193   :  { %1573 = vmatpush.xpose.msra.mxu1 %v1535_v33  ;;  %1090 = vst [vmem:[#allocation4 + $0x4] sm:$0x10] %v387_v52 }
 0x194   :  { %1096 = vst [vmem:[#allocation4 + $0x5] sm:$0x20] %v387_v52 }
 0x195   :  { %1102 = vst [vmem:[#allocation4 + $0x6] sm:$0x40] %v387_v52 }
 0x196   :  { %1108 = vst [vmem:[#allocation4 + $0x7] sm:$0x80] %v387_v52 }
 0x197   :  { %1087 = vst [vmem:[#allocation4 + $0x4] sm:$0x8] %v422_v32 }
 0x198   :  { %1093 = vst [vmem:[#allocation4 + $0x5] sm:$0x10] %v422_v32 }
 0x199   :  { %1099 = vst [vmem:[#allocation4 + $0x6] sm:$0x20] %v422_v32 }
 0x19a   :  { %1105 = vst [vmem:[#allocation4 + $0x7] sm:$0x40] %v422_v32 }
 0x19b   :  { %1111 = vst [vmem:[#allocation4 + $0x8] sm:$0x80] %v422_v32 }
 0x19c   :  { %1491 = vst [vmem:[#allocation3 + $0x1] sm:$0x2] %v2812_v25 }
 0x19d   :  { %1494 = vst [vmem:[#allocation3 + $0x2] sm:$0x2] %v2816_v28 }
 0x19e   :  { %v2839_v38 = vld [vmem:[#allocation4] sm:$0xff]  ;;  %1497 = vst [vmem:[#allocation3 + $0x2] sm:$0x4] %v2812_v25 }
 0x19f   :  { %1276 = vst [vmem:[#allocation4] sm:$0x1] %v390_v36 }
 0x1a0   :  { %1282 = vst [vmem:[#allocation4 + $0x1] sm:$0x2] %v390_v36 }
 0x1a1   :  { %1288 = vst [vmem:[#allocation4 + $0x2] sm:$0x4] %v390_v36 }
 0x1a2   :  { %v2842_v41 = vld [vmem:[#allocation4 + $0x8] sm:$0xff]  ;;  %1294 = vst [vmem:[#allocation4 + $0x3] sm:$0x8] %v390_v36 }
 0x1a3   :  { %1300 = vst [vmem:[#allocation4 + $0x4] sm:$0x10] %v390_v36 }
 0x1a4   :  { %1306 = vst [vmem:[#allocation4 + $0x5] sm:$0x20] %v390_v36 }
 0x1a5   :  { %1312 = vst [vmem:[#allocation4 + $0x6] sm:$0x40] %v390_v36 }
 0x1a6   :  { %1318 = vst [vmem:[#allocation4 + $0x7] sm:$0x80] %v390_v36 }
 0x1a7   :  { %1279 = vst [vmem:[#allocation4 + $0x1] sm:$0x1] %v425_v43 }
 0x1a8   :  { %1285 = vst [vmem:[#allocation4 + $0x2] sm:$0x2] %v425_v43 }
 0x1a9   :  { %1291 = vst [vmem:[#allocation4 + $0x3] sm:$0x4] %v425_v43 }
 0x1aa   :  { %1297 = vst [vmem:[#allocation4 + $0x4] sm:$0x8] %v425_v43 }
 0x1ab   :  { %1303 = vst [vmem:[#allocation4 + $0x5] sm:$0x10] %v425_v43 }
 0x1ac   :  { %1309 = vst [vmem:[#allocation4 + $0x6] sm:$0x20] %v425_v43 }
 0x1ad   :  { %1315 = vst [vmem:[#allocation4 + $0x7] sm:$0x40] %v425_v43 }
 0x1ae   :  { %1321 = vst [vmem:[#allocation4 + $0x8] sm:$0x80] %v425_v43 }
 0x1af   :  { %1500 = vst [vmem:[#allocation3 + $0x3] sm:$0x4] %v2816_v28 }
 0x1b0   :  { %1503 = vst [vmem:[#allocation3 + $0x3] sm:$0x8] %v2812_v25 }
 0x1b1   :  { %1506 = vst [vmem:[#allocation3 + $0x4] sm:$0x8] %v2816_v28  ;;  %v2853_v47 = vld [vmem:[#allocation4] sm:$0xff] }
 0x1b2   :  { %1486 = vst [vmem:[#allocation4] sm:$0x1] %v393_v45 }
 0x1b3   :  { %1489 = vst [vmem:[#allocation4 + $0x1] sm:$0x1] %v428_v46 }
 0x1b4   :  { %1492 = vst [vmem:[#allocation4 + $0x1] sm:$0x2] %v393_v45 }
 0x1b5   :  { %1495 = vst [vmem:[#allocation4 + $0x2] sm:$0x2] %v428_v46  ;;  %v2855_v48 = vld [vmem:[#allocation4 + $0x8] sm:$0xff] }
 0x1b6   :  { %1498 = vst [vmem:[#allocation4 + $0x2] sm:$0x4] %v393_v45 }
 0x1b7   :  { %1501 = vst [vmem:[#allocation4 + $0x3] sm:$0x4] %v428_v46 }
 0x1b8   :  { %1504 = vst [vmem:[#allocation4 + $0x3] sm:$0x8] %v393_v45 }
 0x1b9   :  { %1507 = vst [vmem:[#allocation4 + $0x4] sm:$0x8] %v428_v46 }
 0x1ba   :  { %1510 = vst [vmem:[#allocation4 + $0x4] sm:$0x10] %v393_v45 }
 0x1bb   :  { %1513 = vst [vmem:[#allocation4 + $0x5] sm:$0x10] %v428_v46 }
 0x1bc   :  { %1516 = vst [vmem:[#allocation4 + $0x5] sm:$0x20] %v393_v45 }
 0x1bd   :  { %1519 = vst [vmem:[#allocation4 + $0x6] sm:$0x20] %v428_v46 }
 0x1be   :  { %1522 = vst [vmem:[#allocation4 + $0x6] sm:$0x40] %v393_v45 }
 0x1bf   :  { %1525 = vst [vmem:[#allocation4 + $0x7] sm:$0x40] %v428_v46 }
 0x1c0   :  { %1528 = vst [vmem:[#allocation4 + $0x7] sm:$0x80] %v393_v45 }
 0x1c1   :  { %1531 = vst [vmem:[#allocation4 + $0x8] sm:$0x80] %v428_v46 }
 0x1c2   :  { %1508 = vst [vmem:[#allocation2 + $0x4] sm:$0x10] %v165_v60 }
 0x1c3   :  { %1511 = vst [vmem:[#allocation2 + $0x5] sm:$0x10] %v200_v62 }
 0x1c4   :  { %1514 = vst [vmem:[#allocation2 + $0x5] sm:$0x20] %v165_v60 }
 0x1c5   :  { %1517 = vst [vmem:[#allocation2 + $0x6] sm:$0x20] %v200_v62 }
 0x1c6   :  { %1520 = vst [vmem:[#allocation2 + $0x6] sm:$0x40] %v165_v60 }
 0x1c7   :  { %1523 = vst [vmem:[#allocation2 + $0x7] sm:$0x40] %v200_v62 }
 0x1c8   :  { %1526 = vst [vmem:[#allocation2 + $0x7] sm:$0x80] %v165_v60 }
 0x1c9   :  { %1529 = vst [vmem:[#allocation2 + $0x8] sm:$0x80] %v200_v62 }
 0x1ca   :  { %1484 = vst [vmem:[#allocation2] sm:$0x1] %v165_v60 }
 0x1cb   :  { %1487 = vst [vmem:[#allocation2 + $0x1] sm:$0x1] %v200_v62 }
 0x1cc   :  { %1490 = vst [vmem:[#allocation2 + $0x1] sm:$0x2] %v165_v60 }
 0x1cd   :  { %1493 = vst [vmem:[#allocation2 + $0x2] sm:$0x2] %v200_v62 }
 0x1ce   :  { %1496 = vst [vmem:[#allocation2 + $0x2] sm:$0x4] %v165_v60 }
 0x1cf   :  { %v532_v2 = vpop.xlane.xlu2 %531  ;;  %1499 = vst [vmem:[#allocation2 + $0x3] sm:$0x4] %v200_v62 }
 0x1d0   :  { %v1533_v5 = vld [vmem:[#allocation2 + $0x8] sm:$0xff]  ;;  %1502 = vst [vmem:[#allocation2 + $0x3] sm:$0x8] %v165_v60 }
 0x1d1   :  { %1574 = vmatmul.f32.vlgmr.msra.gmra.mxu1 %v1533_v5  ;;  %1505 = vst [vmem:[#allocation2 + $0x4] sm:$0x8] %v200_v62  ;;  %v1713_v60 = vld [vmem:[#allocation8 + $0x38] sm:$0xff]  ;;  %v1712_v62 = vld [vmem:[#allocation8 + $0x30] sm:$0xff]  ;;  %v1707_v5 = vld [vmem:[#allocation8 + $0x8] sm:$0xff] }
 0x1d7   :  { %v535_v31 = vpop.xlane.xlu0 %534 }
 0x1d8   :  { %v537_v49 = vsub.f32 %v2802_v17, %v535_v31 }
 0x1da   :  { %v540_v53 = vmul.f32 1.442695, %v537_v49  ;;  %v1534_v49 = vld [vmem:[#allocation3] sm:$0xff] }
 0x1dc   :  { %2241 = vpow2.f32 %v540_v53  ;;  %v1720_v53 = vld [vmem:[#allocation8 + $0x70] sm:$0xff] }
 0x1e2   :  { %v2242_v55 = vpop.eup %2241 }
 0x1e3   :  { %v545_v57 = vsel %vm529_vm0, %v2242_v55, 0.0 }
 0x1e4   :  { %546 = vadd.xlane.f32.xlu0 %v545_v57  ;;  %v1717_v57 = vld [vmem:[#allocation8 + $0x58] sm:$0xff] }
 0x1ef   :  { %v742_v42 = vpop.xlane.xlu1 %741 }
 0x1f0   :  { %v746_v50 = vsub.f32 %v2805_v21, %v742_v42 }
 0x1f2   :  { %v748_v54 = vmul.f32 1.442695, %v746_v50  ;;  %v1721_v50 = vld [vmem:[#allocation8 + $0x78] sm:$0xff] }
 0x1f4   :  { %2243 = vpow2.f32 %v748_v54  ;;  %v1719_v54 = vld [vmem:[#allocation8 + $0x68] sm:$0xff] }
 0x1fa   :  { %v2244_v56 = vpop.eup %2243 }
 0x1fb   :  { %v752_v59 = vsel %vm529_vm0, %v2244_v56, 0.0 }
 0x1fc   :  { %753 = vadd.xlane.f32.xlu2 %v752_v59  ;;  %v1716_v59 = vld [vmem:[#allocation8 + $0x50] sm:$0xff] }
 0x257   :  { %v547_v3 = vpop.xlane.xlu0 %546 }
 0x258   :  { %2245 = vrcp.f32 %v547_v3  ;;  %v1709_v3 = vld [vmem:[#allocation8 + $0x18] sm:$0xff] }
 0x25e   :  { %v2246_v51 = vpop.eup %2245 }
 0x25f   :  { %v551_v61 = vmul.f32 %v2246_v51, %v2242_v55  ;;  %v1532_v55 = vld [vmem:[#allocation2] sm:$0xff] }
 0x261   :  { %2185 = vmatmul.msk.f32.vlgmr.msra.gmra.mxu3 %vm529_vm0, %v551_v61 }
 0x262   :  { %803 = vmatpush.msra.mxu3 %v2787_v1 }
 0x269   :  { %734 = vmatmul.f32.vlgmr.msrb.gmra.mxu3 %v2740_v19 }
 0x26a   :  { %943 = vmatpush.xpose.msrb.mxu3 %v2785_v0  ;;  %v536_v0 = vsub.f32 %v2796_v12, %v532_v2  ;;  %v1710_v2 = vld [vmem:[#allocation8 + $0x20] sm:$0xff] }
 0x26c   :  { %v538_v14 = vmul.f32 1.442695, %v536_v0 }
 0x26f   :  { %v754_v4 = vpop.xlane.xlu2 %753 }
 0x270   :  { %2247 = vrcp.f32 %v754_v4  ;;  %v1708_v4 = vld [vmem:[#allocation8 + $0x10] sm:$0xff] }
 0x271   :  { %2249 = vpow2.f32 %v538_v14 }
 0x276   :  { %v2248_v26 = vpop.eup %2247 }
 0x277   :  { %v760_v40 = vmul.f32 %v2248_v26, %v2244_v56  ;;  %v2250_v30 = vpop.eup %2249  ;;  %v1718_v56 = vld [vmem:[#allocation8 + $0x60] sm:$0xff] }
 0x278   :  { %v542_v33 = vsel %vm529_vm0, %v2250_v30, 0.0  ;;  %v1706_v26 = vld [vmem:[#allocation8] sm:$0xff] }
 0x279   :  { %2186 = vmatmul.msk.f32.vlgmr.msra.gmra.mxu2 %vm529_vm0, %v760_v40 }
 0x27a   :  { %990 = vmatpush.msra.mxu2 %v2827_v58  ;;  %v1155_v58 = vpop.f32.mrf.mxu1 }
 0x27b   :  { %v2881_v32 = vmul.f32 0.088388346, %v1155_v58 }
 0x27d   :  { %v1163_v36 = vsel %vm529_vm0, %v2881_v32, -inf }
 0x281   :  { %924 = vmatmul.f32.vlgmr.msrb.gmra.mxu2 %v2745_v24 }
 0x282   :  { %1200 = vmatpush.msrb.mxu2 %v2839_v38 }
 0x2e4   :  { %v595_v1 = vpop.f32.mrf.mxu3 }
 0x2e5   :  { %621 = vst [vmem:[#allocation5 + $0x4] sm:$0x1] %v595_v1  ;;  %v623_v7 = vrot.slane %v595_v1, 1  ;;  %v626_v19 = vrot.slane %v595_v1, 2  ;;  %v629_v8 = vrot.slane %v595_v1, 3  ;;  %v632_v9 = vrot.slane %v595_v1, 4 }
 0x2e6   :  { %v635_v10 = vrot.slane %v595_v1, 5  ;;  %v638_v11 = vrot.slane %v595_v1, 6  ;;  %v641_v13 = vrot.slane %v595_v1, 7 }
 0x2e7   :  { %625 = vst [vmem:[#allocation5 + $0xc] sm:$0x1] %v623_v7 }
 0x2e8   :  { %628 = vst [vmem:[#allocation5 + $0x5] sm:$0x1] %v626_v19 }
 0x2e9   :  { %631 = vst [vmem:[#allocation5 + $0xd] sm:$0x1] %v629_v8 }
 0x2ea   :  { %634 = vst [vmem:[#allocation5 + $0x6] sm:$0x1] %v632_v9 }
 0x2eb   :  { %637 = vst [vmem:[#allocation5 + $0xe] sm:$0x1] %v635_v10 }
 0x2ec   :  { %640 = vst [vmem:[#allocation5 + $0x7] sm:$0x1] %v638_v11  ;;  %v735_v18 = vpop.f32.mrf.mxu3 }
 0x2ed   :  { %643 = vst [vmem:[#allocation5 + $0xf] sm:$0x1] %v641_v13  ;;  %v739_v21 = vmul.f32 0.088388346, %v735_v18 }
 0x2ef   :  { %v743_v28 = vsel %vm529_vm0, %v739_v21, -inf }
 0x2f0   :  { %744 = vmax.xlane.f32.xlu1 %v743_v28 }
 0x2f8   :  { %543 = vadd.xlane.f32.xlu1 %v542_v33 }
 0x2fc   :  { %v782_v24 = vpop.f32.mrf.mxu2 }
 0x2fd   :  { %808 = vst [vmem:[#allocation5 + $0x10] sm:$0x1] %v782_v24  ;;  %v810_v15 = vrot.slane %v782_v24, 1  ;;  %v813_v16 = vrot.slane %v782_v24, 2  ;;  %v816_v17 = vrot.slane %v782_v24, 3  ;;  %v819_v20 = vrot.slane %v782_v24, 4 }
 0x2fe   :  { %v822_v22 = vrot.slane %v782_v24, 5  ;;  %v825_v25 = vrot.slane %v782_v24, 6  ;;  %v828_v29 = vrot.slane %v782_v24, 7 }
 0x2ff   :  { %812 = vst [vmem:[#allocation5 + $0x18] sm:$0x1] %v810_v15  ;;  %v1365_v15 = vpop.f32.mrf.mxu1 }
 0x300   :  { %815 = vst [vmem:[#allocation5 + $0x11] sm:$0x1] %v813_v16  ;;  %v2897_v16 = vmul.f32 0.088388346, %v1365_v15 }
 0x301   :  { %818 = vst [vmem:[#allocation5 + $0x19] sm:$0x1] %v816_v17 }
 0x302   :  { %821 = vst [vmem:[#allocation5 + $0x12] sm:$0x1] %v819_v20 }
 0x303   :  { %824 = vst [vmem:[#allocation5 + $0x1a] sm:$0x1] %v822_v22 }
 0x304   :  { %v925_v12 = vpop.f32.mrf.mxu2  ;;  %827 = vst [vmem:[#allocation5 + $0x13] sm:$0x1] %v825_v25 }
 0x305   :  { %v2876_v23 = vmul.f32 0.088388346, %v925_v12  ;;  %830 = vst [vmem:[#allocation5 + $0x1b] sm:$0x1] %v828_v29 }
 0x307   :  { %v950_v52 = vsel %vm529_vm0, %v2876_v23, -inf }
 0x308   :  { %951 = vmax.xlane.f32.xlu2 %v950_v52 }
 0x310   :  { %1164 = vmax.xlane.f32.xlu2 %v1163_v36 }
 0x363   :  { %v745_v38 = vpop.xlane.xlu1 %744 }
 0x364   :  { %v747_v39 = vsub.f32 %v739_v21, %v745_v38  ;;  %v1373_v21 = vsel %vm529_vm0, %v2897_v16, -inf }
 0x366   :  { %v750_v43 = vmul.f32 1.442695, %v747_v39 }
 0x368   :  { %2251 = vpow2.f32 %v750_v43 }
 0x36b   :  { %v544_v44 = vpop.xlane.xlu1 %543 }
 0x36c   :  { %2253 = vrcp.f32 %v544_v44 }
 0x36e   :  { %v2252_v45 = vpop.eup %2251 }
 0x36f   :  { %v755_v46 = vsel %vm529_vm0, %v2252_v45, 0.0 }
 0x370   :  { %756 = vadd.xlane.f32.xlu0 %v755_v46 }
 0x372   :  { %v2254_v31 = vpop.eup %2253 }
 0x373   :  { %v550_v42 = vmul.f32 %v2254_v31, %v2250_v30 }
 0x375   :  { %2184 = vmatmul.msk.f32.vlgmr.msra.gmra.mxu0 %vm529_vm0, %v550_v42 }
 0x376   :  { %1343 = vmatpush.xpose.msra.mxu0 %v2833_v35  ;;  %v1715_v35 = vld [vmem:[#allocation8 + $0x48] sm:$0xff] }
 0x37b   :  { %v952_v9 = vpop.xlane.xlu2 %951 }
 0x37c   :  { %v956_v13 = vsub.f32 %v2876_v23, %v952_v9 }
 0x37d   :  { %1134 = vmatmul.f32.vlgmr.msrb.gmra.mxu0 %v2762_v37  ;;  %v1714_v37 = vld [vmem:[#allocation8 + $0x40] sm:$0xff] }
 0x37e   :  { %1553 = vmatpush.xpose.msrb.mxu0 %v1534_v49 }
 0x383   :  { %v1165_v17 = vpop.xlane.xlu2 %1164 }
 0x384   :  { %v1167_v20 = vsub.f32 %v2881_v32, %v1165_v17 }
 0x385   :  { %1344 = vmatmul.f32.vlgmr.msra.gmra.mxu0 %v2873_v6 }
 0x386   :  { %1742 = vmatpush.msra.mxu0 %v1721_v50  ;;  %v1170_v12 = vmul.f32 1.442695, %v1167_v20 }
 0x388   :  { %1743 = vmatpush.msra.mxu0 %v1720_v53 }
 0x38a   :  { %1744 = vmatpush.msra.mxu0 %v1719_v54 }
 0x38c   :  { %1745 = vmatpush.msra.mxu0 %v1718_v56 }
 0x38d   :  { %1554 = vmatmul.f32.vlgmr.msrb.gmra.mxu0 %v1532_v55 }
 0x38e   :  { %1746 = vmatpush.msra.mxu0 %v1717_v57 }
 0x390   :  { %1747 = vmatpush.msra.mxu0 %v1716_v59 }
 0x392   :  { %1748 = vmatpush.msra.mxu0 %v1715_v35  ;;  %v1575_v35 = vpop.f32.mrf.mxu1 }
 0x394   :  { %1749 = vmatpush.msra.mxu0 %v1714_v37 }
 0x396   :  { %1750 = vmatpush.msra.mxu0 %v1713_v60 }
 0x398   :  { %1751 = vmatpush.msra.mxu0 %v1712_v62  ;;  %v1579_v62 = vmul.f32 0.088388346, %v1575_v35 }
 0x39a   :  { %1752 = vmatpush.msra.mxu0 %v1711_v63 }
 0x39c   :  { %1753 = vmatpush.msra.mxu0 %v1710_v2 }
 0x39e   :  { %1754 = vmatpush.msra.mxu0 %v1709_v3 }
 0x3a0   :  { %1755 = vmatpush.msra.mxu0 %v1708_v4  ;;  %v1583_v4 = vsel %vm529_vm0, %v1579_v62, -inf }
 0x3a2   :  { %1756 = vmatpush.msra.mxu0 %v1707_v5 }
 0x3a4   :  { %1757 = vmatpush.msra.mxu0 %v1706_v26 }
 0x3e3   :  { %v757_v51 = vpop.xlane.xlu0 %756 }
 0x3e4   :  { %2255 = vrcp.f32 %v757_v51 }
 0x3ea   :  { %v2256_v61 = vpop.eup %2255 }
 0x3eb   :  { %v761_v40 = vmul.f32 %v2256_v61, %v2252_v45 }
 0x3ed   :  { %2187 = vmatmul.msk.f32.vlgmr.msra.gmra.mxu3 %vm529_vm0, %v761_v40 }
 0x3ee   :  { %1013 = vmatpush.msra.mxu3 %v2831_v34 }
 0x3f2   :  { %v572_v6 = vpop.f32.mrf.mxu0 }
 0x3f3   :  { %598 = vst [vmem:[#allocation5] sm:$0x1] %v572_v6  ;;  %v600_v1 = vrot.slane %v572_v6, 1  ;;  %v603_v7 = vrot.slane %v572_v6, 2  ;;  %v606_v19 = vrot.slane %v572_v6, 3  ;;  %v609_v8 = vrot.slane %v572_v6, 4 }
 0x3f4   :  { %v612_v24 = vrot.slane %v572_v6, 5  ;;  %v615_v0 = vrot.slane %v572_v6, 6  ;;  %v618_v10 = vrot.slane %v572_v6, 7 }
 0x3f5   :  { %602 = vst [vmem:[#allocation5 + $0x8] sm:$0x1] %v600_v1  ;;  %944 = vmatmul.f32.vlgmr.msrb.gmra.mxu3 %v2750_v27  ;;  %v958_v27 = vmul.f32 1.442695, %v956_v13 }
 0x3f6   :  { %605 = vst [vmem:[#allocation5 + $0x1] sm:$0x1] %v603_v7  ;;  %1223 = vmatpush.msrb.mxu3 %v2842_v41 }
 0x3f7   :  { %608 = vst [vmem:[#allocation5 + $0x9] sm:$0x1] %v606_v19  ;;  %2257 = vpow2.f32 %v958_v27 }
 0x3f8   :  { %611 = vst [vmem:[#allocation5 + $0x2] sm:$0x1] %v609_v8  ;;  %2259 = vpow2.f32 %v1170_v12 }
 0x3f9   :  { %614 = vst [vmem:[#allocation5 + $0xa] sm:$0x1] %v612_v24 }
 0x3fa   :  { %617 = vst [vmem:[#allocation5 + $0x3] sm:$0x1] %v615_v0  ;;  %v1135_v34 = vpop.f32.mrf.mxu0 }
 0x3fb   :  { %620 = vst [vmem:[#allocation5 + $0xb] sm:$0x1] %v618_v10  ;;  %v1158_v11 = vmul.f32 0.088388346, %v1135_v34 }
 0x3fd   :  { %v1160_v14 = vsel %vm529_vm0, %v1158_v11, -inf  ;;  %v2258_v22 = vpop.eup %2257 }
 0x3fe   :  { %1161 = vmax.xlane.f32.xlu1 %v1160_v14  ;;  %v962_v29 = vsel %vm529_vm0, %v2258_v22, 0.0  ;;  %v2904_v52 = vpop.eup %2259 }
 0x3ff   :  { %v1175_v58 = vsel %vm529_vm0, %v2904_v52, 0.0 }
 0x401   :  { %v1694_v41 = vld [vmem:[#allocation5] sm:$0xff] }
 0x402   :  { %1758 = vmatmul.f32.vlgmr.msra.gmra.mxu0 %v1694_v41  ;;  %v1345_v18 = vpop.f32.mrf.mxu0 }
 0x403   :  { %v1368_v50 = vmul.f32 0.088388346, %v1345_v18 }
 0x405   :  { %v1370_v59 = vsel %vm529_vm0, %v1368_v50, -inf }
 0x406   :  { %1374 = vmax.xlane.f32.xlu1 %v1373_v21 }
 0x40a   :  { %v1555_v23 = vpop.f32.mrf.mxu0 }
 0x40b   :  { %v1578_v25 = vmul.f32 0.088388346, %v1555_v23 }
 0x40d   :  { %v1580_v28 = vsel %vm529_vm0, %v1578_v25, -inf }
 0x40e   :  { %1581 = vmax.xlane.f32.xlu2 %v1580_v28  ;;  %963 = vadd.xlane.f32.xlu1 %v962_v29  ;;  %v1536_v28 = vld [vmem:[#allocation4] sm:$0xff] }
 0x416   :  { %1176 = vadd.xlane.f32.xlu1 %v1175_v58 }
 0x470   :  { %v805_v30 = vpop.f32.mrf.mxu3 }
 0x471   :  { %831 = vst [vmem:[#allocation5 + $0x14] sm:$0x1] %v805_v30  ;;  %v833_v32 = vrot.slane %v805_v30, 1  ;;  %v836_v33 = vrot.slane %v805_v30, 2  ;;  %v839_v36 = vrot.slane %v805_v30, 3  ;;  %v1162_v38 = vpop.xlane.xlu1 %1161  ;;  %v842_v39 = vrot.slane %v805_v30, 4 }
 0x472   :  { %v845_v43 = vrot.slane %v805_v30, 5  ;;  %v848_v44 = vrot.slane %v805_v30, 6  ;;  %v851_v45 = vrot.slane %v805_v30, 7  ;;  %v1166_v56 = vsub.f32 %v1158_v11, %v1162_v38 }
 0x473   :  { %835 = vst [vmem:[#allocation5 + $0x1c] sm:$0x1] %v833_v32 }
 0x474   :  { %838 = vst [vmem:[#allocation5 + $0x15] sm:$0x1] %v836_v33  ;;  %v1168_v60 = vmul.f32 1.442695, %v1166_v56  ;;  %v1733_v56 = vld [vmem:[#allocation8 + $0xd8] sm:$0xff] }
 0x475   :  { %841 = vst [vmem:[#allocation5 + $0x1d] sm:$0x1] %v839_v36 }
 0x476   :  { %844 = vst [vmem:[#allocation5 + $0x16] sm:$0x1] %v842_v39 }
 0x477   :  { %847 = vst [vmem:[#allocation5 + $0x1e] sm:$0x1] %v845_v43 }
 0x478   :  { %850 = vst [vmem:[#allocation5 + $0x17] sm:$0x1] %v848_v44  ;;  %v945_v46 = vpop.f32.mrf.mxu3 }
 0x479   :  { %853 = vst [vmem:[#allocation5 + $0x1f] sm:$0x1] %v851_v45  ;;  %v949_v31 = vmul.f32 0.088388346, %v945_v46  ;;  %v1375_v42 = vpop.xlane.xlu1 %1374  ;;  %v1737_v45 = vld [vmem:[#allocation8 + $0xf8] sm:$0xff]  ;;  %v1736_v46 = vld [vmem:[#allocation8 + $0xf0] sm:$0xff] }
 0x47a   :  { %v1377_v3 = vsub.f32 %v2897_v16, %v1375_v42  ;;  %2212 = vmatpush.msrb.mxu1 %v1737_v45  ;;  %1777 = vmatpush.msrb.mxu0 %v1737_v45 }
 0x47b   :  { %v953_v49 = vsel %vm529_vm0, %v949_v31, -inf }
 0x47c   :  { %954 = vmax.xlane.f32.xlu0 %v953_v49  ;;  %v1380_v26 = vmul.f32 1.442695, %v1377_v3  ;;  %2213 = vmatpush.msrb.mxu1 %v1736_v46 }
 0x47d   :  { %1778 = vmatpush.msrb.mxu0 %v1736_v46 }
 0x47f   :  { %v1696_v53 = vld [vmem:[#allocation5 + $0x10] sm:$0xff] }
 0x480   :  { %1761 = vmatmul.f32.gmra.mxu0 %v1696_v53  ;;  %v1734_v53 = vld [vmem:[#allocation8 + $0xe0] sm:$0xff] }
 0x481   :  { %v1582_v54 = vpop.xlane.xlu2 %1581  ;;  %v964_v55 = vpop.xlane.xlu1 %963 }
 0x482   :  { %v1586_v57 = vsub.f32 %v1578_v25, %v1582_v54  ;;  %2261 = vrcp.f32 %v964_v55 }
 0x484   :  { %v1588_v37 = vmul.f32 1.442695, %v1586_v57  ;;  %1371 = vmax.xlane.f32.xlu0 %v1370_v59  ;;  %v1732_v59 = vld [vmem:[#allocation8 + $0xd0] sm:$0xff] }
 0x486   :  { %2263 = vpow2.f32 %v1588_v37  ;;  %v1731_v37 = vld [vmem:[#allocation8 + $0xc8] sm:$0xff] }
 0x487   :  { %2265 = vpow2.f32 %v1168_v60  ;;  %v1730_v60 = vld [vmem:[#allocation8 + $0xc0] sm:$0xff] }
 0x488   :  { %v2262_v63 = vpop.eup %2261  ;;  %2267 = vpow2.f32 %v1380_v26 }
 0x489   :  { %v970_v2 = vmul.f32 %v2262_v63, %v2258_v22  ;;  %v1177_v32 = vpop.xlane.xlu1 %1176 }
 0x48b   :  { %2188 = vmatmul.msk.f32.vlgmr.msra.gmra.mxu2 %vm529_vm0, %v970_v2  ;;  %v1728_v2 = vld [vmem:[#allocation8 + $0xb0] sm:$0xff] }
 0x48c   :  { %v2913_v5 = vpop.eup %2263  ;;  %1410 = vmatpush.msra.mxu2 %v2853_v47  ;;  %1584 = vmax.xlane.f32.xlu0 %v1583_v4 }
 0x48d   :  { %v1592_v51 = vsel %vm529_vm0, %v2913_v5, 0.0  ;;  %v2266_v61 = vpop.eup %2265 }
 0x48e   :  { %1593 = vadd.xlane.f32.xlu1 %v1592_v51  ;;  %v1172_v40 = vsel %vm529_vm0, %v2266_v61, 0.0  ;;  %v2919_v6 = vpop.eup %2267 }
 0x48f   :  { %v1385_v1 = vsel %vm529_vm0, %v2919_v6, 0.0 }
 0x494   :  { %1173 = vadd.xlane.f32.xlu0 %v1172_v40 }
 0x49c   :  { %1386 = vadd.xlane.f32.xlu0 %v1385_v1 }
 0x4ef   :  { %v955_v7 = vpop.xlane.xlu0 %954 }
 0x4f0   :  { %v957_v19 = vsub.f32 %v949_v31, %v955_v7  ;;  %v1727_v7 = vld [vmem:[#allocation8 + $0xa8] sm:$0xff] }
 0x4f2   :  { %v960_v47 = vmul.f32 1.442695, %v957_v19  ;;  %v1726_v19 = vld [vmem:[#allocation8 + $0xa0] sm:$0xff] }
 0x4f4   :  { %2269 = vpow2.f32 %v960_v47  ;;  %v1725_v47 = vld [vmem:[#allocation8 + $0x98] sm:$0xff] }
 0x4f7   :  { %v1372_v8 = vpop.xlane.xlu0 %1371 }
 0x4f8   :  { %v1376_v24 = vsub.f32 %v1368_v50, %v1372_v8  ;;  %v1735_v50 = vld [vmem:[#allocation8 + $0xe8] sm:$0xff]  ;;  %v1724_v8 = vld [vmem:[#allocation8 + $0x90] sm:$0xff] }
 0x4f9   :  { %2214 = vmatpush.msrb.mxu1 %v1735_v50  ;;  %1779 = vmatpush.msrb.mxu0 %v1735_v50 }
 0x4fa   :  { %v2270_v0 = vpop.eup %2269  ;;  %v1378_v9 = vmul.f32 1.442695, %v1376_v24  ;;  %v1723_v24 = vld [vmem:[#allocation8 + $0x88] sm:$0xff] }
 0x4fb   :  { %v965_v10 = vsel %vm529_vm0, %v2270_v0, 0.0  ;;  %2215 = vmatpush.msrb.mxu1 %v1734_v53  ;;  %1780 = vmatpush.msrb.mxu0 %v1734_v53 }
 0x4fc   :  { %2271 = vpow2.f32 %v1378_v9  ;;  %966 = vadd.xlane.f32.xlu2 %v965_v10 }
 0x4fd   :  { %2216 = vmatpush.msrb.mxu1 %v1733_v56  ;;  %1781 = vmatpush.msrb.mxu0 %v1733_v56 }
 0x4ff   :  { %v1585_v34 = vpop.xlane.xlu0 %1584  ;;  %2217 = vmatpush.msrb.mxu1 %v1732_v59  ;;  %1782 = vmatpush.msrb.mxu0 %v1732_v59 }
 0x500   :  { %v1587_v11 = vsub.f32 %v1579_v62, %v1585_v34  ;;  %v1729_v62 = vld [vmem:[#allocation8 + $0xb8] sm:$0xff] }
 0x501   :  { %v1594_v39 = vpop.xlane.xlu1 %1593  ;;  %2218 = vmatpush.msrb.mxu1 %v1731_v37  ;;  %1783 = vmatpush.msrb.mxu0 %v1731_v37 }
 0x502   :  { %v2272_v13 = vpop.eup %2271  ;;  %v1590_v14 = vmul.f32 1.442695, %v1587_v11 }
 0x503   :  { %v1382_v15 = vsel %vm529_vm0, %v2272_v13, 0.0  ;;  %2219 = vmatpush.msrb.mxu1 %v1730_v60  ;;  %1784 = vmatpush.msrb.mxu0 %v1730_v60 }
 0x504   :  { %2273 = vpow2.f32 %v1590_v14  ;;  %1383 = vadd.xlane.f32.xlu2 %v1382_v15 }
 0x505   :  { %2220 = vmatpush.msrb.mxu1 %v1729_v62  ;;  %1785 = vmatpush.msrb.mxu0 %v1729_v62 }
 0x507   :  { %v1174_v27 = vpop.xlane.xlu0 %1173  ;;  %2221 = vmatpush.msrb.mxu1 %v1728_v2  ;;  %1786 = vmatpush.msrb.mxu0 %v1728_v2 }
 0x508   :  { %2275 = vrcp.f32 %v1174_v27 }
 0x509   :  { %2222 = vmatpush.msrb.mxu1 %v1727_v7  ;;  %1787 = vmatpush.msrb.mxu0 %v1727_v7  ;;  %v1759_v7 = vpop.f32.mrf.mxu0 }
 0x50a   :  { %v2925_v16 = vpop.eup %2273 }
 0x50b   :  { %v1595_v17 = vsel %vm529_vm0, %v2925_v16, 0.0  ;;  %2223 = vmatpush.msrb.mxu1 %v1726_v19  ;;  %1788 = vmatpush.msrb.mxu0 %v1726_v19 }
 0x50c   :  { %1596 = vadd.xlane.f32.xlu2 %v1595_v17 }
 0x50d   :  { %2224 = vmatpush.msrb.mxu1 %v1725_v47  ;;  %1789 = vmatpush.msrb.mxu0 %v1725_v47  ;;  %v2235_v47 = vld [vmem:[%s3175_s10] ss:$0 sm:$0xff] }
 0x50e   :  { %v2276_v41 = vpop.eup %2275  ;;  %v992_v18 = vpop.f32.mrf.mxu2 }
 0x50f   :  { %v1180_v20 = vmul.f32 %v2276_v41, %v2266_v61  ;;  %1018 = vst [vmem:[#allocation5 + $0x20] sm:$0x1] %v992_v18  ;;  %v1020_v21 = vrot.slane %v992_v18, 1  ;;  %v1023_v12 = vrot.slane %v992_v18, 2  ;;  %v1026_v22 = vrot.slane %v992_v18, 3  ;;  %v1387_v43 = vpop.xlane.xlu0 %1386  ;;  %2225 = vmatpush.msrb.mxu1 %v1724_v8  ;;  %1790 = vmatpush.msrb.mxu0 %v1724_v8 }
 0x510   :  { %v1029_v23 = vrot.slane %v992_v18, 4  ;;  %v1032_v25 = vrot.slane %v992_v18, 5  ;;  %v1035_v29 = vrot.slane %v992_v18, 6  ;;  %v1038_v58 = vrot.slane %v992_v18, 7 }
 0x511   :  { %1022 = vst [vmem:[#allocation5 + $0x28] sm:$0x1] %v1020_v21  ;;  %2190 = vmatmul.msk.f32.vlgmr.msrb.gmra.mxu2 %vm529_vm0, %v1180_v20  ;;  %2226 = vmatpush.msrb.mxu1 %v1723_v24  ;;  %v1762_v19 = vpop.f32.mrf.mxu0 }
 0x512   :  { %1025 = vst [vmem:[#allocation5 + $0x21] sm:$0x1] %v1023_v12  ;;  %1620 = vmatpush.msrb.mxu2 %v1536_v28  ;;  %1791 = vmatpush.msrb.mxu0 %v1723_v24 }
 0x513   :  { %1028 = vst [vmem:[#allocation5 + $0x29] sm:$0x1] %v1026_v22 }
 0x514   :  { %1031 = vst [vmem:[#allocation5 + $0x22] sm:$0x1] %v1029_v23 }
 0x515   :  { %1034 = vst [vmem:[#allocation5 + $0x2a] sm:$0x1] %v1032_v25 }
 0x516   :  { %1037 = vst [vmem:[#allocation5 + $0x23] sm:$0x1] %v1035_v29 }
 0x517   :  { %1040 = vst [vmem:[#allocation5 + $0x2b] sm:$0x1] %v1038_v58 }
 0x56f   :  { %v967_v30 = vpop.xlane.xlu2 %966 }
 0x570   :  { %2277 = vrcp.f32 %v967_v30 }
 0x571   :  { %2279 = vrcp.f32 %v1177_v32 }
 0x576   :  { %v2278_v33 = vpop.eup %2277 }
 0x577   :  { %v971_v36 = vmul.f32 %v2278_v33, %v2270_v0  ;;  %v1384_v38 = vpop.xlane.xlu2 %1383  ;;  %v2280_v44 = vpop.eup %2279  ;;  %v1722_v0 = vld [vmem:[#allocation8 + $0x80] sm:$0xff] }
 0x578   :  { %2281 = vrcp.f32 %v1384_v38  ;;  %v1181_v42 = vmul.f32 %v2280_v44, %v2904_v52  ;;  %2227 = vmatpush.msrb.mxu1 %v1722_v0  ;;  %1792 = vmatpush.msrb.mxu0 %v1722_v0 }
 0x579   :  { %2189 = vmatmul.msk.f32.vlgmr.msra.gmra.mxu3 %vm529_vm0, %v971_v36  ;;  %2283 = vrcp.f32 %v1594_v39 }
 0x57a   :  { %1433 = vmatpush.msra.mxu3 %v2855_v48  ;;  %2285 = vrcp.f32 %v1387_v43  ;;  %v1537_v48 = vld [vmem:[#allocation4 + $0x8] sm:$0xff] }
 0x57e   :  { %v2282_v31 = vpop.eup %2281 }
 0x57f   :  { %v1390_v49 = vmul.f32 %v2282_v31, %v2272_v13  ;;  %v2284_v54 = vpop.eup %2283  ;;  %v1597_v55 = vpop.xlane.xlu2 %1596 }
 0x580   :  { %v2286_v57 = vpop.eup %2285  ;;  %2287 = vrcp.f32 %v1597_v55  ;;  %v1600_v52 = vmul.f32 %v2284_v54, %v2913_v5 }
 0x581   :  { %2191 = vmatmul.msk.f32.vlgmr.msrb.gmra.mxu3 %vm529_vm0, %v1181_v42  ;;  %2192 = vmatmul.msk.f32.vlgmr.msra.gmra.mxu2 %vm529_vm0, %v1390_v49  ;;  %v1391_v35 = vmul.f32 %v2286_v57, %v2919_v6 }
 0x582   :  { %1643 = vmatpush.msrb.mxu3 %v1537_v48 }
 0x586   :  { %v2288_v63 = vpop.eup %2287 }
 0x587   :  { %v1601_v3 = vmul.f32 %v2288_v63, %v2925_v16 }
 0x589   :  { %2193 = vmatmul.msk.f32.vlgmr.msra.gmra.mxu3 %vm529_vm0, %v1391_v35  ;;  %2194 = vmatmul.msk.f32.vlgmr.msrb.gmra.mxu2 %vm529_vm0, %v1600_v52 }
 0x591   :  { %2195 = vmatmul.msk.f32.vlgmr.msrb.gmra.mxu3 %vm529_vm0, %v1601_v3 }
 0x594   :  { %v1202_v4 = vpop.f32.mrf.mxu2 }
 0x595   :  { %1228 = vst [vmem:[#allocation5 + $0x30] sm:$0x1] %v1202_v4  ;;  %v1230_v5 = vrot.slane %v1202_v4, 1  ;;  %v1233_v51 = vrot.slane %v1202_v4, 2  ;;  %v1236_v26 = vrot.slane %v1202_v4, 3  ;;  %v1239_v61 = vrot.slane %v1202_v4, 4 }
 0x596   :  { %v1242_v40 = vrot.slane %v1202_v4, 5  ;;  %v1245_v6 = vrot.slane %v1202_v4, 6  ;;  %v1248_v1 = vrot.slane %v1202_v4, 7 }
 0x597   :  { %1232 = vst [vmem:[#allocation5 + $0x38] sm:$0x1] %v1230_v5 }
 0x598   :  { %1235 = vst [vmem:[#allocation5 + $0x31] sm:$0x1] %v1233_v51 }
 0x599   :  { %1238 = vst [vmem:[#allocation5 + $0x39] sm:$0x1] %v1236_v26 }
 0x59a   :  { %1241 = vst [vmem:[#allocation5 + $0x32] sm:$0x1] %v1239_v61 }
 0x59b   :  { %1244 = vst [vmem:[#allocation5 + $0x3a] sm:$0x1] %v1242_v40 }
 0x59c   :  { %1247 = vst [vmem:[#allocation5 + $0x33] sm:$0x1] %v1245_v6  ;;  %v1695_v6 = vld [vmem:[#allocation5 + $0x8] sm:$0xff] }
 0x59d   :  { %1250 = vst [vmem:[#allocation5 + $0x3b] sm:$0x1] %v1248_v1  ;;  %v1697_v1 = vld [vmem:[#allocation5 + $0x18] sm:$0xff] }
 0x5fc   :  { %v1015_v9 = vpop.f32.mrf.mxu3 }
 0x5fd   :  { %1041 = vst [vmem:[#allocation5 + $0x24] sm:$0x1] %v1015_v9  ;;  %v1043_v10 = vrot.slane %v1015_v9, 1  ;;  %v1046_v34 = vrot.slane %v1015_v9, 2  ;;  %v1049_v11 = vrot.slane %v1015_v9, 3  ;;  %v1052_v13 = vrot.slane %v1015_v9, 4 }
 0x5fe   :  { %v1055_v14 = vrot.slane %v1015_v9, 5  ;;  %v1058_v15 = vrot.slane %v1015_v9, 6  ;;  %v1061_v27 = vrot.slane %v1015_v9, 7  ;;  %v1814_v9 = vld [vmem:[%s3167_s2 + $0x10] sm:$0xff] }
 0x5ff   :  { %1045 = vst [vmem:[#allocation5 + $0x2c] sm:$0x1] %v1043_v10 }
 0x600   :  { %1048 = vst [vmem:[#allocation5 + $0x25] sm:$0x1] %v1046_v34 }
 0x601   :  { %1051 = vst [vmem:[#allocation5 + $0x2d] sm:$0x1] %v1049_v11 }
 0x602   :  { %1054 = vst [vmem:[#allocation5 + $0x26] sm:$0x1] %v1052_v13 }
 0x603   :  { %1057 = vst [vmem:[#allocation5 + $0x2e] sm:$0x1] %v1055_v14 }
 0x604   :  { %1060 = vst [vmem:[#allocation5 + $0x27] sm:$0x1] %v1058_v15  ;;  %v1225_v16 = vpop.f32.mrf.mxu3  ;;  %v1412_v22 = vpop.f32.mrf.mxu2 }
 0x605   :  { %1063 = vst [vmem:[#allocation5 + $0x2f] sm:$0x1] %v1061_v27  ;;  %v1253_v17 = vrot.slane %v1225_v16, 1  ;;  %v1256_v41 = vrot.slane %v1225_v16, 2  ;;  %v1259_v18 = vrot.slane %v1225_v16, 3  ;;  %v1262_v20 = vrot.slane %v1225_v16, 4 }
 0x606   :  { %1251 = vst [vmem:[#allocation5 + $0x34] sm:$0x1] %v1225_v16  ;;  %v1265_v21 = vrot.slane %v1225_v16, 5  ;;  %v1268_v12 = vrot.slane %v1225_v16, 6  ;;  %v1271_v23 = vrot.slane %v1225_v16, 7  ;;  %v1440_v25 = vrot.slane %v1412_v22, 1 }
 0x607   :  { %1255 = vst [vmem:[#allocation5 + $0x3c] sm:$0x1] %v1253_v17  ;;  %v1443_v29 = vrot.slane %v1412_v22, 2  ;;  %v1446_v30 = vrot.slane %v1412_v22, 3  ;;  %v1449_v32 = vrot.slane %v1412_v22, 4  ;;  %v1452_v33 = vrot.slane %v1412_v22, 5 }
 0x608   :  { %1258 = vst [vmem:[#allocation5 + $0x35] sm:$0x1] %v1256_v41  ;;  %v1455_v36 = vrot.slane %v1412_v22, 6  ;;  %v1458_v39 = vrot.slane %v1412_v22, 7  ;;  %v1817_v41 = vld [vmem:[%s3167_s2 + $0x28] sm:$0xff] }
 0x609   :  { %1261 = vst [vmem:[#allocation5 + $0x3d] sm:$0x1] %v1259_v18 }
 0x60a   :  { %1264 = vst [vmem:[#allocation5 + $0x36] sm:$0x1] %v1262_v20 }
 0x60b   :  { %1267 = vst [vmem:[#allocation5 + $0x3e] sm:$0x1] %v1265_v21  ;;  %v1698_v28 = vld [vmem:[#allocation5 + $0x20] sm:$0xff]  ;;  %v1760_v21 = vadd.f32 %v2235_v47, %v1759_v7 }
 0x60c   :  { %1270 = vst [vmem:[#allocation5 + $0x37] sm:$0x1] %v1268_v12  ;;  %1764 = vmatmul.f32.gmra.mxu0 %v1698_v28  ;;  %v1699_v58 = vld [vmem:[#allocation5 + $0x28] sm:$0xff]  ;;  %v1435_v38 = vpop.f32.mrf.mxu3  ;;  %v1622_v48 = vpop.f32.mrf.mxu2 }
 0x60d   :  { %1273 = vst [vmem:[#allocation5 + $0x3f] sm:$0x1] %v1271_v23  ;;  %1799 = vmatmul.f32.vlgmr.msrb.gmra.mxu1 %v1699_v58  ;;  %v1463_v43 = vrot.slane %v1435_v38, 1  ;;  %v1466_v45 = vrot.slane %v1435_v38, 2  ;;  %v1469_v31 = vrot.slane %v1435_v38, 3  ;;  %v1472_v42 = vrot.slane %v1435_v38, 4 }
 0x60e   :  { %1438 = vst [vmem:[#allocation5 + $0x40] sm:$0x1] %v1412_v22  ;;  %v1475_v49 = vrot.slane %v1435_v38, 5  ;;  %v1478_v50 = vrot.slane %v1435_v38, 6  ;;  %v1481_v53 = vrot.slane %v1435_v38, 7  ;;  %v1650_v54 = vrot.slane %v1622_v48, 1 }
 0x60f   :  { %1442 = vst [vmem:[#allocation5 + $0x48] sm:$0x1] %v1440_v25  ;;  %v1653_v55 = vrot.slane %v1622_v48, 2  ;;  %v1656_v56 = vrot.slane %v1622_v48, 3  ;;  %v1659_v57 = vrot.slane %v1622_v48, 4  ;;  %v1662_v59 = vrot.slane %v1622_v48, 5 }
 0x610   :  { %1445 = vst [vmem:[#allocation5 + $0x41] sm:$0x1] %v1443_v29  ;;  %v1665_v52 = vrot.slane %v1622_v48, 6  ;;  %v1668_v37 = vrot.slane %v1622_v48, 7  ;;  %v1812_v22 = vld [vmem:[%s3167_s2] sm:$0xff]  ;;  %v1763_v29 = vadd.f32 %v2235_v47, %v1762_v19 }
 0x611   :  { %1448 = vst [vmem:[#allocation5 + $0x49] sm:$0x1] %v1446_v30 }
 0x612   :  { %1451 = vst [vmem:[#allocation5 + $0x42] sm:$0x1] %v1449_v32  ;;  %v1813_v32 = vld [vmem:[%s3167_s2 + $0x8] sm:$0xff] }
 0x613   :  { %1454 = vst [vmem:[#allocation5 + $0x4a] sm:$0x1] %v1452_v33  ;;  %v1700_v44 = vld [vmem:[#allocation5 + $0x30] sm:$0xff]  ;;  %v1815_v33 = vld [vmem:[%s3167_s2 + $0x18] sm:$0xff] }
 0x614   :  { %1457 = vst [vmem:[#allocation5 + $0x43] sm:$0x1] %v1455_v36  ;;  %1767 = vmatmul.f32.gmra.mxu0 %v1700_v44  ;;  %v1701_v46 = vld [vmem:[#allocation5 + $0x38] sm:$0xff]  ;;  %v1645_v35 = vpop.f32.mrf.mxu3 }
 0x615   :  { %1460 = vst [vmem:[#allocation5 + $0x4b] sm:$0x1] %v1458_v39  ;;  %1802 = vmatmul.f32.gmra.mxu1 %v1701_v46  ;;  %v1673_v60 = vrot.slane %v1645_v35, 1  ;;  %v1676_v63 = vrot.slane %v1645_v35, 2  ;;  %v1679_v3 = vrot.slane %v1645_v35, 3  ;;  %v1682_v4 = vrot.slane %v1645_v35, 4 }
 0x616   :  { %1461 = vst [vmem:[#allocation5 + $0x44] sm:$0x1] %v1435_v38  ;;  %v1685_v5 = vrot.slane %v1645_v35, 5  ;;  %v1688_v51 = vrot.slane %v1645_v35, 6  ;;  %v1691_v26 = vrot.slane %v1645_v35, 7 }
 0x617   :  { %1465 = vst [vmem:[#allocation5 + $0x4c] sm:$0x1] %v1463_v43 }
 0x618   :  { %1468 = vst [vmem:[#allocation5 + $0x45] sm:$0x1] %v1466_v45  ;;  %v1816_v45 = vld [vmem:[%s3167_s2 + $0x20] sm:$0xff] }
 0x619   :  { %1471 = vst [vmem:[#allocation5 + $0x4d] sm:$0x1] %v1469_v31  ;;  %v2373_v31 = vmov 128.0  }
 0x61a   :  { %1474 = vst [vmem:[#allocation5 + $0x46] sm:$0x1] %v1472_v42  ;;  %2289 = vrcp.f32 %v2373_v31  ;;  %v1971_v31 = vld [vmem:[%s3178_s13] sm:$0xff] }
 0x61b   :  { %1477 = vst [vmem:[#allocation5 + $0x4e] sm:$0x1] %v1475_v49 }
 0x61c   :  { %1480 = vst [vmem:[#allocation5 + $0x47] sm:$0x1] %v1478_v50 }
 0x61d   :  { %1483 = vst [vmem:[#allocation5 + $0x4f] sm:$0x1] %v1481_v53 }
 0x61e   :  { %1648 = vst [vmem:[#allocation5 + $0x50] sm:$0x1] %v1622_v48 }
 0x61f   :  { %1652 = vst [vmem:[#allocation5 + $0x58] sm:$0x1] %v1650_v54 }
 0x620   :  { %1655 = vst [vmem:[#allocation5 + $0x51] sm:$0x1] %v1653_v55  ;;  %v2290_v42 = vpop.eup %2289 }
 0x621   :  { %1658 = vst [vmem:[#allocation5 + $0x59] sm:$0x1] %v1656_v56  ;;  %v1839_v49 = vmul.f32 128.0, %v2290_v42  ;;  %vm1843_vm1 = vweird.f32 %v2290_v42 }
 0x622   :  { %1661 = vst [vmem:[#allocation5 + $0x52] sm:$0x1] %v1659_v57 }
 0x623   :  { %1664 = vst [vmem:[#allocation5 + $0x5a] sm:$0x1] %v1662_v59  ;;  %v1702_v62 = vld [vmem:[#allocation5 + $0x40] sm:$0xff]  ;;  %v1840_v50 = vsub.f32 1.0, %v1839_v49 }
 0x624   :  { %1667 = vst [vmem:[#allocation5 + $0x53] sm:$0x1] %v1665_v52  ;;  %1770 = vmatmul.f32.gmra.mxu0 %v1702_v62  ;;  %v1703_v2 = vld [vmem:[#allocation5 + $0x48] sm:$0xff] }
 0x625   :  { %1670 = vst [vmem:[#allocation5 + $0x5b] sm:$0x1] %v1668_v37  ;;  %1805 = vmatmul.f32.gmra.mxu1 %v1703_v2  ;;  %v1841_v48 = vmul.f32 %v2290_v42, %v1840_v50 }
 0x626   :  { %1671 = vst [vmem:[#allocation5 + $0x54] sm:$0x1] %v1645_v35 }
 0x627   :  { %1675 = vst [vmem:[#allocation5 + $0x5c] sm:$0x1] %v1673_v60  ;;  %v1842_v53 = vadd.f32 %v2290_v42, %v1841_v48 }
 0x628   :  { %1678 = vst [vmem:[#allocation5 + $0x55] sm:$0x1] %v1676_v63 }
 0x629   :  { %1681 = vst [vmem:[#allocation5 + $0x5d] sm:$0x1] %v1679_v3  ;;  %v2962_v54 = vsel %vm1843_vm1, %v2290_v42, %v1842_v53 }
 0x62a   :  { %1684 = vst [vmem:[#allocation5 + $0x56] sm:$0x1] %v1682_v4 }
 0x62b   :  { %1687 = vst [vmem:[#allocation5 + $0x5e] sm:$0x1] %v1685_v5 }
 0x62c   :  { %1690 = vst [vmem:[#allocation5 + $0x57] sm:$0x1] %v1688_v51 }
 0x62d   :  { %1693 = vst [vmem:[#allocation5 + $0x5f] sm:$0x1] %v1691_v26 }
 0x633   :  { %v1704_v61 = vld [vmem:[#allocation5 + $0x50] sm:$0xff] }
 0x634   :  { %1773 = vmatmul.f32.gmra.mxu0 %v1704_v61  ;;  %v1705_v40 = vld [vmem:[#allocation5 + $0x58] sm:$0xff] }
 0x635   :  { %1808 = vmatmul.f32.gmra.mxu1 %v1705_v40 }
 0x63c   :  { %1793 = vmatmul.f32.vlgmr.msrb.gmra.mxu0 %v1695_v6 }
 0x644   :  { %1796 = vmatmul.f32.gmra.mxu0 %v1697_v1 }
 0x689   :  { %v1765_v8 = vpop.f32.mrf.mxu0 }
 0x68a   :  { %v1766_v24 = vadd.f32 %v2235_v47, %v1765_v8  ;;  %v1800_v0 = vpop.f32.mrf.mxu1 }
 0x68c   :  { %v1801_v10 = vadd.f32 %v1800_v0, %v1766_v24  ;;  %v1986_v24 = vld [vmem:[%s3178_s13 + $0x78] sm:$0xff]  ;;  %v1985_v0 = vld [vmem:[%s3178_s13 + $0x70] sm:$0xff] }
 0x68d   :  { %1991 = vmatpush.msra.mxu2 %v1986_v24 }
 0x68e   :  { %v1820_v34 = vadd.f32 %v1814_v9, %v1801_v10  ;;  %v1984_v10 = vld [vmem:[%s3178_s13 + $0x68] sm:$0xff] }
 0x68f   :  { %1992 = vmatpush.msra.mxu2 %v1985_v0 }
 0x690   :  { %1830 = vadd.xlane.f32.xlu2 %v1820_v34 }
 0x691   :  { %v1768_v11 = vpop.f32.mrf.mxu0  ;;  %1993 = vmatpush.msra.mxu2 %v1984_v10 }
 0x692   :  { %v1803_v13 = vpop.f32.mrf.mxu1  ;;  %v1769_v25 = vadd.f32 %v2235_v47, %v1768_v11  ;;  %v1982_v11 = vld [vmem:[%s3178_s13 + $0x58] sm:$0xff] }
 0x694   :  { %v1804_v58 = vadd.f32 %v1803_v13, %v1769_v25 }
 0x696   :  { %v1821_v43 = vadd.f32 %v1815_v33, %v1804_v58 }
 0x6a1   :  { %v1771_v14 = vpop.f32.mrf.mxu0 }
 0x6a2   :  { %v1806_v15 = vpop.f32.mrf.mxu1  ;;  %v1772_v38 = vadd.f32 %v2235_v47, %v1771_v14  ;;  %v1981_v14 = vld [vmem:[%s3178_s13 + $0x50] sm:$0xff] }
 0x6a4   :  { %v1807_v44 = vadd.f32 %v1806_v15, %v1772_v38  ;;  %v1980_v15 = vld [vmem:[%s3178_s13 + $0x48] sm:$0xff] }
 0x6a6   :  { %v1822_v46 = vadd.f32 %v1816_v45, %v1807_v44  ;;  %v1972_v44 = vld [vmem:[%s3178_s13 + $0x8] sm:$0xff] }
 0x6b1   :  { %v1774_v27 = vpop.f32.mrf.mxu0 }
 0x6b2   :  { %v1775_v16 = vadd.f32 %v2235_v47, %v1774_v27  ;;  %v1809_v17 = vpop.f32.mrf.mxu1 }
 0x6b4   :  { %v1810_v18 = vadd.f32 %v1809_v17, %v1775_v16  ;;  %v1979_v16 = vld [vmem:[%s3178_s13 + $0x40] sm:$0xff] }
 0x6b6   :  { %v1823_v20 = vadd.f32 %v1817_v41, %v1810_v18  ;;  %v1978_v18 = vld [vmem:[%s3178_s13 + $0x38] sm:$0xff] }
 0x6b8   :  { %1836 = vadd.xlane.f32.xlu2 %v1823_v20 }
 0x6b9   :  { %v1794_v12 = vpop.f32.mrf.mxu0 }
 0x6ba   :  { %v1795_v23 = vadd.f32 %v1794_v12, %v1760_v21  ;;  %v1977_v21 = vld [vmem:[%s3178_s13 + $0x30] sm:$0xff]  ;;  %v1976_v12 = vld [vmem:[%s3178_s13 + $0x28] sm:$0xff] }
 0x6bc   :  { %v1818_v28 = vadd.f32 %v1812_v22, %v1795_v23  ;;  %v1975_v22 = vld [vmem:[%s3178_s13 + $0x20] sm:$0xff] }
 0x6be   :  { %1826 = vadd.xlane.f32.xlu0 %v1818_v28 }
 0x6c1   :  { %v1797_v30 = vpop.f32.mrf.mxu0 }
 0x6c2   :  { %v1798_v36 = vadd.f32 %v1797_v30, %v1763_v29  ;;  %v1974_v30 = vld [vmem:[%s3178_s13 + $0x18] sm:$0xff] }
 0x6c4   :  { %v1819_v39 = vadd.f32 %v1813_v32, %v1798_v36 }
 0x6c6   :  { %1828 = vadd.xlane.f32.xlu1 %v1819_v39  ;;  %1832 = vadd.xlane.f32.xlu0 %v1821_v43 }
 0x6ce   :  { %1834 = vadd.xlane.f32.xlu1 %v1822_v46 }
 0x703   :  { %v1831_v55 = vpop.xlane.xlu2 %1830 }
 0x704   :  { %v1847_v56 = vmul.f32 %v2962_v54, %v1831_v55 }
 0x706   :  { %v2965_v57 = vsub.f32 %v1820_v34, %v1847_v56  ;;  %v1983_v34 = vld [vmem:[%s3178_s13 + $0x60] sm:$0xff] }
 0x707   :  { %1994 = vmatpush.msra.mxu2 %v1983_v34 }
 0x708   :  { %v1859_v59 = vmul.f32 %v2965_v57, %v2965_v57 }
 0x709   :  { %1995 = vmatpush.msra.mxu2 %v1982_v11 }
 0x70a   :  { %1867 = vadd.xlane.f32.xlu2 %v1859_v59 }
 0x70b   :  { %1996 = vmatpush.msra.mxu2 %v1981_v14 }
 0x70d   :  { %1997 = vmatpush.msra.mxu2 %v1980_v15 }
 0x70f   :  { %1998 = vmatpush.msra.mxu2 %v1979_v16 }
 0x711   :  { %1999 = vmatpush.msra.mxu2 %v1978_v18 }
 0x713   :  { %2000 = vmatpush.msra.mxu2 %v1977_v21 }
 0x715   :  { %2001 = vmatpush.msra.mxu2 %v1976_v12 }
 0x717   :  { %2002 = vmatpush.msra.mxu2 %v1975_v22 }
 0x719   :  { %2003 = vmatpush.msra.mxu2 %v1974_v30 }
 0x72b   :  { %v1837_v52 = vpop.xlane.xlu2 %1836 }
 0x72c   :  { %v1850_v35 = vmul.f32 %v2962_v54, %v1837_v52 }
 0x72e   :  { %v2970_v37 = vsub.f32 %v1823_v20, %v1850_v35 }
 0x730   :  { %v1862_v60 = vmul.f32 %v2970_v37, %v2970_v37 }
 0x731   :  { %v1827_v62 = vpop.xlane.xlu0 %1826 }
 0x732   :  { %v1845_v63 = vmul.f32 %v2962_v54, %v1827_v62  ;;  %1873 = vadd.xlane.f32.xlu2 %v1862_v60 }
 0x734   :  { %v2975_v2 = vsub.f32 %v1818_v28, %v1845_v63 }
 0x736   :  { %v1857_v3 = vmul.f32 %v2975_v2, %v2975_v2 }
 0x738   :  { %1863 = vadd.xlane.f32.xlu0 %v1857_v3 }
 0x739   :  { %v1829_v4 = vpop.xlane.xlu1 %1828  ;;  %v1833_v5 = vpop.xlane.xlu0 %1832 }
 0x73a   :  { %v1846_v51 = vmul.f32 %v2962_v54, %v1829_v4  ;;  %v1848_v26 = vmul.f32 %v2962_v54, %v1833_v5 }
 0x73c   :  { %v2981_v61 = vsub.f32 %v1819_v39, %v1846_v51  ;;  %v2983_v40 = vsub.f32 %v1821_v43, %v1848_v26  ;;  %v1973_v39 = vld [vmem:[%s3178_s13 + $0x10] sm:$0xff] }
 0x73d   :  { %2004 = vmatpush.msra.mxu2 %v1973_v39 }
 0x73e   :  { %v1858_v6 = vmul.f32 %v2981_v61, %v2981_v61  ;;  %v1860_v1 = vmul.f32 %v2983_v40, %v2983_v40 }
 0x73f   :  { %2005 = vmatpush.msra.mxu2 %v1972_v44 }
 0x740   :  { %1865 = vadd.xlane.f32.xlu1 %v1858_v6  ;;  %1869 = vadd.xlane.f32.xlu0 %v1860_v1  ;;  %v3064_v6 = vld [vmem:[%s3176_s11] ss:$0 sm:$0xff] }
 0x741   :  { %v1835_v7 = vpop.xlane.xlu1 %1834  ;;  %2006 = vmatpush.msra.mxu2 %v1971_v31 }
 0x742   :  { %v1849_v19 = vmul.f32 %v2962_v54, %v1835_v7 }
 0x744   :  { %v2990_v47 = vsub.f32 %v1822_v46, %v1849_v19 }
 0x746   :  { %v1861_v8 = vmul.f32 %v2990_v47, %v2990_v47 }
 0x748   :  { %1871 = vadd.xlane.f32.xlu1 %v1861_v8  ;;  %v2237_v8 = vld [vmem:[%s3177_s12] ss:$0 sm:$0xff] }
 0x77d   :  { %v1868_v9 = vpop.xlane.xlu2 %1867 }
 0x77e   :  { %v1877_v13 = vmul.f32 %v1868_v9, %v2962_v54 }
 0x780   :  { %v3016_v27 = vadd.f32 1e-05, %v1877_v13 }
 0x782   :  { %2291 = vrsqrt.f32 %v3016_v27  ;;  %vm1913_vm9 = vweird.f32 %v3016_v27 }
 0x788   :  { %v3035_v23 = vpop.eup %2291 }
 0x789   :  { %v1908_v33 = vmul.f32 %v3035_v23, %v3016_v27  ;;  %vm1914_vm6 = vweird.f32 %v3035_v23 }
 0x78a   :  { %vm1915_vm10 = vmor %vm1913_vm9, %vm1914_vm6 }
 0x78b   :  { %v1909_v46 = vmul.f32 %v3035_v23, %v1908_v33 }
 0x78d   :  { %v1910_v56 = vmul.f32 0.5, %v1909_v46 }
 0x78f   :  { %v1911_v5 = vsub.f32 1.5, %v1910_v56 }
 0x791   :  { %v1912_v9 = vmul.f32 %v3035_v23, %v1911_v5 }
 0x7a5   :  { %v1874_v42 = vpop.xlane.xlu2 %1873 }
 0x7a6   :  { %v1880_v59 = vmul.f32 %v1874_v42, %v2962_v54 }
 0x7a8   :  { %v1886_v51 = vadd.f32 1e-05, %v1880_v59 }
 0x7ab   :  { %v1864_v17 = vpop.xlane.xlu0 %1863 }
 0x7ac   :  { %v1875_v41 = vmul.f32 %v1864_v17, %v2962_v54  ;;  %v1916_v17 = vsel %vm1915_vm10, %v3035_v23, %v1912_v9 }
 0x7ad   :  { %v1949_v21 = vmul.f32 %v1916_v17, %v2965_v57 }
 0x7ae   :  { %v1881_v20 = vadd.f32 1e-05, %v1875_v41 }
 0x7b0   :  { %2293 = vrsqrt.f32 %v1881_v20  ;;  %vm1893_vm3 = vweird.f32 %v1881_v20 }
 0x7b3   :  { %v1866_v25 = vpop.xlane.xlu1 %1865  ;;  %v1870_v28 = vpop.xlane.xlu0 %1869 }
 0x7b4   :  { %v1876_v29 = vmul.f32 %v1866_v25, %v2962_v54  ;;  %v1878_v58 = vmul.f32 %v1870_v28, %v2962_v54 }
 0x7b6   :  { %v2294_v32 = vpop.eup %2293  ;;  %v1882_v36 = vadd.f32 1e-05, %v1876_v29  ;;  %v3044_v38 = vadd.f32 1e-05, %v1878_v58 }
 0x7b7   :  { %v1888_v43 = vmul.f32 %v2294_v32, %v1881_v20  ;;  %vm1894_vm2 = vweird.f32 %v2294_v32 }
 0x7b8   :  { %2295 = vrsqrt.f32 %v1882_v36  ;;  %vm1895_vm4 = vmor %vm1893_vm3, %vm1894_vm2  ;;  %vm1903_vm7 = vweird.f32 %v1882_v36  ;;  %vm1923_vm12 = vweird.f32 %v3044_v38  ;;  %vm1943_vm2 = vweird.f32 %v1886_v51 }
 0x7b9   :  { %v1889_v45 = vmul.f32 %v2294_v32, %v1888_v43  ;;  %2297 = vrsqrt.f32 %v3044_v38 }
 0x7bb   :  { %v1890_v49 = vmul.f32 0.5, %v1889_v45  ;;  %v1872_v50 = vpop.xlane.xlu1 %1871 }
 0x7bc   :  { %v1879_v48 = vmul.f32 %v1872_v50, %v2962_v54 }
 0x7bd   :  { %v1891_v53 = vsub.f32 1.5, %v1890_v49 }
 0x7be   :  { %v2296_v55 = vpop.eup %2295  ;;  %v1885_v52 = vadd.f32 1e-05, %v1879_v48 }
 0x7bf   :  { %v2298_v35 = vpop.eup %2297  ;;  %v1892_v60 = vmul.f32 %v2294_v32, %v1891_v53  ;;  %v1898_v62 = vmul.f32 %v2296_v55, %v1882_v36  ;;  %vm1904_vm5 = vweird.f32 %v2296_v55 }
 0x7c0   :  { %v1918_v63 = vmul.f32 %v2298_v35, %v3044_v38  ;;  %2299 = vrsqrt.f32 %v1885_v52  ;;  %vm1905_vm8 = vmor %vm1903_vm7, %vm1904_vm5  ;;  %vm1924_vm11 = vweird.f32 %v2298_v35  ;;  %vm1933_vm15 = vweird.f32 %v1885_v52 }
 0x7c1   :  { %v1896_v3 = vsel %vm1895_vm4, %v2294_v32, %v1892_v60  ;;  %v1899_v4 = vmul.f32 %v2296_v55, %v1898_v62  ;;  %2301 = vrsqrt.f32 %v1886_v51  ;;  %vm1925_vm13 = vmor %vm1923_vm12, %vm1924_vm11 }
 0x7c2   :  { %v1947_v26 = vmul.f32 %v1896_v3, %v2975_v2  ;;  %v1919_v7 = vmul.f32 %v2298_v35, %v1918_v63 }
 0x7c3   :  { %v1900_v1 = vmul.f32 0.5, %v1899_v4 }
 0x7c4   :  { %v1956_v19 = vmul.f32 %v3064_v6, %v1947_v26  ;;  %v1920_v34 = vmul.f32 0.5, %v1919_v7 }
 0x7c5   :  { %v1901_v24 = vsub.f32 1.5, %v1900_v1 }
 0x7c6   :  { %v2300_v0 = vpop.eup %2299  ;;  %v1965_v2 = vadd.f32 %v2237_v8, %v1956_v19  ;;  %v1921_v15 = vsub.f32 1.5, %v1920_v34 }
 0x7c7   :  { %v1902_v10 = vmul.f32 %v2296_v55, %v1901_v24  ;;  %v1928_v11 = vmul.f32 %v2300_v0, %v1885_v52  ;;  %v2302_v41 = vpop.eup %2301  ;;  %vm1934_vm14 = vweird.f32 %v2300_v0 }
 0x7c8   :  { %2007 = vmatmul.f32.vlgmr.msra.gmra.mxu2 %v1965_v2  ;;  %v1938_v12 = vmul.f32 %v2302_v41, %v1886_v51  ;;  %v1922_v22 = vmul.f32 %v2298_v35, %v1921_v15  ;;  %vm1935_vm0 = vmor %vm1933_vm15, %vm1934_vm14  ;;  %vm1944_vm1 = vweird.f32 %v2302_v41 }
 0x7c9   :  { %v1906_v13 = vsel %vm1905_vm8, %v2296_v55, %v1902_v10  ;;  %v1929_v16 = vmul.f32 %v2300_v0, %v1928_v11  ;;  %vm1945_vm3 = vmor %vm1943_vm2, %vm1944_vm1 }
 0x7ca   :  { %v1948_v14 = vmul.f32 %v1906_v13, %v2981_v61  ;;  %v1958_v61 = vmul.f32 %v3064_v6, %v1949_v21  ;;  %v1939_v27 = vmul.f32 %v2302_v41, %v1938_v12  ;;  %v1926_v29 = vsel %vm1925_vm13, %v2298_v35, %v1922_v22 }
 0x7cb   :  { %v1930_v25 = vmul.f32 0.5, %v1929_v16  ;;  %v1950_v58 = vmul.f32 %v1926_v29, %v2983_v40 }
 0x7cc   :  { %v1957_v18 = vmul.f32 %v3064_v6, %v1948_v14  ;;  %v1967_v23 = vadd.f32 %v2237_v8, %v1958_v61  ;;  %v1940_v30 = vmul.f32 0.5, %v1939_v27 }
 0x7cd   :  { %v1931_v28 = vsub.f32 1.5, %v1930_v25  ;;  %v1959_v57 = vmul.f32 %v3064_v6, %v1950_v58 }
 0x7ce   :  { %v1966_v20 = vadd.f32 %v2237_v8, %v1957_v18  ;;  %v1941_v33 = vsub.f32 1.5, %v1940_v30 }
 0x7cf   :  { %v1932_v32 = vmul.f32 %v2300_v0, %v1931_v28  ;;  %v1968_v38 = vadd.f32 %v2237_v8, %v1959_v57 }
 0x7d0   :  { %2010 = vmatmul.f32.gmra.mxu2 %v1966_v20  ;;  %v1942_v43 = vmul.f32 %v2302_v41, %v1941_v33 }
 0x7d1   :  { %v1936_v36 = vsel %vm1935_vm0, %v2300_v0, %v1932_v32 }
 0x7d2   :  { %v1951_v39 = vmul.f32 %v1936_v36, %v2990_v47  ;;  %v1946_v44 = vsel %vm1945_vm3, %v2302_v41, %v1942_v43  ;;  %v2238_v47 = vld [vmem:[%s3179_s14] ss:$0 sm:$0xff] }
 0x7d3   :  { %v1952_v46 = vmul.f32 %v1946_v44, %v2970_v37 }
 0x7d4   :  { %v1960_v40 = vmul.f32 %v3064_v6, %v1951_v39 }
 0x7d5   :  { %v1961_v31 = vmul.f32 %v3064_v6, %v1952_v46  ;;  %v3120_v46 = vld [vmem:[%s3180_s15] ss:$0 sm:$0xff] }
 0x7d6   :  { %v1969_v45 = vadd.f32 %v2237_v8, %v1960_v40 }
 0x7d7   :  { %v1970_v42 = vadd.f32 %v2237_v8, %v1961_v31 }
 0x7d8   :  { %2013 = vmatmul.f32.gmra.mxu2 %v1967_v23 }
 0x7e0   :  { %2016 = vmatmul.f32.gmra.mxu2 %v1968_v38 }
 0x7e8   :  { %2019 = vmatmul.f32.gmra.mxu2 %v1969_v45 }
 0x7f0   :  { %2022 = vmatmul.f32.gmra.mxu2 %v1970_v42 }
 0x84b   :  { %v2008_v49 = vpop.f32.mrf.mxu2 }
 0x84c   :  { %v2009_v50 = vadd.f32 %v2238_v47, %v2008_v49 }
 0x84e   :  { %v2026_v48 = vadd.f32 %v2009_v50, %v1965_v2 }
 0x850   :  { %2034 = vadd.xlane.f32.xlu0 %v2026_v48 }
 0x853   :  { %v2011_v53 = vpop.f32.mrf.mxu2 }
 0x854   :  { %v2012_v55 = vadd.f32 %v2238_v47, %v2011_v53 }
 0x856   :  { %v2027_v56 = vadd.f32 %v2012_v55, %v1966_v20 }
 0x858   :  { %2036 = vadd.xlane.f32.xlu1 %v2027_v56 }
 0x85b   :  { %v2014_v59 = vpop.f32.mrf.mxu2 }
 0x85c   :  { %v2015_v52 = vadd.f32 %v2238_v47, %v2014_v59 }
 0x85e   :  { %v2028_v37 = vadd.f32 %v2015_v52, %v1967_v23 }
 0x860   :  { %2038 = vadd.xlane.f32.xlu2 %v2028_v37 }
 0x863   :  { %v2017_v35 = vpop.f32.mrf.mxu2 }
 0x864   :  { %v2018_v60 = vadd.f32 %v2238_v47, %v2017_v35 }
 0x866   :  { %v2029_v62 = vadd.f32 %v2018_v60, %v1968_v38 }
 0x868   :  { %2040 = vadd.xlane.f32.xlu0 %v2029_v62 }
 0x86b   :  { %v2020_v63 = vpop.f32.mrf.mxu2 }
 0x86c   :  { %v2021_v3 = vadd.f32 %v2238_v47, %v2020_v63 }
 0x86e   :  { %v2030_v4 = vadd.f32 %v2021_v3, %v1969_v45 }
 0x870   :  { %2042 = vadd.xlane.f32.xlu1 %v2030_v4 }
 0x873   :  { %v2023_v5 = vpop.f32.mrf.mxu2 }
 0x874   :  { %v2024_v51 = vadd.f32 %v2238_v47, %v2023_v5  ;;  %v3125_v47 = vld [vmem:[%s3181_s16] ss:$0 sm:$0xff] }
 0x876   :  { %v2031_v26 = vadd.f32 %v2024_v51, %v1970_v42 }
 0x878   :  { %2044 = vadd.xlane.f32.xlu2 %v2031_v26 }
 0x8c3   :  { %v2035_v6 = vpop.xlane.xlu0 %2034 }
 0x8c4   :  { %v2046_v1 = vmul.f32 %v2035_v6, %v2962_v54 }
 0x8c6   :  { %v2052_v7 = vsub.f32 %v2026_v48, %v2046_v1 }
 0x8c8   :  { %v2058_v19 = vmul.f32 %v2052_v7, %v2052_v7 }
 0x8ca   :  { %2064 = vadd.xlane.f32.xlu0 %v2058_v19 }
 0x8cb   :  { %v2037_v8 = vpop.xlane.xlu1 %2036 }
 0x8cc   :  { %v2047_v24 = vmul.f32 %v2037_v8, %v2962_v54 }
 0x8ce   :  { %v3090_v0 = vsub.f32 %v2027_v56, %v2047_v24 }
 0x8d0   :  { %v2059_v9 = vmul.f32 %v3090_v0, %v3090_v0 }
 0x8d2   :  { %2066 = vadd.xlane.f32.xlu1 %v2059_v9 }
 0x8d3   :  { %v2039_v2 = vpop.xlane.xlu2 %2038 }
 0x8d4   :  { %v2048_v10 = vmul.f32 %v2039_v2, %v2962_v54 }
 0x8d6   :  { %v3095_v34 = vsub.f32 %v2028_v37, %v2048_v10 }
 0x8d8   :  { %v2060_v11 = vmul.f32 %v3095_v34, %v3095_v34 }
 0x8da   :  { %2068 = vadd.xlane.f32.xlu2 %v2060_v11 }
 0x8db   :  { %v2041_v13 = vpop.xlane.xlu0 %2040 }
 0x8dc   :  { %v2049_v14 = vmul.f32 %v2041_v13, %v2962_v54 }
 0x8de   :  { %v3100_v15 = vsub.f32 %v2029_v62, %v2049_v14 }
 0x8e0   :  { %v2061_v16 = vmul.f32 %v3100_v15, %v3100_v15 }
 0x8e2   :  { %2070 = vadd.xlane.f32.xlu0 %v2061_v16 }
 0x8e3   :  { %v2043_v17 = vpop.xlane.xlu1 %2042 }
 0x8e4   :  { %v2050_v41 = vmul.f32 %v2043_v17, %v2962_v54 }
 0x8e6   :  { %v3105_v18 = vsub.f32 %v2030_v4, %v2050_v41 }
 0x8e8   :  { %v2062_v20 = vmul.f32 %v3105_v18, %v3105_v18 }
 0x8ea   :  { %2072 = vadd.xlane.f32.xlu1 %v2062_v20 }
 0x8eb   :  { %v2045_v21 = vpop.xlane.xlu2 %2044 }
 0x8ec   :  { %v2051_v12 = vmul.f32 %v2045_v21, %v2962_v54 }
 0x8ee   :  { %v3110_v22 = vsub.f32 %v2031_v26, %v2051_v12 }
 0x8f0   :  { %v2063_v25 = vmul.f32 %v3110_v22, %v3110_v22 }
 0x8f2   :  { %2074 = vadd.xlane.f32.xlu2 %v2063_v25 }
 0x93d   :  { %v2065_v61 = vpop.xlane.xlu0 %2064 }
 0x93e   :  { %v2076_v27 = vmul.f32 %v2065_v61, %v2962_v54 }
 0x940   :  { %v2082_v28 = vadd.f32 1e-05, %v2076_v27 }
 0x942   :  { %2303 = vrsqrt.f32 %v2082_v28  ;;  %vm2094_vm5 = vweird.f32 %v2082_v28 }
 0x945   :  { %v2067_v29 = vpop.xlane.xlu1 %2066 }
 0x946   :  { %v2077_v23 = vmul.f32 %v2067_v29, %v2962_v54 }
 0x948   :  { %v2304_v58 = vpop.eup %2303  ;;  %v2083_v30 = vadd.f32 1e-05, %v2077_v23 }
 0x949   :  { %v2089_v32 = vmul.f32 %v2304_v58, %v2082_v28  ;;  %vm2095_vm4 = vweird.f32 %v2304_v58 }
 0x94a   :  { %2305 = vrsqrt.f32 %v2083_v30  ;;  %vm2096_vm6 = vmor %vm2094_vm5, %vm2095_vm4  ;;  %vm2104_vm8 = vweird.f32 %v2083_v30 }
 0x94b   :  { %v2090_v57 = vmul.f32 %v2304_v58, %v2089_v32 }
 0x94d   :  { %v2091_v33 = vmul.f32 0.5, %v2090_v57  ;;  %v2069_v36 = vpop.xlane.xlu2 %2068 }
 0x94e   :  { %v2078_v38 = vmul.f32 %v2069_v36, %v2962_v54 }
 0x94f   :  { %v2092_v39 = vsub.f32 1.5, %v2091_v33 }
 0x950   :  { %v2306_v43 = vpop.eup %2305  ;;  %v2084_v40 = vadd.f32 1e-05, %v2078_v38 }
 0x951   :  { %v2093_v44 = vmul.f32 %v2304_v58, %v2092_v39  ;;  %v2099_v45 = vmul.f32 %v2306_v43, %v2083_v30  ;;  %vm2105_vm7 = vweird.f32 %v2306_v43 }
 0x952   :  { %2307 = vrsqrt.f32 %v2084_v40  ;;  %vm2106_vm9 = vmor %vm2104_vm8, %vm2105_vm7  ;;  %vm2114_vm11 = vweird.f32 %v2084_v40 }
 0x953   :  { %v2097_v31 = vsel %vm2096_vm6, %v2304_v58, %v2093_v44  ;;  %v2100_v42 = vmul.f32 %v2306_v43, %v2099_v45 }
 0x954   :  { %v2148_v49 = vmul.f32 %v2097_v31, %v2052_v7 }
 0x955   :  { %v2101_v50 = vmul.f32 0.5, %v2100_v42  ;;  %v2071_v48 = vpop.xlane.xlu0 %2070 }
 0x956   :  { %v2157_v53 = vmul.f32 %v3120_v46, %v2148_v49  ;;  %v2079_v55 = vmul.f32 %v2071_v48, %v2962_v54 }
 0x957   :  { %v2102_v56 = vsub.f32 1.5, %v2101_v50 }
 0x958   :  { %v2308_v59 = vpop.eup %2307  ;;  %v2166_v52 = vadd.f32 %v3125_v47, %v2157_v53  ;;  %v2085_v37 = vadd.f32 1e-05, %v2079_v55 }
 0x959   :  { %v2103_v35 = vmul.f32 %v2306_v43, %v2102_v56  ;;  %v2109_v60 = vmul.f32 %v2308_v59, %v2084_v40  ;;  %vm2115_vm10 = vweird.f32 %v2308_v59 }
 0x95a   :  { %2172 = vst [vmem:[%s3182_s17] sm:$0xff] %v2166_v52  ;;  %2309 = vrsqrt.f32 %v2085_v37  ;;  %vm2116_vm12 = vmor %vm2114_vm11, %vm2115_vm10  ;;  %vm2124_vm14 = vweird.f32 %v2085_v37 }
 0x95b   :  { %v2107_v62 = vsel %vm2106_vm9, %v2306_v43, %v2103_v35  ;;  %v2110_v63 = vmul.f32 %v2308_v59, %v2109_v60 }
 0x95c   :  { %v2149_v3 = vmul.f32 %v2107_v62, %v3090_v0 }
 0x95d   :  { %v2111_v4 = vmul.f32 0.5, %v2110_v63  ;;  %v2073_v5 = vpop.xlane.xlu1 %2072 }
 0x95e   :  { %v2158_v51 = vmul.f32 %v3120_v46, %v2149_v3  ;;  %v2080_v26 = vmul.f32 %v2073_v5, %v2962_v54 }
 0x95f   :  { %v2112_v6 = vsub.f32 1.5, %v2111_v4 }
 0x960   :  { %v2310_v1 = vpop.eup %2309  ;;  %v2167_v7 = vadd.f32 %v3125_v47, %v2158_v51  ;;  %v2086_v19 = vadd.f32 1e-05, %v2080_v26 }
 0x961   :  { %v2113_v8 = vmul.f32 %v2308_v59, %v2112_v6  ;;  %v2119_v24 = vmul.f32 %v2310_v1, %v2085_v37  ;;  %vm2125_vm13 = vweird.f32 %v2310_v1 }
 0x962   :  { %2173 = vst [vmem:[%s3182_s17 + $0x8] sm:$0xff] %v2167_v7  ;;  %2311 = vrsqrt.f32 %v2086_v19  ;;  %vm2126_vm15 = vmor %vm2124_vm14, %vm2125_vm13  ;;  %vm2134_vm1 = vweird.f32 %v2086_v19 }
 0x963   :  { %v2117_v0 = vsel %vm2116_vm12, %v2308_v59, %v2113_v8  ;;  %v2120_v9 = vmul.f32 %v2310_v1, %v2119_v24 }
 0x964   :  { %v2150_v2 = vmul.f32 %v2117_v0, %v3095_v34 }
 0x965   :  { %v2121_v10 = vmul.f32 0.5, %v2120_v9  ;;  %v2075_v11 = vpop.xlane.xlu2 %2074 }
 0x966   :  { %v2159_v13 = vmul.f32 %v3120_v46, %v2150_v2  ;;  %v2081_v14 = vmul.f32 %v2075_v11, %v2962_v54 }
 0x967   :  { %v2122_v16 = vsub.f32 1.5, %v2121_v10 }
 0x968   :  { %v2312_v17 = vpop.eup %2311  ;;  %v2168_v41 = vadd.f32 %v3125_v47, %v2159_v13  ;;  %v2087_v20 = vadd.f32 1e-05, %v2081_v14 }
 0x969   :  { %v2123_v21 = vmul.f32 %v2310_v1, %v2122_v16  ;;  %v2129_v12 = vmul.f32 %v2312_v17, %v2086_v19  ;;  %vm2135_vm0 = vweird.f32 %v2312_v17 }
 0x96a   :  { %2174 = vst [vmem:[%s3182_s17 + $0x10] sm:$0xff] %v2168_v41  ;;  %2313 = vrsqrt.f32 %v2087_v20  ;;  %vm2136_vm2 = vmor %vm2134_vm1, %vm2135_vm0  ;;  %vm2144_vm4 = vweird.f32 %v2087_v20 }
 0x96b   :  { %v2127_v34 = vsel %vm2126_vm15, %v2310_v1, %v2123_v21  ;;  %v2130_v25 = vmul.f32 %v2312_v17, %v2129_v12 }
 0x96c   :  { %v2151_v61 = vmul.f32 %v2127_v34, %v3100_v15 }
 0x96d   :  { %v2131_v54 = vmul.f32 0.5, %v2130_v25 }
 0x96e   :  { %v2160_v27 = vmul.f32 %v3120_v46, %v2151_v61 }
 0x96f   :  { %v2132_v28 = vsub.f32 1.5, %v2131_v54 }
 0x970   :  { %v2314_v29 = vpop.eup %2313  ;;  %v2169_v23 = vadd.f32 %v3125_v47, %v2160_v27 }
 0x971   :  { %v2133_v58 = vmul.f32 %v2312_v17, %v2132_v28  ;;  %v2139_v30 = vmul.f32 %v2314_v29, %v2087_v20  ;;  %vm2145_vm3 = vweird.f32 %v2314_v29 }
 0x972   :  { %2175 = vst [vmem:[%s3182_s17 + $0x18] sm:$0xff] %v2169_v23  ;;  %vm2146_vm5 = vmor %vm2144_vm4, %vm2145_vm3 }
 0x973   :  { %v2137_v32 = vsel %vm2136_vm2, %v2312_v17, %v2133_v58  ;;  %v2140_v57 = vmul.f32 %v2314_v29, %v2139_v30 }
 0x974   :  { %v2152_v15 = vmul.f32 %v2137_v32, %v3105_v18 }
 0x975   :  { %v2141_v33 = vmul.f32 0.5, %v2140_v57 }
 0x976   :  { %v2161_v36 = vmul.f32 %v3120_v46, %v2152_v15 }
 0x977   :  { %v2142_v38 = vsub.f32 1.5, %v2141_v33 }
 0x978   :  { %v2170_v39 = vadd.f32 %v3125_v47, %v2161_v36 }
 0x979   :  { %v2143_v43 = vmul.f32 %v2314_v29, %v2142_v38 }
 0x97a   :  { %2176 = vst [vmem:[%s3182_s17 + $0x20] sm:$0xff] %v2170_v39 }
 0x97b   :  { %v2147_v40 = vsel %vm2146_vm5, %v2314_v29, %v2143_v43 }
 0x97c   :  { %v2153_v44 = vmul.f32 %v2147_v40, %v3110_v22 }
 0x97e   :  { %v2162_v45 = vmul.f32 %v3120_v46, %v2153_v44 }
 0x980   :  { %v2171_v18 = vadd.f32 %v3125_v47, %v2162_v45 }
 0x982   :  { %2177 = vst [vmem:[%s3182_s17 + $0x28] sm:$0xff] %v2171_v18 }
 0x983   :  { %2182 = vsyncpa [#allocation7], 1 }
 0x984   :  { %2183 = vsyncpa [#allocation9], 1 }

</bundles_post_ra>
